<compile_context>
chip_gen: v6e
topology: v6e:2x2x1
jax: 0.10.0
libtpu: 0.0.40
codegen_flags: <defaults>
</compile_context>

<pallas_src>
import jax
import jax.numpy as jnp
from jax import lax
from jax.experimental import pallas as pl
from jax.experimental.pallas import tpu as pltpu

_SQRT_HALF = 0.7071067811865476


def _erf_approx(x):
    # Abramowitz & Stegun 7.1.26 (|abs err| <= 1.5e-7).  The divide is replaced by an
    # EUP approx reciprocal + one Newton step so the polynomial is the only VALU work.
    a1, a2, a3, a4, a5 = 0.254829592, -0.284496736, 1.421413741, -1.453152027, 1.061405429
    p = 0.3275911
    sgn = jnp.where(x >= 0.0, 1.0, -1.0)
    ax = jnp.abs(x)
    d = 1.0 + p * ax
    t = pl.reciprocal(d, approx=True)
    t = t * (2.0 - d * t)                      # one Newton step -> ~f32 accuracy
    poly = t * (a1 + t * (a2 + t * (a3 + t * (a4 + t * a5))))
    return sgn * (1.0 - poly * jnp.exp(-ax * ax))


def _gelu(x):
    # nn.GELU() default = exact (erf-based) GELU.
    return 0.5 * x * (1.0 + _erf_approx(x * _SQRT_HALF))


# ---------------------------------------------------------------------------
# Fused kernel: LN(channels_first) + fc1 + GELU + depthwise3x3 + GELU + residual + fc2
# One image per grid step; all intermediates stay in VMEM.
# ---------------------------------------------------------------------------
def mlp_fused_kernel(x_ref, g_ref, b_ref, w1_ref, b1_ref, wdw_ref, bdw_ref,
                     w2_ref, b2_ref, o_ref, pad_ref):
    Hp, Wp, K = pad_ref.shape
    H, W = Hp - 2, Wp - 2
    HW = H * W

    # ---- Stage 1: LayerNorm over channels (channels-first, HW on lanes) -----------
    x = x_ref[0]                                       # (C, HW)
    u = jnp.mean(x, axis=0, keepdims=True)             # (1, HW)
    xc = x - u
    s = jnp.mean(xc * xc, axis=0, keepdims=True)
    xn = xc * lax.rsqrt(s + 1e-6)                      # matches torch: /sqrt(s + eps)
    xn = g_ref[...] * xn + b_ref[...]                  # (C, 1) broadcasts

    # fc1 (1x1 conv) on the MXU with bf16 inputs, f32 accumulate, then GELU.
    xn_t = xn.T                                        # single small (C,HW)->(HW,C) transpose
    h = jnp.dot(xn_t.astype(jnp.bfloat16), w1_ref[...],
                preferred_element_type=jnp.float32) + b1_ref[...]
    h = _gelu(h)                                       # (HW, K) f32 — VMEM only

    # ---- Stage 2: depthwise 3x3 (pad=1) via ONE zero-padded VMEM scratch ----------
    h3 = h.reshape(H, W, K)
    zrow = jnp.zeros((1, Wp, K), jnp.float32)
    zcol = jnp.zeros((H, 1, K), jnp.float32)
    # Halo rows re-zeroed every step (see header: hoisting them under program_id==0 is
    # unsafe when the batch axis is core-partitioned; cost is ~3% of the interior store).
    pad_ref[0:1, :, :] = zrow                          # top halo row
    pad_ref[H + 1:H + 2, :, :] = zrow                  # bottom halo row
    # Interior rows + left/right halo cols in one sublane-aligned store.
    pad_ref[1:H + 1, :, :] = jnp.concatenate([zcol, h3, zcol], axis=1)

    w9 = wdw_ref[...]                                  # (9, K)
    acc = jnp.zeros((H, W, K), jnp.float32)
    for kw in range(3):                                # kw outer: 2 sublane realignments total
        col = pad_ref[:, kw:kw + W, :]                 # (Hp, W, K)
        for kh in range(3):                            # leading-dim slices are always aligned
            tap = w9[kh * 3 + kw:kh * 3 + kw + 1].reshape(1, 1, K)
            acc = acc + col[kh:kh + H] * tap

    y = h3 + _gelu(acc + bdw_ref[...].reshape(1, 1, K))   # residual: x + act(pos(x))

    # ---- Stage 3: fc2 (1x1 conv, bf16 MXU); write back channels-first, lane-dense ----
    z = jnp.dot(y.reshape(HW, K).astype(jnp.bfloat16), w2_ref[...],
                preferred_element_type=jnp.float32) + b2_ref[...]   # (HW, C)
    o_ref[0] = z.T.astype(o_ref.dtype)                 # (C, HW) = flattened NCHW block


def _vmem_limit_bytes(C, H, W, K):
    """Per-call VMEM budget: estimate the working set and cap it at 75% of the actual
    device VMEM (leaves compiler headroom; ~48 MiB on v7x, ~96 MiB on v5e/v6e)."""
    f32, bf16 = 4, 2
    HW = H * W
    Hp, Wp = H + 2, W + 2
    io = 2 * 2 * C * HW * f32                                  # x + out blocks, double-buffered
    wts = (3 * C + 3 * K + 9 * K) * f32 + 2 * C * K * bf16     # consts (single-buffered)
    pad = Hp * Wp * K * f32                                    # depthwise padded scratch
    live = f32 * (6 * HW * K + 4 * HW * C)                     # h/acc/col/y + LN/z temporaries
    est = 2 * (io + wts + pad + live)                          # 2x headroom for compiler temps
    try:
        phys = int(pltpu.get_tpu_info().vmem_capacity_bytes)
    except Exception:
        phys = 64 * 1024 * 1024                                # conservative (v7x per-core)
    cap = (phys * 3) // 4
    return int(min(max(est, 16 * 1024 * 1024), cap))


def _const_spec(shape, single_buffer):
    """BlockSpec for a parameter whose block never changes across grid steps."""
    index_map = lambda b: (0,) * len(shape)
    if single_buffer and hasattr(pl, "Buffered"):
        return pl.BlockSpec(shape, index_map, pipeline_mode=pl.Buffered(1))
    return pl.BlockSpec(shape, index_map)


# ---------------------------------------------------------------------------
# Wrapper: only free row-major reshapes (and free param reshapes/casts) around one call.
# ---------------------------------------------------------------------------
def mlp_forward(x_nchw, params, *, single_buffer_consts=True):
    gamma, beta, w1, b1, wdw, bdw, w2, b2 = params
    B, C, H, W = x_nchw.shape
    K = w1.shape[1]
    HW = H * W

    x3 = x_nchw.reshape(B, C, HW)                      # free; keeps NCHW, lane-dense last dim
    const = lambda shape: _const_spec(shape, single_buffer_consts)

    out3 = pl.pallas_call(
        mlp_fused_kernel,
        out_shape=jax.ShapeDtypeStruct((B, C, HW), jnp.float32),
        grid=(B,),
        in_specs=[
            pl.BlockSpec((1, C, HW), lambda b: (b, 0, 0)),   # x (one image per step)
            const((C, 1)),                                   # LN gamma (channels-first)
            const((C, 1)),                                   # LN beta
            const((C, K)),                                   # fc1 weight (bf16)
            const((1, K)),                                   # fc1 bias
            const((9, K)),                                   # depthwise 3x3 weight (9, K)
            const((1, K)),                                   # depthwise bias
            const((K, C)),                                   # fc2 weight (bf16)
            const((1, C)),                                   # fc2 bias
        ],
        out_specs=pl.BlockSpec((1, C, HW), lambda b: (b, 0, 0)),
        scratch_shapes=[pltpu.VMEM((H + 2, W + 2, K), jnp.float32)],
        compiler_params=pltpu.CompilerParams(
            dimension_semantics=("parallel",),               # shards batch across v7x TCs
            vmem_limit_bytes=_vmem_limit_bytes(C, H, W, K)),
    )(x3,
      gamma.reshape(C, 1), beta.reshape(C, 1),
      w1.astype(jnp.bfloat16), b1.reshape(1, K),
      wdw.reshape(9, K), bdw.reshape(1, K),
      w2.astype(jnp.bfloat16), b2.reshape(1, C))

    return out3.reshape(B, C, H, W)                    # free reshape back to NCHW


# ---------------------------------------------------------------------------
# Deterministic parameter init (shapes from MLP.__init__; synthetic values)
# ---------------------------------------------------------------------------
def init_params(key, dim, mlp_ratio=4):
    K = dim * mlp_ratio
    k1, k2, k3, k4, k5, k6 = jax.random.split(key, 6)
    gamma = jnp.ones((dim,), jnp.float32)               # LayerNorm weight
    beta = jnp.zeros((dim,), jnp.float32)               # LayerNorm bias
    w1 = jax.random.normal(k1, (dim, K), jnp.float32) * 0.2    # fc1 (C_in, C_out)
    b1 = jax.random.normal(k2, (K,), jnp.float32) * 0.05
    wdw = jax.random.normal(k3, (3, 3, K), jnp.float32) * 0.2  # depthwise 3x3, channel-last
    bdw = jax.random.normal(k4, (K,), jnp.float32) * 0.05
    w2 = jax.random.normal(k5, (K, dim), jnp.float32) * 0.2    # fc2 (C_in, C_out)
    b2 = jax.random.normal(k6, (dim,), jnp.float32) * 0.05
    return (gamma, beta, w1, b1, wdw, bdw, w2, b2)


# Pure-JAX reference of the PyTorch forward (verification only; f32, exact GELU).
def mlp_reference(x, params):
    gamma, beta, w1, b1, wdw, bdw, w2, b2 = params
    u = jnp.mean(x, axis=1, keepdims=True)
    s = jnp.mean((x - u) ** 2, axis=1, keepdims=True)
    xn = (x - u) / jnp.sqrt(s + 1e-6)
    xn = gamma[None, :, None, None] * xn + beta[None, :, None, None]
    h = jnp.einsum('bchw,ck->bkhw', xn, w1) + b1[None, :, None, None]
    h = jax.nn.gelu(h, approximate=False)
    K = h.shape[1]
    conv = lax.conv_general_dilated(
        jnp.transpose(h, (0, 2, 3, 1)), wdw.reshape(3, 3, 1, K),
        window_strides=(1, 1), padding='SAME',
        dimension_numbers=('NHWC', 'HWIO', 'NHWC'),
        feature_group_count=K) + bdw
    h = h + jax.nn.gelu(jnp.transpose(conv, (0, 3, 1, 2)), approximate=False)
    return jnp.einsum('bkhw,kc->bchw', h, w2) + b2[None, :, None, None]


if __name__ == "__main__":
    B, dim, H, W = 2, 4, 16, 16                         # x: (2, 4, 16, 16) NCHW
    key = jax.random.PRNGKey(0)
    kx, kp = jax.random.split(key)
    x = jax.random.normal(kx, (B, dim, H, W), jnp.float32)
    params = init_params(kp, dim, mlp_ratio=4)

    fwd = jax.jit(mlp_forward, static_argnames=("single_buffer_consts",))
    try:
        out = jax.block_until_ready(fwd(x, params, single_buffer_consts=True))
    except Exception:
        # pl.Buffered(1) single-buffering of constant blocks is a newer Pallas feature;
        # fall back to default double-buffering if this JAX build rejects it.
        out = jax.block_until_ready(fwd(x, params, single_buffer_consts=False))

    ref = jax.block_until_ready(mlp_reference(x, params))
    assert out.shape == (B, dim, H, W)
    max_err = float(jnp.max(jnp.abs(out - ref)))
    # Tolerance relaxed vs the f32 version because both 1x1-conv matmuls now feed the
    # MXU bf16 operands (f32 accumulate).
    assert jnp.allclose(out, ref, rtol=2e-2, atol=2e-2), max_err

    print("KERNEL_OK")
</pallas_src>

<mosaic_0001>
module attributes {stable_mosaic.version = 11 : i64} {
  func.func @mlp_fused_kernel(%arg0: i32, %arg1: memref<1x4x256xf32, #tpu.memory_space<vmem>>, %arg2: memref<4x1xf32, #tpu.memory_space<vmem>>, %arg3: memref<4x1xf32, #tpu.memory_space<vmem>>, %arg4: memref<4x16xbf16, #tpu.memory_space<vmem>>, %arg5: memref<1x16xf32, #tpu.memory_space<vmem>>, %arg6: memref<9x16xf32, #tpu.memory_space<vmem>>, %arg7: memref<1x16xf32, #tpu.memory_space<vmem>>, %arg8: memref<16x4xbf16, #tpu.memory_space<vmem>>, %arg9: memref<1x4xf32, #tpu.memory_space<vmem>>, %arg10: memref<1x4x256xf32, #tpu.memory_space<vmem>>, %arg11: memref<18x18x16xf32, #tpu.memory_space<vmem>>) attributes {dimension_semantics = [#tpu.dimension_semantics<parallel>], iteration_bounds = array<i64: 2>, scalar_prefetch = 0 : i64, scratch_operands = 1 : i64, tpu.core_type = #tpu.core_type<tc>, window_params = [{transform_indices = @transform_0, window_bounds = array<i64: 1, 4, 256>}, {pipeline_mode = #tpu.pipeline_mode<synchronous>, transform_indices = @transform_1, window_bounds = array<i64: 4, 1>}, {pipeline_mode = #tpu.pipeline_mode<synchronous>, transform_indices = @transform_2, window_bounds = array<i64: 4, 1>}, {pipeline_mode = #tpu.pipeline_mode<synchronous>, transform_indices = @transform_3, window_bounds = array<i64: 4, 16>}, {pipeline_mode = #tpu.pipeline_mode<synchronous>, transform_indices = @transform_4, window_bounds = array<i64: 1, 16>}, {pipeline_mode = #tpu.pipeline_mode<synchronous>, transform_indices = @transform_5, window_bounds = array<i64: 9, 16>}, {pipeline_mode = #tpu.pipeline_mode<synchronous>, transform_indices = @transform_6, window_bounds = array<i64: 1, 16>}, {pipeline_mode = #tpu.pipeline_mode<synchronous>, transform_indices = @transform_7, window_bounds = array<i64: 16, 4>}, {pipeline_mode = #tpu.pipeline_mode<synchronous>, transform_indices = @transform_8, window_bounds = array<i64: 1, 4>}, {transform_indices = @transform_9, window_bounds = array<i64: 1, 4, 256>}]} {
    %c0 = arith.constant 0 : index
    %c0_0 = arith.constant 0 : index
    %c0_1 = arith.constant 0 : index
    %0 = vector.load %arg1[%c0, %c0_0, %c0_1] : memref<1x4x256xf32, #tpu.memory_space<vmem>>, vector<1x4x256xf32>
    %1 = vector.shape_cast %0 : vector<1x4x256xf32> to vector<4x256xf32>
    %cst = arith.constant dense<0.000000e+00> : vector<256xf32>
    %2 = vector.multi_reduction <add>, %1, %cst [0] : vector<4x256xf32> to vector<256xf32>
    %3 = vector.shape_cast %2 : vector<256xf32> to vector<1x256xf32>
    %cst_2 = arith.constant 4.000000e+00 : f32
    %4 = vector.broadcast %cst_2 : f32 to vector<1x256xf32>
    %5 = arith.divf %3, %4 : vector<1x256xf32>
    %6 = vector.broadcast %5 : vector<1x256xf32> to vector<4x256xf32>
    %7 = arith.subf %1, %6 : vector<4x256xf32>
    %8 = arith.mulf %7, %7 : vector<4x256xf32>
    %cst_3 = arith.constant dense<0.000000e+00> : vector<256xf32>
    %9 = vector.multi_reduction <add>, %8, %cst_3 [0] : vector<4x256xf32> to vector<256xf32>
    %10 = vector.shape_cast %9 : vector<256xf32> to vector<1x256xf32>
    %cst_4 = arith.constant 4.000000e+00 : f32
    %11 = vector.broadcast %cst_4 : f32 to vector<1x256xf32>
    %12 = arith.divf %10, %11 : vector<1x256xf32>
    %cst_5 = arith.constant 9.99999997E-7 : f32
    %13 = vector.broadcast %cst_5 : f32 to vector<1x256xf32>
    %14 = arith.addf %12, %13 : vector<1x256xf32>
    %15 = math.rsqrt %14 : vector<1x256xf32>
    %16 = vector.broadcast %15 : vector<1x256xf32> to vector<4x256xf32>
    %17 = arith.mulf %7, %16 : vector<4x256xf32>
    %c0_6 = arith.constant 0 : index
    %c0_7 = arith.constant 0 : index
    %18 = vector.load %arg2[%c0_6, %c0_7] : memref<4x1xf32, #tpu.memory_space<vmem>>, vector<4x1xf32>
    %19 = vector.broadcast %18 : vector<4x1xf32> to vector<4x256xf32>
    %20 = arith.mulf %19, %17 : vector<4x256xf32>
    %c0_8 = arith.constant 0 : index
    %c0_9 = arith.constant 0 : index
    %21 = vector.load %arg3[%c0_8, %c0_9] : memref<4x1xf32, #tpu.memory_space<vmem>>, vector<4x1xf32>
    %22 = vector.broadcast %21 : vector<4x1xf32> to vector<4x256xf32>
    %23 = arith.addf %20, %22 : vector<4x256xf32>
    %24 = tpu.transpose %23, [1, 0] : vector<4x256xf32> -> vector<256x4xf32>
    %25 = arith.truncf %24 : vector<256x4xf32> to vector<256x4xbf16>
    %c0_10 = arith.constant 0 : index
    %c0_11 = arith.constant 0 : index
    %26 = vector.load %arg4[%c0_10, %c0_11] : memref<4x16xbf16, #tpu.memory_space<vmem>>, vector<4x16xbf16>
    %cst_12 = arith.constant dense<0.000000e+00> : vector<256x16xf32>
    %27 = tpu.matmul %25, %26, %cst_12 {dimension_numbers = #tpu.dot_dimension_numbers<[1], [0], [0], [1], [0, 0, 1, 1], [], []>} : vector<256x4xbf16>, vector<4x16xbf16>, vector<256x16xf32> -> vector<256x16xf32>
    %c0_13 = arith.constant 0 : index
    %c0_14 = arith.constant 0 : index
    %28 = vector.load %arg5[%c0_13, %c0_14] : memref<1x16xf32, #tpu.memory_space<vmem>>, vector<1x16xf32>
    %29 = vector.broadcast %28 : vector<1x16xf32> to vector<256x16xf32>
    %30 = arith.addf %27, %29 : vector<256x16xf32>
    %cst_15 = arith.constant 5.000000e-01 : f32
    %31 = vector.broadcast %cst_15 : f32 to vector<256x16xf32>
    %32 = arith.mulf %31, %30 : vector<256x16xf32>
    %cst_16 = arith.constant 0.707106769 : f32
    %33 = vector.broadcast %cst_16 : f32 to vector<256x16xf32>
    %34 = arith.mulf %30, %33 : vector<256x16xf32>
    %cst_17 = arith.constant 0.000000e+00 : f32
    %35 = vector.broadcast %cst_17 : f32 to vector<256x16xf32>
    %36 = arith.cmpf oge, %34, %35 : vector<256x16xf32>
    %cst_18 = arith.constant 1.000000e+00 : f32
    %cst_19 = arith.constant -1.000000e+00 : f32
    %37 = vector.broadcast %cst_18 : f32 to vector<256x16xf32>
    %38 = vector.broadcast %cst_19 : f32 to vector<256x16xf32>
    %39 = arith.select %36, %37, %38 : vector<256x16xi1>, vector<256x16xf32>
    %40 = math.absf %34 : vector<256x16xf32>
    %cst_20 = arith.constant 0.327591091 : f32
    %41 = vector.broadcast %cst_20 : f32 to vector<256x16xf32>
    %42 = arith.mulf %41, %40 : vector<256x16xf32>
    %cst_21 = arith.constant 1.000000e+00 : f32
    %43 = vector.broadcast %cst_21 : f32 to vector<256x16xf32>
    %44 = arith.addf %43, %42 : vector<256x16xf32>
    %45 = tpu.reciprocal %44 {approx = true} : vector<256x16xf32> -> vector<256x16xf32>
    %46 = arith.mulf %44, %45 : vector<256x16xf32>
    %cst_22 = arith.constant 2.000000e+00 : f32
    %47 = vector.broadcast %cst_22 : f32 to vector<256x16xf32>
    %48 = arith.subf %47, %46 : vector<256x16xf32>
    %49 = arith.mulf %45, %48 : vector<256x16xf32>
    %cst_23 = arith.constant 1.06140542 : f32
    %50 = vector.broadcast %cst_23 : f32 to vector<256x16xf32>
    %51 = arith.mulf %49, %50 : vector<256x16xf32>
    %cst_24 = arith.constant -1.45315206 : f32
    %52 = vector.broadcast %cst_24 : f32 to vector<256x16xf32>
    %53 = arith.addf %52, %51 : vector<256x16xf32>
    %54 = arith.mulf %49, %53 : vector<256x16xf32>
    %cst_25 = arith.constant 1.42141378 : f32
    %55 = vector.broadcast %cst_25 : f32 to vector<256x16xf32>
    %56 = arith.addf %55, %54 : vector<256x16xf32>
    %57 = arith.mulf %49, %56 : vector<256x16xf32>
    %cst_26 = arith.constant -0.284496725 : f32
    %58 = vector.broadcast %cst_26 : f32 to vector<256x16xf32>
    %59 = arith.addf %58, %57 : vector<256x16xf32>
    %60 = arith.mulf %49, %59 : vector<256x16xf32>
    %cst_27 = arith.constant 0.254829586 : f32
    %61 = vector.broadcast %cst_27 : f32 to vector<256x16xf32>
    %62 = arith.addf %61, %60 : vector<256x16xf32>
    %63 = arith.mulf %49, %62 : vector<256x16xf32>
    %cst_28 = arith.constant 0.000000e+00 : f32
    %64 = vector.broadcast %cst_28 : f32 to vector<256x16xf32>
    %65 = arith.subf %64, %40 : vector<256x16xf32>
    %66 = arith.mulf %65, %40 : vector<256x16xf32>
    %67 = math.exp %66 : vector<256x16xf32>
    %68 = arith.mulf %63, %67 : vector<256x16xf32>
    %cst_29 = arith.constant 1.000000e+00 : f32
    %69 = vector.broadcast %cst_29 : f32 to vector<256x16xf32>
    %70 = arith.subf %69, %68 : vector<256x16xf32>
    %71 = arith.mulf %39, %70 : vector<256x16xf32>
    %cst_30 = arith.constant 1.000000e+00 : f32
    %72 = vector.broadcast %cst_30 : f32 to vector<256x16xf32>
    %73 = arith.addf %72, %71 : vector<256x16xf32>
    %74 = arith.mulf %32, %73 : vector<256x16xf32>
    %75 = vector.shape_cast %74 : vector<256x16xf32> to vector<16x16x16xf32>
    %cst_31 = arith.constant 0.000000e+00 : f32
    %76 = vector.broadcast %cst_31 : f32 to vector<1x18x16xf32>
    %cst_32 = arith.constant 0.000000e+00 : f32
    %77 = vector.broadcast %cst_32 : f32 to vector<16x1x16xf32>
    %c0_33 = arith.constant 0 : index
    %c0_34 = arith.constant 0 : index
    %c0_35 = arith.constant 0 : index
    %78 = vector.load %arg11[%c0_33, %c0_34, %c0_35] : memref<18x18x16xf32, #tpu.memory_space<vmem>>, vector<1x18x16xf32>
    tpu.vector_store %arg11[%c0_33, %c0_34, %c0_35], %76 {strides = array<i32>} : memref<18x18x16xf32, #tpu.memory_space<vmem>>, vector<1x18x16xf32>,
    %c17 = arith.constant 17 : index
    %c0_36 = arith.constant 0 : index
    %c0_37 = arith.constant 0 : index
    %79 = vector.load %arg11[%c17, %c0_36, %c0_37] : memref<18x18x16xf32, #tpu.memory_space<vmem>>, vector<1x18x16xf32>
    tpu.vector_store %arg11[%c17, %c0_36, %c0_37], %76 {strides = array<i32>} : memref<18x18x16xf32, #tpu.memory_space<vmem>>, vector<1x18x16xf32>,
    %80 = tpu.concatenate %77, %75, %77 in 1 : vector<16x1x16xf32>, vector<16x16x16xf32>, vector<16x1x16xf32> -> vector<16x18x16xf32>
    %c1 = arith.constant 1 : index
    %c0_38 = arith.constant 0 : index
    %c0_39 = arith.constant 0 : index
    %81 = vector.load %arg11[%c1, %c0_38, %c0_39] : memref<18x18x16xf32, #tpu.memory_space<vmem>>, vector<16x18x16xf32>
    tpu.vector_store %arg11[%c1, %c0_38, %c0_39], %80 {strides = array<i32>} : memref<18x18x16xf32, #tpu.memory_space<vmem>>, vector<16x18x16xf32>,
    %c0_40 = arith.constant 0 : index
    %c0_41 = arith.constant 0 : index
    %82 = vector.load %arg6[%c0_40, %c0_41] : memref<9x16xf32, #tpu.memory_space<vmem>>, vector<9x16xf32>
    %cst_42 = arith.constant 0.000000e+00 : f32
    %83 = vector.broadcast %cst_42 : f32 to vector<16x16x16xf32>
    %c0_43 = arith.constant 0 : index
    %c0_44 = arith.constant 0 : index
    %c0_45 = arith.constant 0 : index
    %84 = vector.load %arg11[%c0_43, %c0_44, %c0_45] : memref<18x18x16xf32, #tpu.memory_space<vmem>>, vector<18x16x16xf32>
    %85 = vector.extract_strided_slice %82 {offsets = [0, 0], sizes = [1, 16], strides = [1, 1]} : vector<9x16xf32> to vector<1x16xf32>
    %86 = vector.shape_cast %85 : vector<1x16xf32> to vector<1x1x16xf32>
    %87 = vector.extract_strided_slice %84 {offsets = [0, 0, 0], sizes = [16, 16, 16], strides = [1, 1, 1]} : vector<18x16x16xf32> to vector<16x16x16xf32>
    %88 = vector.broadcast %86 : vector<1x1x16xf32> to vector<16x16x16xf32>
    %89 = arith.mulf %87, %88 : vector<16x16x16xf32>
    %90 = arith.addf %83, %89 : vector<16x16x16xf32>
    %91 = vector.extract_strided_slice %82 {offsets = [3, 0], sizes = [1, 16], strides = [1, 1]} : vector<9x16xf32> to vector<1x16xf32>
    %92 = vector.shape_cast %91 : vector<1x16xf32> to vector<1x1x16xf32>
    %93 = vector.extract_strided_slice %84 {offsets = [1, 0, 0], sizes = [16, 16, 16], strides = [1, 1, 1]} : vector<18x16x16xf32> to vector<16x16x16xf32>
    %94 = vector.broadcast %92 : vector<1x1x16xf32> to vector<16x16x16xf32>
    %95 = arith.mulf %93, %94 : vector<16x16x16xf32>
    %96 = arith.addf %90, %95 : vector<16x16x16xf32>
    %97 = vector.extract_strided_slice %82 {offsets = [6, 0], sizes = [1, 16], strides = [1, 1]} : vector<9x16xf32> to vector<1x16xf32>
    %98 = vector.shape_cast %97 : vector<1x16xf32> to vector<1x1x16xf32>
    %99 = vector.extract_strided_slice %84 {offsets = [2, 0, 0], sizes = [16, 16, 16], strides = [1, 1, 1]} : vector<18x16x16xf32> to vector<16x16x16xf32>
    %100 = vector.broadcast %98 : vector<1x1x16xf32> to vector<16x16x16xf32>
    %101 = arith.mulf %99, %100 : vector<16x16x16xf32>
    %102 = arith.addf %96, %101 : vector<16x16x16xf32>
    %c0_46 = arith.constant 0 : index
    %c1_47 = arith.constant 1 : index
    %c0_48 = arith.constant 0 : index
    %103 = vector.load %arg11[%c0_46, %c1_47, %c0_48] : memref<18x18x16xf32, #tpu.memory_space<vmem>>, vector<18x16x16xf32>
    %104 = vector.extract_strided_slice %82 {offsets = [1, 0], sizes = [1, 16], strides = [1, 1]} : vector<9x16xf32> to vector<1x16xf32>
    %105 = vector.shape_cast %104 : vector<1x16xf32> to vector<1x1x16xf32>
    %106 = vector.extract_strided_slice %103 {offsets = [0, 0, 0], sizes = [16, 16, 16], strides = [1, 1, 1]} : vector<18x16x16xf32> to vector<16x16x16xf32>
    %107 = vector.broadcast %105 : vector<1x1x16xf32> to vector<16x16x16xf32>
    %108 = arith.mulf %106, %107 : vector<16x16x16xf32>
    %109 = arith.addf %102, %108 : vector<16x16x16xf32>
    %110 = vector.extract_strided_slice %82 {offsets = [4, 0], sizes = [1, 16], strides = [1, 1]} : vector<9x16xf32> to vector<1x16xf32>
    %111 = vector.shape_cast %110 : vector<1x16xf32> to vector<1x1x16xf32>
    %112 = vector.extract_strided_slice %103 {offsets = [1, 0, 0], sizes = [16, 16, 16], strides = [1, 1, 1]} : vector<18x16x16xf32> to vector<16x16x16xf32>
    %113 = vector.broadcast %111 : vector<1x1x16xf32> to vector<16x16x16xf32>
    %114 = arith.mulf %112, %113 : vector<16x16x16xf32>
    %115 = arith.addf %109, %114 : vector<16x16x16xf32>
    %116 = vector.extract_strided_slice %82 {offsets = [7, 0], sizes = [1, 16], strides = [1, 1]} : vector<9x16xf32> to vector<1x16xf32>
    %117 = vector.shape_cast %116 : vector<1x16xf32> to vector<1x1x16xf32>
    %118 = vector.extract_strided_slice %103 {offsets = [2, 0, 0], sizes = [16, 16, 16], strides = [1, 1, 1]} : vector<18x16x16xf32> to vector<16x16x16xf32>
    %119 = vector.broadcast %117 : vector<1x1x16xf32> to vector<16x16x16xf32>
    %120 = arith.mulf %118, %119 : vector<16x16x16xf32>
    %121 = arith.addf %115, %120 : vector<16x16x16xf32>
    %c0_49 = arith.constant 0 : index
    %c2 = arith.constant 2 : index
    %c0_50 = arith.constant 0 : index
    %122 = vector.load %arg11[%c0_49, %c2, %c0_50] : memref<18x18x16xf32, #tpu.memory_space<vmem>>, vector<18x16x16xf32>
    %123 = vector.extract_strided_slice %82 {offsets = [2, 0], sizes = [1, 16], strides = [1, 1]} : vector<9x16xf32> to vector<1x16xf32>
    %124 = vector.shape_cast %123 : vector<1x16xf32> to vector<1x1x16xf32>
    %125 = vector.extract_strided_slice %122 {offsets = [0, 0, 0], sizes = [16, 16, 16], strides = [1, 1, 1]} : vector<18x16x16xf32> to vector<16x16x16xf32>
    %126 = vector.broadcast %124 : vector<1x1x16xf32> to vector<16x16x16xf32>
    %127 = arith.mulf %125, %126 : vector<16x16x16xf32>
    %128 = arith.addf %121, %127 : vector<16x16x16xf32>
    %129 = vector.extract_strided_slice %82 {offsets = [5, 0], sizes = [1, 16], strides = [1, 1]} : vector<9x16xf32> to vector<1x16xf32>
    %130 = vector.shape_cast %129 : vector<1x16xf32> to vector<1x1x16xf32>
    %131 = vector.extract_strided_slice %122 {offsets = [1, 0, 0], sizes = [16, 16, 16], strides = [1, 1, 1]} : vector<18x16x16xf32> to vector<16x16x16xf32>
    %132 = vector.broadcast %130 : vector<1x1x16xf32> to vector<16x16x16xf32>
    %133 = arith.mulf %131, %132 : vector<16x16x16xf32>
    %134 = arith.addf %128, %133 : vector<16x16x16xf32>
    %135 = vector.extract_strided_slice %82 {offsets = [8, 0], sizes = [1, 16], strides = [1, 1]} : vector<9x16xf32> to vector<1x16xf32>
    %136 = vector.shape_cast %135 : vector<1x16xf32> to vector<1x1x16xf32>
    %137 = vector.extract_strided_slice %122 {offsets = [2, 0, 0], sizes = [16, 16, 16], strides = [1, 1, 1]} : vector<18x16x16xf32> to vector<16x16x16xf32>
    %138 = vector.broadcast %136 : vector<1x1x16xf32> to vector<16x16x16xf32>
    %139 = arith.mulf %137, %138 : vector<16x16x16xf32>
    %140 = arith.addf %134, %139 : vector<16x16x16xf32>
    %c0_51 = arith.constant 0 : index
    %c0_52 = arith.constant 0 : index
    %141 = vector.load %arg7[%c0_51, %c0_52] : memref<1x16xf32, #tpu.memory_space<vmem>>, vector<1x16xf32>
    %142 = vector.shape_cast %141 : vector<1x16xf32> to vector<1x1x16xf32>
    %143 = vector.broadcast %142 : vector<1x1x16xf32> to vector<16x16x16xf32>
    %144 = arith.addf %140, %143 : vector<16x16x16xf32>
    %cst_53 = arith.constant 5.000000e-01 : f32
    %145 = vector.broadcast %cst_53 : f32 to vector<16x16x16xf32>
    %146 = arith.mulf %145, %144 : vector<16x16x16xf32>
    %cst_54 = arith.constant 0.707106769 : f32
    %147 = vector.broadcast %cst_54 : f32 to vector<16x16x16xf32>
    %148 = arith.mulf %144, %147 : vector<16x16x16xf32>
    %cst_55 = arith.constant 0.000000e+00 : f32
    %149 = vector.broadcast %cst_55 : f32 to vector<16x16x16xf32>
    %150 = arith.cmpf oge, %148, %149 : vector<16x16x16xf32>
    %cst_56 = arith.constant 1.000000e+00 : f32
    %cst_57 = arith.constant -1.000000e+00 : f32
    %151 = vector.broadcast %cst_56 : f32 to vector<16x16x16xf32>
    %152 = vector.broadcast %cst_57 : f32 to vector<16x16x16xf32>
    %153 = arith.select %150, %151, %152 : vector<16x16x16xi1>, vector<16x16x16xf32>
    %154 = math.absf %148 : vector<16x16x16xf32>
    %cst_58 = arith.constant 0.327591091 : f32
    %155 = vector.broadcast %cst_58 : f32 to vector<16x16x16xf32>
    %156 = arith.mulf %155, %154 : vector<16x16x16xf32>
    %cst_59 = arith.constant 1.000000e+00 : f32
    %157 = vector.broadcast %cst_59 : f32 to vector<16x16x16xf32>
    %158 = arith.addf %157, %156 : vector<16x16x16xf32>
    %159 = tpu.reciprocal %158 {approx = true} : vector<16x16x16xf32> -> vector<16x16x16xf32>
    %160 = arith.mulf %158, %159 : vector<16x16x16xf32>
    %cst_60 = arith.constant 2.000000e+00 : f32
    %161 = vector.broadcast %cst_60 : f32 to vector<16x16x16xf32>
    %162 = arith.subf %161, %160 : vector<16x16x16xf32>
    %163 = arith.mulf %159, %162 : vector<16x16x16xf32>
    %cst_61 = arith.constant 1.06140542 : f32
    %164 = vector.broadcast %cst_61 : f32 to vector<16x16x16xf32>
    %165 = arith.mulf %163, %164 : vector<16x16x16xf32>
    %cst_62 = arith.constant -1.45315206 : f32
    %166 = vector.broadcast %cst_62 : f32 to vector<16x16x16xf32>
    %167 = arith.addf %166, %165 : vector<16x16x16xf32>
    %168 = arith.mulf %163, %167 : vector<16x16x16xf32>
    %cst_63 = arith.constant 1.42141378 : f32
    %169 = vector.broadcast %cst_63 : f32 to vector<16x16x16xf32>
    %170 = arith.addf %169, %168 : vector<16x16x16xf32>
    %171 = arith.mulf %163, %170 : vector<16x16x16xf32>
    %cst_64 = arith.constant -0.284496725 : f32
    %172 = vector.broadcast %cst_64 : f32 to vector<16x16x16xf32>
    %173 = arith.addf %172, %171 : vector<16x16x16xf32>
    %174 = arith.mulf %163, %173 : vector<16x16x16xf32>
    %cst_65 = arith.constant 0.254829586 : f32
    %175 = vector.broadcast %cst_65 : f32 to vector<16x16x16xf32>
    %176 = arith.addf %175, %174 : vector<16x16x16xf32>
    %177 = arith.mulf %163, %176 : vector<16x16x16xf32>
    %cst_66 = arith.constant 0.000000e+00 : f32
    %178 = vector.broadcast %cst_66 : f32 to vector<16x16x16xf32>
    %179 = arith.subf %178, %154 : vector<16x16x16xf32>
    %180 = arith.mulf %179, %154 : vector<16x16x16xf32>
    %181 = math.exp %180 : vector<16x16x16xf32>
    %182 = arith.mulf %177, %181 : vector<16x16x16xf32>
    %cst_67 = arith.constant 1.000000e+00 : f32
    %183 = vector.broadcast %cst_67 : f32 to vector<16x16x16xf32>
    %184 = arith.subf %183, %182 : vector<16x16x16xf32>
    %185 = arith.mulf %153, %184 : vector<16x16x16xf32>
    %cst_68 = arith.constant 1.000000e+00 : f32
    %186 = vector.broadcast %cst_68 : f32 to vector<16x16x16xf32>
    %187 = arith.addf %186, %185 : vector<16x16x16xf32>
    %188 = arith.mulf %146, %187 : vector<16x16x16xf32>
    %189 = arith.addf %75, %188 : vector<16x16x16xf32>
    %190 = vector.shape_cast %189 : vector<16x16x16xf32> to vector<256x16xf32>
    %191 = arith.truncf %190 : vector<256x16xf32> to vector<256x16xbf16>
    %c0_69 = arith.constant 0 : index
    %c0_70 = arith.constant 0 : index
    %192 = vector.load %arg8[%c0_69, %c0_70] : memref<16x4xbf16, #tpu.memory_space<vmem>>, vector<16x4xbf16>
    %cst_71 = arith.constant dense<0.000000e+00> : vector<256x4xf32>
    %193 = tpu.matmul %191, %192, %cst_71 {dimension_numbers = #tpu.dot_dimension_numbers<[1], [0], [0], [1], [0, 0, 1, 1], [], []>} : vector<256x16xbf16>, vector<16x4xbf16>, vector<256x4xf32> -> vector<256x4xf32>
    %c0_72 = arith.constant 0 : index
    %c0_73 = arith.constant 0 : index
    %194 = vector.load %arg9[%c0_72, %c0_73] : memref<1x4xf32, #tpu.memory_space<vmem>>, vector<1x4xf32>
    %195 = vector.broadcast %194 : vector<1x4xf32> to vector<256x4xf32>
    %196 = arith.addf %193, %195 : vector<256x4xf32>
    %197 = tpu.transpose %196, [1, 0] : vector<256x4xf32> -> vector<4x256xf32>
    %c0_74 = arith.constant 0 : index
    %c0_75 = arith.constant 0 : index
    %c0_76 = arith.constant 0 : index
    %198 = vector.load %arg10[%c0_74, %c0_75, %c0_76] : memref<1x4x256xf32, #tpu.memory_space<vmem>>, vector<1x4x256xf32>
    %199 = vector.shape_cast %198 : vector<1x4x256xf32> to vector<4x256xf32>
    %200 = vector.shape_cast %197 : vector<4x256xf32> to vector<1x4x256xf32>
    tpu.vector_store %arg10[%c0_74, %c0_75, %c0_76], %200 {strides = array<i32>} : memref<1x4x256xf32, #tpu.memory_space<vmem>>, vector<1x4x256xf32>,
    return
  }
  func.func @transform_0(%arg0: i32) -> (i32, i32, i32) {
    %c0_i32 = arith.constant 0 : i32
    %c0_i32_0 = arith.constant 0 : i32
    %c0_i32_1 = arith.constant 0 : i32
    return %arg0, %c0_i32, %c0_i32_0 : i32, i32, i32
  }
  func.func @transform_1(%arg0: i32) -> (i32, i32) {
    %c0_i32 = arith.constant 0 : i32
    %c0_i32_0 = arith.constant 0 : i32
    %c0_i32_1 = arith.constant 0 : i32
    return %c0_i32, %c0_i32_0 : i32, i32
  }
  func.func @transform_2(%arg0: i32) -> (i32, i32) {
    %c0_i32 = arith.constant 0 : i32
    %c0_i32_0 = arith.constant 0 : i32
    %c0_i32_1 = arith.constant 0 : i32
    return %c0_i32, %c0_i32_0 : i32, i32
  }
  func.func @transform_3(%arg0: i32) -> (i32, i32) {
    %c0_i32 = arith.constant 0 : i32
    %c0_i32_0 = arith.constant 0 : i32
    %c0_i32_1 = arith.constant 0 : i32
    return %c0_i32, %c0_i32_0 : i32, i32
  }
  func.func @transform_4(%arg0: i32) -> (i32, i32) {
    %c0_i32 = arith.constant 0 : i32
    %c0_i32_0 = arith.constant 0 : i32
    %c0_i32_1 = arith.constant 0 : i32
    return %c0_i32, %c0_i32_0 : i32, i32
  }
  func.func @transform_5(%arg0: i32) -> (i32, i32) {
    %c0_i32 = arith.constant 0 : i32
    %c0_i32_0 = arith.constant 0 : i32
    %c0_i32_1 = arith.constant 0 : i32
    return %c0_i32, %c0_i32_0 : i32, i32
  }
  func.func @transform_6(%arg0: i32) -> (i32, i32) {
    %c0_i32 = arith.constant 0 : i32
    %c0_i32_0 = arith.constant 0 : i32
    %c0_i32_1 = arith.constant 0 : i32
    return %c0_i32, %c0_i32_0 : i32, i32
  }
  func.func @transform_7(%arg0: i32) -> (i32, i32) {
    %c0_i32 = arith.constant 0 : i32
    %c0_i32_0 = arith.constant 0 : i32
    %c0_i32_1 = arith.constant 0 : i32
    return %c0_i32, %c0_i32_0 : i32, i32
  }
  func.func @transform_8(%arg0: i32) -> (i32, i32) {
    %c0_i32 = arith.constant 0 : i32
    %c0_i32_0 = arith.constant 0 : i32
    %c0_i32_1 = arith.constant 0 : i32
    return %c0_i32, %c0_i32_0 : i32, i32
  }
  func.func @transform_9(%arg0: i32) -> (i32, i32, i32) {
    %c0_i32 = arith.constant 0 : i32
    %c0_i32_0 = arith.constant 0 : i32
    %c0_i32_1 = arith.constant 0 : i32
    return %arg0, %c0_i32, %c0_i32_0 : i32, i32, i32
  }
}

module attributes {stable_mosaic.version = 11 : i64} {
  func.func @mlp_fused_kernel(%arg0: i32, %arg1: memref<1x4x256xf32, #tpu.memory_space<vmem>>, %arg2: memref<4x1xf32, #tpu.memory_space<vmem>>, %arg3: memref<4x1xf32, #tpu.memory_space<vmem>>, %arg4: memref<4x16xbf16, #tpu.memory_space<vmem>>, %arg5: memref<1x16xf32, #tpu.memory_space<vmem>>, %arg6: memref<9x16xf32, #tpu.memory_space<vmem>>, %arg7: memref<1x16xf32, #tpu.memory_space<vmem>>, %arg8: memref<16x4xbf16, #tpu.memory_space<vmem>>, %arg9: memref<1x4xf32, #tpu.memory_space<vmem>>, %arg10: memref<1x4x256xf32, #tpu.memory_space<vmem>>, %arg11: memref<18x18x16xf32, #tpu.memory_space<vmem>>) attributes {dimension_semantics = [#tpu.dimension_semantics<parallel>], iteration_bounds = array<i64: 2>, scalar_prefetch = 0 : i64, scratch_operands = 1 : i64, tpu.core_type = #tpu.core_type<tc>, window_params = [{transform_indices = @transform_0, window_bounds = array<i64: 1, 4, 256>}, {pipeline_mode = #tpu.pipeline_mode<synchronous>, transform_indices = @transform_1, window_bounds = array<i64: 4, 1>}, {pipeline_mode = #tpu.pipeline_mode<synchronous>, transform_indices = @transform_2, window_bounds = array<i64: 4, 1>}, {pipeline_mode = #tpu.pipeline_mode<synchronous>, transform_indices = @transform_3, window_bounds = array<i64: 4, 16>}, {pipeline_mode = #tpu.pipeline_mode<synchronous>, transform_indices = @transform_4, window_bounds = array<i64: 1, 16>}, {pipeline_mode = #tpu.pipeline_mode<synchronous>, transform_indices = @transform_5, window_bounds = array<i64: 9, 16>}, {pipeline_mode = #tpu.pipeline_mode<synchronous>, transform_indices = @transform_6, window_bounds = array<i64: 1, 16>}, {pipeline_mode = #tpu.pipeline_mode<synchronous>, transform_indices = @transform_7, window_bounds = array<i64: 16, 4>}, {pipeline_mode = #tpu.pipeline_mode<synchronous>, transform_indices = @transform_8, window_bounds = array<i64: 1, 4>}, {transform_indices = @transform_9, window_bounds = array<i64: 1, 4, 256>}]} {
    %c0 = arith.constant 0 : index
    %c0_0 = arith.constant 0 : index
    %c0_1 = arith.constant 0 : index
    %0 = vector.load %arg1[%c0, %c0_0, %c0_1] : memref<1x4x256xf32, #tpu.memory_space<vmem>>, vector<1x4x256xf32>
    %1 = vector.shape_cast %0 : vector<1x4x256xf32> to vector<4x256xf32>
    %cst = arith.constant dense<0.000000e+00> : vector<256xf32>
    %2 = vector.multi_reduction <add>, %1, %cst [0] : vector<4x256xf32> to vector<256xf32>
    %3 = vector.shape_cast %2 : vector<256xf32> to vector<1x256xf32>
    %cst_2 = arith.constant 4.000000e+00 : f32
    %4 = vector.broadcast %cst_2 : f32 to vector<1x256xf32>
    %5 = arith.divf %3, %4 : vector<1x256xf32>
    %6 = vector.broadcast %5 : vector<1x256xf32> to vector<4x256xf32>
    %7 = arith.subf %1, %6 : vector<4x256xf32>
    %8 = arith.mulf %7, %7 : vector<4x256xf32>
    %cst_3 = arith.constant dense<0.000000e+00> : vector<256xf32>
    %9 = vector.multi_reduction <add>, %8, %cst_3 [0] : vector<4x256xf32> to vector<256xf32>
    %10 = vector.shape_cast %9 : vector<256xf32> to vector<1x256xf32>
    %cst_4 = arith.constant 4.000000e+00 : f32
    %11 = vector.broadcast %cst_4 : f32 to vector<1x256xf32>
    %12 = arith.divf %10, %11 : vector<1x256xf32>
    %cst_5 = arith.constant 9.99999997E-7 : f32
    %13 = vector.broadcast %cst_5 : f32 to vector<1x256xf32>
    %14 = arith.addf %12, %13 : vector<1x256xf32>
    %15 = math.rsqrt %14 : vector<1x256xf32>
    %16 = vector.broadcast %15 : vector<1x256xf32> to vector<4x256xf32>
    %17 = arith.mulf %7, %16 : vector<4x256xf32>
    %c0_6 = arith.constant 0 : index
    %c0_7 = arith.constant 0 : index
    %18 = vector.load %arg2[%c0_6, %c0_7] : memref<4x1xf32, #tpu.memory_space<vmem>>, vector<4x1xf32>
    %19 = vector.broadcast %18 : vector<4x1xf32> to vector<4x256xf32>
    %20 = arith.mulf %19, %17 : vector<4x256xf32>
    %c0_8 = arith.constant 0 : index
    %c0_9 = arith.constant 0 : index
    %21 = vector.load %arg3[%c0_8, %c0_9] : memref<4x1xf32, #tpu.memory_space<vmem>>, vector<4x1xf32>
    %22 = vector.broadcast %21 : vector<4x1xf32> to vector<4x256xf32>
    %23 = arith.addf %20, %22 : vector<4x256xf32>
    %24 = tpu.transpose %23, [1, 0] : vector<4x256xf32> -> vector<256x4xf32>
    %25 = arith.truncf %24 : vector<256x4xf32> to vector<256x4xbf16>
    %c0_10 = arith.constant 0 : index
    %c0_11 = arith.constant 0 : index
    %26 = vector.load %arg4[%c0_10, %c0_11] : memref<4x16xbf16, #tpu.memory_space<vmem>>, vector<4x16xbf16>
    %cst_12 = arith.constant dense<0.000000e+00> : vector<256x16xf32>
    %27 = tpu.matmul %25, %26, %cst_12 {dimension_numbers = #tpu.dot_dimension_numbers<[1], [0], [0], [1], [0, 0, 1, 1], [], []>} : vector<256x4xbf16>, vector<4x16xbf16>, vector<256x16xf32> -> vector<256x16xf32>
    %c0_13 = arith.constant 0 : index
    %c0_14 = arith.constant 0 : index
    %28 = vector.load %arg5[%c0_13, %c0_14] : memref<1x16xf32, #tpu.memory_space<vmem>>, vector<1x16xf32>
    %29 = vector.broadcast %28 : vector<1x16xf32> to vector<256x16xf32>
    %30 = arith.addf %27, %29 : vector<256x16xf32>
    %cst_15 = arith.constant 5.000000e-01 : f32
    %31 = vector.broadcast %cst_15 : f32 to vector<256x16xf32>
    %32 = arith.mulf %31, %30 : vector<256x16xf32>
    %cst_16 = arith.constant 0.707106769 : f32
    %33 = vector.broadcast %cst_16 : f32 to vector<256x16xf32>
    %34 = arith.mulf %30, %33 : vector<256x16xf32>
    %cst_17 = arith.constant 0.000000e+00 : f32
    %35 = vector.broadcast %cst_17 : f32 to vector<256x16xf32>
    %36 = arith.cmpf oge, %34, %35 : vector<256x16xf32>
    %cst_18 = arith.constant 1.000000e+00 : f32
    %cst_19 = arith.constant -1.000000e+00 : f32
    %37 = vector.broadcast %cst_18 : f32 to vector<256x16xf32>
    %38 = vector.broadcast %cst_19 : f32 to vector<256x16xf32>
    %39 = arith.select %36, %37, %38 : vector<256x16xi1>, vector<256x16xf32>
    %40 = math.absf %34 : vector<256x16xf32>
    %cst_20 = arith.constant 0.327591091 : f32
    %41 = vector.broadcast %cst_20 : f32 to vector<256x16xf32>
    %42 = arith.mulf %41, %40 : vector<256x16xf32>
    %cst_21 = arith.constant 1.000000e+00 : f32
    %43 = vector.broadcast %cst_21 : f32 to vector<256x16xf32>
    %44 = arith.addf %43, %42 : vector<256x16xf32>
    %45 = tpu.reciprocal %44 {approx = true} : vector<256x16xf32> -> vector<256x16xf32>
    %46 = arith.mulf %44, %45 : vector<256x16xf32>
    %cst_22 = arith.constant 2.000000e+00 : f32
    %47 = vector.broadcast %cst_22 : f32 to vector<256x16xf32>
    %48 = arith.subf %47, %46 : vector<256x16xf32>
    %49 = arith.mulf %45, %48 : vector<256x16xf32>
    %cst_23 = arith.constant 1.06140542 : f32
    %50 = vector.broadcast %cst_23 : f32 to vector<256x16xf32>
    %51 = arith.mulf %49, %50 : vector<256x16xf32>
    %cst_24 = arith.constant -1.45315206 : f32
    %52 = vector.broadcast %cst_24 : f32 to vector<256x16xf32>
    %53 = arith.addf %52, %51 : vector<256x16xf32>
    %54 = arith.mulf %49, %53 : vector<256x16xf32>
    %cst_25 = arith.constant 1.42141378 : f32
    %55 = vector.broadcast %cst_25 : f32 to vector<256x16xf32>
    %56 = arith.addf %55, %54 : vector<256x16xf32>
    %57 = arith.mulf %49, %56 : vector<256x16xf32>
    %cst_26 = arith.constant -0.284496725 : f32
    %58 = vector.broadcast %cst_26 : f32 to vector<256x16xf32>
    %59 = arith.addf %58, %57 : vector<256x16xf32>
    %60 = arith.mulf %49, %59 : vector<256x16xf32>
    %cst_27 = arith.constant 0.254829586 : f32
    %61 = vector.broadcast %cst_27 : f32 to vector<256x16xf32>
    %62 = arith.addf %61, %60 : vector<256x16xf32>
    %63 = arith.mulf %49, %62 : vector<256x16xf32>
    %cst_28 = arith.constant 0.000000e+00 : f32
    %64 = vector.broadcast %cst_28 : f32 to vector<256x16xf32>
    %65 = arith.subf %64, %40 : vector<256x16xf32>
    %66 = arith.mulf %65, %40 : vector<256x16xf32>
    %67 = math.exp %66 : vector<256x16xf32>
    %68 = arith.mulf %63, %67 : vector<256x16xf32>
    %cst_29 = arith.constant 1.000000e+00 : f32
    %69 = vector.broadcast %cst_29 : f32 to vector<256x16xf32>
    %70 = arith.subf %69, %68 : vector<256x16xf32>
    %71 = arith.mulf %39, %70 : vector<256x16xf32>
    %cst_30 = arith.constant 1.000000e+00 : f32
    %72 = vector.broadcast %cst_30 : f32 to vector<256x16xf32>
    %73 = arith.addf %72, %71 : vector<256x16xf32>
    %74 = arith.mulf %32, %73 : vector<256x16xf32>
    %75 = vector.shape_cast %74 : vector<256x16xf32> to vector<16x16x16xf32>
    %cst_31 = arith.constant 0.000000e+00 : f32
    %76 = vector.broadcast %cst_31 : f32 to vector<1x18x16xf32>
    %cst_32 = arith.constant 0.000000e+00 : f32
    %77 = vector.broadcast %cst_32 : f32 to vector<16x1x16xf32>
    %c0_33 = arith.constant 0 : index
    %c0_34 = arith.constant 0 : index
    %c0_35 = arith.constant 0 : index
    %78 = vector.load %arg11[%c0_33, %c0_34, %c0_35] : memref<18x18x16xf32, #tpu.memory_space<vmem>>, vector<1x18x16xf32>
    tpu.vector_store %arg11[%c0_33, %c0_34, %c0_35], %76 {strides = array<i32>} : memref<18x18x16xf32, #tpu.memory_space<vmem>>, vector<1x18x16xf32>,
    %c17 = arith.constant 17 : index
    %c0_36 = arith.constant 0 : index
    %c0_37 = arith.constant 0 : index
    %79 = vector.load %arg11[%c17, %c0_36, %c0_37] : memref<18x18x16xf32, #tpu.memory_space<vmem>>, vector<1x18x16xf32>
    tpu.vector_store %arg11[%c17, %c0_36, %c0_37], %76 {strides = array<i32>} : memref<18x18x16xf32, #tpu.memory_space<vmem>>, vector<1x18x16xf32>,
    %80 = tpu.concatenate %77, %75, %77 in 1 : vector<16x1x16xf32>, vector<16x16x16xf32>, vector<16x1x16xf32> -> vector<16x18x16xf32>
    %c1 = arith.constant 1 : index
    %c0_38 = arith.constant 0 : index
    %c0_39 = arith.constant 0 : index
    %81 = vector.load %arg11[%c1, %c0_38, %c0_39] : memref<18x18x16xf32, #tpu.memory_space<vmem>>, vector<16x18x16xf32>
    tpu.vector_store %arg11[%c1, %c0_38, %c0_39], %80 {strides = array<i32>} : memref<18x18x16xf32, #tpu.memory_space<vmem>>, vector<16x18x16xf32>,
    %c0_40 = arith.constant 0 : index
    %c0_41 = arith.constant 0 : index
    %82 = vector.load %arg6[%c0_40, %c0_41] : memref<9x16xf32, #tpu.memory_space<vmem>>, vector<9x16xf32>
    %cst_42 = arith.constant 0.000000e+00 : f32
    %83 = vector.broadcast %cst_42 : f32 to vector<16x16x16xf32>
    %c0_43 = arith.constant 0 : index
    %c0_44 = arith.constant 0 : index
    %c0_45 = arith.constant 0 : index
    %84 = vector.load %arg11[%c0_43, %c0_44, %c0_45] : memref<18x18x16xf32, #tpu.memory_space<vmem>>, vector<18x16x16xf32>
    %85 = vector.extract_strided_slice %82 {offsets = [0, 0], sizes = [1, 16], strides = [1, 1]} : vector<9x16xf32> to vector<1x16xf32>
    %86 = vector.shape_cast %85 : vector<1x16xf32> to vector<1x1x16xf32>
    %87 = vector.extract_strided_slice %84 {offsets = [0, 0, 0], sizes = [16, 16, 16], strides = [1, 1, 1]} : vector<18x16x16xf32> to vector<16x16x16xf32>
    %88 = vector.broadcast %86 : vector<1x1x16xf32> to vector<16x16x16xf32>
    %89 = arith.mulf %87, %88 : vector<16x16x16xf32>
    %90 = arith.addf %83, %89 : vector<16x16x16xf32>
    %91 = vector.extract_strided_slice %82 {offsets = [3, 0], sizes = [1, 16], strides = [1, 1]} : vector<9x16xf32> to vector<1x16xf32>
    %92 = vector.shape_cast %91 : vector<1x16xf32> to vector<1x1x16xf32>
    %93 = vector.extract_strided_slice %84 {offsets = [1, 0, 0], sizes = [16, 16, 16], strides = [1, 1, 1]} : vector<18x16x16xf32> to vector<16x16x16xf32>
    %94 = vector.broadcast %92 : vector<1x1x16xf32> to vector<16x16x16xf32>
    %95 = arith.mulf %93, %94 : vector<16x16x16xf32>
    %96 = arith.addf %90, %95 : vector<16x16x16xf32>
    %97 = vector.extract_strided_slice %82 {offsets = [6, 0], sizes = [1, 16], strides = [1, 1]} : vector<9x16xf32> to vector<1x16xf32>
    %98 = vector.shape_cast %97 : vector<1x16xf32> to vector<1x1x16xf32>
    %99 = vector.extract_strided_slice %84 {offsets = [2, 0, 0], sizes = [16, 16, 16], strides = [1, 1, 1]} : vector<18x16x16xf32> to vector<16x16x16xf32>
    %100 = vector.broadcast %98 : vector<1x1x16xf32> to vector<16x16x16xf32>
    %101 = arith.mulf %99, %100 : vector<16x16x16xf32>
    %102 = arith.addf %96, %101 : vector<16x16x16xf32>
    %c0_46 = arith.constant 0 : index
    %c1_47 = arith.constant 1 : index
    %c0_48 = arith.constant 0 : index
    %103 = vector.load %arg11[%c0_46, %c1_47, %c0_48] : memref<18x18x16xf32, #tpu.memory_space<vmem>>, vector<18x16x16xf32>
    %104 = vector.extract_strided_slice %82 {offsets = [1, 0], sizes = [1, 16], strides = [1, 1]} : vector<9x16xf32> to vector<1x16xf32>
    %105 = vector.shape_cast %104 : vector<1x16xf32> to vector<1x1x16xf32>
    %106 = vector.extract_strided_slice %103 {offsets = [0, 0, 0], sizes = [16, 16, 16], strides = [1, 1, 1]} : vector<18x16x16xf32> to vector<16x16x16xf32>
    %107 = vector.broadcast %105 : vector<1x1x16xf32> to vector<16x16x16xf32>
    %108 = arith.mulf %106, %107 : vector<16x16x16xf32>
    %109 = arith.addf %102, %108 : vector<16x16x16xf32>
    %110 = vector.extract_strided_slice %82 {offsets = [4, 0], sizes = [1, 16], strides = [1, 1]} : vector<9x16xf32> to vector<1x16xf32>
    %111 = vector.shape_cast %110 : vector<1x16xf32> to vector<1x1x16xf32>
    %112 = vector.extract_strided_slice %103 {offsets = [1, 0, 0], sizes = [16, 16, 16], strides = [1, 1, 1]} : vector<18x16x16xf32> to vector<16x16x16xf32>
    %113 = vector.broadcast %111 : vector<1x1x16xf32> to vector<16x16x16xf32>
    %114 = arith.mulf %112, %113 : vector<16x16x16xf32>
    %115 = arith.addf %109, %114 : vector<16x16x16xf32>
    %116 = vector.extract_strided_slice %82 {offsets = [7, 0], sizes = [1, 16], strides = [1, 1]} : vector<9x16xf32> to vector<1x16xf32>
    %117 = vector.shape_cast %116 : vector<1x16xf32> to vector<1x1x16xf32>
    %118 = vector.extract_strided_slice %103 {offsets = [2, 0, 0], sizes = [16, 16, 16], strides = [1, 1, 1]} : vector<18x16x16xf32> to vector<16x16x16xf32>
    %119 = vector.broadcast %117 : vector<1x1x16xf32> to vector<16x16x16xf32>
    %120 = arith.mulf %118, %119 : vector<16x16x16xf32>
    %121 = arith.addf %115, %120 : vector<16x16x16xf32>
    %c0_49 = arith.constant 0 : index
    %c2 = arith.constant 2 : index
    %c0_50 = arith.constant 0 : index
    %122 = vector.load %arg11[%c0_49, %c2, %c0_50] : memref<18x18x16xf32, #tpu.memory_space<vmem>>, vector<18x16x16xf32>
    %123 = vector.extract_strided_slice %82 {offsets = [2, 0], sizes = [1, 16], strides = [1, 1]} : vector<9x16xf32> to vector<1x16xf32>
    %124 = vector.shape_cast %123 : vector<1x16xf32> to vector<1x1x16xf32>
    %125 = vector.extract_strided_slice %122 {offsets = [0, 0, 0], sizes = [16, 16, 16], strides = [1, 1, 1]} : vector<18x16x16xf32> to vector<16x16x16xf32>
    %126 = vector.broadcast %124 : vector<1x1x16xf32> to vector<16x16x16xf32>
    %127 = arith.mulf %125, %126 : vector<16x16x16xf32>
    %128 = arith.addf %121, %127 : vector<16x16x16xf32>
    %129 = vector.extract_strided_slice %82 {offsets = [5, 0], sizes = [1, 16], strides = [1, 1]} : vector<9x16xf32> to vector<1x16xf32>
    %130 = vector.shape_cast %129 : vector<1x16xf32> to vector<1x1x16xf32>
    %131 = vector.extract_strided_slice %122 {offsets = [1, 0, 0], sizes = [16, 16, 16], strides = [1, 1, 1]} : vector<18x16x16xf32> to vector<16x16x16xf32>
    %132 = vector.broadcast %130 : vector<1x1x16xf32> to vector<16x16x16xf32>
    %133 = arith.mulf %131, %132 : vector<16x16x16xf32>
    %134 = arith.addf %128, %133 : vector<16x16x16xf32>
    %135 = vector.extract_strided_slice %82 {offsets = [8, 0], sizes = [1, 16], strides = [1, 1]} : vector<9x16xf32> to vector<1x16xf32>
    %136 = vector.shape_cast %135 : vector<1x16xf32> to vector<1x1x16xf32>
    %137 = vector.extract_strided_slice %122 {offsets = [2, 0, 0], sizes = [16, 16, 16], strides = [1, 1, 1]} : vector<18x16x16xf32> to vector<16x16x16xf32>
    %138 = vector.broadcast %136 : vector<1x1x16xf32> to vector<16x16x16xf32>
    %139 = arith.mulf %137, %138 : vector<16x16x16xf32>
    %140 = arith.addf %134, %139 : vector<16x16x16xf32>
    %c0_51 = arith.constant 0 : index
    %c0_52 = arith.constant 0 : index
    %141 = vector.load %arg7[%c0_51, %c0_52] : memref<1x16xf32, #tpu.memory_space<vmem>>, vector<1x16xf32>
    %142 = vector.shape_cast %141 : vector<1x16xf32> to vector<1x1x16xf32>
    %143 = vector.broadcast %142 : vector<1x1x16xf32> to vector<16x16x16xf32>
    %144 = arith.addf %140, %143 : vector<16x16x16xf32>
    %cst_53 = arith.constant 5.000000e-01 : f32
    %145 = vector.broadcast %cst_53 : f32 to vector<16x16x16xf32>
    %146 = arith.mulf %145, %144 : vector<16x16x16xf32>
    %cst_54 = arith.constant 0.707106769 : f32
    %147 = vector.broadcast %cst_54 : f32 to vector<16x16x16xf32>
    %148 = arith.mulf %144, %147 : vector<16x16x16xf32>
    %cst_55 = arith.constant 0.000000e+00 : f32
    %149 = vector.broadcast %cst_55 : f32 to vector<16x16x16xf32>
    %150 = arith.cmpf oge, %148, %149 : vector<16x16x16xf32>
    %cst_56 = arith.constant 1.000000e+00 : f32
    %cst_57 = arith.constant -1.000000e+00 : f32
    %151 = vector.broadcast %cst_56 : f32 to vector<16x16x16xf32>
    %152 = vector.broadcast %cst_57 : f32 to vector<16x16x16xf32>
    %153 = arith.select %150, %151, %152 : vector<16x16x16xi1>, vector<16x16x16xf32>
    %154 = math.absf %148 : vector<16x16x16xf32>
    %cst_58 = arith.constant 0.327591091 : f32
    %155 = vector.broadcast %cst_58 : f32 to vector<16x16x16xf32>
    %156 = arith.mulf %155, %154 : vector<16x16x16xf32>
    %cst_59 = arith.constant 1.000000e+00 : f32
    %157 = vector.broadcast %cst_59 : f32 to vector<16x16x16xf32>
    %158 = arith.addf %157, %156 : vector<16x16x16xf32>
    %159 = tpu.reciprocal %158 {approx = true} : vector<16x16x16xf32> -> vector<16x16x16xf32>
    %160 = arith.mulf %158, %159 : vector<16x16x16xf32>
    %cst_60 = arith.constant 2.000000e+00 : f32
    %161 = vector.broadcast %cst_60 : f32 to vector<16x16x16xf32>
    %162 = arith.subf %161, %160 : vector<16x16x16xf32>
    %163 = arith.mulf %159, %162 : vector<16x16x16xf32>
    %cst_61 = arith.constant 1.06140542 : f32
    %164 = vector.broadcast %cst_61 : f32 to vector<16x16x16xf32>
    %165 = arith.mulf %163, %164 : vector<16x16x16xf32>
    %cst_62 = arith.constant -1.45315206 : f32
    %166 = vector.broadcast %cst_62 : f32 to vector<16x16x16xf32>
    %167 = arith.addf %166, %165 : vector<16x16x16xf32>
    %168 = arith.mulf %163, %167 : vector<16x16x16xf32>
    %cst_63 = arith.constant 1.42141378 : f32
    %169 = vector.broadcast %cst_63 : f32 to vector<16x16x16xf32>
    %170 = arith.addf %169, %168 : vector<16x16x16xf32>
    %171 = arith.mulf %163, %170 : vector<16x16x16xf32>
    %cst_64 = arith.constant -0.284496725 : f32
    %172 = vector.broadcast %cst_64 : f32 to vector<16x16x16xf32>
    %173 = arith.addf %172, %171 : vector<16x16x16xf32>
    %174 = arith.mulf %163, %173 : vector<16x16x16xf32>
    %cst_65 = arith.constant 0.254829586 : f32
    %175 = vector.broadcast %cst_65 : f32 to vector<16x16x16xf32>
    %176 = arith.addf %175, %174 : vector<16x16x16xf32>
    %177 = arith.mulf %163, %176 : vector<16x16x16xf32>
    %cst_66 = arith.constant 0.000000e+00 : f32
    %178 = vector.broadcast %cst_66 : f32 to vector<16x16x16xf32>
    %179 = arith.subf %178, %154 : vector<16x16x16xf32>
    %180 = arith.mulf %179, %154 : vector<16x16x16xf32>
    %181 = math.exp %180 : vector<16x16x16xf32>
    %182 = arith.mulf %177, %181 : vector<16x16x16xf32>
    %cst_67 = arith.constant 1.000000e+00 : f32
    %183 = vector.broadcast %cst_67 : f32 to vector<16x16x16xf32>
    %184 = arith.subf %183, %182 : vector<16x16x16xf32>
    %185 = arith.mulf %153, %184 : vector<16x16x16xf32>
    %cst_68 = arith.constant 1.000000e+00 : f32
    %186 = vector.broadcast %cst_68 : f32 to vector<16x16x16xf32>
    %187 = arith.addf %186, %185 : vector<16x16x16xf32>
    %188 = arith.mulf %146, %187 : vector<16x16x16xf32>
    %189 = arith.addf %75, %188 : vector<16x16x16xf32>
    %190 = vector.shape_cast %189 : vector<16x16x16xf32> to vector<256x16xf32>
    %191 = arith.truncf %190 : vector<256x16xf32> to vector<256x16xbf16>
    %c0_69 = arith.constant 0 : index
    %c0_70 = arith.constant 0 : index
    %192 = vector.load %arg8[%c0_69, %c0_70] : memref<16x4xbf16, #tpu.memory_space<vmem>>, vector<16x4xbf16>
    %cst_71 = arith.constant dense<0.000000e+00> : vector<256x4xf32>
    %193 = tpu.matmul %191, %192, %cst_71 {dimension_numbers = #tpu.dot_dimension_numbers<[1], [0], [0], [1], [0, 0, 1, 1], [], []>} : vector<256x16xbf16>, vector<16x4xbf16>, vector<256x4xf32> -> vector<256x4xf32>
    %c0_72 = arith.constant 0 : index
    %c0_73 = arith.constant 0 : index
    %194 = vector.load %arg9[%c0_72, %c0_73] : memref<1x4xf32, #tpu.memory_space<vmem>>, vector<1x4xf32>
    %195 = vector.broadcast %194 : vector<1x4xf32> to vector<256x4xf32>
    %196 = arith.addf %193, %195 : vector<256x4xf32>
    %197 = tpu.transpose %196, [1, 0] : vector<256x4xf32> -> vector<4x256xf32>
    %c0_74 = arith.constant 0 : index
    %c0_75 = arith.constant 0 : index
    %c0_76 = arith.constant 0 : index
    %198 = vector.load %arg10[%c0_74, %c0_75, %c0_76] : memref<1x4x256xf32, #tpu.memory_space<vmem>>, vector<1x4x256xf32>
    %199 = vector.shape_cast %198 : vector<1x4x256xf32> to vector<4x256xf32>
    %200 = vector.shape_cast %197 : vector<4x256xf32> to vector<1x4x256xf32>
    tpu.vector_store %arg10[%c0_74, %c0_75, %c0_76], %200 {strides = array<i32>} : memref<1x4x256xf32, #tpu.memory_space<vmem>>, vector<1x4x256xf32>,
    return
  }
  func.func @transform_0(%arg0: i32) -> (i32, i32, i32) {
    %c0_i32 = arith.constant 0 : i32
    %c0_i32_0 = arith.constant 0 : i32
    %c0_i32_1 = arith.constant 0 : i32
    return %arg0, %c0_i32, %c0_i32_0 : i32, i32, i32
  }
  func.func @transform_1(%arg0: i32) -> (i32, i32) {
    %c0_i32 = arith.constant 0 : i32
    %c0_i32_0 = arith.constant 0 : i32
    %c0_i32_1 = arith.constant 0 : i32
    return %c0_i32, %c0_i32_0 : i32, i32
  }
  func.func @transform_2(%arg0: i32) -> (i32, i32) {
    %c0_i32 = arith.constant 0 : i32
    %c0_i32_0 = arith.constant 0 : i32
    %c0_i32_1 = arith.constant 0 : i32
    return %c0_i32, %c0_i32_0 : i32, i32
  }
  func.func @transform_3(%arg0: i32) -> (i32, i32) {
    %c0_i32 = arith.constant 0 : i32
    %c0_i32_0 = arith.constant 0 : i32
    %c0_i32_1 = arith.constant 0 : i32
    return %c0_i32, %c0_i32_0 : i32, i32
  }
  func.func @transform_4(%arg0: i32) -> (i32, i32) {
    %c0_i32 = arith.constant 0 : i32
    %c0_i32_0 = arith.constant 0 : i32
    %c0_i32_1 = arith.constant 0 : i32
    return %c0_i32, %c0_i32_0 : i32, i32
  }
  func.func @transform_5(%arg0: i32) -> (i32, i32) {
    %c0_i32 = arith.constant 0 : i32
    %c0_i32_0 = arith.constant 0 : i32
    %c0_i32_1 = arith.constant 0 : i32
    return %c0_i32, %c0_i32_0 : i32, i32
  }
  func.func @transform_6(%arg0: i32) -> (i32, i32) {
    %c0_i32 = arith.constant 0 : i32
    %c0_i32_0 = arith.constant 0 : i32
    %c0_i32_1 = arith.constant 0 : i32
    return %c0_i32, %c0_i32_0 : i32, i32
  }
  func.func @transform_7(%arg0: i32) -> (i32, i32) {
    %c0_i32 = arith.constant 0 : i32
    %c0_i32_0 = arith.constant 0 : i32
    %c0_i32_1 = arith.constant 0 : i32
    return %c0_i32, %c0_i32_0 : i32, i32
  }
  func.func @transform_8(%arg0: i32) -> (i32, i32) {
    %c0_i32 = arith.constant 0 : i32
    %c0_i32_0 = arith.constant 0 : i32
    %c0_i32_1 = arith.constant 0 : i32
    return %c0_i32, %c0_i32_0 : i32, i32
  }
  func.func @transform_9(%arg0: i32) -> (i32, i32, i32) {
    %c0_i32 = arith.constant 0 : i32
    %c0_i32_0 = arith.constant 0 : i32
    %c0_i32_1 = arith.constant 0 : i32
    return %arg0, %c0_i32, %c0_i32_0 : i32, i32, i32
  }
}

</mosaic_0001>

<bundles_post_ra>
// kernel: mlp_forward.1
= control target key start
LH: loop header
LB: loop body
LE: loop exit
PB: predicated region body
PF: predicated region fallthrough
CT: control target
= control target key end

     0   :  { %s4465_s30 = smov 0   ;;  %s7575_s0 = inlined_call_operand.vmem [shape: f32[2,4,256], index: 0, kind: input, shape index: {}]   ;;  %s7576_s1 = inlined_call_operand.vmem [shape: f32[4,1], index: 1, kind: input, shape index: {}]   ;;  %s7577_s2 = inlined_call_operand.vmem [shape: f32[4,1], index: 2, kind: input, shape index: {}]   ;;  %s7578_s3 = inlined_call_operand.vmem [shape: bf16[4,16], index: 3, kind: input, shape index: {}]   ;;  %s7579_s4 = inlined_call_operand.vmem [shape: f32[1,16], index: 4, kind: input, shape index: {}]   ;;  %s7580_s5 = inlined_call_operand.vmem [shape: f32[9,16], index: 5, kind: input, shape index: {}]   ;;  %s7581_s6 = inlined_call_operand.vmem [shape: f32[1,16], index: 6, kind: input, shape index: {}]   ;;  %s7582_s7 = inlined_call_operand.vmem [shape: bf16[16,4], index: 7, kind: input, shape index: {}]   ;;  %s7583_s8 = inlined_call_operand.vmem [shape: f32[1,4], index: 8, kind: input, shape index: {}]   ;;  %s7584_s9 = inlined_call_operand.vmem [shape: f32[2,4,256], index: 9, kind: output, shape index: {}]  }
   0x1 LB: > { %s3943_s10 = sadd.s32 4294967295, %s4410_s30   ;;  %p3947_p0 = scmp.ge.s32.totalorder %s4410_s30, 1  ;;  %s4410_s30 = sphi %s4465_s30, %s19_s30  }
   0x2   : > { %p287_p1 = scmp.lt.s32.totalorder %s4410_s30, 3 }
   0x4   : > { %p288_p2 = pnand %p3947_p0, %p287_p1 }
   0x6   : > { %291 = sbr.rel (%p288_p2) target bundleno = 1443 (0x5a3), region = 56 }
   0xb   : > { %v390_v0 = vld [vmem:[%s7576_s1] sm:$0xf]  ;;  %v4412_v1 = vmov 0   ;;  %p323_p3 = scmp.lt.s32.totalorder %s3943_s10, 1  ;;  %vm338_vm0 = vcmask 1043456   ;;  %vm546_vm1 = vcmask 1041408  }
   0xc   : > { %4107 = vset.pattern.permute.xlu0 %v4412_v1  ;;  %v401_v2 = vld [vmem:[%s7577_s2] sm:$0xf]  ;;  %vm497_vm2 = vcmask 31744   ;;  %vm1680_vm8 = vcmask 1040384   ;;  %vm1639_vm9 = vcmask 130048   ;;  %vm1642_vm10 = vcmask 123904  }
   0xd   : > { %393 = vperm.xlu0 %4107, %v390_v0   ;;  %s7805_s10 = smov (!%p323_p3, %s3943_s10), 1  ;;  %v489_v51 = vld [vmem:[%s7578_s3] sm:$0x3] }
   0xe   : > { %s3991_s15 = sshll.u32 %s7805_s10, 3  ;;  %4095 = vmatprep.subr.msk.bf16.mxu0 %vm546_vm1, %v489_v51  ;;  %v548_v52 = vsel %vm546_vm1, %v489_v51, 0 }
   0xf   : > { %s327_s18 = scalar_lea.vmem %s7575_s0, %s3991_s15  ;;  %4028 = vmatpush3.bf16.msra.mxu0 %v548_v52  ;;  %s332_s19 = scalar_lea.vmem %s7584_s9, %s3991_s15 }
  0x10   : > { %v334_v3 = vld [vmem:[%s327_s18] sm:$0xff] }
  0x11   : > { %404 = vperm.xlu0 %4107, %v401_v2   ;;  %v336_v4 = vcombine.high %v334_v3, %v334_v3  ;;  %v339_v5 = vsel %vm338_vm0, %v334_v3, 0.0 }
  0x12   : > { %v340_v7 = vrot.slane %v339_v5, 4 }
  0x13   : > { %v346_v6 = vsel %vm338_vm0, %v336_v4, 0.0 }
  0x14   : > { %v347_v8 = vrot.slane %v346_v6, 4  ;;  %v341_v9 = vadd.f32 %v340_v7, %v339_v5 }
  0x16   : > { %v348_v10 = vadd.f32 %v347_v8, %v346_v6  ;;  %v342_v11 = vrot.slane %v341_v9, 2 }
  0x18   : > { %v349_v12 = vrot.slane %v348_v10, 2  ;;  %v343_v13 = vadd.f32 %v342_v11, %v341_v9 }
  0x1a   : > { %v350_v14 = vadd.f32 %v349_v12, %v348_v10  ;;  %v344_v15 = vrot.slane %v343_v13, 1 }
  0x1c   : > { %v351_v16 = vrot.slane %v350_v14, 1  ;;  %v345_v17 = vadd.f32 %v344_v15, %v343_v13 }
  0x1e   : > { %v352_v18 = vadd.f32 %v351_v16, %v350_v14  ;;  %v354_v19 = vmul.f32 0.25, %v345_v17 }
  0x20   : > { %v355_v20 = vmul.f32 0.25, %v352_v18 }
  0x22   : > { %v358_v21 = vcombine.low %v354_v19, %v355_v20 }
  0x24   : > { %v360_v22 = vsub.f32 %v334_v3, %v358_v21 }
  0x26   : > { %v361_v23 = vmul.f32 %v360_v22, %v360_v22 }
  0x28   : > { %v363_v24 = vcombine.high %v361_v23, %v361_v23  ;;  %v365_v25 = vsel %vm338_vm0, %v361_v23, 0.0 }
  0x29   : > { %v366_v27 = vrot.slane %v365_v25, 4 }
  0x2a   : > { %v372_v26 = vsel %vm338_vm0, %v363_v24, 0.0 }
  0x2b   : > { %v373_v28 = vrot.slane %v372_v26, 4  ;;  %v367_v29 = vadd.f32 %v366_v27, %v365_v25 }
  0x2d   : > { %v374_v30 = vadd.f32 %v373_v28, %v372_v26  ;;  %v368_v31 = vrot.slane %v367_v29, 2 }
  0x2f   : > { %v375_v32 = vrot.slane %v374_v30, 2  ;;  %v369_v33 = vadd.f32 %v368_v31, %v367_v29 }
  0x31   : > { %v376_v34 = vadd.f32 %v375_v32, %v374_v30  ;;  %v370_v35 = vrot.slane %v369_v33, 1 }
  0x33   : > { %v377_v36 = vrot.slane %v376_v34, 1  ;;  %v371_v37 = vadd.f32 %v370_v35, %v369_v33 }
  0x35   : > { %v378_v38 = vadd.f32 %v377_v36, %v376_v34  ;;  %v379_v39 = vmul.f32 0.25, %v371_v37 }
  0x37   : > { %v380_v40 = vmul.f32 0.25, %v378_v38  ;;  %v381_v41 = vadd.f32 1e-06, %v379_v39 }
  0x39   : > { %v382_v42 = vadd.f32 1e-06, %v380_v40  ;;  %4110 = vrsqrt.f32 %v381_v41  ;;  %v4513_v40 = vld [vmem:[%s7579_s4] ss:$0 sm:$0xff] }
  0x3b   : > { %4112 = vrsqrt.f32 %v382_v42 }
  0x46   : > { %v4111_v43 = vpop.eup %4110 }
  0x48   : > { %v4113_v44 = vpop.eup %4112 }
  0x49   : > { %v387_v45 = vcombine.low %v4111_v43, %v4113_v44 }
  0x4b   : > { %v389_v47 = vmul.f32 %v387_v45, %v360_v22 }
  0x4d   : > { %v397_v53 = vcombine.high %v389_v47, %v389_v47 }
  0x88   : > { %v394_v46 = vpop.permute.xlu0 %393 }
  0x89   : > { %v399_v48 = vmul.f32 %v394_v46, %v389_v47  ;;  %v400_v54 = vmul.f32 %v397_v53, %v394_v46 }
  0x8c   : > { %v405_v49 = vpop.permute.xlu0 %404 }
  0x8d   : > { %v407_v50 = vadd.f32 %v405_v49, %v399_v48  ;;  %v408_v55 = vadd.f32 %v405_v49, %v400_v54 }
  0x8f   : > { %409 = vxpose.xlu1.b32.start.end [1/1] (short) %v407_v50, 128 }
  0xcc   : > { %441 = vxpose.xlu1.b32.start.end [1/1] (short) %v408_v55, 128 }
 0x10b   : > { %v425_v56 = vpop.trf.xlu1 }
 0x10f   : > { %v426_v57 = vpop.trf.xlu1 }
 0x110   : > { %v473_v58 = vpack.c.bf16 %v426_v57, %v425_v56 }
 0x112   : > { %4029 = vmatprep.mubr.msk.bf16.mxu0 %vm497_vm2, %v473_v58 }
 0x113   : > { %v427_v59 = vpop.trf.xlu1 }
 0x117   : > { %v428_v60 = vpop.trf.xlu1 }
 0x118   : > { %v474_v61 = vpack.c.bf16 %v428_v60, %v427_v59 }
 0x11a   : > { %4030 = vmatmul.mubr.msk.bf16.vlgmr.msra.gmra.mxu0 %vm497_vm2, %v474_v61 }
 0x11b   : > { %v429_v62 = vpop.trf.xlu1 }
 0x11f   : > { %v430_v63 = vpop.trf.xlu1 }
 0x120   : > { %v475_v0 = vpack.c.bf16 %v430_v63, %v429_v62 }
 0x122   : > { %4033 = vmatprep.mubr.msk.bf16.mxu0 %vm497_vm2, %v475_v0 }
 0x123   : > { %v431_v1 = vpop.trf.xlu1 }
 0x127   : > { %v432_v2 = vpop.trf.xlu1 }
 0x128   : > { %v476_v3 = vpack.c.bf16 %v432_v2, %v431_v1 }
 0x12a   : > { %4034 = vmatmul.mubr.msk.bf16.gmra.mxu0 %vm497_vm2, %v476_v3 }
 0x12b   : > { %v433_v4 = vpop.trf.xlu1 }
 0x12f   : > { %v434_v5 = vpop.trf.xlu1 }
 0x130   : > { %v477_v6 = vpack.c.bf16 %v434_v5, %v433_v4 }
 0x132   : > { %4037 = vmatprep.mubr.msk.bf16.mxu0 %vm497_vm2, %v477_v6 }
 0x133   : > { %v435_v7 = vpop.trf.xlu1 }
 0x137   : > { %v436_v8 = vpop.trf.xlu1 }
 0x138   : > { %v478_v9 = vpack.c.bf16 %v436_v8, %v435_v7 }
 0x13a   : > { %4038 = vmatmul.mubr.msk.bf16.gmra.mxu0 %vm497_vm2, %v478_v9 }
 0x13b   : > { %v437_v10 = vpop.trf.xlu1 }
 0x13f   : > { %v438_v11 = vpop.trf.xlu1 }
 0x140   : > { %v479_v12 = vpack.c.bf16 %v438_v11, %v437_v10  ;;  %v7586_v11 = vmov -1.0  }
 0x142   : > { %4041 = vmatprep.mubr.msk.bf16.mxu0 %vm497_vm2, %v479_v12 }
 0x143   : > { %v439_v13 = vpop.trf.xlu1 }
 0x147   : > { %v440_v14 = vpop.trf.xlu1 }
 0x148   : > { %v480_v15 = vpack.c.bf16 %v440_v14, %v439_v13 }
 0x14a   : > { %4042 = vmatmul.mubr.msk.bf16.gmra.mxu0 %vm497_vm2, %v480_v15 }
 0x14b   : > { %v457_v16 = vpop.trf.xlu1 }
 0x14f   : > { %v458_v17 = vpop.trf.xlu1 }
 0x150   : > { %v481_v18 = vpack.c.bf16 %v458_v17, %v457_v16 }
 0x152   : > { %4045 = vmatprep.mubr.msk.bf16.mxu0 %vm497_vm2, %v481_v18 }
 0x153   : > { %v459_v19 = vpop.trf.xlu1 }
 0x157   : > { %v460_v20 = vpop.trf.xlu1 }
 0x158   : > { %v482_v21 = vpack.c.bf16 %v460_v20, %v459_v19 }
 0x15a   : > { %4046 = vmatmul.mubr.msk.bf16.gmra.mxu0 %vm497_vm2, %v482_v21 }
 0x15b   : > { %v461_v22 = vpop.trf.xlu1 }
 0x15f   : > { %v462_v23 = vpop.trf.xlu1 }
 0x160   : > { %v483_v24 = vpack.c.bf16 %v462_v23, %v461_v22 }
 0x162   : > { %4049 = vmatprep.mubr.msk.bf16.mxu0 %vm497_vm2, %v483_v24 }
 0x163   : > { %v463_v25 = vpop.trf.xlu1 }
 0x167   : > { %v464_v26 = vpop.trf.xlu1 }
 0x168   : > { %v484_v27 = vpack.c.bf16 %v464_v26, %v463_v25 }
 0x16a   : > { %4050 = vmatmul.mubr.msk.bf16.gmra.mxu0 %vm497_vm2, %v484_v27 }
 0x16b   : > { %v465_v28 = vpop.trf.xlu1 }
 0x16f   : > { %v466_v29 = vpop.trf.xlu1 }
 0x170   : > { %v485_v30 = vpack.c.bf16 %v466_v29, %v465_v28 }
 0x172   : > { %4053 = vmatprep.mubr.msk.bf16.mxu0 %vm497_vm2, %v485_v30 }
 0x173   : > { %v467_v31 = vpop.trf.xlu1 }
 0x177   : > { %v468_v32 = vpop.trf.xlu1 }
 0x178   : > { %v486_v33 = vpack.c.bf16 %v468_v32, %v467_v31 }
 0x17a   : > { %4054 = vmatmul.mubr.msk.bf16.gmra.mxu0 %vm497_vm2, %v486_v33 }
 0x17b   : > { %v469_v34 = vpop.trf.xlu1 }
 0x17f   : > { %v470_v35 = vpop.trf.xlu1 }
 0x180   : > { %v487_v36 = vpack.c.bf16 %v470_v35, %v469_v34 }
 0x182   : > { %4057 = vmatprep.mubr.msk.bf16.mxu0 %vm497_vm2, %v487_v36 }
 0x183   : > { %v471_v37 = vpop.trf.xlu1 }
 0x187   : > { %v472_v38 = vpop.trf.xlu1 }
 0x188   : > { %v488_v39 = vpack.c.bf16 %v472_v38, %v471_v37 }
 0x18a   : > { %4058 = vmatmul.mubr.msk.bf16.gmra.mxu0 %vm497_vm2, %v488_v39 }
 0x1da   : > { %v4031_v41 = vpop.f32.mrf.mxu0 }
 0x1db   : > { %v593_v42 = vadd.f32 %v4031_v41, %v4513_v40 }
 0x1dc   : > { %v584_v43 = vpop.f32.mrf.mxu0 }
 0x1dd   : > { %v745_v44 = vmul.f32 0.70710677, %v593_v42  ;;  %v585_v45 = vadd.f32 %v4513_v40, %v584_v43  ;;  %v4528_v10 = vmul.f32 0.5, %v593_v42 }
 0x1de   : > { %v4032_v46 = vpop.f32.mrf.mxu0 }
 0x1df   : > { %v841_v47 = vand.u32 2147483647, %v745_v44  ;;  %v743_v48 = vmul.f32 0.70710677, %v585_v45  ;;  %v596_v49 = vadd.f32 %v4032_v46, %v4513_v40  ;;  %vm777_vm3 = vcmp.ge.f32.partialorder %v745_v44, 0.0 }
 0x1e0   : > { %v587_v50 = vpop.f32.mrf.mxu0  ;;  %v4531_v12 = vsel %vm777_vm3, 1.0, %v7586_v11  ;;  %v4533_v13 = vmul.f32 0.5, %v585_v45 }
 0x1e1   : > { %v873_v51 = vmul.f32 0.3275911, %v841_v47  ;;  %v839_v52 = vand.u32 2147483647, %v743_v48  ;;  %v746_v53 = vmul.f32 0.70710677, %v596_v49  ;;  %v588_v54 = vadd.f32 %v4513_v40, %v587_v50 }
 0x1e2   : > { %v1353_v61 = vsub.f32 0.0, %v841_v47  ;;  %vm775_vm4 = vcmp.ge.f32.partialorder %v743_v48, 0.0  ;;  %v4548_v24 = vmul.f32 0.5, %v596_v49 }
 0x1e3   : > { %v905_v55 = vadd.f32 1.0, %v873_v51  ;;  %v871_v56 = vmul.f32 0.3275911, %v839_v52  ;;  %v842_v57 = vand.u32 2147483647, %v746_v53  ;;  %v1351_v63 = vsub.f32 0.0, %v839_v52 }
 0x1e4   : > { %v4519_v58 = vmul.f32 0.70710677, %v588_v54  ;;  %v1385_v3 = vmul.f32 %v1353_v61, %v841_v47  ;;  %v4543_v20 = vsel %vm775_vm4, 1.0, %v7586_v11  ;;  %vm778_vm5 = vcmp.ge.f32.partialorder %v746_v53, 0.0 }
 0x1e5   : > { %4114 = vrcp.f32 %v905_v55  ;;  %v903_v59 = vadd.f32 1.0, %v871_v56  ;;  %v874_v60 = vmul.f32 0.3275911, %v842_v57  ;;  %v1354_v4 = vsub.f32 0.0, %v842_v57 }
 0x1e6   : > { %v840_v62 = vand.u32 2147483647, %v4519_v58  ;;  %v1383_v7 = vmul.f32 %v1351_v63, %v839_v52  ;;  %v1419_v16 = vmul.f32 1.442695, %v1385_v3  ;;  %v4553_v28 = vmul.f32 0.5, %v588_v54 }
 0x1e7   : > { %4116 = vrcp.f32 %v903_v59  ;;  %v906_v0 = vadd.f32 1.0, %v874_v60  ;;  %v1386_v17 = vmul.f32 %v1354_v4, %v842_v57  ;;  %vm776_vm6 = vcmp.ge.f32.partialorder %v4519_v58, 0.0 }
 0x1e8   : > { %v872_v1 = vmul.f32 0.3275911, %v840_v62  ;;  %v1415_v21 = vmul.f32 1.442695, %v1383_v7  ;;  %v1352_v22 = vsub.f32 0.0, %v840_v62  ;;  %v4562_v41 = vsel %vm778_vm5, 1.0, %v7586_v11 }
 0x1e9   : > { %4118 = vrcp.f32 %v906_v0  ;;  %v1421_v33 = vmul.f32 1.442695, %v1386_v17  ;;  %v4575_v49 = vsel %vm776_vm6, 1.0, %v7586_v11 }
 0x1ea   : > { %v4035_v2 = vpop.f32.mrf.mxu0  ;;  %v4522_v5 = vadd.f32 1.0, %v872_v1  ;;  %v1384_v35 = vmul.f32 %v1352_v22, %v840_v62 }
 0x1eb   : > { %v609_v6 = vadd.f32 %v4035_v2, %v4513_v40 }
 0x1ec   : > { %v600_v8 = vpop.f32.mrf.mxu0  ;;  %4120 = vrcp.f32 %v4522_v5  ;;  %v1417_v53 = vmul.f32 1.442695, %v1384_v35 }
 0x1ed   : > { %v4526_v9 = vmul.f32 0.70710677, %v609_v6  ;;  %v4536_v14 = vadd.f32 %v4513_v40, %v600_v8  ;;  %4122 = vpow2.f32 %v1419_v16  ;;  %v4586_v61 = vmul.f32 0.5, %v609_v6 }
 0x1ee   : > { %v4036_v15 = vpop.f32.mrf.mxu0  ;;  %4124 = vpow2.f32 %v1415_v21 }
 0x1ef   : > { %v845_v18 = vand.u32 2147483647, %v4526_v9  ;;  %v4540_v19 = vadd.f32 %v4036_v15, %v4513_v40  ;;  %v4546_v23 = vmul.f32 0.70710677, %v4536_v14  ;;  %vm781_vm7 = vcmp.ge.f32.partialorder %v4526_v9, 0.0 }
 0x1f0   : > { %v603_v31 = vpop.f32.mrf.mxu0 }
 0x1f1   : > { %v877_v25 = vmul.f32 0.3275911, %v845_v18  ;;  %v4551_v26 = vmul.f32 0.70710677, %v4540_v19  ;;  %v1357_v29 = vsub.f32 0.0, %v845_v18  ;;  %v4566_v42 = vadd.f32 %v4513_v40, %v603_v31 }
 0x1f2   : > { %v4115_v27 = vpop.eup %4114  ;;  %v843_v30 = vand.u32 2147483647, %v4546_v23  ;;  %vm779_vm11 = vcmp.ge.f32.partialorder %v4546_v23, 0.0 }
 0x1f3   : > { %v969_v32 = vmul.f32 %v4115_v27, %v905_v55  ;;  %v4557_v34 = vadd.f32 1.0, %v877_v25  ;;  %v846_v37 = vand.u32 2147483647, %v4551_v26  ;;  %v1389_v44 = vmul.f32 %v1357_v29, %v845_v18 }
 0x1f4   : > { %v875_v36 = vmul.f32 0.3275911, %v843_v30  ;;  %v4117_v38 = vpop.eup %4116  ;;  %v1355_v50 = vsub.f32 0.0, %v843_v30  ;;  %v4582_v57 = vmul.f32 0.70710677, %v4566_v42  ;;  %vm782_vm12 = vcmp.ge.f32.partialorder %v4551_v26, 0.0 }
 0x1f5   : > { %v1001_v39 = vsub.f32 2.0, %v969_v32  ;;  %4126 = vrcp.f32 %v4557_v34  ;;  %v967_v43 = vmul.f32 %v4117_v38, %v903_v59  ;;  %v878_v46 = vmul.f32 0.3275911, %v846_v37 }
 0x1f6   : > { %v4568_v45 = vadd.f32 1.0, %v875_v36  ;;  %v4119_v47 = vpop.eup %4118  ;;  %4128 = vpow2.f32 %v1421_v33  ;;  %v1358_v56 = vsub.f32 0.0, %v846_v37  ;;  %v1427_v62 = vmul.f32 1.442695, %v1389_v44 }
 0x1f7   : > { %v4570_v48 = vmul.f32 %v4115_v27, %v1001_v39  ;;  %v999_v51 = vsub.f32 2.0, %v967_v43  ;;  %v970_v52 = vmul.f32 %v4119_v47, %v906_v0  ;;  %v4579_v55 = vadd.f32 1.0, %v878_v46 }
 0x1f8   : > { %4130 = vrcp.f32 %v4568_v45  ;;  %v1387_v1 = vmul.f32 %v1355_v50, %v843_v30  ;;  %v844_v7 = vand.u32 2147483647, %v4582_v57  ;;  %v1390_v6 = vmul.f32 %v1358_v56, %v846_v37 }
 0x1f9   : > { %v1065_v54 = vmul.f32 1.0614054, %v4570_v48  ;;  %v4121_v59 = vpop.eup %4120  ;;  %v4584_v60 = vmul.f32 %v4117_v38, %v999_v51  ;;  %v1002_v58 = vsub.f32 2.0, %v970_v52  ;;  %4132 = vrcp.f32 %v4579_v55 }
 0x1fa   : > { %v968_v0 = vmul.f32 %v4121_v59, %v4522_v5  ;;  %v4039_v2 = vpop.f32.mrf.mxu0  ;;  %4134 = vpow2.f32 %v1417_v53  ;;  %v876_v17 = vmul.f32 0.3275911, %v844_v7  ;;  %v1423_v25 = vmul.f32 1.442695, %v1387_v1  ;;  %v4123_v27 = vpop.eup %4122 }
 0x1fb   : > { %v1097_v63 = vadd.f32 -1.4531521, %v1065_v54  ;;  %v1063_v3 = vmul.f32 1.0614054, %v4584_v60  ;;  %v4591_v4 = vmul.f32 %v4119_v47, %v1002_v58  ;;  %v4598_v18 = vadd.f32 %v4039_v2, %v4513_v40  ;;  %v4125_v33 = vpop.eup %4124 }
 0x1fc   : > { %v1000_v15 = vsub.f32 2.0, %v968_v0  ;;  %4136 = vpow2.f32 %v1427_v62  ;;  %v4603_v31 = vadd.f32 1.0, %v876_v17  ;;  %v1356_v32 = vsub.f32 0.0, %v844_v7  ;;  %v616_v52 = vpop.f32.mrf.mxu0 }
 0x1fd   : > { %v1129_v8 = vmul.f32 %v1097_v63, %v4570_v48  ;;  %v1095_v16 = vadd.f32 -1.4531521, %v1063_v3  ;;  %v1066_v5 = vmul.f32 1.0614054, %v4591_v4  ;;  %v1429_v37 = vmul.f32 1.442695, %v1390_v6 }
 0x1fe   : > { %v4600_v22 = vmul.f32 %v4121_v59, %v1000_v15  ;;  %v4608_v38 = vmul.f32 0.70710677, %v4598_v18  ;;  %v4614_v46 = vsel %vm781_vm7, 1.0, %v7586_v11  ;;  %4138 = vrcp.f32 %v4603_v31 }
 0x1ff   : > { %v1161_v21 = vadd.f32 1.4214138, %v1129_v8  ;;  %v1127_v29 = vmul.f32 %v1095_v16, %v4584_v60  ;;  %v1098_v30 = vadd.f32 -1.4531521, %v1066_v5  ;;  %4140 = vpow2.f32 %v1423_v25 }
 0x200   : > { %v1064_v36 = vmul.f32 1.0614054, %v4600_v22  ;;  %v1388_v59 = vmul.f32 %v1356_v32, %v844_v7  ;;  %v4620_v58 = vand.u32 2147483647, %v4608_v38  ;;  %4142 = vpow2.f32 %v1429_v37 }
 0x201   : > { %v1193_v35 = vmul.f32 %v1161_v21, %v4570_v48  ;;  %v1159_v43 = vadd.f32 1.4214138, %v1127_v29  ;;  %v1130_v44 = vmul.f32 %v1098_v30, %v4591_v4  ;;  %v4627_v3 = vadd.f32 %v4513_v40, %v616_v52 }
 0x202   : > { %v4127_v39 = vpop.eup %4126  ;;  %v1096_v50 = vadd.f32 -1.4531521, %v1064_v36  ;;  %v881_v6 = vmul.f32 0.3275911, %v4620_v58  ;;  %v1425_v25 = vmul.f32 1.442695, %v1388_v59 }
 0x203   : > { %v1225_v47 = vadd.f32 -0.28449672, %v1193_v35  ;;  %v973_v51 = vmul.f32 %v4127_v39, %v4557_v34  ;;  %v4129_v53 = vpop.eup %4128  ;;  %v1191_v54 = vmul.f32 %v1159_v43, %v4584_v60  ;;  %v1162_v56 = vadd.f32 1.4214138, %v1130_v44 }
 0x204   : > { %v1128_v63 = vmul.f32 %v1096_v50, %v4600_v22  ;;  %v4640_v43 = vadd.f32 1.0, %v881_v6  ;;  %v715_v26 = vmul.f32 0.5, %v4536_v14  ;;  %vm780_vm13 = vcmp.ge.f32.partialorder %v4582_v57, 0.0 }
 0x205   : > { %v4131_v62 = vpop.eup %4130  ;;  %v1257_v9 = vmul.f32 %v1225_v47, %v4570_v48  ;;  %v1005_v0 = vsub.f32 2.0, %v973_v51  ;;  %v1223_v1 = vadd.f32 -0.28449672, %v1191_v54  ;;  %v1194_v34 = vmul.f32 %v1162_v56, %v4591_v4 }
 0x206   : > { %v971_v2 = vmul.f32 %v4131_v62, %v4568_v45  ;;  %v1160_v7 = vadd.f32 1.4214138, %v1128_v63  ;;  %v4133_v16 = vpop.eup %4132  ;;  %4144 = vrcp.f32 %v4640_v43  ;;  %v716_v57 = vmul.f32 0.5, %v4566_v42 }
 0x207   : > { %v1289_v8 = vadd.f32 0.2548296, %v1257_v9  ;;  %v4629_v15 = vmul.f32 %v4127_v39, %v1005_v0  ;;  %v1255_v5 = vmul.f32 %v1223_v1, %v4584_v60  ;;  %v1226_v17 = vadd.f32 -0.28449672, %v1194_v34  ;;  %v4135_v29 = vpop.eup %4134 }
 0x208   : > { %v1003_v21 = vsub.f32 2.0, %v971_v2  ;;  %v1192_v45 = vmul.f32 %v1160_v7, %v4600_v22  ;;  %v974_v35 = vmul.f32 %v4133_v16, %v4579_v55  ;;  %4146 = vpow2.f32 %v1425_v25 }
 0x209   : > { %v1321_v30 = vmul.f32 %v1289_v8, %v4570_v48  ;;  %v1069_v32 = vmul.f32 1.0614054, %v4629_v15  ;;  %v1287_v36 = vadd.f32 0.2548296, %v1255_v5  ;;  %v1258_v37 = vmul.f32 %v1226_v17, %v4591_v4  ;;  %v4642_v52 = vpop.eup %4136 }
 0x20a   : > { %v4638_v39 = vmul.f32 %v4131_v62, %v1003_v21  ;;  %v1224_v47 = vadd.f32 -0.28449672, %v1192_v45  ;;  %v1006_v51 = vsub.f32 2.0, %v974_v35  ;;  %vm785_vm14 = vcmp.ge.f32.partialorder %v4608_v38, 0.0 }
 0x20b   : > { %v1481_v44 = vmul.f32 %v4123_v27, %v1321_v30  ;;  %v1101_v50 = vadd.f32 -1.4531521, %v1069_v32  ;;  %v1319_v48 = vmul.f32 %v1287_v36, %v4584_v60  ;;  %v1290_v54 = vadd.f32 0.2548296, %v1258_v37  ;;  %v4139_v1 = vpop.eup %4138 }
 0x20c   : > { %v1067_v56 = vmul.f32 1.0614054, %v4638_v39  ;;  %v1256_v59 = vmul.f32 %v1224_v47, %v4600_v22  ;;  %v4649_v27 = vmul.f32 %v4133_v16, %v1006_v51  ;;  %v4654_v7 = vpop.eup %4140  ;;  %v972_v16 = vmul.f32 %v4139_v1, %v4603_v31 }
 0x20d   : > { %v1513_v55 = vsub.f32 1.0, %v1481_v44  ;;  %v1133_v62 = vmul.f32 %v1101_v50, %v4629_v15  ;;  %v1479_v9 = vmul.f32 %v4125_v33, %v1319_v48  ;;  %v1322_v63 = vmul.f32 %v1290_v54, %v4591_v4  ;;  %v4660_v30 = vpop.eup %4142 }
 0x20e   : > { %v1099_v0 = vadd.f32 -1.4531521, %v1067_v56  ;;  %v1288_v34 = vadd.f32 0.2548296, %v1256_v59  ;;  %v1070_v8 = vmul.f32 1.0614054, %v4649_v27 }
 0x20f   : > { %v1545_v60 = vmul.f32 %v1513_v55, %v4531_v12  ;;  %v1165_v2 = vadd.f32 1.4214138, %v1133_v62  ;;  %v1511_v6 = vsub.f32 1.0, %v1479_v9  ;;  %v1482_v5 = vmul.f32 %v4129_v53, %v1322_v63 }
 0x210   : > { %v1131_v17 = vmul.f32 %v1099_v0, %v4638_v39  ;;  %v1320_v4 = vmul.f32 %v1288_v34, %v4600_v22  ;;  %v1102_v25 = vadd.f32 -1.4531521, %v1070_v8  ;;  %v1004_v35 = vsub.f32 2.0, %v972_v16 }
 0x211   : > { %v1577_v33 = vadd.f32 1.0, %v1545_v60  ;;  %v1197_v21 = vmul.f32 %v1165_v2, %v4629_v15  ;;  %v1543_v12 = vmul.f32 %v1511_v6, %v4543_v20  ;;  %v1514_v45 = vsub.f32 1.0, %v1482_v5 }
 0x212   : > { %v1163_v32 = vadd.f32 1.4214138, %v1131_v17  ;;  %v1480_v36 = vmul.f32 %v4135_v29, %v1320_v4  ;;  %v1134_v31 = vmul.f32 %v1102_v25, %v4649_v27  ;;  %v4669_v50 = vmul.f32 %v4139_v1, %v1004_v35 }
 0x213   : > { %v4664_v53 = vmul.f32 %v1577_v33, %v4528_v10  ;;  %v1229_v37 = vadd.f32 -0.28449672, %v1197_v21  ;;  %v1575_v44 = vadd.f32 1.0, %v1543_v12  ;;  %v1546_v22 = vmul.f32 %v1514_v45, %v4562_v41  ;;  %v4145_v60 = vpop.eup %4144 }
 0x214   : > { %v1195_v47 = vmul.f32 %v1163_v32, %v4638_v39  ;;  %v1512_v51 = vsub.f32 1.0, %v1480_v36  ;;  %v1166_v10 = vadd.f32 1.4214138, %v1134_v31  ;;  %v1068_v55 = vmul.f32 1.0614054, %v4669_v50 }
 0x215   : > { %7635 = vst [vmem:[#allocation3_spill] sm:$0xff] %v4664_v53  ;;  %v1684_v20 = vrot.slane %v4664_v53, 7  ;;  %v1261_v48 = vmul.f32 %v1229_v37, %v4629_v15  ;;  %v4675_v29 = vmul.f32 %v1575_v44, %v4533_v13  ;;  %v1578_v54 = vadd.f32 1.0, %v1546_v22  ;;  %v4147_v33 = vpop.eup %4146 }
 0x216   : > { %v1227_v56 = vadd.f32 -0.28449672, %v1195_v47  ;;  %v1544_v59 = vmul.f32 %v1512_v51, %v4575_v49  ;;  %v1198_v9 = vmul.f32 %v1166_v10, %v4649_v27  ;;  %v1100_v1 = vadd.f32 -1.4531521, %v1068_v55 }
 0x217   : > { %7636 = vst [vmem:[#allocation4_spill] sm:$0xff] %v4675_v29  ;;  %v1778_v41 = vsel %vm1680_vm8, 0.0, %v1684_v20  ;;  %v1293_v62 = vadd.f32 0.2548296, %v1261_v48  ;;  %v1681_v63 = vrot.slane %v4675_v29, 7  ;;  %v4684_v0 = vmul.f32 %v1578_v54, %v4548_v24 }
 0x218   : > { %1813 = vst.msk [vmem:[#allocation2 + $0x30] sm:$0xff] %vm1639_vm9, %v1778_v41  ;;  %v1259_v13 = vmul.f32 %v1227_v56, %v4638_v39  ;;  %v1576_v34 = vadd.f32 1.0, %v1544_v59  ;;  %v1230_v8 = vadd.f32 -0.28449672, %v1198_v9  ;;  %v1361_v49 = vsub.f32 0.0, %v4620_v58 }
 0x219   : > { %7637 = vst [vmem:[#allocation5_spill] sm:$0xff] %v4684_v0  ;;  %v1325_v2 = vmul.f32 %v1293_v62, %v4629_v15  ;;  %v1777_v6 = vsel %vm1680_vm8, 0.0, %v1681_v63  ;;  %v1685_v5 = vrot.slane %v4684_v0, 7  ;;  %v1132_v16 = vmul.f32 %v1100_v1, %v4669_v50 }
 0x21a   : > { %v1291_v17 = vadd.f32 0.2548296, %v1259_v13  ;;  %1810 = vst.msk [vmem:[#allocation2 + $0x18] sm:$0xff] %vm1639_vm9, %v1777_v6  ;;  %v4694_v24 = vmul.f32 %v1576_v34, %v4553_v28  ;;  %v1262_v15 = vmul.f32 %v1230_v8, %v4649_v27  ;;  %v977_v21 = vmul.f32 %v4145_v60, %v4640_v43 }
 0x21b   : > { %v1485_v4 = vmul.f32 %v4642_v52, %v1325_v2  ;;  %v1686_v25 = vsel %vm1680_vm8, %v1684_v20, %v1685_v5  ;;  %v1794_v12 = vsel %vm1680_vm8, %v1685_v5, 0.0  ;;  %v1164_v32 = vadd.f32 1.4214138, %v1132_v16 }
 0x21c   : > { %7638 = vst [vmem:[#allocation6_spill] sm:$0xff] %v4694_v24  ;;  %v1323_v45 = vmul.f32 %v1291_v17, %v4638_v39  ;;  %1814 = vst.msk [vmem:[#allocation2 + $0x38] sm:$0xff] %vm1639_vm9, %v1686_v25  ;;  %v1682_v28 = vrot.slane %v4694_v24, 7  ;;  %v1294_v36 = vadd.f32 0.2548296, %v1262_v15  ;;  %v1009_v52 = vsub.f32 2.0, %v977_v21 }
 0x21d   : > { %1815 = vst.msk [vmem:[#allocation2 + $0x40] sm:$0x3] %vm1642_vm10, %v1794_v12  ;;  %v1517_v35 = vsub.f32 1.0, %v1485_v4  ;;  %v1196_v43 = vmul.f32 %v1164_v32, %v4669_v50  ;;  %v1393_v31 = vmul.f32 %v1361_v49, %v4620_v58  ;;  %v4709_v44 = vmul.f32 0.70710677, %v4627_v3 }
 0x21e   : > { %v1483_v37 = vmul.f32 %v4654_v7, %v1323_v45  ;;  %v1683_v39 = vsel %vm1680_vm8, %v1681_v63, %v1682_v28  ;;  %v1793_v22 = vsel %vm1680_vm8, %v1682_v28, 0.0  ;;  %v1326_v20 = vmul.f32 %v1294_v36, %v4649_v27  ;;  %v4040_v27 = vpop.f32.mrf.mxu0 }
 0x21f   : > { %v1549_v47 = vmul.f32 %v1517_v35, %v4614_v46  ;;  %1811 = vst.msk [vmem:[#allocation2 + $0x20] sm:$0xff] %vm1639_vm9, %v1683_v39  ;;  %v811_v7 = vsel %vm779_vm11, 1.0, %v7586_v11  ;;  %v1228_v51 = vadd.f32 -0.28449672, %v1196_v43  ;;  %v4720_v48 = vmul.f32 %v4145_v60, %v1009_v52 }
 0x220   : > { %1812 = vst.msk [vmem:[#allocation2 + $0x28] sm:$0x3] %vm1642_vm10, %v1793_v22  ;;  %v1515_v58 = vsub.f32 1.0, %v1483_v37  ;;  %v1486_v54 = vmul.f32 %v4660_v30, %v1326_v20  ;;  %v4725_v46 = vand.u32 2147483647, %v4709_v44  ;;  %v1896_v41 = vlaneseq }
 0x221   : > { %v1581_v10 = vadd.f32 1.0, %v1549_v47  ;;  %v1260_v55 = vmul.f32 %v1228_v51, %v4669_v50  ;;  %v1073_v23 = vmul.f32 1.0614054, %v4720_v48  ;;  %v1435_v9 = vmul.f32 1.442695, %v1393_v31 }
 0x222   : > { %v1547_v56 = vmul.f32 %v1515_v58, %v811_v7  ;;  %v1518_v62 = vsub.f32 1.0, %v1486_v54  ;;  %v879_v63 = vmul.f32 0.3275911, %v4725_v46  ;;  %v814_v13 = vsel %vm782_vm12, 1.0, %v7586_v11 }
 0x223   : > { %v4730_v59 = vmul.f32 %v1581_v10, %v4586_v61  ;;  %v1292_v1 = vadd.f32 0.2548296, %v1260_v55  ;;  %v718_v34 = vmul.f32 0.5, %v4540_v19  ;;  %v4738_v8 = vadd.f32 %v4040_v27, %v4513_v40  ;;  %v619_v61 = vpop.f32.mrf.mxu0 }
 0x224   : > { %v1579_v30 = vadd.f32 1.0, %v1547_v56  ;;  %v1550_v2 = vmul.f32 %v1518_v62, %v814_v13  ;;  %v1105_v14 = vadd.f32 -1.4531521, %v1073_v23  ;;  %4148 = vpow2.f32 %v1435_v9 }
 0x225   : > { %7639 = vst [vmem:[#allocation7_spill] sm:$0xff] %v4730_v59  ;;  %v1690_v60 = vrot.slane %v4730_v59, 7  ;;  %v1324_v6 = vmul.f32 %v1292_v1, %v4669_v50  ;;  %v4745_v16 = vadd.f32 1.0, %v879_v63  ;;  %v4751_v21 = vadd.f32 %v4513_v40, %v619_v61  ;;  %v4043_v28 = vpop.f32.mrf.mxu0  ;;  %v1858_v63 = vld [vmem:[%s7580_s5] sm:$0xff] }
 0x226   : > { %v4740_v49 = vmul.f32 %v1579_v30, %v715_v26  ;;  %v1582_v17 = vadd.f32 1.0, %v1550_v2  ;;  %v1137_v15 = vmul.f32 %v1105_v14, %v4720_v48  ;;  %v4757_v50 = vmul.f32 0.70710677, %v4738_v8 }
 0x227   : > { %v1780_v5 = vsel %vm1680_vm8, 0.0, %v1690_v60  ;;  %v1484_v4 = vmul.f32 %v4147_v33, %v1324_v6  ;;  %4150 = vrcp.f32 %v4745_v16  ;;  %v812_v35 = vsel %vm780_vm13, 1.0, %v7586_v11  ;;  %v632_v61 = vpop.f32.mrf.mxu0 }
 0x228   : > { %7640 = vst [vmem:[#allocation8_spill] sm:$0xff] %v4740_v49  ;;  %1819 = vst.msk [vmem:[#allocation2 + $0x60] sm:$0xff] %vm1639_vm9, %v1780_v5  ;;  %v1687_v19 = vrot.slane %v4740_v49, 7  ;;  %v4753_v25 = vmul.f32 %v1582_v17, %v718_v34  ;;  %v1169_v32 = vadd.f32 1.4214138, %v1137_v15  ;;  %v1897_v36 = vshrl.u32 %v1896_v41, 7 }
 0x229   : > { %v1516_v45 = vsub.f32 1.0, %v1484_v4  ;;  %v4766_v52 = vand.u32 2147483647, %v4757_v50  ;;  %v4770_v31 = vmul.f32 0.70710677, %v4751_v21  ;;  %v4776_v20 = vadd.f32 %v4043_v28, %v4513_v40 }
 0x22a   : > { %7641 = vst [vmem:[#allocation9_spill] sm:$0xff] %v4753_v25  ;;  %v1779_v12 = vsel %vm1680_vm8, 0.0, %v1687_v19  ;;  %v1691_v33 = vrot.slane %v4753_v25, 7  ;;  %v1201_v43 = vmul.f32 %v1169_v32, %v4720_v48  ;;  %v1898_v10 = vsub.s32 0, %v1897_v36 }
 0x22b   : > { %1816 = vst.msk [vmem:[#allocation2 + $0x48] sm:$0xff] %vm1639_vm9, %v1779_v12  ;;  %v1548_v37 = vmul.f32 %v1516_v45, %v812_v35  ;;  %v882_v47 = vmul.f32 0.3275911, %v4766_v52  ;;  %v4782_v51 = vand.u32 2147483647, %v4770_v31  ;;  %v1966_v56 = vsub.s32 3, %v1897_v36 }
 0x22c   : > { %v1692_v39 = vsel %vm1680_vm8, %v1690_v60, %v1691_v33  ;;  %v1796_v22 = vsel %vm1680_vm8, %v1691_v33, 0.0  ;;  %v1233_v58 = vadd.f32 -0.28449672, %v1201_v43  ;;  %v2034_v23 = vsub.s32 6, %v1897_v36 }
 0x22d   : > { %1820 = vst.msk [vmem:[#allocation2 + $0x68] sm:$0xff] %vm1639_vm9, %v1692_v39  ;;  %v1580_v7 = vadd.f32 1.0, %v1548_v37  ;;  %v4784_v54 = vadd.f32 1.0, %v882_v47  ;;  %v880_v41 = vmul.f32 0.3275911, %v4782_v51  ;;  %v1359_v62 = vsub.f32 0.0, %v4725_v46 }
 0x22e   : > { %1821 = vst.msk [vmem:[#allocation2 + $0x70] sm:$0x3] %vm1642_vm10, %v1796_v22  ;;  %v1265_v55 = vmul.f32 %v1233_v58, %v4720_v48  ;;  %v4793_v42 = vmul.f32 0.70710677, %v4776_v20  ;;  %v2138_v26 = vsub.s32 1, %v1897_v36  ;;  %v2206_v1 = vsub.s32 4, %v1897_v36 }
 0x22f   : > { %v4786_v27 = vmul.f32 %v1580_v7, %v716_v57  ;;  %4152 = vrcp.f32 %v4784_v54  ;;  %v4799_v13 = vadd.f32 1.0, %v880_v41  ;;  %v2274_v60 = vsub.s32 7, %v1897_v36  ;;  %v2105_v58 = vld [vmem:[#allocation2 + $0x39] sm:$0xff] }
 0x230   : > { %v1297_v30 = vadd.f32 0.2548296, %v1265_v55  ;;  %v2378_v34 = vsub.s32 2, %v1897_v36  ;;  %v2446_v2 = vsub.s32 5, %v1897_v36  ;;  %v4807_v4 = vrot.slane %v1858_v63, %v1898_v10  ;;  %v1865_v36 = vld [vmem:[#allocation2 + $0x38] sm:$0xff]  ;;  %v4044_v55 = vpop.f32.mrf.mxu0 }
 0x231   : > { %7642 = vst [vmem:[#allocation10_spill] sm:$0xff] %v4786_v27  ;;  %v1688_v9 = vrot.slane %v4786_v27, 7  ;;  %v4149_v6 = vpop.eup %4148  ;;  %4154 = vrcp.f32 %v4799_v13  ;;  %v1391_v15 = vmul.f32 %v1359_v62, %v4725_v46  ;;  %v4811_v12 = vand.u32 2147483647, %v4793_v42  ;;  %v2345_v41 = vld [vmem:[#allocation2 + $0x3a] sm:$0xff] }
 0x232   : > { %v1329_v17 = vmul.f32 %v1297_v30, %v4720_v48  ;;  %7643 = vst [vmem:[#allocation11_spill] sm:$0xff] %v4807_v4  ;;  %v4813_v32 = vrot.slane %v1858_v63, %v1966_v56  ;;  %v4817_v28 = vrot.slane %v1858_v63, %v2138_v26  ;;  %v4820_v48 = vadd.f32 %v4513_v40, %v632_v61 }
 0x233   : > { %v1689_v14 = vsel %vm1680_vm8, %v1687_v19, %v1688_v9  ;;  %v1795_v5 = vsel %vm1680_vm8, %v1688_v9, 0.0  ;;  %v4815_v19 = vrot.slane %v1858_v63, %v2034_v23  ;;  %v4822_v33 = vrot.slane %v1858_v63, %v2206_v1 }
 0x234   : > { %1817 = vst.msk [vmem:[#allocation2 + $0x50] sm:$0xff] %vm1639_vm9, %v1689_v14  ;;  %v4151_v45 = vpop.eup %4150  ;;  %v1489_v35 = vmul.f32 %v4149_v6, %v1329_v17  ;;  %v4826_v37 = vrot.slane %v1858_v63, %v2274_v60  ;;  %v4828_v43 = vrot.slane %v1858_v63, %v2378_v34  ;;  %v4830_v39 = vrot.slane %v1858_v63, %v2446_v2  ;;  %v4847_v30 = vld [vmem:[#allocation2 + $0x68] sm:$0xff]  ;;  %v635_v17 = vpop.f32.mrf.mxu0 }
 0x235   : > { %1818 = vst.msk [vmem:[#allocation2 + $0x58] sm:$0x3] %vm1642_vm10, %v1795_v5  ;;  %v975_v46 = vmul.f32 %v4151_v45, %v4745_v16  ;;  %vm783_vm15 = vcmp.ge.f32.partialorder %v4709_v44, 0.0  ;;  %v1431_v57 = vmul.f32 1.442695, %v1391_v15  ;;  %v721_v38 = vmul.f32 0.5, %v4598_v18 }
 0x236   : > { %v1521_v22 = vsub.f32 1.0, %v1489_v35  ;;  %v885_v7 = vmul.f32 0.3275911, %v4811_v12  ;;  %v817_v10 = vsel %vm785_vm14, 1.0, %v7586_v11  ;;  %v4837_v16 = vmul.f32 0.5, %v4627_v3 }
 0x237   : > { %v1007_v47 = vsub.f32 2.0, %v975_v46  ;;  %v4840_v56 = vmul.f32 0.70710677, %v4820_v48  ;;  %v1362_v9 = vsub.f32 0.0, %v4766_v52  ;;  %v1905_v18 = vmul.f32 %v4807_v4, %v1865_v36 }
 0x238   : > { %v1553_v23 = vmul.f32 %v1521_v22, %v817_v10  ;;  %v4845_v63 = vadd.f32 1.0, %v885_v7  ;;  %v4853_v3 = vsel %vm783_vm15, 1.0, %v7586_v11  ;;  %v1360_v1 = vsub.f32 0.0, %v4782_v51 }
 0x239   : > { %v4842_v62 = vmul.f32 %v4151_v45, %v1007_v47  ;;  %v4857_v60 = vand.u32 2147483647, %v4840_v56  ;;  %v2145_v2 = vmul.f32 %v4817_v28, %v2105_v58  ;;  %4156 = vpow2.f32 %v1431_v57 }
 0x23a   : > { %v4862_v61 = vadd.f32 %v4044_v55, %v4513_v40  ;;  %v2385_v14 = vmul.f32 %v4828_v43, %v2345_v41  ;;  %v1585_v5 = vadd.f32 1.0, %v1553_v23  ;;  %4158 = vrcp.f32 %v4845_v63 }
 0x23b   : > { %v1867_v26 = vld [vmem:[#allocation2 + $0x50] sm:$0xff]  ;;  %v1071_v44 = vmul.f32 1.0614054, %v4842_v62  ;;  %v2041_v45 = vmul.f32 %v4815_v19, %v4847_v30  ;;  %v1394_v46 = vmul.f32 %v1362_v9, %v4766_v52  ;;  %v1392_v57 = vmul.f32 %v1360_v1, %v4782_v51 }
 0x23c   : > { %v1973_v34 = vmul.f32 %v4813_v32, %v1867_v26  ;;  %v4153_v6 = vpop.eup %4152  ;;  %v4871_v36 = vld [vmem:[#allocation2 + $0x51] sm:$0xff]  ;;  %v4873_v22 = vmul.f32 %v1585_v5, %v721_v38  ;;  %v883_v7 = vmul.f32 0.3275911, %v4857_v60  ;;  %v4878_v41 = vmul.f32 0.70710677, %v4862_v61 }
 0x23d   : > { %v978_v35 = vmul.f32 %v4153_v6, %v4784_v54  ;;  %v1103_v47 = vadd.f32 -1.4531521, %v1071_v44  ;;  %v4881_v23 = vadd.f32 %v4513_v40, %v635_v17  ;;  %v4883_v54 = vld [vmem:[#allocation2 + $0x69] sm:$0xff]  ;;  %v1363_v59 = vsub.f32 0.0, %v4857_v60 }
 0x23e   : > { %v2005_v15 = vadd.f32 %v1973_v34, %v1905_v18  ;;  %7644 = vst [vmem:[#allocation12_spill] sm:$0xff] %v4873_v22  ;;  %v4155_v58 = vpop.eup %4154  ;;  %v7585_v52 = vrot.slane %v4873_v22, 7  ;;  %v4888_v51 = vadd.f32 1.0, %v883_v7  ;;  %v2213_v18 = vmul.f32 %v4822_v33, %v4871_v36 }
 0x23f   : > { %v1010_v55 = vsub.f32 2.0, %v978_v35  ;;  %v1135_v38 = vmul.f32 %v1103_v47, %v4842_v62  ;;  %v976_v9 = vmul.f32 %v4155_v58, %v4799_v13  ;;  %v1437_v34 = vmul.f32 1.442695, %v1394_v46 }
 0x240   : > { %v2073_v10 = vadd.f32 %v2041_v45, %v2005_v15  ;;  %v1782_v5 = vsel %vm1680_vm8, 0.0, %v7585_v52  ;;  %4160 = vrcp.f32 %v4888_v51  ;;  %v2281_v13 = vmul.f32 %v4826_v37, %v4883_v54  ;;  %v4905_v45 = vld [vmem:[#allocation2 + $0x52] sm:$0xff] }
 0x241   : > { %v4892_v1 = vmul.f32 %v4153_v6, %v1010_v55  ;;  %v1167_v44 = vadd.f32 1.4214138, %v1135_v38  ;;  %v1008_v17 = vsub.f32 2.0, %v976_v9  ;;  %1825 = vst.msk [vmem:[#allocation2 + $0x90] sm:$0xff] %vm1639_vm9, %v1782_v5  ;;  %v4903_v6 = vand.u32 2147483647, %v4878_v41 }
 0x242   : > { %v2177_v26 = vadd.f32 %v2145_v2, %v2073_v10  ;;  %v1433_v47 = vmul.f32 1.442695, %v1392_v57  ;;  %v4911_v7 = vmul.f32 0.70710677, %v4881_v23  ;;  %v4914_v55 = vmul.f32 0.5, %v4738_v8 }
 0x243   : > { %v1074_v2 = vmul.f32 1.0614054, %v4892_v1  ;;  %v1199_v35 = vmul.f32 %v1167_v44, %v4842_v62  ;;  %v4908_v46 = vmul.f32 %v4155_v58, %v1008_v17  ;;  %v886_v9 = vmul.f32 0.3275911, %v4903_v6 }
 0x244   : > { %v2245_v15 = vadd.f32 %v2213_v18, %v2177_v26  ;;  %v4917_v26 = vld [vmem:[#allocation2 + $0x6a] sm:$0xff]  ;;  %4162 = vpow2.f32 %v1437_v34  ;;  %v1365_v58 = vsub.f32 0.0, %v4811_v12  ;;  %v2453_v57 = vmul.f32 %v4830_v39, %v4905_v45 }
 0x245   : > { %v1106_v38 = vadd.f32 -1.4531521, %v1074_v2  ;;  %v1231_v18 = vadd.f32 -0.28449672, %v1199_v35  ;;  %v1072_v5 = vmul.f32 1.0614054, %v4908_v46  ;;  %4164 = vpow2.f32 %v1433_v47 }
 0x246   : > { %v2313_v10 = vadd.f32 %v2281_v13, %v2245_v15  ;;  %v4924_v15 = vadd.f32 1.0, %v886_v9  ;;  %v4157_v8 = vpop.eup %4156  ;;  %v4929_v13 = vld [vmem:[%s7580_s5 + $0x8] ss:$0 sm:$0xff]  ;;  %v4933_v35 = vand.u32 2147483647, %v4911_v7  ;;  %vm786_vm0 = vcmp.ge.f32.partialorder %v4757_v50, 0.0 }
 0x247   : > { %v1138_v17 = vmul.f32 %v1106_v38, %v4892_v1  ;;  %v1263_v34 = vmul.f32 %v1231_v18, %v4842_v62  ;;  %v1104_v2 = vadd.f32 -1.4531521, %v1072_v5  ;;  %v2521_v38 = vmul.f32 %v4929_v13, %v4917_v26 }
 0x248   : > { %v2417_v44 = vadd.f32 %v2385_v14, %v2313_v10  ;;  %v4159_v14 = vpop.eup %4158  ;;  %4166 = vrcp.f32 %v4924_v15  ;;  %v1397_v18 = vmul.f32 %v1365_v58, %v4811_v12  ;;  %vm784_vm1 = vcmp.ge.f32.partialorder %v4770_v31, 0.0 }
 0x249   : > { %v1170_v9 = vadd.f32 1.4214138, %v1138_v17  ;;  %v1295_v52 = vadd.f32 0.2548296, %v1263_v34  ;;  %v1136_v11 = vmul.f32 %v1104_v2, %v4908_v46  ;;  %v981_v25 = vmul.f32 %v4159_v14, %v4845_v63 }
 0x24a   : > { %v2485_v10 = vadd.f32 %v2453_v57, %v2417_v44  ;;  %v884_v44 = vmul.f32 0.3275911, %v4933_v35  ;;  %v4947_v57 = vld [vmem:[%s7581_s6] ss:$0 sm:$0xff]  ;;  %v4951_v34 = vmul.f32 0.5, %v4751_v21  ;;  %vm789_vm2 = vcmp.ge.f32.partialorder %v4793_v42, 0.0 }
 0x24b   : > { %v1202_v47 = vmul.f32 %v1170_v9, %v4892_v1  ;;  %v1327_v17 = vmul.f32 %v1295_v52, %v4842_v62  ;;  %v1168_v63 = vadd.f32 1.4214138, %v1136_v11  ;;  %v1013_v2 = vsub.f32 2.0, %v981_v25  ;;  %v4047_v62 = vpop.f32.mrf.mxu0 }
 0x24c   : > { %v2553_v5 = vadd.f32 %v2521_v38, %v2485_v10  ;;  %v4957_v10 = vadd.f32 1.0, %v884_v44  ;;  %v1443_v0 = vmul.f32 1.442695, %v1397_v18  ;;  %v1395_v25 = vmul.f32 %v1363_v59, %v4857_v60 }
 0x24d   : > { %v1234_v58 = vadd.f32 -0.28449672, %v1202_v47  ;;  %v1487_v38 = vmul.f32 %v4157_v8, %v1327_v17  ;;  %v1200_v9 = vmul.f32 %v1168_v63, %v4908_v46  ;;  %v4960_v49 = vmul.f32 %v4159_v14, %v1013_v2  ;;  %v4161_v52 = vpop.eup %4160 }
 0x24e   : > { %v4954_v12 = vadd.f32 %v4947_v57, %v2553_v5  ;;  %4168 = vrcp.f32 %v4957_v10  ;;  %v979_v44 = vmul.f32 %v4161_v52, %v4888_v51  ;;  %v7645_v18 = vmov -1.0  }
 0x24f   : > { %v1266_v11 = vmul.f32 %v1234_v58, %v4892_v1  ;;  %v1519_v5 = vsub.f32 1.0, %v1487_v38  ;;  %v1232_v47 = vadd.f32 -0.28449672, %v1200_v9  ;;  %v1077_v8 = vmul.f32 1.0614054, %v4960_v49 }
 0x250   : > { %v4963_v21 = vmul.f32 0.70710677, %v4954_v12  ;;  %v818_v17 = vsel %vm786_vm0, 1.0, %v7645_v18  ;;  %v4977_v2 = vadd.f32 %v4047_v62, %v4513_v40  ;;  %4170 = vpow2.f32 %v1443_v0 }
 0x251   : > { %v1298_v63 = vadd.f32 0.2548296, %v1266_v11  ;;  %v1551_v59 = vmul.f32 %v1519_v5, %v4853_v3  ;;  %v1264_v60 = vmul.f32 %v1232_v47, %v4908_v46  ;;  %v1109_v58 = vadd.f32 -1.4531521, %v1077_v8  ;;  %v4163_v38 = vpop.eup %4162 }
 0x252   : > { %v4971_v14 = vand.u32 2147483647, %v4963_v21  ;;  %v1011_v53 = vsub.f32 2.0, %v979_v44  ;;  %v1439_v40 = vmul.f32 1.442695, %v1395_v25  ;;  %v4165_v62 = vpop.eup %4164  ;;  %v816_v0 = vsel %vm784_vm1, 1.0, %v7645_v18 }
 0x253   : > { %v1330_v9 = vmul.f32 %v1298_v63, %v4892_v1  ;;  %v1583_v50 = vadd.f32 1.0, %v1551_v59  ;;  %v1296_v24 = vadd.f32 0.2548296, %v1264_v60  ;;  %v1141_v11 = vmul.f32 %v1109_v58, %v4960_v49 }
 0x254   : > { %v2784_v51 = vmul.f32 0.3275911, %v4971_v14  ;;  %v4987_v5 = vmul.f32 %v4161_v52, %v1011_v53  ;;  %v4990_v47 = vmul.f32 0.70710677, %v4977_v2  ;;  %v1366_v52 = vsub.f32 0.0, %v4903_v6 }
 0x255   : > { %v1490_v3 = vmul.f32 %v4163_v38, %v1330_v9  ;;  %v4167_v8 = vpop.eup %4166  ;;  %v4993_v27 = vmul.f32 %v1583_v50, %v4837_v16  ;;  %v1328_v1 = vmul.f32 %v1296_v24, %v4908_v46  ;;  %v1173_v25 = vadd.f32 1.4214138, %v1141_v11  ;;  %v648_v50 = vpop.f32.mrf.mxu0 }
 0x256   : > { %v4985_v29 = vadd.f32 1.0, %v2784_v51  ;;  %v1075_v53 = vmul.f32 1.0614054, %v4987_v5  ;;  %v982_v31 = vmul.f32 %v4167_v8, %v4924_v15  ;;  %v5007_v24 = vand.u32 2147483647, %v4990_v47 }
 0x257   : > { %7646 = vst [vmem:[#allocation13_spill] sm:$0xff] %v4993_v27  ;;  %v1522_v44 = vsub.f32 1.0, %v1490_v3  ;;  %v1693_v63 = vrot.slane %v4993_v27, 7  ;;  %v1488_v59 = vmul.f32 %v4165_v62, %v1328_v1  ;;  %v1205_v16 = vmul.f32 %v1173_v25, %v4960_v49 }
 0x258   : > { %4172 = vrcp.f32 %v4985_v29  ;;  %v1107_v58 = vadd.f32 -1.4531521, %v1075_v53  ;;  %v1014_v9 = vsub.f32 2.0, %v982_v31  ;;  %v1398_v3 = vmul.f32 %v1366_v52, %v4903_v6  ;;  %v5025_v6 = vld [vmem:[%s7579_s4] ss:$0 sm:$0xff] }
 0x259   : > { %v1554_v60 = vmul.f32 %v1522_v44, %v818_v17  ;;  %4174 = vpow2.f32 %v1439_v40  ;;  %v1781_v46 = vsel %vm1680_vm8, 0.0, %v1693_v63  ;;  %v1520_v38 = vsub.f32 1.0, %v1488_v59 }
 0x25a   : > { %v1237_v51 = vadd.f32 -0.28449672, %v1205_v16  ;;  %1822 = vst.msk [vmem:[#allocation2 + $0x78] sm:$0xff] %vm1639_vm9, %v1781_v46  ;;  %v1139_v62 = vmul.f32 %v1107_v58, %v4987_v5  ;;  %v889_v15 = vmul.f32 0.3275911, %v5007_v24  ;;  %v5015_v25 = vmul.f32 %v4167_v8, %v1014_v9 }
 0x25b   : > { %v1586_v11 = vadd.f32 1.0, %v1554_v60  ;;  %v4169_v17 = vpop.eup %4168  ;;  %v1552_v40 = vmul.f32 %v1520_v38, %v816_v0  ;;  %v1364_v44 = vsub.f32 0.0, %v4933_v35  ;;  %v5028_v52 = vadd.f32 %v5025_v6, %v648_v50 }
 0x25c   : > { %v1269_v1 = vmul.f32 %v1237_v51, %v4960_v49  ;;  %v1171_v59 = vadd.f32 1.4214138, %v1139_v62  ;;  %v980_v16 = vmul.f32 %v4169_v17, %v4957_v10  ;;  %v1078_v8 = vmul.f32 1.0614054, %v5015_v25 }
 0x25d   : > { %v5019_v53 = vmul.f32 %v1586_v11, %v4914_v55  ;;  %v1584_v0 = vadd.f32 1.0, %v1552_v40  ;;  %v5031_v60 = vadd.f32 1.0, %v889_v15  ;;  %v1445_v46 = vmul.f32 1.442695, %v1398_v3  ;;  %v4171_v38 = vpop.eup %4170 }
 0x25e   : > { %v1301_v31 = vadd.f32 0.2548296, %v1269_v1  ;;  %v1203_v58 = vmul.f32 %v1171_v59, %v4987_v5  ;;  %v1012_v10 = vsub.f32 2.0, %v980_v16  ;;  %v1110_v50 = vadd.f32 -1.4531521, %v1078_v8 }
 0x25f   : > { %7647 = vst [vmem:[#allocation14_spill] sm:$0xff] %v5019_v53  ;;  %v1697_v55 = vrot.slane %v5019_v53, 7  ;;  %v5036_v51 = vmul.f32 %v1584_v0, %v4951_v34  ;;  %v1396_v11 = vmul.f32 %v1364_v44, %v4933_v35  ;;  %v7648_v62 = vrot.slane %v4873_v22, 7 }
 0x260   : > { %v1333_v9 = vmul.f32 %v1301_v31, %v4960_v49  ;;  %v1235_v1 = vadd.f32 -0.28449672, %v1203_v58  ;;  %v5044_v53 = vmul.f32 %v4169_v17, %v1012_v10  ;;  %v1142_v49 = vmul.f32 %v1110_v50, %v5015_v25 }
 0x261   : > { %v1698_v15 = vsel %vm1680_vm8, %v7648_v62, %v1697_v55  ;;  %v1798_v40 = vsel %vm1680_vm8, %v1697_v55, 0.0  ;;  %v1694_v34 = vrot.slane %v5036_v51, 7  ;;  %4176 = vrcp.f32 %v5031_v60 }
 0x262   : > { %1826 = vst.msk [vmem:[#allocation2 + $0x98] sm:$0xff] %vm1639_vm9, %v1698_v15  ;;  %v1493_v3 = vmul.f32 %v4171_v38, %v1333_v9  ;;  %v821_v35 = vsel %vm789_vm2, 1.0, %v7645_v18  ;;  %v1267_v44 = vmul.f32 %v1235_v1, %v4987_v5  ;;  %4178 = vpow2.f32 %v1445_v46 }
 0x263   : > { %1827 = vst.msk [vmem:[#allocation2 + $0xa0] sm:$0x3] %vm1642_vm10, %v1798_v40  ;;  %v1076_v17 = vmul.f32 1.0614054, %v5044_v53  ;;  %v1695_v16 = vsel %vm1680_vm8, %v1693_v63, %v1694_v34  ;;  %v1797_v0 = vsel %vm1680_vm8, %v1694_v34, 0.0  ;;  %v725_v62 = vmul.f32 0.5, %v4776_v20 }
 0x264   : > { %v1525_v31 = vsub.f32 1.0, %v1493_v3  ;;  %v1174_v8 = vadd.f32 1.4214138, %v1142_v49  ;;  %1823 = vst.msk [vmem:[#allocation2 + $0x80] sm:$0xff] %vm1639_vm9, %v1695_v16  ;;  %v1299_v42 = vadd.f32 0.2548296, %v1267_v44  ;;  %v5070_v40 = vmul.f32 %v4813_v32, %v4847_v30 }
 0x265   : > { %v4173_v59 = vpop.eup %4172  ;;  %1824 = vst.msk [vmem:[#allocation2 + $0x88] sm:$0x3] %vm1642_vm10, %v1797_v0  ;;  %v1108_v58 = vadd.f32 -1.4531521, %v1076_v17  ;;  %v1441_v10 = vmul.f32 1.442695, %v1396_v11  ;;  %v5075_v3 = vmul.f32 %v4822_v33, %v4883_v54  ;;  %v1909_v44 = vmul.f32 %v4807_v4, %v4847_v30 }
 0x266   : > { %v2880_v55 = vmul.f32 %v4173_v59, %v4985_v29  ;;  %v4175_v38 = vpop.eup %4174  ;;  %v1557_v46 = vmul.f32 %v1525_v31, %v821_v35  ;;  %v1206_v9 = vmul.f32 %v1174_v8, %v5015_v25  ;;  %v5063_v50 = vmul.f32 0.70710677, %v5028_v52  ;;  %7649 = vst [vmem:[#allocation15_spill] sm:$0xff] %v5070_v40 }
 0x267   : > { %v1331_v15 = vmul.f32 %v1299_v42, %v4987_v5  ;;  %v1140_v29 = vmul.f32 %v1108_v58, %v5044_v53  ;;  %v723_v11 = vmul.f32 0.5, %v4820_v48  ;;  %7650 = vst [vmem:[#allocation16_spill] sm:$0xff] %v5075_v3  ;;  %4180 = vpow2.f32 %v1441_v10 }
 0x268   : > { %v2912_v63 = vsub.f32 2.0, %v2880_v55  ;;  %v1589_v1 = vadd.f32 1.0, %v1557_v46  ;;  %v1238_v34 = vadd.f32 -0.28449672, %v1206_v9  ;;  %vm787_vm3 = vcmp.ge.f32.partialorder %v4840_v56, 0.0  ;;  %v4048_v46 = vpop.f32.mrf.mxu0 }
 0x269   : > { %v1491_v49 = vmul.f32 %v4175_v38, %v1331_v15  ;;  %v1172_v35 = vadd.f32 1.4214138, %v1140_v29  ;;  %vm790_vm4 = vcmp.ge.f32.partialorder %v4878_v41, 0.0  ;;  %v5082_v5 = vand.u32 2147483647, %v5063_v50  ;;  %v5094_v0 = vld [vmem:[#allocation2 + $0x98] sm:$0xff] }
 0x26a   : > { %v5077_v20 = vmul.f32 %v4173_v59, %v2912_v63  ;;  %v5086_v48 = vmul.f32 %v4830_v39, %v4917_v26  ;;  %v2149_v17 = vmul.f32 %v4817_v28, %v4883_v54  ;;  %v5092_v16 = vmul.f32 %v1589_v1, %v725_v62 }
 0x26b   : > { %v1871_v59 = vld [vmem:[#allocation2 + $0x80] sm:$0xff]  ;;  %v5098_v56 = vmul.f32 %v4828_v43, %v4917_v26  ;;  %v1523_v41 = vsub.f32 1.0, %v1491_v49  ;;  %v1270_v31 = vmul.f32 %v1238_v34, %v5015_v25  ;;  %v1204_v8 = vmul.f32 %v1172_v35, %v5044_v53 }
 0x26c   : > { %7651 = vst [vmem:[#allocation17_spill] sm:$0xff] %v5086_v48  ;;  %7652 = vst [vmem:[#allocation18_spill] sm:$0xff] %v5092_v16  ;;  %v1977_v55 = vmul.f32 %v4813_v32, %v1871_v59  ;;  %v819_v30 = vsel %vm787_vm3, 1.0, %v7645_v18  ;;  %v5105_v54 = vmul.f32 0.5, %v4862_v61  ;;  %v822_v42 = vsel %vm790_vm4, 1.0, %v7645_v18  ;;  %v5113_v61 = vld [vmem:[#allocation2 + $0x81] sm:$0xff] }
 0x26d   : > { %v2976_v58 = vmul.f32 1.0614054, %v5077_v20  ;;  %v7597_v10 = vrot.slane %v5092_v16, 7  ;;  %v1555_v26 = vmul.f32 %v1523_v41, %v819_v30  ;;  %v887_v38 = vmul.f32 0.3275911, %v5082_v5 }
 0x26e   : > { %v4177_v9 = vpop.eup %4176  ;;  %v2009_v63 = vadd.f32 %v1977_v55, %v1909_v44  ;;  %v2045_v62 = vmul.f32 %v4815_v19, %v5094_v0  ;;  %v1302_v15 = vadd.f32 0.2548296, %v1270_v31  ;;  %v1236_v29 = vadd.f32 -0.28449672, %v1204_v8  ;;  %v5126_v55 = vld [vmem:[#allocation2 + $0x99] sm:$0xff] }
 0x26f   : > { %v4179_v1 = vpop.eup %4178  ;;  %v1784_v34 = vsel %vm1680_vm8, 0.0, %v7597_v10  ;;  %v1587_v49 = vadd.f32 1.0, %v1555_v26  ;;  %vm788_vm5 = vcmp.ge.f32.partialorder %v4911_v7, 0.0  ;;  %v1369_v35 = vsub.f32 0.0, %v5007_v24 }
 0x270   : > { %v2077_v59 = vadd.f32 %v2045_v62, %v2009_v63  ;;  %1831 = vst.msk [vmem:[#allocation2 + $0xc0] sm:$0xff] %vm1639_vm9, %v1784_v34  ;;  %v1334_v44 = vmul.f32 %v1302_v15, %v5015_v25  ;;  %v1268_v41 = vmul.f32 %v1236_v29, %v5044_v53  ;;  %v5124_v31 = vadd.f32 %v5025_v6, %v4048_v46 }
 0x271   : > { %v3008_v8 = vadd.f32 -1.4531521, %v2976_v58  ;;  %v5128_v30 = vmul.f32 %v1587_v49, %v723_v11  ;;  %v985_v26 = vmul.f32 %v4177_v9, %v5031_v60  ;;  %v5131_v10 = vadd.f32 1.0, %v887_v38 }
 0x272   : > { %v2181_v22 = vadd.f32 %v2149_v17, %v2077_v59  ;;  %v2217_v63 = vmul.f32 %v4822_v33, %v5113_v61  ;;  %v1494_v62 = vmul.f32 %v4179_v1, %v1334_v44  ;;  %v1300_v25 = vadd.f32 0.2548296, %v1268_v41  ;;  %v651_v17 = vpop.f32.mrf.mxu0  ;;  %v5142_v1 = vld [vmem:[#allocation2 + $0x82] sm:$0xff]  ;;  %v5153_v41 = vld [vmem:[#allocation2 + $0x9a] sm:$0xff] }
 0x273   : > { %7653 = vst [vmem:[#allocation19_spill] sm:$0xff] %v5128_v30  ;;  %v7599_v15 = vrot.slane %v5128_v30, 7  ;;  %v1017_v29 = vsub.f32 2.0, %v985_v26  ;;  %v1401_v46 = vmul.f32 %v1369_v35, %v5007_v24  ;;  %4182 = vrcp.f32 %v5131_v10 }
 0x274   : > { %v2249_v58 = vadd.f32 %v2217_v63, %v2181_v22  ;;  %v2285_v11 = vmul.f32 %v4826_v37, %v5126_v55  ;;  %v1526_v60 = vsub.f32 1.0, %v1494_v62  ;;  %v1332_v38 = vmul.f32 %v1300_v25, %v5044_v53  ;;  %v4181_v34 = vpop.eup %4180 }
 0x275   : > { %v3264_v49 = vsub.f32 0.0, %v4971_v14  ;;  %v1783_v59 = vsel %vm1680_vm8, 0.0, %v7599_v15  ;;  %v5147_v24 = vmul.f32 %v4177_v9, %v1017_v29  ;;  %v5150_v22 = vmul.f32 0.70710677, %v5124_v31 }
 0x276   : > { %v3040_v35 = vmul.f32 %v3008_v8, %v5077_v20  ;;  %v2317_v44 = vadd.f32 %v2285_v11, %v2249_v58  ;;  %1828 = vst.msk [vmem:[#allocation2 + $0xa8] sm:$0xff] %vm1639_vm9, %v1783_v59  ;;  %v1558_v53 = vmul.f32 %v1526_v60, %v822_v42  ;;  %v1492_v26 = vmul.f32 %v4181_v34, %v1332_v38 }
 0x277   : > { %v1081_v63 = vmul.f32 1.0614054, %v5147_v24  ;;  %v1451_v62 = vmul.f32 1.442695, %v1401_v46  ;;  %v5158_v25 = vand.u32 2147483647, %v5150_v22  ;;  %v5161_v9 = vadd.f32 %v5025_v6, %v651_v17 }
 0x278   : > { %v2421_v29 = vadd.f32 %v5098_v56, %v2317_v44  ;;  %v2457_v8 = vmul.f32 %v4830_v39, %v5142_v1  ;;  %v1590_v58 = vadd.f32 1.0, %v1558_v53  ;;  %v1524_v11 = vsub.f32 1.0, %v1492_v26 }
 0x279   : > { %v2525_v42 = vmul.f32 %v4929_v13, %v5153_v41  ;;  %v820_v46 = vsel %vm788_vm5, 1.0, %v7645_v18  ;;  %v1113_v60 = vadd.f32 -1.4531521, %v1081_v63  ;;  %v890_v38 = vmul.f32 0.3275911, %v5158_v25 }
 0x27a   : > { %v3072_v34 = vadd.f32 1.4214138, %v3040_v35  ;;  %v2489_v17 = vadd.f32 %v2457_v8, %v2421_v29  ;;  %v5173_v59 = vmul.f32 %v1590_v58, %v5105_v54  ;;  %v1556_v56 = vmul.f32 %v1524_v11, %v820_v46 }
 0x27b   : > { %v3296_v44 = vmul.f32 %v3264_v49, %v4971_v14  ;;  %v1145_v53 = vmul.f32 %v1113_v60, %v5147_v24  ;;  %4184 = vpow2.f32 %v1451_v62  ;;  %v5177_v26 = vadd.f32 1.0, %v890_v38 }
 0x27c   : > { %7654 = vst [vmem:[#allocation20_spill] sm:$0xff] %v5173_v59  ;;  %v2557_v15 = vadd.f32 %v2525_v42, %v2489_v17  ;;  %v1703_v7 = vrot.slane %v5173_v59, 7  ;;  %v1588_v27 = vadd.f32 1.0, %v1556_v56  ;;  %v5181_v63 = vmul.f32 0.70710677, %v5161_v9 }
 0x27d   : > { %v724_v35 = vmul.f32 0.5, %v4881_v23  ;;  %v5185_v54 = vmul.f32 0.5, %v4977_v2  ;;  %v1177_v29 = vadd.f32 1.4214138, %v1145_v53  ;;  %4186 = vrcp.f32 %v5177_v26 }
 0x27e   : > { %v3104_v14 = vmul.f32 %v3072_v34, %v5077_v20  ;;  %v5190_v49 = vadd.f32 %v4947_v57, %v2557_v15  ;;  %v7655_v62 = vrot.slane %v5092_v16, 7  ;;  %v1800_v58 = vsel %vm1680_vm8, %v1703_v7, 0.0 }
 0x27f   : > { %v5197_v11 = vmul.f32 0.5, %v4954_v12  ;;  %1833 = vst.msk [vmem:[#allocation2 + $0xd0] sm:$0x3] %vm1642_vm10, %v1800_v58  ;;  %v5201_v23 = vmul.f32 %v1588_v27, %v724_v35  ;;  %vm793_vm6 = vcmp.ge.f32.partialorder %v4990_v47, 0.0  ;;  %v1209_v2 = vmul.f32 %v1177_v29, %v5147_v24 }
 0x280   : > { %v1704_v8 = vsel %vm1680_vm8, %v7655_v62, %v1703_v7  ;;  %v4183_v15 = vpop.eup %4182  ;;  %v5207_v42 = vmul.f32 %v4817_v28, %v4871_v36  ;;  %v3333_v46 = vmul.f32 1.442695, %v3296_v44  ;;  %v5210_v60 = vmul.f32 0.70710677, %v5190_v49 }
 0x281   : > { %1832 = vst.msk [vmem:[#allocation2 + $0xc8] sm:$0xff] %vm1639_vm9, %v1704_v8  ;;  %7656 = vst [vmem:[#allocation21_spill] sm:$0xff] %v5201_v23  ;;  %v5213_v12 = vand.u32 2147483647, %v5181_v63  ;;  %v1700_v38 = vrot.slane %v5201_v23, 7  ;;  %v983_v34 = vmul.f32 %v4183_v15, %v5131_v10  ;;  %v1367_v17 = vsub.f32 0.0, %v5082_v5 }
 0x282   : > { %7657 = vst [vmem:[#allocation22_spill] sm:$0xff] %v5207_v42  ;;  %v1241_v27 = vadd.f32 -0.28449672, %v1209_v2  ;;  %v5220_v56 = vmul.f32 %v4828_v43, %v4905_v45  ;;  %v3136_v36 = vadd.f32 -0.28449672, %v3104_v14  ;;  %vm2688_vm7 = vcmp.ge.f32.partialorder %v4963_v21, 0.0  ;;  %v4051_v2 = vpop.f32.mrf.mxu0 }
 0x283   : > { %v5223_v44 = vand.u32 2147483647, %v5210_v60  ;;  %v888_v53 = vmul.f32 0.3275911, %v5213_v12  ;;  %v7659_v7 = vrot.slane %v5128_v30, 7  ;;  %v1799_v10 = vsel %vm1680_vm8, %v1700_v38, 0.0 }
 0x284   : > { %7658 = vst [vmem:[#allocation23_spill] sm:$0xff] %v5220_v56  ;;  %v1273_v29 = vmul.f32 %v1241_v27, %v5147_v24  ;;  %4188 = vpow2.f32 %v3333_v46  ;;  %1830 = vst.msk [vmem:[#allocation2 + $0xb8] sm:$0x3] %vm1642_vm10, %v1799_v10  ;;  %vm791_vm11 = vcmp.ge.f32.partialorder %v5063_v50, 0.0  ;;  %v1015_v14 = vsub.f32 2.0, %v983_v34  ;;  %v664_v10 = vpop.f32.mrf.mxu0 }
 0x285   : > { %v1701_v35 = vsel %vm1680_vm8, %v7659_v7, %v1700_v38  ;;  %v2788_v45 = vmul.f32 0.3275911, %v5223_v44  ;;  %v825_v21 = vsel %vm793_vm6, 1.0, %v7645_v18  ;;  %v1399_v8 = vmul.f32 %v1367_v17, %v5082_v5 }
 0x286   : > { %1829 = vst.msk [vmem:[#allocation2 + $0xb0] sm:$0xff] %vm1639_vm9, %v1701_v35  ;;  %v1305_v62 = vadd.f32 0.2548296, %v1273_v29  ;;  %v5240_v58 = vadd.f32 1.0, %v888_v53  ;;  %v5243_v46 = vsel %vm2688_vm7, 1.0, %v7645_v18  ;;  %v3168_v38 = vmul.f32 %v3136_v36, %v5077_v20 }
 0x287   : > { %v5246_v27 = vadd.f32 1.0, %v2788_v45  ;;  %v5248_v7 = vmul.f32 %v4183_v15, %v1015_v14  ;;  %v5251_v50 = vmul.f32 0.5, %v5028_v52  ;;  %v5254_v47 = vsel %vm791_vm11, 1.0, %v7645_v18 }
 0x288   : > { %v5257_v5 = vmul.f32 0.5, %v5124_v31  ;;  %v1370_v34 = vsub.f32 0.0, %v5158_v25  ;;  %v4185_v17 = vpop.eup %4184  ;;  %v5262_v53 = vmul.f32 %v4813_v32, %v5094_v0  ;;  %v5266_v15 = vmul.f32 %v4822_v33, %v5126_v55 }
 0x289   : > { %v5270_v52 = vmul.f32 %v4830_v39, %v5153_v41  ;;  %4190 = vrcp.f32 %v5246_v27  ;;  %v1337_v31 = vmul.f32 %v1305_v62, %v5147_v24  ;;  %v1079_v36 = vmul.f32 1.0614054, %v5248_v7  ;;  %v5285_v24 = vld [vmem:[#allocation2 + $0xc8] sm:$0xff] }
 0x28a   : > { %7660 = vst [vmem:[#allocation24_spill] sm:$0xff] %v5262_v53  ;;  %7661 = vst [vmem:[#allocation25_spill] sm:$0xff] %v5266_v15  ;;  %v1447_v35 = vmul.f32 1.442695, %v1399_v8  ;;  %4192 = vrcp.f32 %v5240_v58  ;;  %v4187_v29 = vpop.eup %4186  ;;  %v3200_v45 = vadd.f32 0.2548296, %v3168_v38  ;;  %v5278_v14 = vmul.f32 %v4817_v28, %v5113_v61 }
 0x28b   : > { %7662 = vst [vmem:[#allocation26_spill] sm:$0xff] %v5270_v52  ;;  %v1913_v59 = vmul.f32 %v4807_v4, %v5094_v0  ;;  %v5283_v16 = vadd.f32 %v5025_v6, %v4051_v2  ;;  %v1497_v62 = vmul.f32 %v4185_v17, %v1337_v31  ;;  %v1111_v8 = vadd.f32 -1.4531521, %v1079_v36 }
 0x28c   : > { %7663 = vst [vmem:[#allocation27_spill] sm:$0xff] %v5278_v14  ;;  %v986_v52 = vmul.f32 %v4187_v29, %v5177_v26  ;;  %v1402_v15 = vmul.f32 %v1370_v34, %v5158_v25  ;;  %v5291_v38 = vmul.f32 %v4828_v43, %v5142_v1  ;;  %v2153_v0 = vmul.f32 %v4817_v28, %v5126_v55 }
 0x28d   : > { %v1875_v30 = vld [vmem:[#allocation2 + $0xb0] sm:$0xff]  ;;  %v5297_v2 = vadd.f32 %v5025_v6, %v664_v10  ;;  %v1529_v14 = vsub.f32 1.0, %v1497_v62  ;;  %v1143_v17 = vmul.f32 %v1111_v8, %v5248_v7  ;;  %4194 = vpow2.f32 %v1447_v35 }
 0x28e   : > { %7664 = vst [vmem:[#allocation28_spill] sm:$0xff] %v5291_v38  ;;  %v1981_v61 = vmul.f32 %v4813_v32, %v1875_v30  ;;  %v1018_v31 = vsub.f32 2.0, %v986_v52  ;;  %v3232_v26 = vmul.f32 %v3200_v45, %v5077_v20  ;;  %v2049_v1 = vmul.f32 %v4815_v19, %v5285_v24  ;;  %v5306_v30 = vld [vmem:[#allocation2 + $0xb1] sm:$0xff]  ;;  %v5318_v45 = vld [vmem:[#allocation2 + $0xc9] sm:$0xff] }
 0x28f   : > { %v5304_v34 = vmul.f32 0.70710677, %v5283_v16  ;;  %v1561_v55 = vmul.f32 %v1529_v14, %v825_v21  ;;  %v1175_v36 = vadd.f32 1.4214138, %v1143_v17  ;;  %v1453_v62 = vmul.f32 1.442695, %v1402_v15 }
 0x290   : > { %v2013_v25 = vadd.f32 %v1981_v61, %v1913_v59  ;;  %v5308_v10 = vmul.f32 %v4187_v29, %v1018_v31  ;;  %v2393_v52 = vmul.f32 %v4828_v43, %v5153_v41  ;;  %v5316_v59 = vmul.f32 0.70710677, %v5297_v2  ;;  %v5326_v31 = vld [vmem:[#allocation2 + $0xb2] sm:$0xff] }
 0x291   : > { %v5313_v20 = vand.u32 2147483647, %v5304_v34  ;;  %v4189_v35 = vpop.eup %4188  ;;  %v1593_v8 = vadd.f32 1.0, %v1561_v55  ;;  %v1207_v21 = vmul.f32 %v1175_v36, %v5248_v7  ;;  %v1368_v15 = vsub.f32 0.0, %v5213_v12 }
 0x292   : > { %v2081_v38 = vadd.f32 %v2049_v1, %v2013_v25  ;;  %v1082_v29 = vmul.f32 1.0614054, %v5308_v10  ;;  %v3392_v14 = vmul.f32 %v4189_v35, %v3232_v26  ;;  %v2221_v41 = vmul.f32 %v4822_v33, %v5306_v30 }
 0x293   : > { %v893_v17 = vmul.f32 0.3275911, %v5313_v20  ;;  %v5329_v25 = vmul.f32 %v1593_v8, %v5185_v54  ;;  %v1239_v1 = vadd.f32 -0.28449672, %v1207_v21  ;;  %4196 = vpow2.f32 %v1453_v62  ;;  %v4052_v21 = vpop.f32.mrf.mxu0 }
 0x294   : > { %v2185_v61 = vadd.f32 %v2153_v0, %v2081_v38  ;;  %v1114_v55 = vadd.f32 -1.4531521, %v1082_v29  ;;  %v2289_v53 = vmul.f32 %v4826_v37, %v5318_v45  ;;  %v5336_v38 = vand.u32 2147483647, %v5316_v59 }
 0x295   : > { %7665 = vst [vmem:[#allocation29_spill] sm:$0xff] %v5329_v25  ;;  %v5333_v48 = vadd.f32 1.0, %v893_v17  ;;  %v7605_v26 = vrot.slane %v5329_v25, 7  ;;  %v1271_v35 = vmul.f32 %v1239_v1, %v5248_v7  ;;  %v1400_v8 = vmul.f32 %v1368_v15, %v5213_v12  ;;  %v5346_v17 = vld [vmem:[#allocation2 + $0xca] sm:$0xff] }
 0x296   : > { %v2253_v36 = vadd.f32 %v2221_v41, %v2185_v61  ;;  %v4191_v0 = vpop.eup %4190  ;;  %v1146_v54 = vmul.f32 %v1114_v55, %v5308_v10  ;;  %v2461_v41 = vmul.f32 %v4830_v39, %v5326_v31  ;;  %vm794_vm12 = vcmp.ge.f32.partialorder %v5150_v22, 0.0 }
 0x297   : > { %v4193_v62 = vpop.eup %4192  ;;  %v2884_v29 = vmul.f32 %v4191_v0, %v5246_v27  ;;  %4198 = vrcp.f32 %v5333_v48  ;;  %v1786_v1 = vsel %vm1680_vm8, 0.0, %v7605_v26  ;;  %v1303_v56 = vadd.f32 0.2548296, %v1271_v35 }
 0x298   : > { %v2321_v61 = vadd.f32 %v2289_v53, %v2253_v36  ;;  %v1178_v55 = vadd.f32 1.4214138, %v1146_v54  ;;  %v984_v12 = vmul.f32 %v4193_v62, %v5240_v58  ;;  %1837 = vst.msk [vmem:[#allocation2 + $0xf0] sm:$0xff] %vm1639_vm9, %v1786_v1  ;;  %v891_v27 = vmul.f32 0.3275911, %v5336_v38 }
 0x299   : > { %v2916_v15 = vsub.f32 2.0, %v2884_v29  ;;  %v5355_v53 = vadd.f32 %v5025_v6, %v4052_v21  ;;  %v3424_v36 = vsub.f32 1.0, %v3392_v14  ;;  %v1335_v42 = vmul.f32 %v1303_v56, %v5248_v7 }
 0x29a   : > { %v2425_v3 = vadd.f32 %v2393_v52, %v2321_v61  ;;  %v1210_v40 = vmul.f32 %v1178_v55, %v5308_v10  ;;  %v1016_v23 = vsub.f32 2.0, %v984_v12  ;;  %v4195_v26 = vpop.eup %4194  ;;  %v2529_v58 = vmul.f32 %v4929_v13, %v5346_v17 }
 0x29b   : > { %v5359_v35 = vmul.f32 %v4191_v0, %v2916_v15  ;;  %v5363_v52 = vadd.f32 1.0, %v891_v27  ;;  %v1495_v29 = vmul.f32 %v4195_v26, %v1335_v42  ;;  %v1449_v21 = vmul.f32 1.442695, %v1400_v8 }
 0x29c   : > { %v2493_v54 = vadd.f32 %v2461_v41, %v2425_v3  ;;  %v1242_v61 = vadd.f32 -0.28449672, %v1210_v40  ;;  %v5365_v1 = vmul.f32 %v4193_v62, %v1016_v23  ;;  %v5370_v7 = vmul.f32 0.70710677, %v5355_v53 }
 0x29d   : > { %v2980_v14 = vmul.f32 1.0614054, %v5359_v35  ;;  %4200 = vrcp.f32 %v5363_v52  ;;  %v1527_v0 = vsub.f32 1.0, %v1495_v29  ;;  %v3456_v40 = vmul.f32 %v3424_v36, %v5243_v46 }
 0x29e   : > { %v2561_v56 = vadd.f32 %v2529_v58, %v2493_v54  ;;  %v1274_v13 = vmul.f32 %v1242_v61, %v5308_v10  ;;  %v1080_v3 = vmul.f32 1.0614054, %v5365_v1  ;;  %v5380_v42 = vmul.f32 0.5, %v5161_v9 }
 0x29f   : > { %v5383_v26 = vand.u32 2147483647, %v5370_v7  ;;  %v1559_v8 = vmul.f32 %v1527_v0, %v5254_v47  ;;  %vm792_vm13 = vcmp.ge.f32.partialorder %v5181_v63, 0.0  ;;  %v3012_v55 = vadd.f32 -1.4531521, %v2980_v14 }
 0x2a0   : > { %v5377_v23 = vadd.f32 %v4947_v57, %v2561_v56  ;;  %v1306_v62 = vadd.f32 0.2548296, %v1274_v13  ;;  %v1112_v22 = vadd.f32 -1.4531521, %v1080_v3  ;;  %v4197_v41 = vpop.eup %4196  ;;  %v826_v57 = vsel %vm794_vm12, 1.0, %v7645_v18 }
 0x2a1   : > { %4202 = vpow2.f32 %v1449_v21  ;;  %v1591_v46 = vadd.f32 1.0, %v1559_v8  ;;  %v894_v27 = vmul.f32 0.3275911, %v5383_v26  ;;  %v3488_v47 = vadd.f32 1.0, %v3456_v40 }
 0x2a2   : > { %v5388_v12 = vmul.f32 0.70710677, %v5377_v23  ;;  %v1338_v9 = vmul.f32 %v1306_v62, %v5308_v10  ;;  %v1144_v15 = vmul.f32 %v1112_v22, %v5365_v1  ;;  %v5395_v36 = vmul.f32 0.5, %v5190_v49 }
 0x2a3   : > { %v5401_v54 = vsel %vm792_vm13, 1.0, %v7645_v18  ;;  %v3268_v29 = vsub.f32 0.0, %v5223_v44  ;;  %v5405_v61 = vmul.f32 %v1591_v46, %v5251_v50  ;;  %v3044_v14 = vmul.f32 %v3012_v55, %v5359_v35 }
 0x2a4   : > { %v5398_v63 = vand.u32 2147483647, %v5388_v12  ;;  %v4199_v58 = vpop.eup %4198  ;;  %v1498_v10 = vmul.f32 %v4197_v41, %v1338_v9  ;;  %v1176_v21 = vadd.f32 1.4214138, %v1144_v15  ;;  %v1373_v0 = vsub.f32 0.0, %v5313_v20  ;;  %v667_v41 = vpop.f32.mrf.mxu0 }
 0x2a5   : > { %7666 = vst [vmem:[#allocation30_spill] sm:$0xff] %v5405_v61  ;;  %v989_v49 = vmul.f32 %v4199_v58, %v5333_v48  ;;  %v1705_v13 = vrot.slane %v5405_v61, 7  ;;  %v5413_v8 = vadd.f32 1.0, %v894_v27  ;;  %v3520_v50 = vmul.f32 %v3488_v47, %v5197_v11 }
 0x2a6   : > { %v2792_v56 = vmul.f32 0.3275911, %v5398_v63  ;;  %v1530_v3 = vsub.f32 1.0, %v1498_v10  ;;  %v1208_v40 = vmul.f32 %v1176_v21, %v5365_v1  ;;  %vm2692_vm14 = vcmp.ge.f32.partialorder %v5210_v60, 0.0 }
 0x2a7   : > { %v1021_v22 = vsub.f32 2.0, %v989_v49  ;;  %v1785_v48 = vsel %vm1680_vm8, 0.0, %v1705_v13  ;;  %4204 = vrcp.f32 %v5413_v8  ;;  %v3076_v9 = vadd.f32 1.4214138, %v3044_v14 }
 0x2a8   : > { %v5417_v62 = vadd.f32 1.0, %v2792_v56  ;;  %v1562_v55 = vmul.f32 %v1530_v3, %v826_v57  ;;  %v1240_v46 = vadd.f32 -0.28449672, %v1208_v40  ;;  %v3300_v15 = vmul.f32 %v3268_v29, %v5223_v44  ;;  %1834 = vst.msk [vmem:[#allocation2 + $0xd8] sm:$0xff] %vm1639_vm9, %v1785_v48  ;;  %v7667_v29 = vld [vmem:[#allocation10_spill] sm:$0xff] }
 0x2a9   : > { %v5425_v11 = vmul.f32 %v4199_v58, %v1021_v22  ;;  %v1405_v27 = vmul.f32 %v1373_v0, %v5313_v20  ;;  %v5431_v57 = vadd.f32 %v5025_v6, %v667_v41  ;;  %v5436_v14 = vsel %vm2692_vm14, 1.0, %v7645_v18 }
 0x2aa   : > { %v4201_v47 = vpop.eup %4200  ;;  %4206 = vrcp.f32 %v5417_v62  ;;  %v1594_v10 = vadd.f32 1.0, %v1562_v55  ;;  %v1272_v21 = vmul.f32 %v1240_v46, %v5365_v1  ;;  %v1371_v20 = vsub.f32 0.0, %v5336_v38 }
 0x2ab   : > { %v1085_v44 = vmul.f32 1.0614054, %v5425_v11  ;;  %v987_v58 = vmul.f32 %v4201_v47, %v5363_v52  ;;  %v5442_v56 = vadd.f32 %v3520_v50, %v7667_v29  ;;  %v5448_v3 = vmul.f32 0.5, %v5283_v16 }
 0x2ac   : > { %v5445_v49 = vmul.f32 %v1594_v10, %v5257_v5  ;;  %v1304_v0 = vadd.f32 0.2548296, %v1272_v21  ;;  %v3108_v60 = vmul.f32 %v3076_v9, %v5359_v35  ;;  %v1459_v22 = vmul.f32 1.442695, %v1405_v27 }
 0x2ad   : > { %7668 = vst [vmem:[#allocation10_spill] sm:$0xff] %v5442_v56  ;;  %v1117_v40 = vadd.f32 -1.4531521, %v1085_v44  ;;  %v1019_v41 = vsub.f32 2.0, %v987_v58  ;;  %v3341_v55 = vmul.f32 1.442695, %v3300_v15  ;;  %v5458_v5 = vmul.f32 %v4813_v32, %v5285_v24 }
 0x2ae   : > { %7669 = vst [vmem:[#allocation31_spill] sm:$0xff] %v5445_v49  ;;  %v4203_v48 = vpop.eup %4202  ;;  %v1709_v52 = vrot.slane %v5445_v49, 7  ;;  %v1336_v46 = vmul.f32 %v1304_v0, %v5365_v1  ;;  %v5454_v50 = vmul.f32 0.70710677, %v5431_v57  ;;  %v1403_v9 = vmul.f32 %v1371_v20, %v5336_v38 }
 0x2af   : > { %7670 = vst [vmem:[#allocation32_spill] sm:$0xff] %v5458_v5  ;;  %v1149_v16 = vmul.f32 %v1117_v40, %v5425_v11  ;;  %v5461_v10 = vmul.f32 %v4201_v47, %v1019_v41  ;;  %v5466_v15 = vmul.f32 %v4822_v33, %v5318_v45  ;;  %v7672_v27 = vrot.slane %v5329_v25, 7 }
 0x2b0   : > { %v1802_v21 = vsel %vm1680_vm8, %v1709_v52, 0.0  ;;  %v1496_v44 = vmul.f32 %v4203_v48, %v1336_v46  ;;  %v3140_v58 = vadd.f32 -0.28449672, %v3108_v60  ;;  %4208 = vpow2.f32 %v1459_v22  ;;  %v4055_v22 = vpop.f32.mrf.mxu0 }
 0x2b1   : > { %7671 = vst [vmem:[#allocation33_spill] sm:$0xff] %v5466_v15  ;;  %v1710_v1 = vsel %vm1680_vm8, %v7672_v27, %v1709_v52  ;;  %1839 = vst.msk [vmem:[#allocation2 + $0x100] sm:$0x3] %vm1642_vm10, %v1802_v21  ;;  %v1181_v47 = vadd.f32 1.4214138, %v1149_v16  ;;  %4210 = vpow2.f32 %v3341_v55  ;;  %v5477_v20 = vmul.f32 %v4830_v39, %v5346_v17 }
 0x2b2   : > { %1838 = vst.msk [vmem:[#allocation2 + $0xf8] sm:$0xff] %vm1639_vm9, %v1710_v1  ;;  %v1083_v38 = vmul.f32 1.0614054, %v5461_v10  ;;  %v1528_v29 = vsub.f32 1.0, %v1496_v44  ;;  %v5480_v0 = vand.u32 2147483647, %v5454_v50  ;;  %v5484_v60 = vmul.f32 %v4807_v4, %v5285_v24 }
 0x2b3   : > { %7673 = vst [vmem:[#allocation34_spill] sm:$0xff] %v5477_v20  ;;  %v1213_v40 = vmul.f32 %v1181_v47, %v5425_v11  ;;  %v1455_v48 = vmul.f32 1.442695, %v1403_v9  ;;  %v5490_v55 = vmul.f32 %v4817_v28, %v5318_v45  ;;  %v5494_v46 = vmul.f32 %v4828_v43, %v5346_v17 }
 0x2b4   : > { %v1115_v41 = vadd.f32 -1.4531521, %v1083_v38  ;;  %v1560_v52 = vmul.f32 %v1528_v29, %v5401_v54  ;;  %v892_v16 = vmul.f32 0.3275911, %v5480_v0  ;;  %v4205_v27 = vpop.eup %4204  ;;  %v3172_v24 = vmul.f32 %v3140_v58, %v5359_v35 }
 0x2b5   : > { %vm797_vm15 = vcmp.ge.f32.partialorder %v5304_v34, 0.0  ;;  %v1245_v1 = vadd.f32 -0.28449672, %v1213_v40  ;;  %v990_v54 = vmul.f32 %v4205_v27, %v5413_v8  ;;  %v5504_v45 = vadd.f32 %v5025_v6, %v4055_v22 }
 0x2b6   : > { %v1147_v9 = vmul.f32 %v1115_v41, %v5461_v10  ;;  %v1592_v21 = vadd.f32 1.0, %v1560_v52  ;;  %v5501_v44 = vadd.f32 1.0, %v892_v16  ;;  %4212 = vpow2.f32 %v1455_v48 }
 0x2b7   : > { %v4207_v17 = vpop.eup %4206  ;;  %v1277_v47 = vmul.f32 %v1245_v1, %v5425_v11  ;;  %v1374_v58 = vsub.f32 0.0, %v5383_v26  ;;  %vm795_vm0 = vcmp.ge.f32.partialorder %v5316_v59, 0.0  ;;  %v1022_v40 = vsub.f32 2.0, %v990_v54 }
 0x2b8   : > { %v1179_v38 = vadd.f32 1.4214138, %v1147_v9  ;;  %v5509_v29 = vmul.f32 %v1592_v21, %v5380_v42  ;;  %4214 = vrcp.f32 %v5501_v44  ;;  %v5515_v8 = vmul.f32 %v4817_v28, %v5306_v30 }
 0x2b9   : > { %v3272_v41 = vsub.f32 0.0, %v5398_v63  ;;  %v829_v48 = vsel %vm797_vm15, 1.0, %v7645_v18  ;;  %v5522_v22 = vmul.f32 0.5, %v5297_v2  ;;  %v3204_v42 = vadd.f32 0.2548296, %v3172_v24 }
 0x2ba   : > { %7674 = vst [vmem:[#allocation35_spill] sm:$0xff] %v5509_v29  ;;  %7675 = vst [vmem:[#allocation36_spill] sm:$0xff] %v5515_v8  ;;  %v2888_v52 = vmul.f32 %v4207_v17, %v5417_v62  ;;  %v1706_v59 = vrot.slane %v5509_v29, 7  ;;  %v5527_v16 = vmul.f32 0.70710677, %v5504_v45  ;;  %v5530_v30 = vsel %vm795_vm0, 1.0, %v7645_v18 }
 0x2bb   : > { %v1309_v1 = vadd.f32 0.2548296, %v1277_v47  ;;  %v1211_v9 = vmul.f32 %v1179_v38, %v5461_v10  ;;  %v1406_v34 = vmul.f32 %v1374_v58, %v5383_v26  ;;  %v5539_v62 = vmul.f32 0.5, %v5355_v53  ;;  %v680_v38 = vpop.f32.mrf.mxu0 }
 0x2bc   : > { %v1707_v2 = vsel %vm1680_vm8, %v1705_v13, %v1706_v59  ;;  %v1801_v24 = vsel %vm1680_vm8, %v1706_v59, 0.0  ;;  %v5541_v21 = vmul.f32 %v4205_v27, %v1022_v40  ;;  %v3304_v54 = vmul.f32 %v3272_v41, %v5398_v63 }
 0x2bd   : > { %1835 = vst.msk [vmem:[#allocation2 + $0xe0] sm:$0xff] %vm1639_vm9, %v1707_v2  ;;  %v1341_v47 = vmul.f32 %v1309_v1, %v5425_v11  ;;  %v1243_v26 = vadd.f32 -0.28449672, %v1211_v9  ;;  %vm798_vm1 = vcmp.ge.f32.partialorder %v5370_v7, 0.0  ;;  %v4209_v13 = vpop.eup %4208  ;;  %v3236_v58 = vmul.f32 %v3204_v42, %v5359_v35 }
 0x2be   : > { %1836 = vst.msk [vmem:[#allocation2 + $0xe8] sm:$0x3] %vm1642_vm10, %v1801_v24  ;;  %v2920_v59 = vsub.f32 2.0, %v2888_v52  ;;  %v1086_v53 = vmul.f32 1.0614054, %v5541_v21  ;;  %v4211_v63 = vpop.eup %4210  ;;  %v5554_v40 = vmul.f32 0.5, %v5377_v23  ;;  %v5560_v35 = vadd.f32 %v5025_v6, %v680_v38 }
 0x2bf   : > { %v5551_v27 = vand.u32 2147483647, %v5527_v16  ;;  %v1501_v41 = vmul.f32 %v4209_v13, %v1341_v47  ;;  %v1275_v11 = vmul.f32 %v1243_v26, %v5461_v10  ;;  %v1461_v1 = vmul.f32 1.442695, %v1406_v34 }
 0x2c0   : > { %vm2696_vm2 = vcmp.ge.f32.partialorder %v5388_v12, 0.0  ;;  %v1118_v9 = vadd.f32 -1.4531521, %v1086_v53  ;;  %v3349_v42 = vmul.f32 1.442695, %v3304_v54  ;;  %v1372_v49 = vsub.f32 0.0, %v5480_v0 }
 0x2c1   : > { %v897_v2 = vmul.f32 0.3275911, %v5551_v27  ;;  %v1533_v52 = vsub.f32 1.0, %v1501_v41  ;;  %v1307_v24 = vadd.f32 0.2548296, %v1275_v11  ;;  %v3396_v25 = vmul.f32 %v4211_v63, %v3236_v58  ;;  %v5578_v58 = vld [vmem:[#allocation2 + $0xf8] sm:$0xff]  ;;  %v4056_v41 = vpop.f32.mrf.mxu0 }
 0x2c2   : > { %v5563_v23 = vmul.f32 %v4207_v17, %v2920_v59  ;;  %v1150_v47 = vmul.f32 %v1118_v9, %v5541_v21  ;;  %v5572_v38 = vsel %vm798_vm1, 1.0, %v7645_v18  ;;  %4216 = vpow2.f32 %v1461_v1 }
 0x2c3   : > { %v5566_v26 = vadd.f32 1.0, %v897_v2  ;;  %v1565_v34 = vmul.f32 %v1533_v52, %v829_v48  ;;  %v1339_v13 = vmul.f32 %v1307_v24, %v5461_v10  ;;  %v4213_v54 = vpop.eup %4212  ;;  %v5576_v53 = vmul.f32 %v4828_v43, %v5326_v31 }
 0x2c4   : > { %v1879_v17 = vld [vmem:[#allocation2 + $0xe0] sm:$0xff]  ;;  %v1182_v59 = vadd.f32 1.4214138, %v1150_v47  ;;  %v5582_v48 = vmul.f32 0.70710677, %v5560_v35  ;;  %v5587_v7 = vsel %vm2696_vm2, 1.0, %v7645_v18  ;;  %v1404_v31 = vmul.f32 %v1372_v49, %v5480_v0 }
 0x2c5   : > { %7676 = vst [vmem:[#allocation37_spill] sm:$0xff] %v5576_v53  ;;  %4218 = vrcp.f32 %v5566_v26  ;;  %v4215_v10 = vpop.eup %4214  ;;  %v1985_v63 = vmul.f32 %v4813_v32, %v1879_v17  ;;  %v3428_v11 = vsub.f32 1.0, %v3396_v25  ;;  %v2984_v1 = vmul.f32 1.0614054, %v5563_v23 }
 0x2c6   : > { %4220 = vpow2.f32 %v3349_v42  ;;  %v1597_v9 = vadd.f32 1.0, %v1565_v34  ;;  %v1499_v2 = vmul.f32 %v4213_v54, %v1339_v13  ;;  %v2053_v24 = vmul.f32 %v4815_v19, %v5578_v58  ;;  %v5597_v42 = vld [vmem:[#allocation2 + $0xe1] sm:$0xff] }
 0x2c7   : > { %v2017_v52 = vadd.f32 %v1985_v63, %v5484_v60  ;;  %v1214_v12 = vmul.f32 %v1182_v59, %v5541_v21  ;;  %v988_v47 = vmul.f32 %v4215_v10, %v5501_v44  ;;  %v5603_v25 = vand.u32 2147483647, %v5582_v48  ;;  %v5608_v59 = vld [vmem:[#allocation2 + $0xf9] sm:$0xff] }
 0x2c8   : > { %v5600_v17 = vmul.f32 %v1597_v9, %v5448_v3  ;;  %v1531_v49 = vsub.f32 1.0, %v1499_v2  ;;  %v5606_v0 = vadd.f32 %v5025_v6, %v4056_v41  ;;  %v1457_v54 = vmul.f32 1.442695, %v1404_v31 }
 0x2c9   : > { %v2085_v60 = vadd.f32 %v2053_v24, %v2017_v52  ;;  %v1246_v34 = vadd.f32 -0.28449672, %v1214_v12  ;;  %v1020_v13 = vsub.f32 2.0, %v988_v47  ;;  %v3016_v63 = vadd.f32 -1.4531521, %v2984_v1  ;;  %v5619_v52 = vld [vmem:[#allocation2 + $0xfa] sm:$0xff] }
 0x2ca   : > { %7677 = vst [vmem:[#allocation38_spill] sm:$0xff] %v5600_v17  ;;  %v7609_v44 = vrot.slane %v5600_v17, 7  ;;  %v1563_v61 = vmul.f32 %v1531_v49, %v5530_v30  ;;  %v895_v3 = vmul.f32 0.3275911, %v5603_v25  ;;  %v2225_v2 = vmul.f32 %v4822_v33, %v5597_v42 }
 0x2cb   : > { %v2189_v9 = vadd.f32 %v5490_v55, %v2085_v60  ;;  %v1278_v6 = vmul.f32 %v1246_v34, %v5541_v21  ;;  %v5617_v41 = vmul.f32 %v4215_v10, %v1020_v13  ;;  %v5627_v30 = vmul.f32 0.70710677, %v5606_v0  ;;  %v5635_v34 = vld [vmem:[#allocation2 + $0xe2] sm:$0xff] }
 0x2cc   : > { %v1788_v31 = vsel %vm1680_vm8, 0.0, %v7609_v44  ;;  %v1595_v1 = vadd.f32 1.0, %v1563_v61  ;;  %v5624_v24 = vadd.f32 1.0, %v895_v3  ;;  %v2293_v12 = vmul.f32 %v4826_v37, %v5608_v59  ;;  %v5644_v3 = vld [vmem:[%s7580_s5 + $0x8] ss:$0 sm:$0xff] }
 0x2cd   : > { %v2257_v55 = vadd.f32 %v2225_v2, %v2189_v9  ;;  %1843 = vst.msk [vmem:[#allocation2 + $0x120] sm:$0xff] %vm1639_vm9, %v1788_v31  ;;  %v1310_v10 = vadd.f32 0.2548296, %v1278_v6  ;;  %v1084_v47 = vmul.f32 1.0614054, %v5617_v41  ;;  %v3460_v49 = vmul.f32 %v3428_v11, %v5436_v14  ;;  %v683_v31 = vpop.f32.mrf.mxu0 }
 0x2ce   : > { %v3048_v60 = vmul.f32 %v3016_v63, %v5563_v23  ;;  %v5638_v61 = vmul.f32 %v1595_v1, %v5522_v22  ;;  %4222 = vrcp.f32 %v5624_v24  ;;  %v2533_v9 = vmul.f32 %v5644_v3, %v5619_v52 }
 0x2cf   : > { %v2325_v13 = vadd.f32 %v2293_v12, %v2257_v55  ;;  %v1342_v14 = vmul.f32 %v1310_v10, %v5541_v21  ;;  %v1116_v11 = vadd.f32 -1.4531521, %v1084_v47  ;;  %v4217_v63 = vpop.eup %4216  ;;  %4224 = vpow2.f32 %v1457_v54 }
 0x2d0   : > { %7678 = vst [vmem:[#allocation39_spill] sm:$0xff] %v5638_v61  ;;  %v7610_v2 = vrot.slane %v5638_v61, 7  ;;  %v1377_v22 = vsub.f32 0.0, %v5551_v27  ;;  %v5652_v6 = vand.u32 2147483647, %v5627_v30  ;;  %v2465_v12 = vmul.f32 %v4830_v39, %v5635_v34 }
 0x2d1   : > { %v2429_v55 = vadd.f32 %v5494_v46, %v2325_v13  ;;  %v1502_v44 = vmul.f32 %v4217_v63, %v1342_v14  ;;  %v1148_v21 = vmul.f32 %v1116_v11, %v5617_v41  ;;  %v3080_v47 = vadd.f32 1.4214138, %v3048_v60  ;;  %v5669_v14 = vld [vmem:[%s7579_s4] ss:$0 sm:$0xff] }
 0x2d2   : > { %v4219_v1 = vpop.eup %4218  ;;  %v1787_v54 = vsel %vm1680_vm8, 0.0, %v7610_v2  ;;  %v898_v53 = vmul.f32 0.3275911, %v5652_v6  ;;  %v5672_v60 = vadd.f32 %v5669_v14, %v683_v31  ;;  %vm796_vm3 = vcmp.ge.f32.partialorder %v5454_v50, 0.0 }
 0x2d3   : > { %v5658_v10 = vpop.eup %4220  ;;  %v993_v20 = vmul.f32 %v4219_v1, %v5566_v26  ;;  %v2497_v15 = vadd.f32 %v2465_v12, %v2429_v55  ;;  %1840 = vst.msk [vmem:[#allocation2 + $0x108] sm:$0xff] %vm1639_vm9, %v1787_v54  ;;  %v1534_v46 = vsub.f32 1.0, %v1502_v44  ;;  %v1180_v13 = vadd.f32 1.4214138, %v1148_v21 }
 0x2d4   : > { %v1409_v26 = vmul.f32 %v1377_v22, %v5551_v27  ;;  %v5676_v63 = vadd.f32 1.0, %v898_v53  ;;  %vm801_vm4 = vcmp.ge.f32.partialorder %v5527_v16, 0.0  ;;  %v3492_v21 = vadd.f32 1.0, %v3460_v49 }
 0x2d5   : > { %v1025_v11 = vsub.f32 2.0, %v993_v20  ;;  %v2565_v55 = vadd.f32 %v2533_v9, %v2497_v15  ;;  %v1566_v12 = vmul.f32 %v1534_v46, %v5572_v38  ;;  %v1212_v44 = vmul.f32 %v1180_v13, %v5617_v41  ;;  %v5688_v20 = vld [vmem:[%s7581_s6] ss:$0 sm:$0xff] }
 0x2d6   : > { %v3112_v54 = vmul.f32 %v3080_v47, %v5563_v23  ;;  %4226 = vrcp.f32 %v5676_v63  ;;  %v5694_v53 = vmul.f32 0.70710677, %v5672_v60  ;;  %v5697_v49 = vmul.f32 0.5, %v5431_v57 }
 0x2d7   : > { %v5682_v2 = vmul.f32 %v4219_v1, %v1025_v11  ;;  %v5691_v15 = vadd.f32 %v5688_v20, %v2565_v55  ;;  %v1598_v27 = vadd.f32 1.0, %v1566_v12  ;;  %v1244_v38 = vadd.f32 -0.28449672, %v1212_v44  ;;  %v4059_v55 = vpop.f32.mrf.mxu0 }
 0x2d8   : > { %v828_v9 = vsel %vm796_vm3, 1.0, %v7645_v18  ;;  %v1467_v31 = vmul.f32 1.442695, %v1409_v26  ;;  %v5710_v46 = vmul.f32 0.5, %v5504_v45  ;;  %v5715_v57 = vsel %vm801_vm4, 1.0, %v7645_v18 }
 0x2d9   : > { %v1089_v22 = vmul.f32 1.0614054, %v5682_v2  ;;  %v5704_v1 = vmul.f32 0.70710677, %v5691_v15  ;;  %v5707_v47 = vmul.f32 %v1598_v27, %v5539_v62  ;;  %v3524_v50 = vmul.f32 %v3492_v21, %v5395_v36 }
 0x2da   : > { %v3144_v13 = vadd.f32 -0.28449672, %v3112_v54  ;;  %v1276_v11 = vmul.f32 %v1244_v38, %v5617_v41  ;;  %v1375_v45 = vsub.f32 0.0, %v5603_v25  ;;  %v5725_v27 = vand.u32 2147483647, %v5694_v53 }
 0x2db   : > { %7679 = vst [vmem:[#allocation40_spill] sm:$0xff] %v5707_v47  ;;  %v1121_v26 = vadd.f32 -1.4531521, %v1089_v22  ;;  %v4223_v12 = vpop.eup %4222  ;;  %v5720_v44 = vand.u32 2147483647, %v5704_v1  ;;  %v1715_v62 = vrot.slane %v5707_v47, 7  ;;  %4228 = vpow2.f32 %v1467_v31 }
 0x2dc   : > { %v1308_v16 = vadd.f32 0.2548296, %v1276_v11  ;;  %v991_v36 = vmul.f32 %v4223_v12, %v5624_v24  ;;  %v4225_v21 = vpop.eup %4224  ;;  %v7680_v38 = vrot.slane %v5600_v17, 7  ;;  %v5735_v5 = vadd.f32 %v5669_v14, %v4059_v55 }
 0x2dd   : > { %v1153_v8 = vmul.f32 %v1121_v26, %v5682_v2  ;;  %v2796_v54 = vmul.f32 0.3275911, %v5720_v44  ;;  %v1804_v47 = vsel %vm1680_vm8, %v1715_v62, 0.0  ;;  %v896_v26 = vmul.f32 0.3275911, %v5725_v27 }
 0x2de   : > { %v1716_v22 = vsel %vm1680_vm8, %v7680_v38, %v1715_v62  ;;  %1845 = vst.msk [vmem:[#allocation2 + $0x130] sm:$0x3] %vm1642_vm10, %v1804_v47  ;;  %v1340_v31 = vmul.f32 %v1308_v16, %v5617_v41  ;;  %v1023_v24 = vsub.f32 2.0, %v991_v36  ;;  %v5742_v56 = vadd.f32 %v3524_v50, %v5036_v51 }
 0x2df   : > { %1844 = vst.msk [vmem:[#allocation2 + $0x128] sm:$0xff] %vm1639_vm9, %v1716_v22  ;;  %v1185_v11 = vadd.f32 1.4214138, %v1153_v8  ;;  %v5746_v38 = vmul.f32 %v4813_v32, %v5578_v58  ;;  %v5748_v62 = vadd.f32 1.0, %v2796_v54  ;;  %v1407_v55 = vmul.f32 %v1375_v45, %v5603_v25 }
 0x2e0   : > { %7681 = vst [vmem:[#allocation41_spill] sm:$0xff] %v5742_v56  ;;  %v1500_v22 = vmul.f32 %v4225_v21, %v1340_v31  ;;  %v5752_v17 = vmul.f32 %v4223_v12, %v1023_v24  ;;  %v5754_v8 = vadd.f32 1.0, %v896_v26  ;;  %v3176_v41 = vmul.f32 %v3144_v13, %v5563_v23 }
 0x2e1   : > { %7682 = vst [vmem:[#allocation42_spill] sm:$0xff] %v5746_v38  ;;  %v1217_v47 = vmul.f32 %v1185_v11, %v5682_v2  ;;  %4230 = vrcp.f32 %v5748_v62  ;;  %v1378_v51 = vsub.f32 0.0, %v5652_v6  ;;  %v5760_v50 = vmul.f32 0.70710677, %v5735_v5 }
 0x2e2   : > { %v1532_v16 = vsub.f32 1.0, %v1500_v22  ;;  %v1087_v25 = vmul.f32 1.0614054, %v5752_v17  ;;  %4232 = vrcp.f32 %v5754_v8  ;;  %v5766_v12 = vmul.f32 %v4822_v33, %v5608_v59  ;;  %v696_v22 = vpop.f32.mrf.mxu0 }
 0x2e3   : > { %v1249_v36 = vadd.f32 -0.28449672, %v1217_v47  ;;  %v4227_v45 = vpop.eup %4226  ;;  %v5770_v13 = vmul.f32 %v4830_v39, %v5619_v52  ;;  %v1463_v21 = vmul.f32 1.442695, %v1407_v55  ;;  %v5773_v54 = vand.u32 2147483647, %v5760_v50 }
 0x2e4   : > { %7683 = vst [vmem:[#allocation43_spill] sm:$0xff] %v5766_v12  ;;  %v1564_v31 = vmul.f32 %v1532_v16, %v828_v9  ;;  %v1119_v24 = vadd.f32 -1.4531521, %v1087_v25  ;;  %v994_v26 = vmul.f32 %v4227_v45, %v5676_v63  ;;  %v3208_v47 = vadd.f32 0.2548296, %v3176_v41 }
 0x2e5   : > { %7684 = vst [vmem:[#allocation44_spill] sm:$0xff] %v5770_v13  ;;  %v1281_v11 = vmul.f32 %v1249_v36, %v5682_v2  ;;  %v5779_v38 = vmul.f32 %v4807_v4, %v5578_v58  ;;  %v5783_v12 = vmul.f32 %v4817_v28, %v5608_v59  ;;  %v901_v55 = vmul.f32 0.3275911, %v5773_v54 }
 0x2e6   : > { %v1596_v13 = vadd.f32 1.0, %v1564_v31  ;;  %v5788_v9 = vmul.f32 %v4828_v43, %v5619_v52  ;;  %vm799_vm5 = vcmp.ge.f32.partialorder %v5582_v48, 0.0  ;;  %v1410_v63 = vmul.f32 %v1378_v51, %v5652_v6 }
 0x2e7   : > { %v1313_v41 = vadd.f32 0.2548296, %v1281_v11  ;;  %v5793_v16 = vmul.f32 0.5, %v5560_v35  ;;  %v5796_v58 = vmul.f32 0.5, %v5606_v0  ;;  %v5799_v59 = vadd.f32 %v5669_v14, %v696_v22 }
 0x2e8   : > { %v5802_v36 = vmul.f32 %v1596_v13, %v5697_v49  ;;  %v1151_v52 = vmul.f32 %v1119_v24, %v5752_v17  ;;  %4234 = vpow2.f32 %v1463_v21  ;;  %v1026_v25 = vsub.f32 2.0, %v994_v26  ;;  %v4229_v48 = vpop.eup %4228 }
 0x2e9   : > { %v3240_v6 = vmul.f32 %v3208_v47, %v5563_v23  ;;  %v1345_v51 = vmul.f32 %v1313_v41, %v5682_v2  ;;  %v5808_v35 = vsel %vm799_vm5, 1.0, %v7645_v18  ;;  %v5810_v0 = vadd.f32 1.0, %v901_v55 }
 0x2ea   : > { %7685 = vst [vmem:[#allocation45_spill] sm:$0xff] %v5802_v36  ;;  %v1712_v31 = vrot.slane %v5802_v36, 7  ;;  %v1183_v11 = vadd.f32 1.4214138, %v1151_v52  ;;  %v5813_v22 = vmul.f32 %v4227_v45, %v1026_v25  ;;  %v1469_v49 = vmul.f32 1.442695, %v1410_v63 }
 0x2eb   : > { %v1505_v13 = vmul.f32 %v4229_v48, %v1345_v51  ;;  %v1376_v21 = vsub.f32 0.0, %v5725_v27  ;;  %4236 = vrcp.f32 %v5810_v0  ;;  %v5818_v23 = vmul.f32 0.70710677, %v5799_v59 }
 0x2ec   : > { %v7686_v2 = vrot.slane %v5638_v61, 7  ;;  %v1803_v26 = vsel %vm1680_vm8, %v1712_v31, 0.0  ;;  %v1215_v47 = vmul.f32 %v1183_v11, %v5752_v17  ;;  %v1090_v45 = vmul.f32 1.0614054, %v5813_v22 }
 0x2ed   : > { %v5828_v55 = vmul.f32 %v4817_v28, %v5597_v42  ;;  %v3276_v63 = vsub.f32 0.0, %v5720_v44  ;;  %1842 = vst.msk [vmem:[#allocation2 + $0x118] sm:$0x3] %vm1642_vm10, %v1803_v26  ;;  %v1537_v41 = vsub.f32 1.0, %v1505_v13  ;;  %v5834_v52 = vand.u32 2147483647, %v5818_v23 }
 0x2ee   : > { %v1713_v24 = vsel %vm1680_vm8, %v7686_v2, %v1712_v31  ;;  %v4231_v25 = vpop.eup %4230  ;;  %v5837_v48 = vmul.f32 %v5658_v10, %v3240_v6  ;;  %v1247_v51 = vadd.f32 -0.28449672, %v1215_v47  ;;  %vm802_vm6 = vcmp.ge.f32.partialorder %v5627_v30, 0.0 }
 0x2ef   : > { %7687 = vst [vmem:[#allocation46_spill] sm:$0xff] %v5828_v55  ;;  %1841 = vst.msk [vmem:[#allocation2 + $0x110] sm:$0xff] %vm1639_vm9, %v1713_v24  ;;  %v1122_v31 = vadd.f32 -1.4531521, %v1090_v45  ;;  %v4233_v42 = vpop.eup %4232  ;;  %v2892_v11 = vmul.f32 %v4231_v25, %v5748_v62  ;;  %v1569_v2 = vmul.f32 %v1537_v41, %v5715_v57  ;;  %v1408_v24 = vmul.f32 %v1376_v21, %v5725_v27  ;;  %v4060_v62 = vpop.f32.mrf.mxu0 }
 0x2f0   : > { %v899_v13 = vmul.f32 0.3275911, %v5834_v52  ;;  %v1279_v26 = vmul.f32 %v1247_v51, %v5752_v17  ;;  %4238 = vpow2.f32 %v1469_v49  ;;  %v992_v10 = vmul.f32 %v4233_v42, %v5754_v8  ;;  %v5857_v49 = vld [vmem:[#allocation2 + $0x128] sm:$0xff] }
 0x2f1   : > { %v1154_v61 = vmul.f32 %v1122_v31, %v5813_v22  ;;  %v2924_v6 = vsub.f32 2.0, %v2892_v11  ;;  %v3308_v47 = vmul.f32 %v3276_v63, %v5720_v44  ;;  %v1601_v45 = vadd.f32 1.0, %v1569_v2 }
 0x2f2   : > { %v5848_v55 = vadd.f32 1.0, %v899_v13  ;;  %v1311_v56 = vadd.f32 0.2548296, %v1279_v26  ;;  %v5853_v57 = vsel %vm802_vm6, 1.0, %v7645_v18  ;;  %v1024_v21 = vsub.f32 2.0, %v992_v10 }
 0x2f3   : > { %v1186_v27 = vadd.f32 1.4214138, %v1154_v61  ;;  %v5855_v41 = vmul.f32 %v4231_v25, %v2924_v6  ;;  %v5860_v8 = vmul.f32 %v1601_v45, %v5710_v46  ;;  %v1465_v44 = vmul.f32 1.442695, %v1408_v24 }
 0x2f4   : > { %4240 = vrcp.f32 %v5848_v55  ;;  %v1343_v51 = vmul.f32 %v1311_v56, %v5752_v17  ;;  %v5865_v30 = vmul.f32 %v4233_v42, %v1024_v21  ;;  %v5868_v61 = vadd.f32 %v5669_v14, %v4060_v62 }
 0x2f5   : > { %7688 = vst [vmem:[#allocation47_spill] sm:$0xff] %v5860_v8  ;;  %v1218_v31 = vmul.f32 %v1186_v27, %v5813_v22  ;;  %v4235_v25 = vpop.eup %4234  ;;  %v2988_v2 = vmul.f32 1.0614054, %v5855_v41  ;;  %v5872_v46 = vmul.f32 1.442695, %v3308_v47  ;;  %v2057_v13 = vmul.f32 %v4815_v19, %v5857_v49 }
 0x2f6   : > { %v1883_v63 = vld [vmem:[#allocation2 + $0x110] sm:$0xff]  ;;  %v7614_v56 = vrot.slane %v5860_v8, 7  ;;  %v1503_v17 = vmul.f32 %v4235_v25, %v1343_v51  ;;  %v1381_v42 = vsub.f32 0.0, %v5773_v54  ;;  %v1088_v45 = vmul.f32 1.0614054, %v5865_v30 }
 0x2f7   : > { %v1989_v24 = vmul.f32 %v4813_v32, %v1883_v63  ;;  %v3020_v26 = vadd.f32 -1.4531521, %v2988_v2  ;;  %v1250_v6 = vadd.f32 -0.28449672, %v1218_v31  ;;  %v5881_v27 = vld [vmem:[#allocation2 + $0x111] sm:$0xff]  ;;  %4242 = vpow2.f32 %v1465_v44  ;;  %v5890_v2 = vld [vmem:[#allocation2 + $0x129] sm:$0xff] }
 0x2f8   : > { %v4237_v62 = vpop.eup %4236  ;;  %7689 = vst [vmem:[#allocation48_spill] sm:$0xff] %v5881_v27  ;;  %v1790_v47 = vsel %vm1680_vm8, 0.0, %v7614_v56  ;;  %v1535_v21 = vsub.f32 1.0, %v1503_v17  ;;  %v5887_v63 = vmul.f32 0.70710677, %v5868_v61  ;;  %v1413_v17 = vmul.f32 %v1381_v42, %v5773_v54 }
 0x2f9   : > { %v2021_v10 = vadd.f32 %v1989_v24, %v5779_v38  ;;  %v3052_v51 = vmul.f32 %v3020_v26, %v5855_v41  ;;  %1849 = vst.msk [vmem:[#allocation2 + $0x150] sm:$0xff] %vm1639_vm9, %v1790_v47  ;;  %v1282_v38 = vmul.f32 %v1250_v6, %v5813_v22  ;;  %v1120_v31 = vadd.f32 -1.4531521, %v1088_v45 }
 0x2fa   : > { %v1567_v24 = vmul.f32 %v1535_v21, %v5808_v35  ;;  %v997_v11 = vmul.f32 %v4237_v62, %v5810_v0  ;;  %v5898_v44 = vand.u32 2147483647, %v5887_v63  ;;  %v2297_v6 = vmul.f32 %v4826_v37, %v5890_v2  ;;  %v5907_v21 = vld [vmem:[#allocation2 + $0x112] sm:$0xff] }
 0x2fb   : > { %v2089_v25 = vadd.f32 %v2057_v13, %v2021_v10  ;;  %v2229_v13 = vmul.f32 %v4822_v33, %v5881_v27  ;;  %v1314_v26 = vadd.f32 0.2548296, %v1282_v38  ;;  %v1152_v10 = vmul.f32 %v1120_v31, %v5865_v30  ;;  %7690 = vst [vmem:[#allocation49_spill] sm:$0xff] %v5907_v21 }
 0x2fc   : > { %v1599_v45 = vadd.f32 1.0, %v1567_v24  ;;  %v1029_v35 = vsub.f32 2.0, %v997_v11  ;;  %v902_v0 = vmul.f32 0.3275911, %v5898_v44  ;;  %v3084_v54 = vadd.f32 1.4214138, %v3052_v51 }
 0x2fd   : > { %v2193_v56 = vadd.f32 %v5783_v12, %v2089_v25  ;;  %v4239_v47 = vpop.eup %4238  ;;  %v1346_v12 = vmul.f32 %v1314_v26, %v5813_v22  ;;  %v1184_v25 = vadd.f32 1.4214138, %v1152_v10  ;;  %v1475_v31 = vmul.f32 1.442695, %v1413_v17  ;;  %v5917_v11 = vld [vmem:[#allocation2 + $0x12a] sm:$0xff] }
 0x2fe   : > { %v5911_v36 = vmul.f32 %v1599_v45, %v5793_v16  ;;  %v5913_v38 = vmul.f32 %v4237_v62, %v1029_v35  ;;  %v5915_v29 = vadd.f32 1.0, %v902_v0  ;;  %v2469_v22 = vmul.f32 %v4830_v39, %v5907_v21  ;;  %v699_v45 = vpop.f32.mrf.mxu0 }
 0x2ff   : > { %v2261_v42 = vadd.f32 %v2229_v13, %v2193_v56  ;;  %v1506_v27 = vmul.f32 %v4239_v47, %v1346_v12  ;;  %v1216_v51 = vmul.f32 %v1184_v25, %v5865_v30  ;;  %v1379_v56 = vsub.f32 0.0, %v5834_v52 }
 0x300   : > { %7691 = vst [vmem:[#allocation50_spill] sm:$0xff] %v5911_v36  ;;  %v7618_v16 = vrot.slane %v5911_v36, 7  ;;  %v1093_v62 = vmul.f32 1.0614054, %v5913_v38  ;;  %4244 = vrcp.f32 %v5915_v29  ;;  %v3116_v17 = vmul.f32 %v3084_v54, %v5855_v41 }
 0x301   : > { %v2329_v24 = vadd.f32 %v2297_v6, %v2261_v42  ;;  %v4241_v13 = vpop.eup %4240  ;;  %v1538_v10 = vsub.f32 1.0, %v1506_v27  ;;  %v1248_v6 = vadd.f32 -0.28449672, %v1216_v51  ;;  %v2537_v35 = vmul.f32 %v5644_v3, %v5917_v11 }
 0x302   : > { %v1789_v0 = vsel %vm1680_vm8, 0.0, %v7618_v16  ;;  %v1125_v47 = vadd.f32 -1.4531521, %v1093_v62  ;;  %v995_v42 = vmul.f32 %v4241_v13, %v5848_v55  ;;  %4246 = vpow2.f32 %v1475_v31 }
 0x303   : > { %v2433_v26 = vadd.f32 %v5788_v9, %v2329_v24  ;;  %1846 = vst.msk [vmem:[#allocation2 + $0x138] sm:$0xff] %vm1639_vm9, %v1789_v0  ;;  %v1570_v54 = vmul.f32 %v1538_v10, %v5853_v57  ;;  %v1280_v9 = vmul.f32 %v1248_v6, %v5865_v30  ;;  %v1411_v24 = vmul.f32 %v1379_v56, %v5834_v52 }
 0x304   : > { %v1157_v27 = vmul.f32 %v1125_v47, %v5913_v38  ;;  %v1027_v25 = vsub.f32 2.0, %v995_v42  ;;  %v5940_v51 = vadd.f32 %v5669_v14, %v699_v45  ;;  %v4243_v16 = vpop.eup %4242  ;;  %v3148_v62 = vadd.f32 -0.28449672, %v3116_v17 }
 0x305   : > { %v2501_v12 = vadd.f32 %v2469_v22, %v2433_v26  ;;  %v1602_v55 = vadd.f32 1.0, %v1570_v54  ;;  %v1312_v22 = vadd.f32 0.2548296, %v1280_v9  ;;  %v7692_v26 = vsub.f32 1.0, %v5837_v48 }
 0x306   : > { %v1189_v10 = vadd.f32 1.4214138, %v1157_v27  ;;  %v5945_v6 = vmul.f32 %v4241_v13, %v1027_v25  ;;  %v5948_v31 = vmul.f32 0.70710677, %v5940_v51  ;;  %4248 = vpow2.f32 %v5872_v46 }
 0x307   : > { %v2569_v21 = vadd.f32 %v2537_v35, %v2501_v12  ;;  %v3464_v57 = vmul.f32 %v7692_v26, %v5587_v7  ;;  %v5955_v52 = vmul.f32 %v1602_v55, %v5796_v58  ;;  %v1344_v56 = vmul.f32 %v1312_v22, %v5865_v30 }
 0x308   : > { %v5960_v48 = vmul.f32 %v4828_v43, %v5635_v34  ;;  %vm800_vm7 = vcmp.ge.f32.partialorder %v5694_v53, 0.0  ;;  %v1221_v7 = vmul.f32 %v1189_v10, %v5913_v38  ;;  %v1091_v13 = vmul.f32 1.0614054, %v5945_v6 }
 0x309   : > { %v5952_v14 = vadd.f32 %v5688_v20, %v2569_v21  ;;  %7693 = vst [vmem:[#allocation51_spill] sm:$0xff] %v5955_v52  ;;  %v3180_v46 = vmul.f32 %v3148_v62, %v5855_v41  ;;  %v1721_v58 = vrot.slane %v5955_v52, 7  ;;  %v1471_v17 = vmul.f32 1.442695, %v1411_v24 }
 0x30a   : > { %7694 = vst [vmem:[#allocation52_spill] sm:$0xff] %v5960_v48  ;;  %v1504_v45 = vmul.f32 %v4243_v16, %v1344_v56  ;;  %v1253_v30 = vadd.f32 -0.28449672, %v1221_v7  ;;  %v1123_v35 = vadd.f32 -1.4531521, %v1091_v13  ;;  %v3496_v0 = vadd.f32 1.0, %v3464_v57 }
 0x30b   : > { %v5967_v21 = vmul.f32 0.70710677, %v5952_v14  ;;  %v5971_v34 = vand.u32 2147483647, %v5948_v31  ;;  %v7695_v42 = vrot.slane %v5860_v8, 7  ;;  %v736_v54 = vmul.f32 0.5, %v5672_v60 }
 0x30c   : > { %v1806_v9 = vsel %vm1680_vm8, %v1721_v58, 0.0  ;;  %v832_v16 = vsel %vm800_vm7, 1.0, %v7645_v18  ;;  %v1536_v27 = vsub.f32 1.0, %v1504_v45  ;;  %v1285_v25 = vmul.f32 %v1253_v30, %v5913_v38 }
 0x30d   : > { %v5974_v47 = vand.u32 2147483647, %v5967_v21  ;;  %v1722_v12 = vsel %vm1680_vm8, %v7695_v42, %v1721_v58  ;;  %v4245_v24 = vpop.eup %4244  ;;  %v3212_v62 = vadd.f32 0.2548296, %v3180_v46  ;;  %1851 = vst.msk [vmem:[#allocation2 + $0x160] sm:$0x3] %vm1642_vm10, %v1806_v9  ;;  %v1155_v22 = vmul.f32 %v1123_v35, %v5945_v6 }
 0x30e   : > { %1850 = vst.msk [vmem:[#allocation2 + $0x158] sm:$0xff] %vm1639_vm9, %v1722_v12  ;;  %4250 = vpow2.f32 %v1471_v17  ;;  %v1568_v60 = vmul.f32 %v1536_v27, %v832_v16  ;;  %v1317_v26 = vadd.f32 0.2548296, %v1285_v25  ;;  %v998_v57 = vmul.f32 %v4245_v24, %v5915_v29  ;;  %v7697_v42 = vld [vmem:[#allocation21_spill] sm:$0xff] }
 0x30f   : > { %v2800_v55 = vmul.f32 0.3275911, %v5974_v47  ;;  %v900_v10 = vmul.f32 0.3275911, %v5971_v34  ;;  %v3528_v53 = vmul.f32 %v3496_v0, %v5554_v40  ;;  %v1187_v7 = vadd.f32 1.4214138, %v1155_v22  ;;  %v4247_v46 = vpop.eup %4246 }
 0x310   : > { %v1382_v13 = vsub.f32 0.0, %v5898_v44  ;;  %v1600_v58 = vadd.f32 1.0, %v1568_v60  ;;  %v1349_v45 = vmul.f32 %v1317_v26, %v5913_v38  ;;  %v1030_v30 = vsub.f32 2.0, %v998_v57 }
 0x311   : > { %v5992_v56 = vadd.f32 1.0, %v2800_v55  ;;  %v5996_v35 = vadd.f32 1.0, %v900_v10  ;;  %vm2700_vm11 = vcmp.ge.f32.partialorder %v5704_v1, 0.0  ;;  %v3244_v29 = vmul.f32 %v3212_v62, %v5855_v41 }
 0x312   : > { %v1219_v40 = vmul.f32 %v1187_v7, %v5945_v6  ;;  %v6002_v17 = vmul.f32 %v1600_v58, %v736_v54  ;;  %vm805_vm12 = vcmp.ge.f32.partialorder %v5760_v50, 0.0  ;;  %v1509_v0 = vmul.f32 %v4247_v46, %v1349_v45 }
 0x313   : > { %4252 = vrcp.f32 %v5992_v56  ;;  %v6007_v38 = vadd.f32 %v3528_v53, %v7697_v42  ;;  %v6009_v9 = vmul.f32 %v4245_v24, %v1030_v30  ;;  %v4249_v16 = vpop.eup %4248  ;;  %v6012_v41 = vmul.f32 0.5, %v5691_v15 }
 0x314   : > { %7696 = vst [vmem:[#allocation53_spill] sm:$0xff] %v6002_v17  ;;  %4254 = vrcp.f32 %v5996_v35  ;;  %v1251_v12 = vadd.f32 -0.28449672, %v1219_v40  ;;  %v1718_v27 = vrot.slane %v6002_v17, 7  ;;  %v1541_v25 = vsub.f32 1.0, %v1509_v0 }
 0x315   : > { %7698 = vst [vmem:[#allocation21_spill] sm:$0xff] %v6007_v38  ;;  %v1414_v54 = vmul.f32 %v1382_v13, %v5898_v44  ;;  %v4414_v62 = vmov 0.0   ;;  %v2732_v15 = vsel %vm2700_vm11, 1.0, %v7645_v18  ;;  %v3404_v24 = vmul.f32 %v4249_v16, %v3244_v29 }
 0x316   : > { %1640 = vst.msk [vmem:[#allocation2] sm:$0xff] %vm1639_vm9, %v4414_v62  ;;  %1641 = vst.msk [vmem:[#allocation2 + $0x8] sm:$0xff] %vm1639_vm9, %v4414_v62  ;;  %v3280_v44 = vsub.f32 0.0, %v5974_v47  ;;  %v837_v55 = vsel %vm805_vm12, 1.0, %v7645_v18  ;;  %v7699_v22 = vrot.slane %v5911_v36, 7  ;;  %v1805_v26 = vsel %vm1680_vm8, %v1718_v27, 0.0 }
 0x317   : > { %1643 = vst.msk [vmem:[#allocation2 + $0x10] sm:$0x3] %vm1642_vm10, %v4414_v62  ;;  %1647 = vst.msk [vmem:[#allocation2 + $0x1a8] sm:$0x3] %vm1642_vm10, %v4414_v62  ;;  %v1573_v57 = vmul.f32 %v1541_v25, %v837_v55  ;;  %v1283_v10 = vmul.f32 %v1251_v12, %v5945_v6  ;;  %v1925_v1 = vmul.f32 %v4807_v4, %v5857_v49  ;;  %v741_v53 = vmul.f32 0.5, %v5735_v5  ;;  %v4109_v12 = vld [vmem:[%s7582_s7] sm:$0xff]  }
 0x318   : > { %1645 = vst.msk [vmem:[#allocation2 + $0x198] sm:$0xff] %vm1639_vm9, %v4414_v62  ;;  %1646 = vst.msk [vmem:[#allocation2 + $0x1a0] sm:$0xff] %vm1639_vm9, %v4414_v62  ;;  %v1719_v60 = vsel %vm1680_vm8, %v7699_v22, %v1718_v27  ;;  %vm803_vm13 = vcmp.ge.f32.partialorder %v5818_v23, 0.0  ;;  %v1094_v50 = vmul.f32 1.0614054, %v6009_v9  ;;  %v1380_v58 = vsub.f32 0.0, %v5971_v34  ;;  %4061 = vmatprep.subr.bf16.mxu1 %v4109_v12 }
 0x319   : > { %1847 = vst.msk [vmem:[#allocation2 + $0x140] sm:$0xff] %vm1639_vm9, %v1719_v60  ;;  %v1605_v7 = vadd.f32 1.0, %v1573_v57  ;;  %v1315_v13 = vadd.f32 0.2548296, %v1283_v10  ;;  %v1477_v46 = vmul.f32 1.442695, %v1414_v54  ;;  %v6044_v45 = vmul.f32 %v4817_v28, %v5890_v2  ;;  %4062 = vmatpush3.bf16.msra.mxu1 %v4109_v12 }
 0x31a   : > { %1848 = vst.msk [vmem:[#allocation2 + $0x148] sm:$0x3] %vm1642_vm10, %v1805_v26  ;;  %vm806_vm14 = vcmp.ge.f32.partialorder %v5887_v63, 0.0  ;;  %v1126_v30 = vadd.f32 -1.4531521, %v1094_v50  ;;  %vm804_vm15 = vcmp.ge.f32.partialorder %v5948_v31, 0.0  ;;  %v3312_v40 = vmul.f32 %v3280_v44, %v5974_v47 }
 0x31b   : > { %v4251_v29 = vpop.eup %4250  ;;  %v3436_v5 = vsub.f32 1.0, %v3404_v24  ;;  %v6049_v0 = vmul.f32 %v1605_v7, %v741_v53  ;;  %v1347_v42 = vmul.f32 %v1315_v13, %v5945_v6  ;;  %v6057_v16 = vmul.f32 %v4828_v43, %v5917_v11  ;;  %v6064_v54 = vld [vmem:[#allocation2 + $0x158] sm:$0xff] }
 0x31c   : > { %v739_v27 = vmul.f32 0.5, %v5799_v59  ;;  %v835_v25 = vsel %vm803_vm13, 1.0, %v7645_v18  ;;  %v1158_v47 = vmul.f32 %v1126_v30, %v6009_v9  ;;  %v6066_v62 = vld [vmem:[#allocation2 + $0x159] sm:$0xff]  ;;  %4256 = vpow2.f32 %v1477_v46 }
 0x31d   : > { %7700 = vst [vmem:[#allocation54_spill] sm:$0xff] %v6049_v0  ;;  %v7620_v6 = vrot.slane %v6049_v0, 7  ;;  %v1507_v24 = vmul.f32 %v4251_v29, %v1347_v42  ;;  %v1412_v44 = vmul.f32 %v1380_v58, %v5971_v34  ;;  %v6070_v55 = vld [vmem:[#allocation2 + $0x15a] sm:$0xff]  ;;  %v6073_v59 = vmul.f32 0.5, %v5868_v61  ;;  %v1864_v58 = vld [vmem:[#allocation2 + $0x30] sm:$0xff] }
 0x31e   : > { %v6078_v23 = vsel %vm806_vm14, 1.0, %v7645_v18  ;;  %v1190_v22 = vadd.f32 1.4214138, %v1158_v47  ;;  %v6083_v60 = vsel %vm804_vm15, 1.0, %v7645_v18  ;;  %v6085_v34 = vmul.f32 %v3436_v5, %v2732_v15  ;;  %v1862_v53 = vld [vmem:[#allocation2 + $0x18] sm:$0xff]  ;;  %v1863_v46 = vld [vmem:[#allocation2 + $0x20] sm:$0xff] }
 0x31f   : > { %v6087_v57 = vmul.f32 1.442695, %v3312_v40  ;;  %v1792_v61 = vsel %vm1680_vm8, 0.0, %v7620_v6  ;;  %v1539_v63 = vsub.f32 1.0, %v1507_v24  ;;  %v2061_v13 = vmul.f32 %v4815_v19, %v6064_v54 }
 0x320   : > { %v4253_v26 = vpop.eup %4252  ;;  %v1887_v10 = vld [vmem:[#allocation2 + $0x140] sm:$0xff]  ;;  %v2301_v15 = vmul.f32 %v4826_v37, %v6066_v62  ;;  %1855 = vst.msk [vmem:[#allocation2 + $0x180] sm:$0xff] %vm1639_vm9, %v1792_v61  ;;  %v6101_v30 = vmul.f32 %v5644_v3, %v6070_v55  ;;  %v1222_v5 = vmul.f32 %v1190_v22, %v6009_v9  ;;  %v1902_v47 = vmul.f32 %v4807_v4, %v1862_v53 }
 0x321   : > { %v4255_v50 = vpop.eup %4254  ;;  %v2896_v7 = vmul.f32 %v4253_v26, %v5992_v56  ;;  %v1993_v31 = vmul.f32 %v4813_v32, %v1887_v10  ;;  %v1571_v29 = vmul.f32 %v1539_v63, %v835_v25  ;;  %v1473_v56 = vmul.f32 1.442695, %v1412_v44  ;;  %v6106_v24 = vld [vmem:[#allocation2 + $0x141] sm:$0xff] }
 0x322   : > { %v996_v12 = vmul.f32 %v4255_v50, %v5996_v35  ;;  %7701 = vst [vmem:[#allocation55_spill] sm:$0xff] %v6106_v24  ;;  %v1254_v61 = vadd.f32 -0.28449672, %v1222_v5  ;;  %v1903_v6 = vmul.f32 %v4807_v4, %v1863_v46  ;;  %v1904_v52 = vmul.f32 %v4807_v4, %v1864_v58  ;;  %v1860_v22 = vld [vmem:[#allocation2] sm:$0xff]  ;;  %v1861_v44 = vld [vmem:[#allocation2 + $0x8] sm:$0xff] }
 0x323   : > { %v2928_v40 = vsub.f32 2.0, %v2896_v7  ;;  %v2025_v42 = vadd.f32 %v1993_v31, %v1925_v1  ;;  %v1603_v10 = vadd.f32 1.0, %v1571_v29  ;;  %v1968_v1 = vmul.f32 %v4813_v32, %v1862_v53 }
 0x324   : > { %v1028_v63 = vsub.f32 2.0, %v996_v12  ;;  %v1286_v35 = vmul.f32 %v1254_v61, %v6009_v9  ;;  %4258 = vpow2.f32 %v1473_v56  ;;  %v1969_v31 = vmul.f32 %v4813_v32, %v1863_v46 }
 0x325   : > { %v6110_v3 = vmul.f32 %v4253_v26, %v2928_v40  ;;  %v2093_v25 = vadd.f32 %v2061_v13, %v2025_v42  ;;  %v6113_v7 = vmul.f32 %v1603_v10, %v739_v27  ;;  %v2233_v26 = vmul.f32 %v4822_v33, %v6106_v24  ;;  %v6123_v40 = vld [vmem:[#allocation2 + $0x48] sm:$0xff] }
 0x326   : > { %v6121_v13 = vmul.f32 %v4255_v50, %v1028_v63  ;;  %v1318_v27 = vadd.f32 0.2548296, %v1286_v35  ;;  %v1900_v42 = vmul.f32 %v4807_v4, %v1860_v22  ;;  %v1901_v56 = vmul.f32 %v4807_v4, %v1861_v44  ;;  %v6128_v10 = vld [vmem:[#allocation2 + $0x142] sm:$0xff]  ;;  %v4374_v63 = vld [vmem:[#allocation2 + $0x38] sm:$0xff] }
 0x327   : > { %7702 = vst [vmem:[#allocation56_spill] sm:$0xff] %v6113_v7  ;;  %v2992_v29 = vmul.f32 1.0614054, %v6110_v3  ;;  %v2197_v5 = vadd.f32 %v6044_v45, %v2093_v25  ;;  %v7624_v53 = vrot.slane %v6113_v7, 7  ;;  %v1970_v61 = vmul.f32 %v4813_v32, %v1864_v58 }
 0x328   : > { %v1092_v45 = vmul.f32 1.0614054, %v6121_v13  ;;  %v1350_v25 = vmul.f32 %v1318_v27, %v6009_v9  ;;  %v1971_v35 = vmul.f32 %v4374_v63, %v4813_v32  ;;  %v1972_v22 = vmul.f32 %v4813_v32, %v6123_v40 }
 0x329   : > { %v3024_v12 = vadd.f32 -1.4531521, %v2992_v29  ;;  %v2265_v46 = vadd.f32 %v2233_v26, %v2197_v5  ;;  %v1791_v50 = vsel %vm1680_vm8, 0.0, %v7624_v53  ;;  %v4257_v44 = vpop.eup %4256  ;;  %v2002_v8 = vadd.f32 %v1970_v61, %v1902_v47  ;;  %v6149_v47 = vld [vmem:[#allocation2 + $0x50] sm:$0xff] }
 0x32a   : > { %1852 = vst.msk [vmem:[#allocation2 + $0x168] sm:$0xff] %vm1639_vm9, %v1791_v50  ;;  %v1124_v26 = vadd.f32 -1.4531521, %v1092_v45  ;;  %v2473_v36 = vmul.f32 %v4830_v39, %v6128_v10  ;;  %v1510_v53 = vmul.f32 %v4257_v44, %v1350_v25  ;;  %v2000_v17 = vadd.f32 %v1968_v1, %v1900_v42  ;;  %v2100_v1 = vld [vmem:[#allocation2 + $0x1] sm:$0xff] }
 0x32b   : > { %v3056_v29 = vmul.f32 %v3024_v12, %v6110_v3  ;;  %v2333_v5 = vadd.f32 %v2301_v15, %v2265_v46  ;;  %v2001_v9 = vadd.f32 %v1969_v31, %v1901_v56  ;;  %v2036_v24 = vmul.f32 %v4815_v19, %v1864_v58  ;;  %v2101_v31 = vld [vmem:[#allocation2 + $0x9] sm:$0xff]  ;;  %v6154_v45 = vld [vmem:[#allocation2 + $0x60] sm:$0xff] }
 0x32c   : > { %v1156_v48 = vmul.f32 %v1124_v26, %v6121_v13  ;;  %v1542_v4 = vsub.f32 1.0, %v1510_v53  ;;  %v2037_v15 = vmul.f32 %v4374_v63, %v4815_v19  ;;  %v2038_v12 = vmul.f32 %v4815_v19, %v6123_v40 }
 0x32d   : > { %v3088_v27 = vadd.f32 1.4214138, %v3056_v29  ;;  %v2437_v38 = vadd.f32 %v6057_v16, %v2333_v5  ;;  %v2039_v46 = vmul.f32 %v6149_v47, %v4815_v19  ;;  %v2003_v58 = vadd.f32 %v1971_v35, %v1903_v6  ;;  %v2102_v29 = vld [vmem:[#allocation2 + $0x19] sm:$0xff]  ;;  %v2103_v5 = vld [vmem:[#allocation2 + $0x21] sm:$0xff] }
 0x32e   : > { %v1188_v56 = vadd.f32 1.4214138, %v1156_v48  ;;  %v1574_v53 = vmul.f32 %v1542_v4, %v6078_v23  ;;  %v2004_v61 = vadd.f32 %v1972_v22, %v1904_v52  ;;  %v2068_v50 = vadd.f32 %v2036_v24, %v2000_v17 }
 0x32f   : > { %v3120_v42 = vmul.f32 %v3088_v27, %v6110_v3  ;;  %v2505_v16 = vadd.f32 %v2473_v36, %v2437_v38  ;;  %v2069_v25 = vadd.f32 %v2037_v15, %v2001_v9  ;;  %v2140_v26 = vmul.f32 %v4817_v28, %v2100_v1  ;;  %v2104_v15 = vld [vmem:[#allocation2 + $0x31] sm:$0xff] }
 0x330   : > { %v1220_v44 = vmul.f32 %v1188_v56, %v6121_v13  ;;  %v2141_v27 = vmul.f32 %v4817_v28, %v2101_v31  ;;  %v1606_v36 = vadd.f32 1.0, %v1574_v53  ;;  %v2040_v48 = vmul.f32 %v4815_v19, %v6154_v45 }
 0x331   : > { %v2573_v63 = vadd.f32 %v6101_v30, %v2505_v16  ;;  %v2070_v38 = vadd.f32 %v2038_v12, %v2002_v8  ;;  %v2071_v6 = vadd.f32 %v2039_v46, %v2003_v58  ;;  %v4259_v4 = vpop.eup %4258  ;;  %v3152_v52 = vadd.f32 -0.28449672, %v3120_v42 }
 0x332   : > { %4260 = vpow2.f32 %v6087_v57  ;;  %v1252_v23 = vadd.f32 -0.28449672, %v1220_v44  ;;  %v6168_v30 = vmul.f32 %v1606_v36, %v6073_v59  ;;  %v2072_v24 = vadd.f32 %v2040_v48, %v2004_v61 }
 0x333   : > { %v6165_v17 = vadd.f32 %v5688_v20, %v2573_v63  ;;  %v2142_v35 = vmul.f32 %v4817_v28, %v2102_v29  ;;  %v2143_v22 = vmul.f32 %v4817_v28, %v2103_v5  ;;  %v2172_v12 = vadd.f32 %v2140_v26, %v2068_v50 }
 0x334   : > { %7703 = vst [vmem:[#allocation57_spill] sm:$0xff] %v6168_v30  ;;  %v1284_v8 = vmul.f32 %v1252_v23, %v6121_v13  ;;  %v2173_v57 = vadd.f32 %v2141_v27, %v2069_v25  ;;  %v1727_v20 = vrot.slane %v6168_v30, 7  ;;  %v2208_v59 = vmul.f32 %v4822_v33, %v2102_v29  ;;  %v4376_v25 = vld [vmem:[#allocation2 + $0x39] sm:$0xff] }
 0x335   : > { %v6173_v9 = vmul.f32 0.70710677, %v6165_v17  ;;  %v2174_v46 = vadd.f32 %v2142_v35, %v2070_v38  ;;  %v2175_v1 = vadd.f32 %v2143_v22, %v2071_v6  ;;  %v3184_v31 = vmul.f32 %v3152_v52, %v6110_v3  ;;  %v2340_v52 = vld [vmem:[#allocation2 + $0x2] sm:$0xff] }
 0x336   : > { %v1316_v16 = vadd.f32 0.2548296, %v1284_v8  ;;  %v2209_v56 = vmul.f32 %v4822_v33, %v2103_v5  ;;  %v7704_v58 = vrot.slane %v6049_v0, 7  ;;  %v1808_v61 = vsel %vm1680_vm8, %v1727_v20, 0.0  ;;  %v6193_v5 = vld [vmem:[#allocation2 + $0x49] sm:$0xff] }
 0x337   : > { %v6180_v42 = vand.u32 2147483647, %v6173_v9  ;;  %v2210_v50 = vmul.f32 %v4822_v33, %v2104_v15  ;;  %v2211_v63 = vmul.f32 %v4376_v25, %v4822_v33  ;;  %v3500_v44 = vadd.f32 1.0, %v6085_v34  ;;  %1857 = vst.msk [vmem:[#allocation2 + $0x190] sm:$0x3] %vm1642_vm10, %v1808_v61  ;;  %v2341_v8 = vld [vmem:[#allocation2 + $0xa] sm:$0xff] }
 0x338   : > { %v1728_v53 = vsel %vm1680_vm8, %v7704_v58, %v1727_v20  ;;  %v1348_v29 = vmul.f32 %v1316_v16, %v6121_v13  ;;  %v2240_v26 = vadd.f32 %v2208_v59, %v2172_v12  ;;  %v2241_v27 = vadd.f32 %v2209_v56, %v2173_v57  ;;  %v4377_v57 = vld [vmem:[#allocation2 + $0x51] sm:$0xff] }
 0x339   : > { %1856 = vst.msk [vmem:[#allocation2 + $0x188] sm:$0xff] %vm1639_vm9, %v1728_v53  ;;  %v2804_v36 = vmul.f32 0.3275911, %v6180_v42  ;;  %v2144_v48 = vmul.f32 %v4817_v28, %v2104_v15  ;;  %v2242_v38 = vadd.f32 %v2210_v50, %v2174_v46  ;;  %v2243_v6 = vadd.f32 %v2211_v63, %v2175_v1 }
 0x33a   : > { %v3216_v23 = vadd.f32 0.2548296, %v3184_v31  ;;  %v1508_v35 = vmul.f32 %v4259_v4, %v1348_v29  ;;  %v2276_v34 = vmul.f32 %v4826_v37, %v2104_v15  ;;  %v2277_v22 = vmul.f32 %v4376_v25, %v4826_v37  ;;  %v2342_v31 = vld [vmem:[#allocation2 + $0x1a] sm:$0xff]  ;;  %v2343_v4 = vld [vmem:[#allocation2 + $0x22] sm:$0xff] }
 0x33b   : > { %v2176_v20 = vadd.f32 %v2144_v48, %v2072_v24  ;;  %v2212_v13 = vmul.f32 %v4822_v33, %v6193_v5  ;;  %v2278_v12 = vmul.f32 %v4826_v37, %v6193_v5  ;;  %v2279_v59 = vmul.f32 %v4377_v57, %v4826_v37  ;;  %v6218_v29 = vld [vmem:[#allocation2 + $0x61] sm:$0xff] }
 0x33c   : > { %v1540_v46 = vsub.f32 1.0, %v1508_v35  ;;  %v2308_v1 = vadd.f32 %v2276_v34, %v2240_v26  ;;  %v2309_v16 = vadd.f32 %v2277_v22, %v2241_v27  ;;  %v2380_v15 = vmul.f32 %v4828_v43, %v2340_v52  ;;  %v2344_v52 = vld [vmem:[#allocation2 + $0x32] sm:$0xff]  ;;  %v4379_v57 = vld [vmem:[#allocation2 + $0x3a] sm:$0xff] }
 0x33d   : > { %v6205_v56 = vadd.f32 1.0, %v2804_v36  ;;  %v2310_v58 = vadd.f32 %v2278_v12, %v2242_v38  ;;  %v2311_v24 = vadd.f32 %v2279_v59, %v2243_v6  ;;  %v2381_v53 = vmul.f32 %v4828_v43, %v2341_v8 }
 0x33e   : > { %v6210_v61 = vmul.f32 %v4813_v32, %v5857_v49  ;;  %v6214_v50 = vmul.f32 %v4822_v33, %v5890_v2  ;;  %v3248_v25 = vmul.f32 %v3216_v23, %v6110_v3  ;;  %v1572_v63 = vmul.f32 %v1540_v46, %v6083_v60 }
 0x33f   : > { %v4261_v26 = vpop.eup %4260  ;;  %v740_v27 = vmul.f32 0.5, %v5940_v51  ;;  %v2244_v36 = vadd.f32 %v2212_v13, %v2176_v20  ;;  %v2382_v48 = vmul.f32 %v4828_v43, %v2342_v31  ;;  %v2383_v38 = vmul.f32 %v4828_v43, %v2343_v4  ;;  %v6231_v20 = vld [vmem:[#allocation2 + $0x4a] sm:$0xff]  ;;  %v6237_v13 = vld [vmem:[%s7580_s5 + $0x8] ss:$0 sm:$0xff] }
 0x340   : > { %7705 = vst [vmem:[#allocation58_spill] sm:$0xff] %v6210_v61  ;;  %7706 = vst [vmem:[#allocation59_spill] sm:$0xff] %v6214_v50  ;;  %v3532_v49 = vmul.f32 %v3500_v44, %v6012_v41  ;;  %v1604_v6 = vadd.f32 1.0, %v1572_v63  ;;  %v2412_v2 = vadd.f32 %v2380_v15, %v2308_v1  ;;  %v2413_v35 = vadd.f32 %v2381_v53, %v2309_v16 }
 0x341   : > { %4262 = vrcp.f32 %v6205_v56  ;;  %v2280_v60 = vmul.f32 %v4826_v37, %v6218_v29  ;;  %v2414_v3 = vadd.f32 %v2382_v48, %v2310_v58  ;;  %v2415_v23 = vadd.f32 %v2383_v38, %v2311_v24  ;;  %v4380_v24 = vld [vmem:[#allocation2 + $0x52] sm:$0xff] }
 0x342   : > { %v3408_v34 = vmul.f32 %v4261_v26, %v3248_v25  ;;  %v6227_v51 = vmul.f32 %v1604_v6, %v740_v27  ;;  %v2448_v22 = vmul.f32 %v4830_v39, %v2342_v31  ;;  %v2449_v8 = vmul.f32 %v4830_v39, %v2343_v4 }
 0x343   : > { %v2312_v41 = vadd.f32 %v2280_v60, %v2244_v36  ;;  %v2450_v44 = vmul.f32 %v4830_v39, %v2344_v52  ;;  %v2516_v12 = vmul.f32 %v6237_v13, %v2344_v52  ;;  %v2451_v59 = vmul.f32 %v4379_v57, %v4830_v39 }
 0x344   : > { %7707 = vst [vmem:[#allocation60_spill] sm:$0xff] %v6227_v51  ;;  %v1724_v46 = vrot.slane %v6227_v51, 7  ;;  %v2480_v1 = vadd.f32 %v2448_v22, %v2412_v2  ;;  %v2481_v16 = vadd.f32 %v2449_v8, %v2413_v35  ;;  %v2517_v31 = vmul.f32 %v4379_v57, %v6237_v13  ;;  %v6262_v35 = vld [vmem:[%s7581_s6] ss:$0 sm:$0xff]  ;;  %v7710_v22 = vld [vmem:[#allocation48_spill] sm:$0xff]  ;;  %v7714_v57 = vld [vmem:[#allocation35_spill] sm:$0xff] }
 0x345   : > { %v2482_v4 = vadd.f32 %v2450_v44, %v2414_v3  ;;  %v2483_v15 = vadd.f32 %v2451_v59, %v2415_v23  ;;  %v2518_v58 = vmul.f32 %v6237_v13, %v6231_v20  ;;  %v2519_v53 = vmul.f32 %v4380_v24, %v6237_v13  ;;  %v7712_v8 = vld [vmem:[#allocation49_spill] sm:$0xff]  ;;  %v7719_v24 = vld [vmem:[#allocation11_spill] sm:$0xff] }
 0x346   : > { %v7708_v25 = vrot.slane %v6113_v7, 7  ;;  %v1807_v26 = vsel %vm1680_vm8, %v1724_v46, 0.0  ;;  %v2548_v27 = vadd.f32 %v2516_v12, %v2480_v1  ;;  %v2549_v36 = vadd.f32 %v2517_v31, %v2481_v16 }
 0x347   : > { %vm2704_vm0 = vcmp.ge.f32.partialorder %v5967_v21, 0.0  ;;  %v3284_v48 = vsub.f32 0.0, %v6180_v42  ;;  %1854 = vst.msk [vmem:[#allocation2 + $0x178] sm:$0x3] %vm1642_vm10, %v1807_v26  ;;  %v2384_v38 = vmul.f32 %v4828_v43, %v2344_v52  ;;  %v2550_v6 = vadd.f32 %v2518_v58, %v2482_v4 }
 0x348   : > { %v1725_v63 = vsel %vm1680_vm8, %v7708_v25, %v1724_v46  ;;  %v6257_v2 = vmul.f32 %v4830_v39, %v5917_v11  ;;  %v6265_v60 = vadd.f32 %v6262_v35, %v2548_v27  ;;  %v6268_v3 = vadd.f32 %v6262_v35, %v2549_v36 }
 0x349   : > { %1853 = vst.msk [vmem:[#allocation2 + $0x170] sm:$0xff] %vm1639_vm9, %v1725_v63  ;;  %v2551_v23 = vadd.f32 %v2519_v53, %v2483_v15  ;;  %v6272_v52 = vmul.f32 %v4817_v28, %v7710_v22  ;;  %v6276_v11 = vmul.f32 %v4828_v43, %v7712_v8  ;;  %v2640_v44 = vmul.f32 0.5, %v5952_v14 }
 0x34a   : > { %7709 = vst [vmem:[#allocation61_spill] sm:$0xff] %v6257_v2  ;;  %v2416_v12 = vadd.f32 %v2384_v38, %v2312_v41  ;;  %v6280_v59 = vadd.f32 %v3532_v49, %v7714_v57  ;;  %v2736_v46 = vsel %vm2704_vm0, 1.0, %v7645_v18  ;;  %v3440_v1 = vsub.f32 1.0, %v3408_v34  ;;  %v6311_v41 = vld [vmem:[#allocation2 + $0x62] sm:$0xff]  ;;  %v7720_v57 = vld [vmem:[#allocation55_spill] sm:$0xff] }
 0x34b   : > { %7711 = vst [vmem:[#allocation48_spill] sm:$0xff] %v6272_v52  ;;  %7713 = vst [vmem:[#allocation49_spill] sm:$0xff] %v6276_v11  ;;  %v6286_v16 = vmul.f32 0.70710677, %v6265_v60  ;;  %v3316_v31 = vmul.f32 %v3284_v48, %v6180_v42  ;;  %v6290_v4 = vmul.f32 0.70710677, %v6268_v3  ;;  %v6293_v15 = vadd.f32 %v6262_v35, %v2550_v6 }
 0x34c   : > { %7715 = vst [vmem:[#allocation35_spill] sm:$0xff] %v6280_v59  ;;  %v2452_v14 = vmul.f32 %v4830_v39, %v6231_v20  ;;  %v6299_v49 = vmul.f32 %v4813_v32, %v6064_v54  ;;  %v6303_v21 = vmul.f32 %v4822_v33, %v6066_v62  ;;  %v6309_v42 = vadd.f32 %v6262_v35, %v2551_v23  ;;  %v1893_v48 = vld [vmem:[#allocation2 + $0x188] sm:$0xff] }
 0x34d   : > { %v6306_v34 = vand.u32 2147483647, %v6286_v16  ;;  %v6315_v58 = vmul.f32 %v4830_v39, %v6070_v55  ;;  %v1929_v53 = vmul.f32 %v7719_v24, %v6064_v54  ;;  %v6320_v25 = vand.u32 2147483647, %v6290_v4 }
 0x34e   : > { %7716 = vst [vmem:[#allocation62_spill] sm:$0xff] %v6299_v49  ;;  %7717 = vst [vmem:[#allocation63_spill] sm:$0xff] %v6303_v21  ;;  %v2484_v63 = vadd.f32 %v2452_v14, %v2416_v12  ;;  %v4263_v26 = vpop.eup %4262  ;;  %v3472_v27 = vmul.f32 %v3440_v1, %v2736_v46  ;;  %v2169_v38 = vmul.f32 %v4817_v28, %v6066_v62  ;;  %v3373_v22 = vmul.f32 1.442695, %v3316_v31 }
 0x34f   : > { %7718 = vst [vmem:[#allocation64_spill] sm:$0xff] %v6315_v58  ;;  %v6326_v6 = vmul.f32 %v4828_v43, %v6070_v55  ;;  %v2779_v23 = vmul.f32 0.3275911, %v6306_v34  ;;  %v6331_v8 = vmul.f32 0.70710677, %v6293_v15  ;;  %v2520_v12 = vmul.f32 %v6237_v13, %v6311_v41 }
 0x350   : > { %v1891_v36 = vld [vmem:[#allocation2 + $0x170] sm:$0xff]  ;;  %v6337_v46 = vmul.f32 %v4817_v28, %v7720_v57  ;;  %v2780_v62 = vmul.f32 0.3275911, %v6320_v25  ;;  %v6343_v55 = vmul.f32 0.70710677, %v6309_v42  ;;  %v2900_v31 = vmul.f32 %v4263_v26, %v6205_v56 }
 0x351   : > { %v1997_v54 = vmul.f32 %v4813_v32, %v1891_v36  ;;  %v6340_v1 = vadd.f32 1.0, %v2779_v23  ;;  %v2065_v36 = vmul.f32 %v4815_v19, %v1893_v48  ;;  %v2552_v30 = vadd.f32 %v2520_v12, %v2484_v63  ;;  %v2373_v12 = vld [vmem:[#allocation2 + $0x18a] sm:$0xff] }
 0x352   : > { %7721 = vst [vmem:[#allocation11_spill] sm:$0xff] %v6337_v46  ;;  %v3504_v0 = vadd.f32 1.0, %v3472_v27  ;;  %vm2708_vm8 = vcmp.ge.f32.partialorder %v6173_v9, 0.0  ;;  %v6348_v7 = vadd.f32 1.0, %v2780_v62  ;;  %v6353_v23 = vmul.f32 %v4828_v43, %v6128_v10  ;;  %v2133_v9 = vld [vmem:[#allocation2 + $0x189] sm:$0xff] }
 0x353   : > { %v2029_v14 = vadd.f32 %v1997_v54, %v1929_v53  ;;  %4264 = vrcp.f32 %v6340_v1  ;;  %v2146_v51 = vmul.f32 %v4817_v28, %v6193_v5  ;;  %v6359_v56 = vmul.f32 %v4817_v28, %v6218_v29  ;;  %v6374_v54 = vld [vmem:[#allocation2 + $0x171] sm:$0xff] }
 0x354   : > { %7722 = vst [vmem:[#allocation55_spill] sm:$0xff] %v6353_v23  ;;  %v6362_v53 = vmul.f32 0.5, %v6165_v17  ;;  %4266 = vrcp.f32 %v6348_v7  ;;  %v6366_v63 = vand.u32 2147483647, %v6331_v8  ;;  %v6369_v10 = vand.u32 2147483647, %v6343_v55 }
 0x355   : > { %v2097_v57 = vadd.f32 %v2065_v36, %v2029_v14  ;;  %v6372_v27 = vsel %vm2708_vm8, 1.0, %v7645_v18  ;;  %v2932_v5 = vsub.f32 2.0, %v2900_v31  ;;  %4268 = vpow2.f32 %v3373_v22  ;;  %v6388_v31 = vld [vmem:[#allocation2 + $0x78] sm:$0xff] }
 0x356   : > { %7723 = vst [vmem:[#allocation65_spill] sm:$0xff] %v6362_v53  ;;  %7724 = vst [vmem:[#allocation66_spill] sm:$0xff] %v6372_v27  ;;  %v6377_v17 = vadd.f32 %v6262_v35, %v2552_v30  ;;  %v3536_v62 = vmul.f32 %v3504_v0, %v2640_v44  ;;  %v2781_v36 = vmul.f32 0.3275911, %v6366_v63  ;;  %v2782_v53 = vmul.f32 0.3275911, %v6369_v10 }
 0x357   : > { %v2201_v14 = vadd.f32 %v2169_v38, %v2097_v57  ;;  %v6382_v58 = vmul.f32 %v4813_v32, %v1893_v48  ;;  %v6385_v23 = vmul.f32 %v4822_v33, %v2133_v9  ;;  %v2305_v22 = vmul.f32 %v4826_v37, %v2133_v9 }
 0x358   : > { %v1906_v30 = vmul.f32 %v7719_v24, %v6123_v40  ;;  %v2237_v0 = vmul.f32 %v4822_v33, %v6374_v54  ;;  %v6395_v44 = vmul.f32 %v4830_v39, %v2373_v12  ;;  %v6397_v38 = vadd.f32 1.0, %v2781_v36 }
 0x359   : > { %7725 = vst [vmem:[#allocation67_spill] sm:$0xff] %v6382_v58  ;;  %7726 = vst [vmem:[#allocation68_spill] sm:$0xff] %v6385_v23  ;;  %v6399_v48 = vadd.f32 1.0, %v2782_v53  ;;  %v6401_v57 = vmul.f32 %v4263_v26, %v2932_v5  ;;  %v6404_v23 = vmul.f32 0.70710677, %v6377_v17  ;;  %v1907_v9 = vmul.f32 %v6149_v47, %v7719_v24  ;;  %v7728_v26 = vld [vmem:[#allocation45_spill] sm:$0xff] }
 0x35a   : > { %7727 = vst [vmem:[#allocation69_spill] sm:$0xff] %v6395_v44  ;;  %v1974_v40 = vmul.f32 %v4813_v32, %v6154_v45  ;;  %v2269_v58 = vadd.f32 %v2237_v0, %v2201_v14  ;;  %v6411_v21 = vmul.f32 %v6237_v13, %v2373_v12  ;;  %4270 = vrcp.f32 %v6397_v38  ;;  %v6428_v14 = vld [vmem:[#allocation2 + $0x80] sm:$0xff] }
 0x35b   : > { %v2042_v53 = vmul.f32 %v4815_v19, %v6388_v31  ;;  %v6417_v5 = vadd.f32 %v3536_v62, %v7728_v26  ;;  %v3259_v36 = vsub.f32 0.0, %v6306_v34  ;;  %4272 = vrcp.f32 %v6399_v48 }
 0x35c   : > { %v2006_v47 = vadd.f32 %v1974_v40, %v1906_v30  ;;  %v6422_v44 = vmul.f32 0.5, %v6265_v60  ;;  %vm2683_vm10 = vcmp.ge.f32.partialorder %v6286_v16, 0.0  ;;  %v6426_v12 = vand.u32 2147483647, %v6404_v23 }
 0x35d   : > { %7729 = vst [vmem:[#allocation45_spill] sm:$0xff] %v6417_v5  ;;  %v2043_v0 = vmul.f32 %v6428_v14, %v4815_v19  ;;  %v2996_v62 = vmul.f32 1.0614054, %v6401_v57  ;;  %v3260_v26 = vsub.f32 0.0, %v6320_v25  ;;  %v7730_v5 = vld [vmem:[#allocation15_spill] sm:$0xff]  ;;  %v2337_v40 = vadd.f32 %v2305_v22, %v2269_v58 }
 0x35e   : > { %v2007_v46 = vadd.f32 %v7730_v5, %v1907_v9  ;;  %v2074_v30 = vadd.f32 %v2042_v53, %v2006_v47  ;;  %v6436_v60 = vmul.f32 0.5, %v6268_v3  ;;  %vm2684_vm1 = vcmp.ge.f32.partialorder %v6290_v4, 0.0  ;;  %v6451_v47 = vld [vmem:[#allocation2 + $0x172] sm:$0xff] }
 0x35f   : > { %v2783_v49 = vmul.f32 0.3275911, %v6426_v12  ;;  %v3291_v2 = vmul.f32 %v3259_v36, %v6306_v34  ;;  %v3261_v11 = vsub.f32 0.0, %v6366_v63  ;;  %v6445_v9 = vsel %vm2683_vm10, 1.0, %v7645_v18  ;;  %v7731_v36 = vld [vmem:[#allocation22_spill] sm:$0xff] }
 0x360   : > { %v4265_v59 = vpop.eup %4264  ;;  %v2075_v50 = vadd.f32 %v2043_v0, %v2007_v46  ;;  %v2178_v52 = vadd.f32 %v2146_v51, %v2074_v30  ;;  %v3262_v3 = vsub.f32 0.0, %v6369_v10  ;;  %v3028_v5 = vadd.f32 -1.4531521, %v2996_v62 }
 0x361   : > { %v2875_v58 = vmul.f32 %v4265_v59, %v6340_v1  ;;  %v6449_v22 = vadd.f32 1.0, %v2783_v49  ;;  %v4267_v53 = vpop.eup %4266  ;;  %v3292_v34 = vmul.f32 %v3260_v26, %v6320_v25  ;;  %v2214_v51 = vmul.f32 %v4822_v33, %v6218_v29  ;;  %v6462_v49 = vld [vmem:[#allocation2 + $0x79] sm:$0xff] }
 0x362   : > { %v2179_v46 = vadd.f32 %v7731_v36, %v2075_v50  ;;  %v6457_v16 = vpop.eup %4268  ;;  %v2441_v0 = vadd.f32 %v6326_v6, %v2337_v40  ;;  %v2876_v1 = vmul.f32 %v4267_v53, %v6348_v7  ;;  %v3323_v62 = vmul.f32 1.442695, %v3291_v2  ;;  %v7732_v26 = vld [vmem:[#allocation16_spill] sm:$0xff]  ;;  %v4383_v2 = vld [vmem:[#allocation2 + $0x81] sm:$0xff] }
 0x363   : > { %v2907_v30 = vsub.f32 2.0, %v2875_v58  ;;  %4274 = vrcp.f32 %v6449_v22  ;;  %v3293_v61 = vmul.f32 %v3261_v11, %v6366_v63  ;;  %v2246_v25 = vadd.f32 %v2214_v51, %v2178_v52 }
 0x364   : > { %v2247_v50 = vadd.f32 %v7732_v26, %v2179_v46  ;;  %v2477_v29 = vmul.f32 %v4830_v39, %v6451_v47  ;;  %v2908_v36 = vsub.f32 2.0, %v2876_v1  ;;  %v3294_v6 = vmul.f32 %v3262_v3, %v6369_v10 }
 0x365   : > { %v6468_v27 = vmul.f32 %v4265_v59, %v2907_v30  ;;  %v3060_v7 = vmul.f32 %v3028_v5, %v6401_v57  ;;  %v3325_v40 = vmul.f32 1.442695, %v3292_v34  ;;  %v2282_v58 = vmul.f32 %v4826_v37, %v6462_v49 }
 0x366   : > { %v2283_v11 = vmul.f32 %v4383_v2, %v4826_v37  ;;  %v2509_v52 = vadd.f32 %v2477_v29, %v2441_v0  ;;  %v6478_v63 = vsel %vm2684_vm1, 1.0, %v7645_v18  ;;  %v6480_v46 = vmul.f32 %v4267_v53, %v2908_v36  ;;  %v7733_v2 = vld [vmem:[#allocation23_spill] sm:$0xff] }
 0x367   : > { %v2971_v59 = vmul.f32 1.0614054, %v6468_v27  ;;  %v4271_v10 = vpop.eup %4270  ;;  %4276 = vpow2.f32 %v3323_v62  ;;  %v3327_v3 = vmul.f32 1.442695, %v3293_v61  ;;  %v2314_v5 = vadd.f32 %v2282_v58, %v2246_v25 }
 0x368   : > { %v2315_v34 = vadd.f32 %v2283_v11, %v2247_v50  ;;  %v4273_v51 = vpop.eup %4272  ;;  %v2972_v1 = vmul.f32 1.0614054, %v6480_v46  ;;  %v2877_v0 = vmul.f32 %v4271_v10, %v6397_v38  ;;  %v3329_v26 = vmul.f32 1.442695, %v3294_v6 }
 0x369   : > { %v3003_v30 = vadd.f32 -1.4531521, %v2971_v59  ;;  %v3092_v29 = vadd.f32 1.4214138, %v3060_v7  ;;  %4278 = vpow2.f32 %v3325_v40  ;;  %v2878_v4 = vmul.f32 %v4273_v51, %v6399_v48  ;;  %v6494_v48 = vld [vmem:[#allocation2 + $0x7a] sm:$0xff] }
 0x36a   : > { %v2386_v53 = vmul.f32 %v4828_v43, %v6231_v20  ;;  %v2577_v36 = vadd.f32 %v6411_v21, %v2509_v52  ;;  %v3004_v62 = vadd.f32 -1.4531521, %v2972_v1  ;;  %v2909_v25 = vsub.f32 2.0, %v2877_v0  ;;  %v7734_v52 = vld [vmem:[#allocation17_spill] sm:$0xff] }
 0x36b   : > { %v3035_v61 = vmul.f32 %v3003_v30, %v6468_v27  ;;  %v2910_v50 = vsub.f32 2.0, %v2878_v4  ;;  %4280 = vpow2.f32 %v3327_v3  ;;  %v2419_v11 = vadd.f32 %v7733_v2, %v2315_v34 }
 0x36c   : > { %v2418_v58 = vadd.f32 %v2386_v53, %v2314_v5  ;;  %v3036_v38 = vmul.f32 %v3004_v62, %v6480_v46  ;;  %v6492_v7 = vmul.f32 %v4271_v10, %v2909_v25  ;;  %4282 = vpow2.f32 %v3329_v26  ;;  %v4384_v26 = vld [vmem:[#allocation2 + $0x82] sm:$0xff] }
 0x36d   : > { %v3067_v6 = vadd.f32 1.4214138, %v3035_v61  ;;  %v6496_v20 = vmul.f32 %v4273_v51, %v2910_v50  ;;  %v3263_v21 = vsub.f32 0.0, %v6426_v12  ;;  %v2454_v40 = vmul.f32 %v4830_v39, %v6311_v41 }
 0x36e   : > { %v2487_v59 = vadd.f32 %v7734_v52, %v2419_v11  ;;  %v6503_v3 = vadd.f32 %v6262_v35, %v2577_v36  ;;  %v3068_v5 = vadd.f32 1.4214138, %v3036_v38  ;;  %v2973_v10 = vmul.f32 1.0614054, %v6492_v7 }
 0x36f   : > { %v3099_v34 = vmul.f32 %v3067_v6, %v6468_v27  ;;  %v2974_v30 = vmul.f32 1.0614054, %v6496_v20  ;;  %v2486_v51 = vadd.f32 %v2454_v40, %v2418_v58  ;;  %v2522_v0 = vmul.f32 %v6237_v13, %v6494_v48 }
 0x370   : > { %7735 = vst [vmem:[#allocation15_spill] sm:$0xff] %v6503_v3  ;;  %v4275_v1 = vpop.eup %4274  ;;  %v2523_v4 = vmul.f32 %v4384_v26, %v6237_v13  ;;  %v3100_v53 = vmul.f32 %v3068_v5, %v6480_v46  ;;  %vm2685_vm2 = vcmp.ge.f32.partialorder %v6331_v8, 0.0  ;;  %v3005_v36 = vadd.f32 -1.4531521, %v2973_v10 }
 0x371   : > { %v3131_v62 = vadd.f32 -0.28449672, %v3099_v34  ;;  %v2879_v61 = vmul.f32 %v4275_v1, %v6449_v22  ;;  %v3006_v25 = vadd.f32 -1.4531521, %v2974_v30  ;;  %v3295_v50 = vmul.f32 %v3263_v21, %v6426_v12 }
 0x372   : > { %v2554_v2 = vadd.f32 %v2522_v0, %v2486_v51  ;;  %v2555_v11 = vadd.f32 %v2523_v4, %v2487_v59  ;;  %v3132_v58 = vadd.f32 -0.28449672, %v3100_v53  ;;  %v3037_v6 = vmul.f32 %v3005_v36, %v6492_v7 }
 0x373   : > { %v3163_v38 = vmul.f32 %v3131_v62, %v6468_v27  ;;  %v2911_v40 = vsub.f32 2.0, %v2879_v61  ;;  %v6518_v52 = vmul.f32 0.70710677, %v6503_v3  ;;  %v3038_v5 = vmul.f32 %v3006_v25, %v6496_v20 }
 0x374   : > { %v6522_v34 = vadd.f32 %v6262_v35, %v2554_v2  ;;  %v6525_v22 = vadd.f32 %v6262_v35, %v2555_v11  ;;  %v4277_v12 = vpop.eup %4276  ;;  %v3164_v21 = vmul.f32 %v3132_v58, %v6480_v46  ;;  %v3069_v10 = vadd.f32 1.4214138, %v3037_v6 }
 0x375   : > { %7736 = vst [vmem:[#allocation22_spill] sm:$0xff] %v6518_v52  ;;  %v3195_v59 = vadd.f32 0.2548296, %v3163_v38  ;;  %v6528_v30 = vmul.f32 %v4275_v1, %v2911_v40  ;;  %v3124_v51 = vmul.f32 %v3092_v29, %v6401_v57  ;;  %v3070_v0 = vadd.f32 1.4214138, %v3038_v5 }
 0x376   : > { %v3331_v26 = vmul.f32 1.442695, %v3295_v50  ;;  %v6532_v4 = vmul.f32 0.70710677, %v6522_v34  ;;  %v4279_v53 = vpop.eup %4278  ;;  %v3196_v62 = vadd.f32 0.2548296, %v3164_v21  ;;  %v3101_v61 = vmul.f32 %v3069_v10, %v6492_v7 }
 0x377   : > { %v3227_v36 = vmul.f32 %v3195_v59, %v6468_v27  ;;  %v2975_v25 = vmul.f32 1.0614054, %v6528_v30  ;;  %v6538_v2 = vand.u32 2147483647, %v6518_v52  ;;  %vm2686_vm3 = vcmp.ge.f32.partialorder %v6343_v55, 0.0 }
 0x378   : > { %v3102_v29 = vmul.f32 %v3070_v0, %v6496_v20  ;;  %v6543_v1 = vmul.f32 0.70710677, %v6525_v22  ;;  %v4281_v50 = vpop.eup %4280  ;;  %v3228_v11 = vmul.f32 %v3196_v62, %v6480_v46  ;;  %v3133_v38 = vadd.f32 -0.28449672, %v3101_v61 }
 0x379   : > { %v3387_v58 = vmul.f32 %v4277_v12, %v3227_v36  ;;  %v3007_v27 = vadd.f32 -1.4531521, %v2975_v25  ;;  %v4283_v6 = vpop.eup %4282  ;;  %v3156_v40 = vadd.f32 -0.28449672, %v3124_v51  ;;  %4284 = vpow2.f32 %v3331_v26 }
 0x37a   : > { %v3134_v5 = vadd.f32 -0.28449672, %v3102_v29  ;;  %v6547_v21 = vand.u32 2147483647, %v6532_v4  ;;  %v3388_v59 = vmul.f32 %v4279_v53, %v3228_v11  ;;  %v3165_v0 = vmul.f32 %v3133_v38, %v6492_v7 }
 0x37b   : > { %v3419_v10 = vsub.f32 1.0, %v3387_v58  ;;  %v3039_v3 = vmul.f32 %v3007_v27, %v6528_v30  ;;  %v2808_v52 = vmul.f32 0.3275911, %v6538_v2  ;;  %v2717_v46 = vsel %vm2685_vm2, 1.0, %v7645_v18 }
 0x37c   : > { %v3166_v12 = vmul.f32 %v3134_v5, %v6496_v20  ;;  %v6557_v51 = vand.u32 2147483647, %v6543_v1  ;;  %v3420_v26 = vsub.f32 1.0, %v3388_v59  ;;  %v3197_v53 = vadd.f32 0.2548296, %v3165_v0 }
 0x37d   : > { %v3451_v62 = vmul.f32 %v3419_v10, %v6445_v9  ;;  %v3071_v36 = vadd.f32 1.4214138, %v3039_v3  ;;  %v3188_v61 = vmul.f32 %v3156_v40, %v6401_v57  ;;  %v2785_v29 = vmul.f32 0.3275911, %v6547_v21 }
 0x37e   : > { %v3198_v25 = vadd.f32 0.2548296, %v3166_v12  ;;  %v2786_v11 = vmul.f32 0.3275911, %v6557_v51  ;;  %v3452_v8 = vmul.f32 %v3420_v26, %v6478_v63  ;;  %v3229_v38 = vmul.f32 %v3197_v53, %v6492_v7 }
 0x37f   : > { %v3483_v58 = vadd.f32 1.0, %v3451_v62  ;;  %v3103_v27 = vmul.f32 %v3071_v36, %v6528_v30  ;;  %v6567_v59 = vadd.f32 1.0, %v2785_v29  ;;  %v1976_v3 = vmul.f32 %v4813_v32, %v6388_v31 }
 0x380   : > { %v3230_v5 = vmul.f32 %v3198_v25, %v6496_v20  ;;  %v6569_v9 = vadd.f32 1.0, %v2786_v11  ;;  %v3484_v40 = vadd.f32 1.0, %v3452_v8  ;;  %v3389_v0 = vmul.f32 %v4281_v50, %v3229_v38  ;;  %v6582_v25 = vld [vmem:[#allocation2 + $0x90] sm:$0xff]  ;;  %v7738_v11 = vld [vmem:[#allocation6_spill] sm:$0xff] }
 0x381   : > { %v3515_v10 = vmul.f32 %v3483_v58, %v6422_v44  ;;  %v3135_v12 = vadd.f32 -0.28449672, %v3103_v27  ;;  %v2718_v63 = vsel %vm2686_vm3, 1.0, %v7645_v18  ;;  %4286 = vrcp.f32 %v6567_v59 }
 0x382   : > { %v3390_v7 = vmul.f32 %v4283_v6, %v3230_v5  ;;  %v1908_v20 = vmul.f32 %v7719_v24, %v6154_v45  ;;  %v3220_v26 = vadd.f32 0.2548296, %v3188_v61  ;;  %v3516_v62 = vmul.f32 %v3484_v40, %v6436_v60  ;;  %v7737_v6 = vld [vmem:[#allocation4_spill] sm:$0xff] }
 0x383   : > { %v3421_v53 = vsub.f32 1.0, %v3389_v0  ;;  %v3167_v36 = vmul.f32 %v3135_v12, %v6528_v30  ;;  %v6584_v44 = vadd.f32 1.0, %v2808_v52  ;;  %4288 = vrcp.f32 %v6569_v9 }
 0x384   : > { %v3422_v50 = vsub.f32 1.0, %v3390_v7  ;;  %v2008_v55 = vadd.f32 %v1976_v3, %v1908_v20  ;;  %v3547_v29 = vadd.f32 %v3515_v10, %v7737_v6  ;;  %v3548_v8 = vadd.f32 %v3516_v62, %v7738_v11 }
 0x385   : > { %v3453_v58 = vmul.f32 %v3421_v53, %v2717_v46  ;;  %v3199_v45 = vadd.f32 0.2548296, %v3167_v36  ;;  %v2621_v61 = vmul.f32 0.5, %v6293_v15  ;;  %v2622_v60 = vmul.f32 0.5, %v6309_v42  ;;  %v7739_v53 = vld [vmem:[#allocation3_spill] sm:$0xff] }
 0x386   : > { %v3454_v38 = vmul.f32 %v3422_v50, %v2718_v63  ;;  %v2044_v27 = vmul.f32 %v4815_v19, %v6582_v25  ;;  %v4285_v52 = vpop.eup %4284  ;;  %v3252_v5 = vmul.f32 %v3220_v26, %v6401_v57  ;;  %v3579_v40 = vpack.c.bf16 %v3548_v8, %v3547_v29  ;;  %v6606_v63 = vld [vmem:[#allocation2 + $0x91] sm:$0xff]  ;;  %v7740_v50 = vld [vmem:[#allocation5_spill] sm:$0xff] }
 0x387   : > { %v3485_v0 = vadd.f32 1.0, %v3453_v58  ;;  %v3231_v3 = vmul.f32 %v3199_v45, %v6528_v30  ;;  %4290 = vrcp.f32 %v6584_v44  ;;  %vm2687_vm4 = vcmp.ge.f32.partialorder %v6404_v23, 0.0 }
 0x388   : > { %v3486_v10 = vadd.f32 1.0, %v3454_v38  ;;  %v2076_v46 = vadd.f32 %v2044_v27, %v2008_v55  ;;  %v6599_v15 = vmul.f32 %v4817_v28, %v6374_v54  ;;  %v6603_v42 = vmul.f32 %v4828_v43, %v6451_v47  ;;  %4063 = vmatprep.mubr.msk.bf16.mxu1 %vm1639_vm9, %v3579_v40 }
 0x389   : > { %v3517_v57 = vmul.f32 %v3485_v0, %v2621_v61  ;;  %v3391_v12 = vmul.f32 %v4285_v52, %v3231_v3  ;;  %v2623_v7 = vmul.f32 0.5, %v6377_v17  ;;  %v2216_v20 = vmul.f32 %v4822_v33, %v6462_v49  ;;  %v6632_v52 = vld [vmem:[#allocation2 + $0x92] sm:$0xff] }
 0x38a   : > { %v3518_v30 = vmul.f32 %v3486_v10, %v2622_v60  ;;  %v2180_v23 = vadd.f32 %v6359_v56, %v2076_v46  ;;  %v6613_v54 = vmul.f32 %v6457_v16, %v3252_v5  ;;  %v2719_v47 = vsel %vm2687_vm4, 1.0, %v7645_v18  ;;  %v6621_v56 = vld [vmem:[#allocation2 + $0xa8] sm:$0xff]  ;;  %v7741_v5 = vld [vmem:[#allocation24_spill] sm:$0xff]  ;;  %v6637_v0 = vld [vmem:[#allocation2 + $0xb0] sm:$0xff] }
 0x38b   : > { %v3423_v26 = vsub.f32 1.0, %v3391_v12  ;;  %v3265_v62 = vsub.f32 0.0, %v6547_v21  ;;  %v3549_v36 = vadd.f32 %v3517_v57, %v7739_v53  ;;  %v2284_v17 = vmul.f32 %v4826_v37, %v6606_v63 }
 0x38c   : > { %v3550_v55 = vadd.f32 %v3518_v30, %v7740_v50  ;;  %v2248_v6 = vadd.f32 %v2216_v20, %v2180_v23  ;;  %v3266_v11 = vsub.f32 0.0, %v6557_v51  ;;  %v1910_v16 = vmul.f32 %v7719_v24, %v6388_v31 }
 0x38d   : > { %v3455_v29 = vmul.f32 %v3423_v26, %v2719_v47  ;;  %v1911_v8 = vmul.f32 %v6428_v14, %v7719_v24  ;;  %v2388_v61 = vmul.f32 %v4828_v43, %v6311_v41  ;;  %v1978_v60 = vmul.f32 %v4813_v32, %v6582_v25 }
 0x38e   : > { %v3580_v58 = vpack.c.bf16 %v3550_v55, %v3549_v36  ;;  %v2316_v45 = vadd.f32 %v2284_v17, %v2248_v6  ;;  %v4287_v38 = vpop.eup %4286  ;;  %v2046_v31 = vmul.f32 %v4815_v19, %v6621_v56  ;;  %v2047_v14 = vmul.f32 %v6637_v0, %v4815_v19  ;;  %v7743_v55 = vld [vmem:[#allocation27_spill] sm:$0xff] }
 0x38f   : > { %v3487_v27 = vadd.f32 1.0, %v3455_v29  ;;  %v2011_v40 = vadd.f32 %v7741_v5, %v1911_v8  ;;  %v2881_v41 = vmul.f32 %v4287_v38, %v6567_v59  ;;  %v3297_v3 = vmul.f32 %v3265_v62, %v6547_v21  ;;  %v7742_v59 = vld [vmem:[#allocation8_spill] sm:$0xff]  ;;  %v6656_v29 = vld [vmem:[#allocation2 + $0xa9] sm:$0xff] }
 0x390   : > { %4064 = vmatmul.mubr.msk.bf16.vlgmr.msra.gmra.mxu1 %vm1639_vm9, %v3580_v58  ;;  %v2420_v10 = vadd.f32 %v2388_v61, %v2316_v45  ;;  %v2456_v46 = vmul.f32 %v4830_v39, %v6494_v48  ;;  %v4289_v57 = vpop.eup %4288  ;;  %v3298_v30 = vmul.f32 %v3266_v11, %v6557_v51  ;;  %v2010_v23 = vadd.f32 %v1978_v60, %v1910_v16  ;;  %v7744_v16 = vld [vmem:[#allocation10_spill] sm:$0xff]  ;;  %v7745_v45 = vld [vmem:[#allocation25_spill] sm:$0xff]  ;;  %v4386_v60 = vld [vmem:[#allocation2 + $0xb1] sm:$0xff] }
 0x391   : > { %v3519_v12 = vmul.f32 %v3487_v27, %v2623_v7  ;;  %v2079_v20 = vadd.f32 %v2047_v14, %v2011_v40  ;;  %v2882_v47 = vmul.f32 %v4289_v57, %v6569_v9  ;;  %v2913_v26 = vsub.f32 2.0, %v2881_v41 }
 0x392   : > { %v2488_v53 = vadd.f32 %v2456_v46, %v2420_v10  ;;  %v2524_v36 = vmul.f32 %v6237_v13, %v6632_v52  ;;  %v2078_v21 = vadd.f32 %v2046_v31, %v2010_v23  ;;  %v2150_v62 = vmul.f32 %v4817_v28, %v6462_v49 }
 0x393   : > { %v3551_v50 = vadd.f32 %v3519_v12, %v7742_v59  ;;  %v2183_v6 = vadd.f32 %v7743_v55, %v2079_v20  ;;  %v2914_v7 = vsub.f32 2.0, %v2882_v47  ;;  %v6654_v17 = vmul.f32 %v4287_v38, %v2913_v26  ;;  %v7746_v47 = vld [vmem:[#allocation28_spill] sm:$0xff]  ;;  %v6682_v59 = vld [vmem:[#allocation2 + $0xaa] sm:$0xff] }
 0x394   : > { %v2556_v51 = vadd.f32 %v2524_v36, %v2488_v53  ;;  %v2218_v9 = vmul.f32 %v4822_v33, %v6606_v63  ;;  %v4291_v11 = vpop.eup %4290  ;;  %v2182_v58 = vadd.f32 %v2150_v62, %v2078_v21  ;;  %v2287_v49 = vmul.f32 %v4386_v60, %v4826_v37  ;;  %v7747_v21 = vld [vmem:[#allocation26_spill] sm:$0xff]  ;;  %v4387_v55 = vld [vmem:[#allocation2 + $0xb2] sm:$0xff] }
 0x395   : > { %v3581_v8 = vpack.c.bf16 %v7744_v16, %v3551_v50  ;;  %v2251_v61 = vadd.f32 %v7745_v45, %v2183_v6  ;;  %v6663_v27 = vmul.f32 %v4289_v57, %v2914_v7  ;;  %v2977_v38 = vmul.f32 1.0614054, %v6654_v17  ;;  %v6692_v45 = vld [vmem:[#allocation2 + $0xc0] sm:$0xff] }
 0x396   : > { %v3335_v5 = vmul.f32 1.442695, %v3297_v3  ;;  %v6667_v40 = vadd.f32 %v6262_v35, %v2556_v51  ;;  %v3444_v31 = vsub.f32 1.0, %v6613_v54  ;;  %v2250_v14 = vadd.f32 %v2218_v9, %v2182_v58 }
 0x397   : > { %4067 = vmatprep.mubr.msk.bf16.mxu1 %vm1639_vm9, %v3581_v8  ;;  %v2286_v41 = vmul.f32 %v4826_v37, %v6656_v29  ;;  %v2319_v10 = vadd.f32 %v2287_v49, %v2251_v61  ;;  %v2904_v46 = vmul.f32 %v4291_v11, %v6584_v44  ;;  %v2978_v57 = vmul.f32 1.0614054, %v6663_v27 }
 0x398   : > { %v3009_v12 = vadd.f32 -1.4531521, %v2977_v38  ;;  %v3337_v23 = vmul.f32 1.442695, %v3298_v30  ;;  %v6676_v3 = vmul.f32 0.70710677, %v6667_v40  ;;  %v2390_v54 = vmul.f32 %v4828_v43, %v6494_v48 }
 0x399   : > { %v2318_v20 = vadd.f32 %v2286_v41, %v2250_v14  ;;  %v2423_v26 = vadd.f32 %v7746_v47, %v2319_v10  ;;  %v3010_v53 = vadd.f32 -1.4531521, %v2978_v57  ;;  %4292 = vpow2.f32 %v3335_v5  ;;  %v7748_v5 = vld [vmem:[#allocation66_spill] sm:$0xff] }
 0x39a   : > { %v3041_v36 = vmul.f32 %v3009_v12, %v6654_v17  ;;  %v2458_v44 = vmul.f32 %v4830_v39, %v6632_v52  ;;  %v2755_v30 = vand.u32 2147483647, %v6676_v3  ;;  %v2527_v6 = vmul.f32 %v4387_v55, %v6237_v13 }
 0x39b   : > { %v2422_v50 = vadd.f32 %v2390_v54, %v2318_v20  ;;  %v2491_v62 = vadd.f32 %v7747_v21, %v2423_v26  ;;  %v2936_v48 = vsub.f32 2.0, %v2904_v46  ;;  %v3042_v7 = vmul.f32 %v3010_v53, %v6663_v27 }
 0x39c   : > { %v3073_v51 = vadd.f32 1.4214138, %v3041_v36  ;;  %4294 = vpow2.f32 %v3337_v23  ;;  %v2787_v9 = vmul.f32 0.3275911, %v2755_v30  ;;  %v2526_v8 = vmul.f32 %v6237_v13, %v6682_v59 }
 0x39d   : > { %v2490_v16 = vadd.f32 %v2458_v44, %v2422_v50  ;;  %v2559_v58 = vadd.f32 %v2527_v6, %v2491_v62  ;;  %v3074_v61 = vadd.f32 1.4214138, %v3042_v7  ;;  %v1912_v49 = vmul.f32 %v7719_v24, %v6582_v25 }
 0x39e   : > { %v3105_v60 = vmul.f32 %v3073_v51, %v6654_v17  ;;  %v1980_v38 = vmul.f32 %v4813_v32, %v6621_v56  ;;  %v3476_v14 = vmul.f32 %v3444_v31, %v7748_v5  ;;  %v6700_v41 = vadd.f32 1.0, %v2787_v9  ;;  %v6734_v51 = vld [vmem:[#allocation2 + $0xc1] sm:$0xff] }
 0x39f   : > { %v2558_v10 = vadd.f32 %v2526_v8, %v2490_v16  ;;  %v6703_v46 = vadd.f32 %v6262_v35, %v2559_v58  ;;  %v3106_v57 = vmul.f32 %v3074_v61, %v6663_v27  ;;  %v2048_v20 = vmul.f32 %v4815_v19, %v6692_v45 }
 0x3a0   : > { %v3137_v12 = vadd.f32 -0.28449672, %v3105_v60  ;;  %v2012_v23 = vadd.f32 %v1980_v38, %v1912_v49  ;;  %v6708_v54 = vmul.f32 %v4291_v11, %v2936_v48  ;;  %4296 = vrcp.f32 %v6700_v41 }
 0x3a1   : > { %v6713_v31 = vadd.f32 %v6262_v35, %v2558_v10  ;;  %v3138_v47 = vadd.f32 -0.28449672, %v3106_v57  ;;  %v6717_v53 = vmul.f32 0.70710677, %v6703_v46  ;;  %v6719_v44 = vadd.f32 1.0, %v3476_v14 }
 0x3a2   : > { %v3169_v26 = vmul.f32 %v3137_v12, %v6654_v17  ;;  %v2080_v36 = vadd.f32 %v2048_v20, %v2012_v23  ;;  %v3267_v50 = vsub.f32 0.0, %v2755_v30  ;;  %v2152_v21 = vmul.f32 %v4817_v28, %v6606_v63 }
 0x3a3   : > { %7749 = vst [vmem:[#allocation16_spill] sm:$0xff] %v6719_v44  ;;  %v6722_v11 = vmul.f32 0.70710677, %v6713_v31  ;;  %v2625_v62 = vmul.f32 0.5, %v6522_v34  ;;  %v3170_v55 = vmul.f32 %v3138_v47, %v6663_v27  ;;  %v6729_v48 = vand.u32 2147483647, %v6717_v53 }
 0x3a4   : > { %v3201_v6 = vadd.f32 0.2548296, %v3169_v26  ;;  %vm2689_vm5 = vcmp.ge.f32.partialorder %v6532_v4, 0.0  ;;  %vm2690_vm6 = vcmp.ge.f32.partialorder %v6543_v1, 0.0  ;;  %v2184_v9 = vadd.f32 %v2152_v21, %v2080_v36  ;;  %v6757_v36 = vld [vmem:[#allocation2 + $0xc2] sm:$0xff] }
 0x3a5   : > { %v2757_v7 = vand.u32 2147483647, %v6722_v11  ;;  %v3000_v16 = vmul.f32 1.0614054, %v6708_v54  ;;  %v3202_v63 = vadd.f32 0.2548296, %v3170_v55  ;;  %v3299_v60 = vmul.f32 %v3267_v50, %v2755_v30 }
 0x3a6   : > { %v3233_v34 = vmul.f32 %v3201_v6, %v6654_v17  ;;  %v2790_v8 = vmul.f32 0.3275911, %v6729_v48  ;;  %v4293_v58 = vpop.eup %4292  ;;  %v2626_v61 = vmul.f32 0.5, %v6525_v22  ;;  %v2220_v4 = vmul.f32 %v4822_v33, %v6656_v29 }
 0x3a7   : > { %v2789_v49 = vmul.f32 0.3275911, %v2757_v7  ;;  %v2721_v38 = vsel %vm2689_vm5, 1.0, %v7645_v18  ;;  %v3234_v5 = vmul.f32 %v3202_v63, %v6663_v27  ;;  %v2722_v17 = vsel %vm2690_vm6, 1.0, %v7645_v18 }
 0x3a8   : > { %v3393_v14 = vmul.f32 %v4293_v58, %v3233_v34  ;;  %v6744_v10 = vadd.f32 1.0, %v2790_v8  ;;  %v2252_v22 = vadd.f32 %v2220_v4, %v2184_v9  ;;  %v2288_v30 = vmul.f32 %v4826_v37, %v6734_v51  ;;  %v6762_v9 = vld [vmem:[#allocation2 + $0xd8] sm:$0xff] }
 0x3a9   : > { %v4295_v57 = vpop.eup %4294  ;;  %v6749_v12 = vadd.f32 1.0, %v2789_v49  ;;  %v6753_v23 = vadd.f32 -1.4531521, %v3000_v16  ;;  %v3339_v27 = vmul.f32 1.442695, %v3299_v60  ;;  %v2392_v1 = vmul.f32 %v4828_v43, %v6632_v52 }
 0x3aa   : > { %v3394_v20 = vmul.f32 %v4295_v57, %v3234_v5  ;;  %v3425_v47 = vsub.f32 1.0, %v3393_v14  ;;  %4298 = vrcp.f32 %v6744_v10  ;;  %v2320_v26 = vadd.f32 %v2288_v30, %v2252_v22  ;;  %v7750_v14 = vld [vmem:[#allocation32_spill] sm:$0xff] }
 0x3ab   : > { %4300 = vrcp.f32 %v6749_v12  ;;  %v3269_v55 = vsub.f32 0.0, %v2757_v7  ;;  %v3270_v6 = vsub.f32 0.0, %v6729_v48  ;;  %v2460_v63 = vmul.f32 %v4830_v39, %v6682_v59 }
 0x3ac   : > { %v3426_v50 = vsub.f32 1.0, %v3394_v20  ;;  %v3457_v21 = vmul.f32 %v3425_v47, %v2721_v38  ;;  %v2424_v16 = vadd.f32 %v2392_v1, %v2320_v26  ;;  %v1914_v34 = vmul.f32 %v7719_v24, %v6621_v56  ;;  %v6778_v20 = vld [vmem:[#allocation2 + $0xe0] sm:$0xff] }
 0x3ad   : > { %v1915_v8 = vmul.f32 %v6637_v0, %v7719_v24  ;;  %v4297_v58 = vpop.eup %4296  ;;  %v2528_v49 = vmul.f32 %v6237_v13, %v6757_v36  ;;  %v1982_v4 = vmul.f32 %v4813_v32, %v6692_v45  ;;  %v2050_v56 = vmul.f32 %v4815_v19, %v6762_v9 }
 0x3ae   : > { %v3458_v60 = vmul.f32 %v3426_v50, %v2722_v17  ;;  %v3489_v52 = vadd.f32 1.0, %v3457_v21  ;;  %v2883_v38 = vmul.f32 %v4297_v58, %v6700_v41  ;;  %v2492_v5 = vadd.f32 %v2460_v63, %v2424_v16  ;;  %v6782_v21 = vld [vmem:[#allocation2 + $0xd9] sm:$0xff] }
 0x3af   : > { %v2015_v57 = vadd.f32 %v7750_v14, %v1915_v8  ;;  %v2014_v0 = vadd.f32 %v1982_v4, %v1914_v34  ;;  %v2051_v17 = vmul.f32 %v6778_v20, %v4815_v19  ;;  %4302 = vpow2.f32 %v3339_v27  ;;  %v4389_v14 = vld [vmem:[#allocation2 + $0xe1] sm:$0xff] }
 0x3b0   : > { %v3490_v22 = vadd.f32 1.0, %v3458_v60  ;;  %v3521_v30 = vmul.f32 %v3489_v52, %v2625_v62  ;;  %v2915_v13 = vsub.f32 2.0, %v2883_v38  ;;  %v3301_v47 = vmul.f32 %v3269_v55, %v2757_v7  ;;  %v7751_v7 = vld [vmem:[#allocation7_spill] sm:$0xff]  ;;  %v7753_v52 = vld [vmem:[#allocation36_spill] sm:$0xff]  ;;  %v7754_v38 = vld [vmem:[#allocation33_spill] sm:$0xff] }
 0x3b1   : > { %v2560_v26 = vadd.f32 %v2528_v49, %v2492_v5  ;;  %v2082_v41 = vadd.f32 %v2050_v56, %v2014_v0  ;;  %v2083_v50 = vadd.f32 %v2051_v17, %v2015_v57  ;;  %v2154_v16 = vmul.f32 %v4817_v28, %v6656_v29  ;;  %v6805_v56 = vld [vmem:[#allocation2 + $0xda] sm:$0xff] }
 0x3b2   : > { %v3522_v1 = vmul.f32 %v3490_v22, %v2626_v61  ;;  %v6786_v63 = vmul.f32 %v4297_v58, %v2915_v13  ;;  %v3302_v62 = vmul.f32 %v3270_v6, %v6729_v48  ;;  %v2222_v27 = vmul.f32 %v4822_v33, %v6734_v51  ;;  %v7752_v61 = vld [vmem:[#allocation9_spill] sm:$0xff] }
 0x3b3   : > { %v6790_v34 = vadd.f32 %v6262_v35, %v2560_v26  ;;  %v3553_v55 = vadd.f32 %v3521_v30, %v7751_v7  ;;  %v2186_v60 = vadd.f32 %v2154_v16, %v2082_v41  ;;  %v2187_v49 = vadd.f32 %v7753_v52, %v2083_v50  ;;  %v6819_v7 = vld [vmem:[%s7580_s5 + $0x8] ss:$0 sm:$0xff] }
 0x3b4   : > { %v3554_v8 = vadd.f32 %v3522_v1, %v7752_v61  ;;  %v2979_v4 = vmul.f32 1.0614054, %v6786_v63  ;;  %v3343_v29 = vmul.f32 1.442695, %v3301_v47  ;;  %v2290_v35 = vmul.f32 %v4826_v37, %v6782_v21  ;;  %v7755_v61 = vld [vmem:[#allocation37_spill] sm:$0xff] }
 0x3b5   : > { %v6799_v58 = vmul.f32 0.70710677, %v6790_v34  ;;  %v2254_v6 = vadd.f32 %v2222_v27, %v2186_v60  ;;  %v2255_v5 = vadd.f32 %v7754_v38, %v2187_v49  ;;  %v2291_v57 = vmul.f32 %v4389_v14, %v4826_v37  ;;  %v4391_v60 = vld [vmem:[#allocation2 + $0xe2] sm:$0xff]  ;;  %v6832_v14 = vld [vmem:[#allocation2 + $0xf0] sm:$0xff] }
 0x3b6   : > { %v3582_v48 = vpack.c.bf16 %v3554_v8, %v3553_v55  ;;  %v3011_v30 = vadd.f32 -1.4531521, %v2979_v4  ;;  %v3345_v0 = vmul.f32 1.442695, %v3302_v62  ;;  %v2394_v13 = vmul.f32 %v4828_v43, %v6682_v59  ;;  %v7756_v38 = vld [vmem:[#allocation34_spill] sm:$0xff] }
 0x3b7   : > { %v4299_v22 = vpop.eup %4298  ;;  %v2759_v17 = vand.u32 2147483647, %v6799_v58  ;;  %v2322_v1 = vadd.f32 %v2290_v35, %v2254_v6  ;;  %v2323_v41 = vadd.f32 %v2291_v57, %v2255_v5  ;;  %v2462_v50 = vmul.f32 %v4830_v39, %v6757_v36 }
 0x3b8   : > { %v4301_v47 = vpop.eup %4300  ;;  %4068 = vmatmul.mubr.msk.bf16.gmra.mxu1 %vm1639_vm9, %v3582_v48  ;;  %v2886_v26 = vmul.f32 %v4299_v22, %v6744_v10  ;;  %v3043_v16 = vmul.f32 %v3011_v30, %v6786_v63  ;;  %v2530_v59 = vmul.f32 %v6819_v7, %v6805_v56  ;;  %v2531_v52 = vmul.f32 %v4391_v60, %v6819_v7 }
 0x3b9   : > { %v2885_v27 = vmul.f32 %v4301_v47, %v6749_v12  ;;  %v2791_v62 = vmul.f32 0.3275911, %v2759_v17  ;;  %v2426_v10 = vadd.f32 %v2394_v13, %v2322_v1  ;;  %v2427_v8 = vadd.f32 %v7755_v61, %v2323_v41 }
 0x3ba   : > { %v2918_v55 = vsub.f32 2.0, %v2886_v26  ;;  %v3075_v49 = vadd.f32 1.4214138, %v3043_v16  ;;  %v1916_v12 = vmul.f32 %v7719_v24, %v6692_v45  ;;  %v1984_v57 = vmul.f32 %v4813_v32, %v6762_v9 }
 0x3bb   : > { %v2917_v4 = vsub.f32 2.0, %v2885_v27  ;;  %v6825_v35 = vadd.f32 1.0, %v2791_v62  ;;  %v2494_v6 = vadd.f32 %v2462_v50, %v2426_v10  ;;  %v2495_v5 = vadd.f32 %v7756_v38, %v2427_v8 }
 0x3bc   : > { %v6829_v48 = vmul.f32 %v4299_v22, %v2918_v55  ;;  %v3107_v30 = vmul.f32 %v3075_v49, %v6786_v63  ;;  %v3271_v26 = vsub.f32 0.0, %v2759_v17  ;;  %v4303_v1 = vpop.eup %4302  ;;  %v2016_v50 = vadd.f32 %v1984_v57, %v1916_v12 }
 0x3bd   : > { %v6837_v13 = vmul.f32 %v4301_v47, %v2917_v4  ;;  %4304 = vrcp.f32 %v6825_v35  ;;  %v2562_v22 = vadd.f32 %v2530_v59, %v2494_v6  ;;  %v2563_v41 = vadd.f32 %v2531_v52, %v2495_v5  ;;  %v6848_v47 = vld [vmem:[%s7581_s6] ss:$0 sm:$0xff] }
 0x3be   : > { %v2982_v45 = vmul.f32 1.0614054, %v6829_v48  ;;  %vm2691_vm7 = vcmp.ge.f32.partialorder %v6676_v3, 0.0  ;;  %v3139_v16 = vadd.f32 -0.28449672, %v3107_v30  ;;  %v2052_v62 = vmul.f32 %v4815_v19, %v6832_v14 }
 0x3bf   : > { %v2981_v27 = vmul.f32 1.0614054, %v6837_v13  ;;  %4306 = vpow2.f32 %v3343_v29  ;;  %v6851_v10 = vadd.f32 %v6848_v47, %v2562_v22  ;;  %v6854_v59 = vadd.f32 %v6848_v47, %v2563_v41  ;;  %v6876_v22 = vld [vmem:[#allocation2 + $0xf1] sm:$0xff] }
 0x3c0   : > { %v3014_v55 = vadd.f32 -1.4531521, %v2982_v45  ;;  %v3171_v61 = vmul.f32 %v3139_v16, %v6786_v63  ;;  %v2084_v60 = vadd.f32 %v2052_v62, %v2016_v50  ;;  %v2156_v52 = vmul.f32 %v4817_v28, %v6734_v51 }
 0x3c1   : > { %v3013_v8 = vadd.f32 -1.4531521, %v2981_v27  ;;  %4308 = vpow2.f32 %v3345_v0  ;;  %v3303_v49 = vmul.f32 %v3271_v26, %v2759_v17  ;;  %v6861_v4 = vmul.f32 0.70710677, %v6851_v10 }
 0x3c2   : > { %v3046_v29 = vmul.f32 %v3014_v55, %v6829_v48  ;;  %v3203_v12 = vadd.f32 0.2548296, %v3171_v61  ;;  %v6865_v38 = vmul.f32 0.70710677, %v6854_v59  ;;  %v2188_v5 = vadd.f32 %v2156_v52, %v2084_v60 }
 0x3c3   : > { %v3045_v6 = vmul.f32 %v3013_v8, %v6837_v13  ;;  %v2627_v57 = vmul.f32 0.5, %v6667_v40  ;;  %v2723_v51 = vsel %vm2691_vm7, 1.0, %v7645_v18  ;;  %v2761_v0 = vand.u32 2147483647, %v6861_v4 }
 0x3c4   : > { %v3078_v30 = vadd.f32 1.4214138, %v3046_v29  ;;  %v3235_v17 = vmul.f32 %v3203_v12, %v6786_v63  ;;  %v6874_v26 = vmul.f32 0.5, %v6703_v46  ;;  %v2224_v41 = vmul.f32 %v4822_v33, %v6782_v21 }
 0x3c5   : > { %v3077_v45 = vadd.f32 1.4214138, %v3045_v6  ;;  %vm2694_vm11 = vcmp.ge.f32.partialorder %v6717_v53, 0.0  ;;  %v6883_v3 = vand.u32 2147483647, %v6865_v38  ;;  %v2292_v8 = vmul.f32 %v4826_v37, %v6876_v22 }
 0x3c6   : > { %v3110_v40 = vmul.f32 %v3078_v30, %v6829_v48  ;;  %v2793_v50 = vmul.f32 0.3275911, %v2761_v0  ;;  %v3395_v16 = vmul.f32 %v4303_v1, %v3235_v17  ;;  %v3347_v27 = vmul.f32 1.442695, %v3303_v49 }
 0x3c7   : > { %v3109_v63 = vmul.f32 %v3077_v45, %v6837_v13  ;;  %v2256_v46 = vadd.f32 %v2224_v41, %v2188_v5  ;;  %v2794_v55 = vmul.f32 0.3275911, %v6883_v3  ;;  %vm2693_vm12 = vcmp.ge.f32.partialorder %v6722_v11, 0.0  ;;  %v6901_v45 = vld [vmem:[#allocation2 + $0xf2] sm:$0xff] }
 0x3c8   : > { %v3142_v62 = vadd.f32 -0.28449672, %v3110_v40  ;;  %v6887_v61 = vadd.f32 1.0, %v2793_v50  ;;  %v3427_v53 = vsub.f32 1.0, %v3395_v16  ;;  %v2726_v60 = vsel %vm2694_vm11, 1.0, %v7645_v18 }
 0x3c9   : > { %v3141_v52 = vadd.f32 -0.28449672, %v3109_v63  ;;  %v6894_v12 = vadd.f32 1.0, %v2794_v55  ;;  %v2324_v49 = vadd.f32 %v2292_v8, %v2256_v46  ;;  %v2725_v17 = vsel %vm2693_vm12, 1.0, %v7645_v18 }
 0x3ca   : > { %v4305_v29 = vpop.eup %4304  ;;  %v3174_v1 = vmul.f32 %v3142_v62, %v6829_v48  ;;  %4310 = vrcp.f32 %v6887_v61  ;;  %v3459_v6 = vmul.f32 %v3427_v53, %v2723_v51  ;;  %v2396_v41 = vmul.f32 %v4828_v43, %v6757_v36 }
 0x3cb   : > { %v3173_v5 = vmul.f32 %v3141_v52, %v6837_v13  ;;  %v2887_v30 = vmul.f32 %v4305_v29, %v6825_v35  ;;  %4312 = vpow2.f32 %v3347_v27  ;;  %v3273_v51 = vsub.f32 0.0, %v2761_v0 }
 0x3cc   : > { %v3206_v11 = vadd.f32 0.2548296, %v3174_v1  ;;  %4314 = vrcp.f32 %v6894_v12  ;;  %v4307_v40 = vpop.eup %4306  ;;  %v3491_v50 = vadd.f32 1.0, %v3459_v6  ;;  %v3274_v35 = vsub.f32 0.0, %v6883_v3  ;;  %v6914_v1 = vld [vmem:[#allocation2 + $0x108] sm:$0xff] }
 0x3cd   : > { %v3205_v16 = vadd.f32 0.2548296, %v3173_v5  ;;  %v2919_v63 = vsub.f32 2.0, %v2887_v30  ;;  %v2428_v27 = vadd.f32 %v2396_v41, %v2324_v49  ;;  %v2464_v62 = vmul.f32 %v4830_v39, %v6805_v56  ;;  %v7757_v30 = vld [vmem:[#allocation13_spill] sm:$0xff] }
 0x3ce   : > { %v3238_v46 = vmul.f32 %v3206_v11, %v6829_v48  ;;  %v4309_v55 = vpop.eup %4308  ;;  %v3523_v8 = vmul.f32 %v3491_v50, %v2627_v57  ;;  %v2532_v36 = vmul.f32 %v6819_v7, %v6901_v45  ;;  %v1918_v48 = vmul.f32 %v7719_v24, %v6762_v9 }
 0x3cf   : > { %v3237_v53 = vmul.f32 %v3205_v16, %v6837_v13  ;;  %v6910_v52 = vmul.f32 %v4305_v29, %v2919_v63  ;;  %v2496_v5 = vadd.f32 %v2464_v62, %v2428_v27  ;;  %v1919_v49 = vmul.f32 %v6778_v20, %v7719_v24 }
 0x3d0   : > { %v3398_v6 = vmul.f32 %v4309_v55, %v3238_v46  ;;  %v3555_v11 = vadd.f32 %v3523_v8, %v7757_v30  ;;  %v1986_v29 = vmul.f32 %v4813_v32, %v6832_v14  ;;  %v3305_v50 = vmul.f32 %v3273_v51, %v2761_v0  ;;  %v7758_v46 = vld [vmem:[#allocation41_spill] sm:$0xff]  ;;  %v6931_v30 = vld [vmem:[#allocation2 + $0x110] sm:$0xff] }
 0x3d1   : > { %v3397_v57 = vmul.f32 %v4307_v40, %v3237_v53  ;;  %v2983_v13 = vmul.f32 1.0614054, %v6910_v52  ;;  %v2564_v16 = vadd.f32 %v2532_v36, %v2496_v5  ;;  %v2054_v63 = vmul.f32 %v4815_v19, %v6914_v1  ;;  %v7759_v40 = vld [vmem:[#allocation42_spill] sm:$0xff] }
 0x3d2   : > { %v3430_v41 = vsub.f32 1.0, %v3398_v6  ;;  %v3583_v27 = vpack.c.bf16 %v7758_v46, %v3555_v11  ;;  %v2018_v55 = vadd.f32 %v1986_v29, %v1918_v48  ;;  %v2019_v53 = vadd.f32 %v7759_v40, %v1919_v49 }
 0x3d3   : > { %v3429_v9 = vsub.f32 1.0, %v3397_v57  ;;  %v3015_v62 = vadd.f32 -1.4531521, %v2983_v13  ;;  %v6928_v8 = vadd.f32 %v6848_v47, %v2564_v16  ;;  %v2055_v0 = vmul.f32 %v6931_v30, %v4815_v19 }
 0x3d4   : > { %v3462_v20 = vmul.f32 %v3430_v41, %v2726_v60  ;;  %4071 = vmatprep.mubr.msk.bf16.mxu1 %vm1639_vm9, %v3583_v27  ;;  %v2086_v6 = vadd.f32 %v2054_v63, %v2018_v55  ;;  %v2158_v5 = vmul.f32 %v4817_v28, %v6782_v21  ;;  %v2629_v60 = vmul.f32 0.5, %v6713_v31  ;;  %v6949_v31 = vld [vmem:[#allocation2 + $0x109] sm:$0xff] }
 0x3d5   : > { %v3461_v51 = vmul.f32 %v3429_v9, %v2725_v17  ;;  %v3047_v36 = vmul.f32 %v3015_v62, %v6910_v52  ;;  %v6941_v11 = vmul.f32 0.70710677, %v6928_v8  ;;  %v2087_v49 = vadd.f32 %v2055_v0, %v2019_v53  ;;  %v7762_v0 = vld [vmem:[#allocation12_spill] sm:$0xff] }
 0x3d6   : > { %v3494_v48 = vadd.f32 1.0, %v3462_v20  ;;  %v3306_v41 = vmul.f32 %v3274_v35, %v6883_v3  ;;  %v2190_v16 = vadd.f32 %v2158_v5, %v2086_v6  ;;  %v3351_v27 = vmul.f32 1.442695, %v3305_v50  ;;  %v7760_v20 = vld [vmem:[#allocation46_spill] sm:$0xff] }
 0x3d7   : > { %v4311_v57 = vpop.eup %4310  ;;  %v3493_v13 = vadd.f32 1.0, %v3461_v51  ;;  %v3079_v29 = vadd.f32 1.4214138, %v3047_v36  ;;  %v6947_v21 = vand.u32 2147483647, %v6941_v11  ;;  %v2191_v40 = vadd.f32 %v7760_v20, %v2087_v49  ;;  %v7761_v35 = vld [vmem:[#allocation14_spill] sm:$0xff] }
 0x3d8   : > { %v4313_v17 = vpop.eup %4312  ;;  %v3526_v46 = vmul.f32 %v3494_v48, %v6874_v26  ;;  %v2889_v63 = vmul.f32 %v4311_v57, %v6887_v61  ;;  %v2226_v3 = vmul.f32 %v4822_v33, %v6876_v22  ;;  %v2294_v5 = vmul.f32 %v4826_v37, %v6949_v31  ;;  %v6973_v20 = vld [vmem:[#allocation2 + $0x10a] sm:$0xff] }
 0x3d9   : > { %v4315_v9 = vpop.eup %4314  ;;  %v3525_v62 = vmul.f32 %v3493_v13, %v2629_v60  ;;  %v3111_v55 = vmul.f32 %v3079_v29, %v6910_v52  ;;  %v2795_v50 = vmul.f32 0.3275911, %v6947_v21  ;;  %v7763_v13 = vld [vmem:[#allocation43_spill] sm:$0xff]  ;;  %vm2695_vm13 = vcmp.ge.f32.partialorder %v6799_v58, 0.0 }
 0x3da   : > { %v3558_v53 = vadd.f32 %v3526_v46, %v7761_v35  ;;  %v2890_v26 = vmul.f32 %v4315_v9, %v6894_v12  ;;  %v2921_v61 = vsub.f32 2.0, %v2889_v63  ;;  %v2258_v6 = vadd.f32 %v2226_v3, %v2190_v16  ;;  %v4394_v63 = vld [vmem:[#allocation2 + $0x111] sm:$0xff] }
 0x3db   : > { %v3557_v51 = vadd.f32 %v3525_v62, %v7762_v0  ;;  %v3143_v36 = vadd.f32 -0.28449672, %v3111_v55  ;;  %v6963_v49 = vadd.f32 1.0, %v2795_v50  ;;  %v2259_v29 = vadd.f32 %v7763_v13, %v2191_v40 }
 0x3dc   : > { %v2922_v60 = vsub.f32 2.0, %v2890_v26  ;;  %v6961_v48 = vmul.f32 %v4311_v57, %v2921_v61  ;;  %v2295_v62 = vmul.f32 %v4394_v63, %v4826_v37  ;;  %v2326_v57 = vadd.f32 %v2294_v5, %v2258_v6 }
 0x3dd   : > { %v3584_v46 = vpack.c.bf16 %v3558_v53, %v3557_v51  ;;  %v3175_v12 = vmul.f32 %v3143_v36, %v6910_v52  ;;  %4316 = vrcp.f32 %v6963_v49  ;;  %v3353_v3 = vmul.f32 1.442695, %v3306_v41  ;;  %v7764_v51 = vld [vmem:[#allocation52_spill] sm:$0xff] }
 0x3de   : > { %v6969_v55 = vmul.f32 %v4315_v9, %v2922_v60  ;;  %v2985_v16 = vmul.f32 1.0614054, %v6961_v48  ;;  %v2327_v35 = vadd.f32 %v2295_v62, %v2259_v29  ;;  %v2398_v53 = vmul.f32 %v4828_v43, %v6805_v56  ;;  %v4395_v60 = vld [vmem:[#allocation2 + $0x112] sm:$0xff] }
 0x3df   : > { %4072 = vmatmul.mubr.msk.bf16.gmra.mxu1 %vm1639_vm9, %v3584_v46  ;;  %v3207_v40 = vadd.f32 0.2548296, %v3175_v12  ;;  %4318 = vpow2.f32 %v3351_v27  ;;  %v2466_v9 = vmul.f32 %v4830_v39, %v6901_v45  ;;  %v2534_v6 = vmul.f32 %v6819_v7, %v6973_v20  ;;  %v7765_v46 = vld [vmem:[#allocation44_spill] sm:$0xff] }
 0x3e0   : > { %v2986_v26 = vmul.f32 1.0614054, %v6969_v55  ;;  %v3017_v61 = vadd.f32 -1.4531521, %v2985_v16  ;;  %v2430_v0 = vadd.f32 %v2398_v53, %v2326_v57  ;;  %v2431_v36 = vadd.f32 %v7764_v51, %v2327_v35  ;;  %v6994_v57 = vld [vmem:[#allocation2 + $0x120] sm:$0xff] }
 0x3e1   : > { %v3239_v50 = vmul.f32 %v3207_v40, %v6910_v52  ;;  %v2535_v56 = vmul.f32 %v4395_v60, %v6819_v7  ;;  %v1920_v27 = vmul.f32 %v7719_v24, %v6832_v14  ;;  %v1988_v52 = vmul.f32 %v4813_v32, %v6914_v1 }
 0x3e2   : > { %v3018_v41 = vadd.f32 -1.4531521, %v2986_v26  ;;  %v3049_v5 = vmul.f32 %v3017_v61, %v6961_v48  ;;  %v2498_v29 = vadd.f32 %v2466_v9, %v2430_v0  ;;  %v2499_v12 = vadd.f32 %v7765_v46, %v2431_v36 }
 0x3e3   : > { %v3399_v13 = vmul.f32 %v4313_v17, %v3239_v50  ;;  %4320 = vpow2.f32 %v3353_v3  ;;  %v3275_v16 = vsub.f32 0.0, %v6947_v21  ;;  %v2020_v26 = vadd.f32 %v1988_v52, %v1920_v27 }
 0x3e4   : > { %v3050_v63 = vmul.f32 %v3018_v41, %v6969_v55  ;;  %v3081_v62 = vadd.f32 1.4214138, %v3049_v5  ;;  %v2566_v35 = vadd.f32 %v2534_v6, %v2498_v29  ;;  %v2567_v53 = vadd.f32 %v2535_v56, %v2499_v12 }
 0x3e5   : > { %v3431_v40 = vsub.f32 1.0, %v3399_v13  ;;  %v2631_v14 = vmul.f32 0.5, %v6790_v34  ;;  %v2727_v17 = vsel %vm2695_vm13, 1.0, %v7645_v18  ;;  %v2056_v51 = vmul.f32 %v4815_v19, %v6994_v57 }
 0x3e6   : > { %v3082_v61 = vadd.f32 1.4214138, %v3050_v63  ;;  %v3113_v9 = vmul.f32 %v3081_v62, %v6961_v48  ;;  %v7002_v3 = vadd.f32 %v6848_v47, %v2566_v35  ;;  %v7005_v0 = vadd.f32 %v6848_v47, %v2567_v53 }
 0x3e7   : > { %v3463_v50 = vmul.f32 %v3431_v40, %v2727_v17  ;;  %v7010_v36 = vmul.f32 0.5, %v6851_v10  ;;  %vm2697_vm14 = vcmp.ge.f32.partialorder %v6861_v4, 0.0  ;;  %v3307_v41 = vmul.f32 %v3275_v16, %v6947_v21  ;;  %v7766_v40 = vld [vmem:[#allocation19_spill] sm:$0xff] }
 0x3e8   : > { %v3114_v34 = vmul.f32 %v3082_v61, %v6969_v55  ;;  %v3145_v58 = vadd.f32 -0.28449672, %v3113_v9  ;;  %v7016_v5 = vmul.f32 0.70710677, %v7002_v3  ;;  %v2088_v60 = vadd.f32 %v2056_v51, %v2020_v26  ;;  %v7042_v9 = vld [vmem:[#allocation2 + $0x121] sm:$0xff] }
 0x3e9   : > { %v3495_v6 = vadd.f32 1.0, %v3463_v50  ;;  %v7019_v56 = vmul.f32 0.5, %v6854_v59  ;;  %v7023_v10 = vmul.f32 0.70710677, %v7005_v0  ;;  %vm2698_vm15 = vcmp.ge.f32.partialorder %v6865_v38, 0.0  ;;  %v7767_v50 = vld [vmem:[#allocation21_spill] sm:$0xff] }
 0x3ea   : > { %v3146_v27 = vadd.f32 -0.28449672, %v3114_v34  ;;  %v3177_v13 = vmul.f32 %v3145_v58, %v6961_v48  ;;  %v4317_v29 = vpop.eup %4316  ;;  %v7027_v12 = vand.u32 2147483647, %v7016_v5  ;;  %v2160_v21 = vmul.f32 %v4817_v28, %v6876_v22 }
 0x3eb   : > { %v3527_v46 = vmul.f32 %v3495_v6, %v2631_v14  ;;  %v2729_v59 = vsel %vm2697_vm14, 1.0, %v7645_v18  ;;  %v2891_v62 = vmul.f32 %v4317_v29, %v6963_v49  ;;  %v3355_v53 = vmul.f32 1.442695, %v3307_v41 }
 0x3ec   : > { %v3178_v52 = vmul.f32 %v3146_v27, %v6969_v55  ;;  %v3209_v63 = vadd.f32 0.2548296, %v3177_v13  ;;  %v4319_v16 = vpop.eup %4318  ;;  %v7038_v26 = vand.u32 2147483647, %v7023_v10  ;;  %v2192_v14 = vadd.f32 %v2160_v21, %v2088_v60 }
 0x3ed   : > { %v3559_v35 = vadd.f32 %v3527_v46, %v7766_v40  ;;  %v2923_v61 = vsub.f32 2.0, %v2891_v62  ;;  %v2797_v4 = vmul.f32 0.3275911, %v7027_v12  ;;  %v2730_v49 = vsel %vm2698_vm15, 1.0, %v7645_v18 }
 0x3ee   : > { %v3210_v17 = vadd.f32 0.2548296, %v3178_v52  ;;  %v3241_v22 = vmul.f32 %v3209_v63, %v6961_v48  ;;  %v2798_v34 = vmul.f32 0.3275911, %v7038_v26  ;;  %v2228_v58 = vmul.f32 %v4822_v33, %v6949_v31 }
 0x3ef   : > { %v3585_v51 = vpack.c.bf16 %v7767_v50, %v3559_v35  ;;  %v7052_v48 = vmul.f32 %v4317_v29, %v2923_v61  ;;  %v7054_v60 = vadd.f32 1.0, %v2797_v4  ;;  %4322 = vpow2.f32 %v3355_v53  ;;  %v7065_v29 = vld [vmem:[#allocation2 + $0x122] sm:$0xff]  ;;  %v7069_v53 = vld [vmem:[#allocation2 + $0x138] sm:$0xff] }
 0x3f0   : > { %v3242_v6 = vmul.f32 %v3210_v17, %v6969_v55  ;;  %v3401_v41 = vmul.f32 %v4319_v16, %v3241_v22  ;;  %v4321_v27 = vpop.eup %4320  ;;  %v7057_v13 = vadd.f32 1.0, %v2798_v34  ;;  %v2260_v38 = vadd.f32 %v2228_v58, %v2192_v14 }
 0x3f1   : > { %4075 = vmatprep.mubr.msk.bf16.mxu1 %vm1639_vm9, %v3585_v51  ;;  %v2296_v46 = vmul.f32 %v4826_v37, %v7042_v9  ;;  %v2987_v63 = vmul.f32 1.0614054, %v7052_v48  ;;  %4324 = vrcp.f32 %v7054_v60  ;;  %vm2699_vm0 = vcmp.ge.f32.partialorder %v6941_v11, 0.0 }
 0x3f2   : > { %v3402_v21 = vmul.f32 %v4321_v27, %v3242_v6  ;;  %v3433_v52 = vsub.f32 1.0, %v3401_v41  ;;  %4326 = vrcp.f32 %v7057_v13  ;;  %v2400_v62 = vmul.f32 %v4828_v43, %v6901_v45 }
 0x3f3   : > { %v2328_v55 = vadd.f32 %v2296_v46, %v2260_v38  ;;  %v3019_v35 = vadd.f32 -1.4531521, %v2987_v63  ;;  %v1922_v14 = vmul.f32 %v7719_v24, %v6914_v1  ;;  %v2468_v22 = vmul.f32 %v4830_v39, %v6973_v20  ;;  %v7768_v1 = vld [vmem:[#allocation58_spill] sm:$0xff]  ;;  %v7086_v46 = vld [vmem:[#allocation2 + $0x140] sm:$0xff] }
 0x3f4   : > { %v3434_v16 = vsub.f32 1.0, %v3402_v21  ;;  %v3465_v40 = vmul.f32 %v3433_v52, %v2729_v59  ;;  %v1923_v61 = vmul.f32 %v6931_v30, %v7719_v24  ;;  %v1990_v4 = vmul.f32 %v4813_v32, %v6994_v57 }
 0x3f5   : > { %v2432_v17 = vadd.f32 %v2400_v62, %v2328_v55  ;;  %v3051_v59 = vmul.f32 %v3019_v35, %v7052_v48  ;;  %v2536_v51 = vmul.f32 %v6819_v7, %v7065_v29  ;;  %v2058_v41 = vmul.f32 %v4815_v19, %v7069_v53  ;;  %v7100_v35 = vld [vmem:[#allocation2 + $0x139] sm:$0xff] }
 0x3f6   : > { %v3466_v50 = vmul.f32 %v3434_v16, %v2730_v49  ;;  %v3497_v45 = vadd.f32 1.0, %v3465_v40  ;;  %v2022_v58 = vadd.f32 %v1990_v4, %v1922_v14  ;;  %v2023_v6 = vadd.f32 %v7768_v1, %v1923_v61  ;;  %v7770_v4 = vld [vmem:[#allocation20_spill] sm:$0xff] }
 0x3f7   : > { %v2500_v34 = vadd.f32 %v2468_v22, %v2432_v17  ;;  %v3083_v38 = vadd.f32 1.4214138, %v3051_v59  ;;  %v2059_v49 = vmul.f32 %v7086_v46, %v4815_v19  ;;  %v3277_v21 = vsub.f32 0.0, %v7027_v12 }
 0x3f8   : > { %v3498_v27 = vadd.f32 1.0, %v3466_v50  ;;  %v3529_v30 = vmul.f32 %v3497_v45, %v7010_v36  ;;  %v2090_v63 = vadd.f32 %v2058_v41, %v2022_v58  ;;  %v2162_v55 = vmul.f32 %v4817_v28, %v6949_v31  ;;  %v7771_v45 = vld [vmem:[#allocation48_spill] sm:$0xff] }
 0x3f9   : > { %v2568_v52 = vadd.f32 %v2536_v51, %v2500_v34  ;;  %v7097_v16 = vsel %vm2699_vm0, 1.0, %v7645_v18  ;;  %v3115_v36 = vmul.f32 %v3083_v38, %v7052_v48  ;;  %v2091_v40 = vadd.f32 %v2059_v49, %v2023_v6  ;;  %v7772_v38 = vld [vmem:[#allocation59_spill] sm:$0xff]  ;;  %v4397_v49 = vld [vmem:[#allocation2 + $0x141] sm:$0xff] }
 0x3fa   : > { %v3530_v62 = vmul.f32 %v3498_v27, %v7019_v56  ;;  %v3278_v14 = vsub.f32 0.0, %v7038_v26  ;;  %v2194_v22 = vadd.f32 %v2162_v55, %v2090_v63  ;;  %v2230_v31 = vmul.f32 %v4822_v33, %v7042_v9  ;;  %v7769_v56 = vld [vmem:[#allocation18_spill] sm:$0xff]  ;;  %v7120_v63 = vld [vmem:[#allocation2 + $0x13a] sm:$0xff] }
 0x3fb   : > { %v7104_v17 = vadd.f32 %v6848_v47, %v2568_v52  ;;  %v3561_v61 = vadd.f32 %v3529_v30, %v7769_v56  ;;  %v3147_v50 = vadd.f32 -0.28449672, %v3115_v36  ;;  %v2195_v59 = vadd.f32 %v7771_v45, %v2091_v40  ;;  %v7773_v45 = vld [vmem:[#allocation49_spill] sm:$0xff] }
 0x3fc   : > { %v3562_v11 = vadd.f32 %v3530_v62, %v7770_v4  ;;  %v3309_v51 = vmul.f32 %v3277_v21, %v7027_v12  ;;  %v2262_v58 = vadd.f32 %v2230_v31, %v2194_v22  ;;  %v2298_v1 = vmul.f32 %v4826_v37, %v7100_v35  ;;  %v4323_v6 = vpop.eup %4322 }
 0x3fd   : > { %v7113_v34 = vmul.f32 0.70710677, %v7104_v17  ;;  %v3179_v27 = vmul.f32 %v3147_v50, %v7052_v48  ;;  %v2263_v30 = vadd.f32 %v7772_v38, %v2195_v59  ;;  %v2299_v52 = vmul.f32 %v4397_v49, %v4826_v37  ;;  %v7774_v49 = vld [vmem:[#allocation61_spill] sm:$0xff] }
 0x3fe   : > { %v3586_v41 = vpack.c.bf16 %v3562_v11, %v3561_v61  ;;  %v4325_v55 = vpop.eup %4324  ;;  %v3310_v12 = vmul.f32 %v3278_v14, %v7038_v26  ;;  %v2330_v62 = vadd.f32 %v2298_v1, %v2262_v58  ;;  %v2402_v36 = vmul.f32 %v4828_v43, %v6973_v20  ;;  %v4398_v58 = vld [vmem:[#allocation2 + $0x142] sm:$0xff] }
 0x3ff   : > { %v7124_v21 = vand.u32 2147483647, %v7113_v34  ;;  %v4327_v40 = vpop.eup %4326  ;;  %v3211_v22 = vadd.f32 0.2548296, %v3179_v27  ;;  %v2893_v31 = vmul.f32 %v4325_v55, %v7054_v60  ;;  %v2331_v56 = vadd.f32 %v2299_v52, %v2263_v30 }
 0x400   : > { %4076 = vmatmul.mubr.msk.bf16.gmra.mxu1 %vm1639_vm9, %v3586_v41  ;;  %v2470_v61 = vmul.f32 %v4830_v39, %v7065_v29  ;;  %v2894_v4 = vmul.f32 %v4327_v40, %v7057_v13  ;;  %v2434_v14 = vadd.f32 %v2402_v36, %v2330_v62  ;;  %v2538_v11 = vmul.f32 %v6819_v7, %v7120_v63  ;;  %v7146_v62 = vld [vmem:[#allocation2 + $0x150] sm:$0xff] }
 0x401   : > { %v2799_v26 = vmul.f32 0.3275911, %v7124_v21  ;;  %v3243_v20 = vmul.f32 %v3211_v22, %v7052_v48  ;;  %v2925_v50 = vsub.f32 2.0, %v2893_v31  ;;  %v2435_v59 = vadd.f32 %v7773_v45, %v2331_v56 }
 0x402   : > { %v2539_v60 = vmul.f32 %v4398_v58, %v6819_v7  ;;  %v2926_v1 = vsub.f32 2.0, %v2894_v4  ;;  %v2502_v27 = vadd.f32 %v2470_v61, %v2434_v14  ;;  %v1924_v13 = vmul.f32 %v7719_v24, %v6994_v57 }
 0x403   : > { %v7139_v41 = vadd.f32 1.0, %v2799_v26  ;;  %v3403_v38 = vmul.f32 %v4323_v6, %v3243_v20  ;;  %v7143_v30 = vmul.f32 %v4325_v55, %v2925_v50  ;;  %v2503_v52 = vadd.f32 %v7774_v49, %v2435_v59 }
 0x404   : > { %v1992_v48 = vmul.f32 %v4813_v32, %v7069_v53  ;;  %v7150_v36 = vmul.f32 %v4327_v40, %v2926_v1  ;;  %v3359_v22 = vmul.f32 1.442695, %v3309_v51  ;;  %v2570_v31 = vadd.f32 %v2538_v11, %v2502_v27 }
 0x405   : > { %4328 = vrcp.f32 %v7139_v41  ;;  %v3435_v56 = vsub.f32 1.0, %v3403_v38  ;;  %v2989_v61 = vmul.f32 1.0614054, %v7143_v30  ;;  %v2571_v57 = vadd.f32 %v2539_v60, %v2503_v52 }
 0x406   : > { %v2024_v6 = vadd.f32 %v1992_v48, %v1924_v13  ;;  %v2990_v55 = vmul.f32 1.0614054, %v7150_v36  ;;  %v3361_v4 = vmul.f32 1.442695, %v3310_v12  ;;  %v7156_v26 = vadd.f32 %v6848_v47, %v2570_v31 }
 0x407   : > { %v2060_v14 = vmul.f32 %v4815_v19, %v7146_v62  ;;  %v2635_v40 = vmul.f32 0.5, %v6928_v8  ;;  %v3467_v51 = vmul.f32 %v3435_v56, %v7097_v16  ;;  %v3021_v20 = vadd.f32 -1.4531521, %v2989_v61 }
 0x408   : > { %v7163_v11 = vadd.f32 %v6848_v47, %v2571_v57  ;;  %v3022_v50 = vadd.f32 -1.4531521, %v2990_v55  ;;  %4330 = vpow2.f32 %v3359_v22  ;;  %v7166_v45 = vmul.f32 0.70710677, %v7156_v26  ;;  %v7775_v22 = vld [vmem:[#allocation30_spill] sm:$0xff] }
 0x409   : > { %v2092_v12 = vadd.f32 %v2060_v14, %v2024_v6  ;;  %v3499_v59 = vadd.f32 1.0, %v3467_v51  ;;  %v3053_v58 = vmul.f32 %v3021_v20, %v7143_v30  ;;  %v2164_v8 = vmul.f32 %v4817_v28, %v7042_v9  ;;  %v7198_v14 = vld [vmem:[#allocation2 + $0x151] sm:$0xff] }
 0x40a   : > { %v7170_v60 = vmul.f32 0.70710677, %v7163_v11  ;;  %v3054_v16 = vmul.f32 %v3022_v50, %v7150_v36  ;;  %4332 = vpow2.f32 %v3361_v4  ;;  %v3279_v1 = vsub.f32 0.0, %v7124_v21 }
 0x40b   : > { %v7177_v27 = vand.u32 2147483647, %v7166_v45  ;;  %v3531_v13 = vmul.f32 %v3499_v59, %v2635_v40  ;;  %v7180_v38 = vmul.f32 0.5, %v7002_v3  ;;  %v3085_v49 = vadd.f32 1.4214138, %v3053_v58  ;;  %v7776_v40 = vld [vmem:[#allocation35_spill] sm:$0xff] }
 0x40c   : > { %v2196_v52 = vadd.f32 %v2164_v8, %v2092_v12  ;;  %vm2701_vm8 = vcmp.ge.f32.partialorder %v7016_v5, 0.0  ;;  %vm2702_vm10 = vcmp.ge.f32.partialorder %v7023_v10, 0.0  ;;  %v3086_v48 = vadd.f32 1.4214138, %v3054_v16 }
 0x40d   : > { %v7185_v9 = vand.u32 2147483647, %v7170_v60  ;;  %v3563_v31 = vadd.f32 %v3531_v13, %v7775_v22  ;;  %v3117_v56 = vmul.f32 %v3085_v49, %v7143_v30  ;;  %v2801_v61 = vmul.f32 0.3275911, %v7177_v27  ;;  %v7219_v13 = vld [vmem:[#allocation2 + $0x152] sm:$0xff] }
 0x40e   : > { %v2232_v3 = vmul.f32 %v4822_v33, %v7100_v35  ;;  %v7193_v57 = vmul.f32 0.5, %v7005_v0  ;;  %v3118_v6 = vmul.f32 %v3086_v48, %v7150_v36  ;;  %v3311_v55 = vmul.f32 %v3279_v1, %v7124_v21 }
 0x40f   : > { %v2802_v4 = vmul.f32 0.3275911, %v7185_v9  ;;  %v3587_v51 = vpack.c.bf16 %v7776_v40, %v3563_v31  ;;  %v3149_v20 = vadd.f32 -0.28449672, %v3117_v56  ;;  %v7201_v50 = vadd.f32 1.0, %v2801_v61  ;;  %v7227_v56 = vld [vmem:[#allocation2 + $0x168] sm:$0xff] }
 0x410   : > { %v2264_v12 = vadd.f32 %v2232_v3, %v2196_v52  ;;  %v2733_v59 = vsel %vm2701_vm8, 1.0, %v7645_v18  ;;  %v2734_v0 = vsel %vm2702_vm10, 1.0, %v7645_v18  ;;  %v3150_v58 = vadd.f32 -0.28449672, %v3118_v6 }
 0x411   : > { %v7209_v21 = vadd.f32 1.0, %v2802_v4  ;;  %4079 = vmatprep.mubr.msk.bf16.mxu1 %vm1639_vm9, %v3587_v51  ;;  %v3181_v16 = vmul.f32 %v3149_v20, %v7143_v30  ;;  %v7214_v1 = vmul.f32 0.5, %v7104_v17  ;;  %4334 = vrcp.f32 %v7201_v50 }
 0x412   : > { %v4329_v8 = vpop.eup %4328  ;;  %v2300_v5 = vmul.f32 %v4826_v37, %v7198_v14  ;;  %v3182_v10 = vmul.f32 %v3150_v58, %v7150_v36  ;;  %v3363_v52 = vmul.f32 1.442695, %v3311_v55  ;;  %v3281_v22 = vsub.f32 0.0, %v7177_v27 }
 0x413   : > { %v2895_v49 = vmul.f32 %v4329_v8, %v7139_v41  ;;  %4336 = vrcp.f32 %v7209_v21  ;;  %v3213_v48 = vadd.f32 0.2548296, %v3181_v16  ;;  %v2404_v17 = vmul.f32 %v4828_v43, %v7065_v29 }
 0x414   : > { %v2332_v31 = vadd.f32 %v2300_v5, %v2264_v12  ;;  %v3214_v61 = vadd.f32 0.2548296, %v3182_v10  ;;  %v2472_v6 = vmul.f32 %v4830_v39, %v7120_v63  ;;  %v2540_v41 = vmul.f32 %v6819_v7, %v7219_v13 }
 0x415   : > { %v2927_v3 = vsub.f32 2.0, %v2895_v49  ;;  %v4331_v55 = vpop.eup %4330  ;;  %v3245_v4 = vmul.f32 %v3213_v48, %v7143_v30  ;;  %v1926_v51 = vmul.f32 %v7719_v24, %v7069_v53  ;;  %v1927_v29 = vmul.f32 %v7086_v46, %v7719_v24  ;;  %v7777_v49 = vld [vmem:[#allocation62_spill] sm:$0xff] }
 0x416   : > { %v2436_v40 = vadd.f32 %v2404_v17, %v2332_v31  ;;  %v3246_v20 = vmul.f32 %v3214_v61, %v7150_v36  ;;  %v1994_v58 = vmul.f32 %v4813_v32, %v7146_v62  ;;  %v2062_v16 = vmul.f32 %v4815_v19, %v7227_v56  ;;  %v7246_v31 = vld [vmem:[#allocation2 + $0x170] sm:$0xff] }
 0x417   : > { %v7239_v12 = vmul.f32 %v4329_v8, %v2927_v3  ;;  %v4333_v5 = vpop.eup %4332  ;;  %v3405_v10 = vmul.f32 %v4331_v55, %v3245_v4  ;;  %v2027_v48 = vadd.f32 %v7777_v49, %v1927_v29  ;;  %v2063_v53 = vmul.f32 %v7246_v31, %v4815_v19  ;;  %v7778_v49 = vld [vmem:[#allocation11_spill] sm:$0xff] }
 0x418   : > { %v2504_v30 = vadd.f32 %v2472_v6, %v2436_v40  ;;  %v3406_v46 = vmul.f32 %v4333_v5, %v3246_v20  ;;  %v3282_v8 = vsub.f32 0.0, %v7185_v9  ;;  %v2026_v17 = vadd.f32 %v1994_v58, %v1926_v51  ;;  %v7258_v5 = vld [vmem:[#allocation2 + $0x169] sm:$0xff] }
 0x419   : > { %v2991_v36 = vmul.f32 1.0614054, %v7239_v12  ;;  %v3437_v61 = vsub.f32 1.0, %v3405_v10  ;;  %v3313_v3 = vmul.f32 %v3281_v22, %v7177_v27  ;;  %v2095_v44 = vadd.f32 %v2063_v53, %v2027_v48 }
 0x41a   : > { %v2572_v25 = vadd.f32 %v2540_v41, %v2504_v30  ;;  %v3438_v55 = vsub.f32 1.0, %v3406_v46  ;;  %v2094_v4 = vadd.f32 %v2062_v16, %v2026_v17  ;;  %v2166_v40 = vmul.f32 %v4817_v28, %v7100_v35 }
 0x41b   : > { %v3023_v6 = vadd.f32 -1.4531521, %v2991_v36  ;;  %v3469_v29 = vmul.f32 %v3437_v61, %v2733_v59  ;;  %4338 = vpow2.f32 %v3363_v52  ;;  %v2199_v51 = vadd.f32 %v7778_v49, %v2095_v44  ;;  %v7781_v49 = vld [vmem:[#allocation31_spill] sm:$0xff] }
 0x41c   : > { %v7256_v20 = vadd.f32 %v6848_v47, %v2572_v25  ;;  %v3470_v58 = vmul.f32 %v3438_v55, %v2734_v0  ;;  %v2198_v22 = vadd.f32 %v2166_v40, %v2094_v4  ;;  %v2234_v41 = vmul.f32 %v4822_v33, %v7198_v14  ;;  %v4400_v55 = vld [vmem:[#allocation2 + $0x171] sm:$0xff]  ;;  %v7780_v4 = vld [vmem:[#allocation29_spill] sm:$0xff] }
 0x41d   : > { %v3055_v27 = vmul.f32 %v3023_v6, %v7239_v12  ;;  %v3501_v16 = vadd.f32 1.0, %v3469_v29  ;;  %v3314_v10 = vmul.f32 %v3282_v8, %v7185_v9  ;;  %v3367_v35 = vmul.f32 1.442695, %v3313_v3  ;;  %v7779_v9 = vld [vmem:[#allocation63_spill] sm:$0xff] }
 0x41e   : > { %v7266_v59 = vmul.f32 0.70710677, %v7256_v20  ;;  %v4335_v25 = vpop.eup %4334  ;;  %v3502_v52 = vadd.f32 1.0, %v3470_v58  ;;  %v2266_v48 = vadd.f32 %v2234_v41, %v2198_v22  ;;  %v2302_v44 = vmul.f32 %v4826_v37, %v7258_v5 }
 0x41f   : > { %v3087_v30 = vadd.f32 1.4214138, %v3055_v27  ;;  %v3533_v53 = vmul.f32 %v3501_v16, %v7180_v38  ;;  %v2897_v46 = vmul.f32 %v4335_v25, %v7201_v50  ;;  %v2267_v8 = vadd.f32 %v7779_v9, %v2199_v51  ;;  %v7290_v16 = vld [vmem:[#allocation2 + $0x16a] sm:$0xff] }
 0x420   : > { %v4337_v0 = vpop.eup %4336  ;;  %v7273_v36 = vand.u32 2147483647, %v7266_v59  ;;  %v3534_v17 = vmul.f32 %v3502_v52, %v7193_v57  ;;  %vm2703_vm1 = vcmp.ge.f32.partialorder %v7113_v34, 0.0  ;;  %v2303_v6 = vmul.f32 %v4400_v55, %v4826_v37 }
 0x421   : > { %v3119_v61 = vmul.f32 %v3087_v30, %v7239_v12  ;;  %v2898_v3 = vmul.f32 %v4337_v0, %v7209_v21  ;;  %v3565_v38 = vadd.f32 %v3533_v53, %v7780_v4  ;;  %v2929_v40 = vsub.f32 2.0, %v2897_v46  ;;  %v4401_v4 = vld [vmem:[#allocation2 + $0x172] sm:$0xff] }
 0x422   : > { %v2803_v50 = vmul.f32 0.3275911, %v7273_v36  ;;  %v2406_v29 = vmul.f32 %v4828_v43, %v7120_v63  ;;  %v3566_v51 = vadd.f32 %v3534_v17, %v7781_v49  ;;  %v2334_v27 = vadd.f32 %v2302_v44, %v2266_v48 }
 0x423   : > { %v3151_v57 = vadd.f32 -0.28449672, %v3119_v61  ;;  %v2930_v58 = vsub.f32 2.0, %v2898_v3  ;;  %v7286_v22 = vmul.f32 %v4335_v25, %v2929_v40  ;;  %v2335_v21 = vadd.f32 %v2303_v6, %v2267_v8  ;;  %v7782_v25 = vld [vmem:[#allocation55_spill] sm:$0xff] }
 0x424   : > { %v7288_v41 = vadd.f32 1.0, %v2803_v50  ;;  %v2474_v52 = vmul.f32 %v4830_v39, %v7219_v13  ;;  %v3588_v30 = vpack.c.bf16 %v3566_v51, %v3565_v38  ;;  %v2438_v63 = vadd.f32 %v2406_v29, %v2334_v27 }
 0x425   : > { %v3183_v53 = vmul.f32 %v3151_v57, %v7239_v12  ;;  %v7295_v46 = vmul.f32 %v4337_v0, %v2930_v58  ;;  %v2993_v9 = vmul.f32 1.0614054, %v7286_v22  ;;  %v3369_v17 = vmul.f32 1.442695, %v3314_v10  ;;  %v7783_v0 = vld [vmem:[#allocation64_spill] sm:$0xff]  ;;  %v7309_v58 = vld [vmem:[#allocation2 + $0x180] sm:$0xff] }
 0x426   : > { %4340 = vrcp.f32 %v7288_v41  ;;  %v2439_v48 = vadd.f32 %v7782_v25, %v2335_v21  ;;  %4080 = vmatmul.mubr.msk.bf16.gmra.mxu1 %vm1639_vm9, %v3588_v30  ;;  %v2506_v61 = vadd.f32 %v2474_v52, %v2438_v63  ;;  %v2542_v3 = vmul.f32 %v6819_v7, %v7290_v16 }
 0x427   : > { %v3215_v44 = vadd.f32 0.2548296, %v3183_v53  ;;  %v2994_v8 = vmul.f32 1.0614054, %v7295_v46  ;;  %v3025_v55 = vadd.f32 -1.4531521, %v2993_v9  ;;  %4342 = vpow2.f32 %v3367_v35 }
 0x428   : > { %v2507_v6 = vadd.f32 %v7783_v0, %v2439_v48  ;;  %v2543_v10 = vmul.f32 %v4401_v4, %v6819_v7  ;;  %v4339_v38 = vpop.eup %4338  ;;  %v3283_v29 = vsub.f32 0.0, %v7273_v36  ;;  %v2574_v49 = vadd.f32 %v2542_v3, %v2506_v61 }
 0x429   : > { %v3247_v40 = vmul.f32 %v3215_v44, %v7239_v12  ;;  %v3026_v50 = vadd.f32 -1.4531521, %v2994_v8  ;;  %v3057_v51 = vmul.f32 %v3025_v55, %v7286_v22  ;;  %v1928_v35 = vmul.f32 %v7719_v24, %v7146_v62 }
 0x42a   : > { %v2575_v57 = vadd.f32 %v2543_v10, %v2507_v6  ;;  %v1996_v27 = vmul.f32 %v4813_v32, %v7227_v56  ;;  %4344 = vpow2.f32 %v3369_v17  ;;  %v7317_v12 = vadd.f32 %v6848_v47, %v2574_v49 }
 0x42b   : > { %v3407_v21 = vmul.f32 %v4339_v38, %v3247_v40  ;;  %v3058_v7 = vmul.f32 %v3026_v50, %v7295_v46  ;;  %v2735_v52 = vsel %vm2703_vm1, 1.0, %v7645_v18  ;;  %v3089_v30 = vadd.f32 1.4214138, %v3057_v51 }
 0x42c   : > { %v7323_v53 = vadd.f32 %v6848_v47, %v2575_v57  ;;  %v2028_v63 = vadd.f32 %v1996_v27, %v1928_v35  ;;  %v7326_v25 = vmul.f32 0.70710677, %v7317_v12  ;;  %v2064_v17 = vmul.f32 %v4815_v19, %v7309_v58 }
 0x42d   : > { %v3439_v62 = vsub.f32 1.0, %v3407_v21  ;;  %v3090_v9 = vadd.f32 1.4214138, %v3058_v7  ;;  %v7331_v48 = vmul.f32 0.5, %v7156_v26  ;;  %v3121_v44 = vmul.f32 %v3089_v30, %v7286_v22  ;;  %v7784_v30 = vld [vmem:[#allocation39_spill] sm:$0xff] }
 0x42e   : > { %v3315_v34 = vmul.f32 %v3283_v29, %v7273_v36  ;;  %v7336_v8 = vmul.f32 0.70710677, %v7323_v53  ;;  %v7340_v3 = vand.u32 2147483647, %v7326_v25  ;;  %v2096_v55 = vadd.f32 %v2064_v17, %v2028_v63 }
 0x42f   : > { %v3471_v47 = vmul.f32 %v3439_v62, %v2735_v52  ;;  %v3122_v61 = vmul.f32 %v3090_v9, %v7295_v46  ;;  %v7343_v0 = vmul.f32 0.5, %v7163_v11  ;;  %vm2705_vm2 = vcmp.ge.f32.partialorder %v7166_v45, 0.0 }
 0x430   : > { %v3153_v26 = vadd.f32 -0.28449672, %v3121_v44  ;;  %v7347_v6 = vand.u32 2147483647, %v7336_v8  ;;  %v2805_v10 = vmul.f32 0.3275911, %v7340_v3  ;;  %v2168_v38 = vmul.f32 %v4817_v28, %v7198_v14 }
 0x431   : > { %v3503_v36 = vadd.f32 1.0, %v3471_v47  ;;  %v3154_v4 = vadd.f32 -0.28449672, %v3122_v61  ;;  %vm2706_vm3 = vcmp.ge.f32.partialorder %v7170_v60, 0.0  ;;  %v3371_v50 = vmul.f32 1.442695, %v3315_v34 }
 0x432   : > { %v3185_v40 = vmul.f32 %v3153_v26, %v7286_v22  ;;  %v2806_v11 = vmul.f32 0.3275911, %v7347_v6  ;;  %v7357_v57 = vadd.f32 1.0, %v2805_v10  ;;  %v2200_v35 = vadd.f32 %v2168_v38, %v2096_v55  ;;  %v7376_v55 = vld [vmem:[#allocation2 + $0x182] sm:$0xff] }
 0x433   : > { %v4341_v29 = vpop.eup %4340  ;;  %v3535_v49 = vmul.f32 %v3503_v36, %v7214_v1  ;;  %v3186_v51 = vmul.f32 %v3154_v4, %v7295_v46  ;;  %v2737_v27 = vsel %vm2705_vm2, 1.0, %v7645_v18  ;;  %v2132_v1 = vld [vmem:[#allocation2 + $0x181] sm:$0xff]  ;;  %v2236_v9 = vmul.f32 %v4822_v33, %v7258_v5 }
 0x434   : > { %v3217_v14 = vadd.f32 0.2548296, %v3185_v40  ;;  %v2899_v21 = vmul.f32 %v4341_v29, %v7288_v41  ;;  %v7363_v7 = vadd.f32 1.0, %v2806_v11  ;;  %v4343_v52 = vpop.eup %4342  ;;  %4346 = vrcp.f32 %v7357_v57  ;;  %v7785_v41 = vld [vmem:[#allocation45_spill] sm:$0xff] }
 0x435   : > { %v3567_v63 = vadd.f32 %v3535_v49, %v7784_v30  ;;  %v3218_v62 = vadd.f32 0.2548296, %v3186_v51  ;;  %v2738_v45 = vsel %vm2706_vm3, 1.0, %v7645_v18  ;;  %v2268_v61 = vadd.f32 %v2236_v9, %v2200_v35  ;;  %v7392_v51 = vld [vmem:[%s7580_s5 + $0x8] ss:$0 sm:$0xff] }
 0x436   : > { %v3249_v17 = vmul.f32 %v3217_v14, %v7286_v22  ;;  %v2931_v44 = vsub.f32 2.0, %v2899_v21  ;;  %4348 = vrcp.f32 %v7363_v7  ;;  %v3285_v60 = vsub.f32 0.0, %v7340_v3  ;;  %v1895_v14 = vld [vmem:[#allocation2 + $0x1a0] sm:$0xff] }
 0x437   : > { %v3589_v34 = vpack.c.bf16 %v7785_v41, %v3567_v63  ;;  %v3250_v47 = vmul.f32 %v3218_v62, %v7295_v46  ;;  %4350 = vpow2.f32 %v3371_v50  ;;  %v4345_v26 = vpop.eup %4344  ;;  %v2304_v10 = vmul.f32 %v4826_v37, %v2132_v1  ;;  %v1894_v50 = vld [vmem:[#allocation2 + $0x198] sm:$0xff] }
 0x438   : > { %v3409_v36 = vmul.f32 %v4343_v52, %v3249_v17  ;;  %v7378_v4 = vmul.f32 %v4341_v29, %v2931_v44  ;;  %v3286_v38 = vsub.f32 0.0, %v7347_v6  ;;  %v2408_v46 = vmul.f32 %v4828_v43, %v7219_v13 }
 0x439   : > { %4083 = vmatprep.mubr.msk.bf16.mxu1 %vm1639_vm9, %v3589_v34  ;;  %v3410_v22 = vmul.f32 %v4345_v26, %v3250_v47  ;;  %v2476_v40 = vmul.f32 %v4830_v39, %v7290_v16  ;;  %v2336_v49 = vadd.f32 %v2304_v10, %v2268_v61  ;;  %v2544_v35 = vmul.f32 %v7392_v51, %v7376_v55  ;;  %v7786_v34 = vld [vmem:[#allocation67_spill] sm:$0xff]  ;;  %v2134_v26 = vld [vmem:[#allocation2 + $0x199] sm:$0xff] }
 0x43a   : > { %v3441_v11 = vsub.f32 1.0, %v3409_v36  ;;  %v2995_v29 = vmul.f32 1.0614054, %v7378_v4  ;;  %v1930_v13 = vmul.f32 %v7719_v24, %v7227_v56  ;;  %v1931_v52 = vmul.f32 %v7246_v31, %v7719_v24  ;;  %v2135_v24 = vld [vmem:[#allocation2 + $0x1a1] sm:$0xff] }
 0x43b   : > { %v3442_v21 = vsub.f32 1.0, %v3410_v22  ;;  %v1998_v30 = vmul.f32 %v4813_v32, %v7309_v58  ;;  %v2440_v9 = vadd.f32 %v2408_v46, %v2336_v49  ;;  %v2066_v17 = vmul.f32 %v4815_v19, %v1894_v50 }
 0x43c   : > { %v3473_v63 = vmul.f32 %v3441_v11, %v2737_v27  ;;  %v3027_v62 = vadd.f32 -1.4531521, %v2995_v29  ;;  %v2031_v47 = vadd.f32 %v7786_v34, %v1931_v52  ;;  %v2067_v61 = vmul.f32 %v4815_v19, %v1895_v14 }
 0x43d   : > { %v3474_v44 = vmul.f32 %v3442_v21, %v2738_v45  ;;  %v2030_v41 = vadd.f32 %v1998_v30, %v1930_v13  ;;  %v2508_v10 = vadd.f32 %v2476_v40, %v2440_v9  ;;  %v2170_v32 = vmul.f32 %v4817_v28, %v7258_v5  ;;  %v7787_v28 = vld [vmem:[#allocation38_spill] sm:$0xff] }
 0x43e   : > { %v3505_v36 = vadd.f32 1.0, %v3473_v63  ;;  %v3059_v56 = vmul.f32 %v3027_v62, %v7378_v4  ;;  %v2099_v27 = vadd.f32 %v2067_v61, %v2031_v47  ;;  %v2238_v22 = vmul.f32 %v4822_v33, %v2132_v1 }
 0x43f   : > { %v3506_v31 = vadd.f32 1.0, %v3474_v44  ;;  %v2098_v58 = vadd.f32 %v2066_v17, %v2030_v41  ;;  %v2576_v50 = vadd.f32 %v2544_v35, %v2508_v10  ;;  %v2306_v19 = vmul.f32 %v4826_v37, %v2134_v26 }
 0x440   : > { %v3537_v45 = vmul.f32 %v3505_v36, %v7331_v48  ;;  %v3091_v46 = vadd.f32 1.4214138, %v3059_v56  ;;  %v2203_v40 = vadd.f32 %v6599_v15, %v2099_v27  ;;  %v2307_v49 = vmul.f32 %v4826_v37, %v2135_v24  ;;  %v4403_v48 = vld [vmem:[%s7581_s6] ss:$0 sm:$0xff]  ;;  %v7789_v37 = vld [vmem:[#allocation68_spill] sm:$0xff] }
 0x441   : > { %v3538_v11 = vmul.f32 %v3506_v31, %v7343_v0  ;;  %v2202_v29 = vadd.f32 %v2170_v32, %v2098_v58  ;;  %v4347_v14 = vpop.eup %4346  ;;  %v3317_v33 = vmul.f32 %v3285_v60, %v7340_v3  ;;  %v7420_v1 = vadd.f32 %v4403_v48, %v2576_v50  ;;  %v7788_v0 = vld [vmem:[#allocation40_spill] sm:$0xff] }
 0x442   : > { %v3569_v5 = vadd.f32 %v3537_v45, %v7787_v28  ;;  %v3123_v21 = vmul.f32 %v3091_v46, %v7378_v4  ;;  %v2901_v15 = vmul.f32 %v4347_v14, %v7357_v57  ;;  %v2271_v30 = vadd.f32 %v7789_v37, %v2203_v40  ;;  %v2374_v36 = vld [vmem:[#allocation2 + $0x19a] sm:$0xff] }
 0x443   : > { %v4349_v35 = vpop.eup %4348  ;;  %v3570_v13 = vadd.f32 %v3538_v11, %v7788_v0  ;;  %v2270_v52 = vadd.f32 %v2238_v22, %v2202_v29  ;;  %v7427_v3 = vmul.f32 0.70710677, %v7420_v1  ;;  %v2410_v60 = vmul.f32 %v4828_v43, %v7290_v16  ;;  %v2375_v43 = vld [vmem:[#allocation2 + $0x1a2] sm:$0xff] }
 0x444   : > { %v4351_v63 = vpop.eup %4350  ;;  %v3155_v62 = vadd.f32 -0.28449672, %v3123_v21  ;;  %v2902_v9 = vmul.f32 %v4349_v35, %v7363_v7  ;;  %v2933_v44 = vsub.f32 2.0, %v2901_v15  ;;  %v2339_v34 = vadd.f32 %v2307_v49, %v2271_v30  ;;  %v7793_v15 = vld [vmem:[#allocation16_spill] sm:$0xff] }
 0x445   : > { %v3590_v17 = vpack.c.bf16 %v3570_v13, %v3569_v5  ;;  %v2338_v41 = vadd.f32 %v2306_v19, %v2270_v52  ;;  %v3318_v61 = vmul.f32 %v3286_v38, %v7347_v6  ;;  %v7434_v26 = vand.u32 2147483647, %v7427_v3  ;;  %v7792_v13 = vld [vmem:[#allocation65_spill] sm:$0xff] }
 0x446   : > { %v3187_v47 = vmul.f32 %v3155_v62, %v7378_v4  ;;  %v2934_v57 = vsub.f32 2.0, %v2902_v9  ;;  %v3064_v7 = vmul.f32 %v6753_v23, %v6708_v54  ;;  %v7439_v56 = vmul.f32 %v4347_v14, %v2933_v44  ;;  %v7790_v23 = vld [vmem:[#allocation69_spill] sm:$0xff] }
 0x447   : > { %4084 = vmatmul.mubr.msk.bf16.gmra.mxu1 %vm1639_vm9, %v3590_v17  ;;  %v2442_v16 = vadd.f32 %v2410_v60, %v2338_v41  ;;  %v2443_v10 = vadd.f32 %v6603_v42, %v2339_v34  ;;  %v3375_v31 = vmul.f32 1.442695, %v3317_v33  ;;  %v2807_v6 = vmul.f32 0.3275911, %v7434_v26  ;;  %v7482_v41 = vld [vmem:[%s7583_s8] ss:$0 sm:$0xff] }
 0x448   : > { %v3219_v24 = vadd.f32 0.2548296, %v3187_v47  ;;  %v7442_v32 = vmul.f32 %v4349_v35, %v2934_v57  ;;  %v2997_v38 = vmul.f32 1.0614054, %v7439_v56  ;;  %v2478_v58 = vmul.f32 %v4830_v39, %v7376_v55 }
 0x449   : > { %v2511_v27 = vadd.f32 %v7790_v23, %v2443_v10  ;;  %v2546_v22 = vmul.f32 %v7392_v51, %v2374_v36  ;;  %v3377_v42 = vmul.f32 1.442695, %v3318_v61  ;;  %v7452_v50 = vadd.f32 1.0, %v2807_v6 }
 0x44a   : > { %v3251_v45 = vmul.f32 %v3219_v24, %v7378_v4  ;;  %v2998_v46 = vmul.f32 1.0614054, %v7442_v32  ;;  %v3096_v19 = vadd.f32 1.4214138, %v3064_v7  ;;  %v3029_v11 = vadd.f32 -1.4531521, %v2997_v38 }
 0x44b   : > { %v2510_v29 = vadd.f32 %v2478_v58, %v2442_v16  ;;  %v2547_v40 = vmul.f32 %v7392_v51, %v2375_v43  ;;  %vm2707_vm4 = vcmp.ge.f32.partialorder %v7266_v59, 0.0  ;;  %4352 = vrcp.f32 %v7452_v50  ;;  %v7795_v58 = vld [vmem:[#allocation50_spill] sm:$0xff] }
 0x44c   : > { %v3411_v49 = vmul.f32 %v4351_v63, %v3251_v45  ;;  %v3030_v39 = vadd.f32 -1.4531521, %v2998_v46  ;;  %v3061_v55 = vmul.f32 %v3029_v11, %v7439_v56  ;;  %4354 = vpow2.f32 %v3375_v31 }
 0x44d   : > { %v2578_v4 = vadd.f32 %v2546_v22, %v2510_v29  ;;  %v2579_v14 = vadd.f32 %v2547_v40, %v2511_v27  ;;  %v7791_v28 = vsub.f32 0.0, %v6538_v2  ;;  %4356 = vpow2.f32 %v3377_v42 }
 0x44e   : > { %v3443_v21 = vsub.f32 1.0, %v3411_v49  ;;  %v3062_v33 = vmul.f32 %v3030_v39, %v7442_v32  ;;  %v2739_v51 = vsel %vm2707_vm4, 1.0, %v7645_v18  ;;  %v3093_v59 = vadd.f32 1.4214138, %v3061_v55 }
 0x44f   : > { %v3320_v5 = vmul.f32 %v7791_v28, %v6538_v2  ;;  %v7463_v35 = vadd.f32 %v4403_v48, %v2578_v4  ;;  %v7465_v0 = vadd.f32 %v4403_v48, %v2579_v14  ;;  %v3540_v52 = vmul.f32 %v7793_v15, %v7792_v13 }
 0x450   : > { %v3475_v37 = vmul.f32 %v3443_v21, %v2739_v51  ;;  %v3094_v30 = vadd.f32 1.4214138, %v3062_v33  ;;  %v4065_v63 = vpop.f32.mrf.mxu1  ;;  %v3128_v62 = vmul.f32 %v3096_v19, %v6708_v54  ;;  %v3125_v2 = vmul.f32 %v3093_v59, %v7439_v56 }
 0x451   : > { %v7472_v9 = vmul.f32 0.70710677, %v7463_v35  ;;  %v2643_v60 = vmul.f32 0.5, %v7256_v20  ;;  %v7477_v48 = vmul.f32 0.70710677, %v7465_v0  ;;  %v7794_v20 = vld [vmem:[#allocation53_spill] sm:$0xff]  ;;  %v3701_v13 = vadd.f32 %v4065_v63, %v7482_v41 }
 0x452   : > { %v3507_v17 = vadd.f32 1.0, %v3475_v37  ;;  %v3126_v44 = vmul.f32 %v3094_v30, %v7442_v32  ;;  %v3692_v34 = vpop.f32.mrf.mxu1  ;;  %v3381_v47 = vmul.f32 1.442695, %v3320_v5  ;;  %v3157_v57 = vadd.f32 -0.28449672, %v3125_v2 }
 0x453   : > { %v7485_v61 = vand.u32 2147483647, %v7472_v9  ;;  %v3693_v36 = vadd.f32 %v7482_v41, %v3692_v34  ;;  %v3572_v7 = vadd.f32 %v3540_v52, %v7794_v20  ;;  %v7491_v31 = vand.u32 2147483647, %v7477_v48 }
 0x454   : > { %v3539_v43 = vmul.f32 %v3507_v17, %v2643_v60  ;;  %v3158_v16 = vadd.f32 -0.28449672, %v3126_v44  ;;  %v4066_v10 = vpop.f32.mrf.mxu1  ;;  %v3189_v24 = vmul.f32 %v3157_v57, %v7439_v56  ;;  %v3160_v38 = vadd.f32 -0.28449672, %v3128_v62 }
 0x455   : > { %v2809_v6 = vmul.f32 0.3275911, %v7485_v61  ;;  %3819 = vxpose.xlu0.b32.start [1/16] (narrow) %v3693_v36, 8  ;;  %4358 = vpow2.f32 %v3381_v47  ;;  %v2810_v46 = vmul.f32 0.3275911, %v7491_v31  ;;  %v3287_v29 = vsub.f32 0.0, %v7434_v26 }
 0x456   : > { %v3571_v23 = vadd.f32 %v3539_v43, %v7795_v58  ;;  %v3190_v27 = vmul.f32 %v3158_v16, %v7442_v32  ;;  %v3695_v22 = vpop.f32.mrf.mxu1  ;;  %v3221_v45 = vadd.f32 0.2548296, %v3189_v24  ;;  %v3192_v14 = vmul.f32 %v3160_v38, %v6708_v54 }
 0x457   : > { %v2841_v42 = vadd.f32 1.0, %v2809_v6  ;;  %v3696_v40 = vadd.f32 %v7482_v41, %v3695_v22  ;;  %v2842_v55 = vadd.f32 1.0, %v2810_v46  ;;  %vm2709_vm5 = vcmp.ge.f32.partialorder %v7326_v25, 0.0 }
 0x458   : > { %v3591_v19 = vpack.c.bf16 %v3572_v7, %v3571_v23  ;;  %v3222_v11 = vadd.f32 0.2548296, %v3190_v27  ;;  %v4353_v49 = vpop.eup %4352  ;;  %v3253_v39 = vmul.f32 %v3221_v45, %v7439_v56  ;;  %vm2710_vm6 = vcmp.ge.f32.partialorder %v7336_v8, 0.0 }
 0x459   : > { %4360 = vrcp.f32 %v2841_v42  ;;  %v4355_v4 = vpop.eup %4354  ;;  %v2903_v5 = vmul.f32 %v4353_v49, %v7452_v50  ;;  %3820 = vxpose.xlu0.b32.cont [2/16] (narrow) %v3696_v40, 8  ;;  %v3319_v59 = vmul.f32 %v3287_v29, %v7434_v26  ;;  %v3224_v52 = vadd.f32 0.2548296, %v3192_v14 }
 0x45a   : > { %4087 = vmatprep.mubr.msk.bf16.mxu1 %vm1639_vm9, %v3591_v19  ;;  %v3254_v28 = vmul.f32 %v3222_v11, %v7442_v32  ;;  %v4357_v21 = vpop.eup %4356  ;;  %v3413_v33 = vmul.f32 %v4355_v4, %v3253_v39  ;;  %4362 = vrcp.f32 %v2842_v55  ;;  %v2741_v32 = vsel %vm2709_vm5, 1.0, %v7645_v18  ;;  %v7798_v11 = vld [vmem:[#allocation22_spill] sm:$0xff] }
 0x45b   : > { %v2935_v51 = vsub.f32 2.0, %v2903_v5  ;;  %v2742_v30 = vsel %vm2710_vm6, 1.0, %v7645_v18  ;;  %v3379_v2 = vmul.f32 1.442695, %v3319_v59  ;;  %v3704_v60 = vadd.f32 %v4066_v10, %v7482_v41  ;;  %v7796_v10 = vld [vmem:[#allocation47_spill] sm:$0xff] }
 0x45c   : > { %v3414_v56 = vmul.f32 %v4357_v21, %v3254_v28  ;;  %v3445_v15 = vsub.f32 1.0, %v3413_v33  ;;  %v2645_v17 = vmul.f32 0.5, %v7317_v12  ;;  %v3256_v63 = vmul.f32 %v3224_v52, %v6708_v54  ;;  %v7797_v12 = vld [vmem:[#allocation51_spill] sm:$0xff] }
 0x45d   : > { %v2967_v50 = vmul.f32 %v4353_v49, %v2935_v51  ;;  %3821 = vxpose.xlu0.b32.cont [3/16] (narrow) %v3701_v13, 8  ;;  %v2646_v44 = vmul.f32 0.5, %v7323_v53  ;;  %4364 = vpow2.f32 %v3379_v2  ;;  %v3289_v43 = vsub.f32 0.0, %v7485_v61 }
 0x45e   : > { %v3446_v37 = vsub.f32 1.0, %v3414_v56  ;;  %v3477_v25 = vmul.f32 %v3445_v15, %v2741_v32  ;;  %v3290_v53 = vsub.f32 0.0, %v7491_v31  ;;  %vm2712_vm7 = vcmp.ge.f32.partialorder %v7798_v11, 0.0 }
 0x45f   : > { %v2999_v8 = vmul.f32 1.0614054, %v2967_v50  ;;  %v3321_v19 = vmul.f32 %v3289_v43, %v7485_v61  ;;  %v2744_v14 = vsel %vm2712_vm7, 1.0, %v7645_v18  ;;  %vm2711_vm11 = vcmp.ge.f32.partialorder %v7427_v3, 0.0 }
 0x460   : > { %v3478_v62 = vmul.f32 %v3446_v37, %v2742_v30  ;;  %v3509_v26 = vadd.f32 1.0, %v3477_v25  ;;  %v3322_v4 = vmul.f32 %v3290_v53, %v7491_v31  ;;  %v7799_v25 = vld [vmem:[#allocation15_spill] sm:$0xff]  ;;  %v2743_v2 = vsel %vm2711_vm11, 1.0, %v7645_v18 }
 0x461   : > { %v3031_v47 = vadd.f32 -1.4531521, %v2999_v8  ;;  %3822 = vxpose.xlu0.b32.cont [4/16] (narrow) %v3704_v60, 8  ;;  %v3383_v21 = vmul.f32 1.442695, %v3321_v19  ;;  %vm2713_vm12 = vcmp.ge.f32.partialorder %v7472_v9, 0.0 }
 0x462   : > { %v3510_v34 = vadd.f32 1.0, %v3478_v62  ;;  %v3541_v57 = vmul.f32 %v3509_v26, %v2645_v17  ;;  %v4359_v36 = vpop.eup %4358  ;;  %v3385_v51 = vmul.f32 1.442695, %v3322_v4  ;;  %v2648_v62 = vmul.f32 0.5, %v7799_v25 }
 0x463   : > { %v3063_v7 = vmul.f32 %v3031_v47, %v2967_v50  ;;  %v3416_v24 = vmul.f32 %v4359_v36, %v3256_v63  ;;  %4366 = vpow2.f32 %v3383_v21  ;;  %vm2714_vm13 = vcmp.ge.f32.partialorder %v7477_v48, 0.0 }
 0x464   : > { %v3542_v20 = vmul.f32 %v3510_v34, %v2646_v44  ;;  %v3573_v6 = vadd.f32 %v3541_v57, %v7796_v10  ;;  %4368 = vpow2.f32 %v3385_v51  ;;  %v2647_v34 = vmul.f32 0.5, %v7420_v1  ;;  %v7803_v51 = vld [vmem:[#allocation57_spill] sm:$0xff] }
 0x465   : > { %v3095_v58 = vadd.f32 1.4214138, %v3063_v7  ;;  %v3448_v29 = vsub.f32 1.0, %v3416_v24  ;;  %v2746_v9 = vsel %vm2714_vm13, 1.0, %v7645_v18 }
 0x466   : > { %v4361_v16 = vpop.eup %4360  ;;  %v3574_v38 = vadd.f32 %v3542_v20, %v7797_v12  ;;  %v7800_v20 = vld [vmem:[#allocation60_spill] sm:$0xff] }
 0x467   : > { %v2905_v54 = vmul.f32 %v4361_v16, %v2841_v42  ;;  %v4363_v23 = vpop.eup %4362  ;;  %v3127_v22 = vmul.f32 %v3095_v58, %v2967_v50  ;;  %v7801_v12 = vld [vmem:[#allocation56_spill] sm:$0xff] }
 0x468   : > { %v3592_v27 = vpack.c.bf16 %v3574_v38, %v3573_v6  ;;  %v2906_v45 = vmul.f32 %v4363_v23, %v2842_v55  ;;  %v3480_v55 = vmul.f32 %v3448_v29, %v2744_v14 }
 0x469   : > { %v2937_v46 = vsub.f32 2.0, %v2905_v54  ;;  %v3159_v40 = vadd.f32 -0.28449672, %v3127_v22 }
 0x46a   : > { %4088 = vmatmul.mubr.msk.bf16.gmra.mxu1 %vm1639_vm9, %v3592_v27  ;;  %v2938_v49 = vsub.f32 2.0, %v2906_v45  ;;  %v4365_v13 = vpop.eup %4364  ;;  %v3512_v32 = vadd.f32 1.0, %v3480_v55 }
 0x46b   : > { %v2969_v39 = vmul.f32 %v4361_v16, %v2937_v46  ;;  %v3191_v42 = vmul.f32 %v3159_v40, %v2967_v50  ;;  %v2745_v40 = vsel %vm2713_vm12, 1.0, %v7645_v18 }
 0x46c   : > { %v2970_v28 = vmul.f32 %v4363_v23, %v2938_v49  ;;  %v3544_v26 = vmul.f32 %v3512_v32, %v2648_v62 }
 0x46d   : > { %v3001_v5 = vmul.f32 1.0614054, %v2969_v39  ;;  %v3223_v33 = vadd.f32 0.2548296, %v3191_v42  ;;  %v2649_v42 = vmul.f32 0.5, %v7463_v35 }
 0x46e   : > { %v3002_v56 = vmul.f32 1.0614054, %v2970_v28  ;;  %v3576_v7 = vadd.f32 %v3544_v26, %v7800_v20 }
 0x46f   : > { %v3033_v61 = vadd.f32 -1.4531521, %v3001_v5  ;;  %v3255_v59 = vmul.f32 %v3223_v33, %v2967_v50  ;;  %v2650_v5 = vmul.f32 0.5, %v7465_v0 }
 0x470   : > { %v3034_v15 = vadd.f32 -1.4531521, %v3002_v56  ;;  %v4367_v23 = vpop.eup %4366  ;;  %v7802_v56 = vld [vmem:[#allocation54_spill] sm:$0xff] }
 0x471   : > { %v3065_v52 = vmul.f32 %v3033_v61, %v2969_v39  ;;  %v3415_v31 = vmul.f32 %v4365_v13, %v3255_v59  ;;  %v4369_v19 = vpop.eup %4368 }
 0x472   : > { %v3066_v37 = vmul.f32 %v3034_v15, %v2970_v28 }
 0x473   : > { %v3097_v30 = vadd.f32 1.4214138, %v3065_v52  ;;  %v3447_v8 = vsub.f32 1.0, %v3415_v31 }
 0x474   : > { %v3098_v60 = vadd.f32 1.4214138, %v3066_v37 }
 0x475   : > { %v3129_v17 = vmul.f32 %v3097_v30, %v2969_v39  ;;  %v3479_v50 = vmul.f32 %v3447_v8, %v2743_v2 }
 0x476   : > { %v3130_v63 = vmul.f32 %v3098_v60, %v2970_v28 }
 0x477   : > { %v3161_v44 = vadd.f32 -0.28449672, %v3129_v17  ;;  %v3511_v47 = vadd.f32 1.0, %v3479_v50 }
 0x478   : > { %v4069_v57 = vpop.f32.mrf.mxu1  ;;  %v3162_v3 = vadd.f32 -0.28449672, %v3130_v63 }
 0x479   : > { %v3193_v36 = vmul.f32 %v3161_v44, %v2969_v39  ;;  %v3543_v43 = vmul.f32 %v3511_v47, %v2647_v34  ;;  %v3717_v4 = vadd.f32 %v4069_v57, %v7482_v41 }
 0x47a   : > { %v3708_v16 = vpop.f32.mrf.mxu1  ;;  %v3194_v24 = vmul.f32 %v3162_v3, %v2970_v28 }
 0x47b   : > { %v3225_v10 = vadd.f32 0.2548296, %v3193_v36  ;;  %v3709_v6 = vadd.f32 %v7482_v41, %v3708_v16  ;;  %v3575_v38 = vadd.f32 %v3543_v43, %v7801_v12 }
 0x47c   : > { %v4070_v58 = vpop.f32.mrf.mxu1  ;;  %v3226_v54 = vadd.f32 0.2548296, %v3194_v24 }
 0x47d   : > { %v3257_v53 = vmul.f32 %v3225_v10, %v2969_v39  ;;  %3823 = vxpose.xlu0.b32.cont [5/16] (narrow) %v3709_v6, 8  ;;  %v3593_v1 = vpack.c.bf16 %v3576_v7, %v3575_v38  ;;  %v3720_v55 = vadd.f32 %v4070_v58, %v7482_v41 }
 0x47e   : > { %v3711_v27 = vpop.f32.mrf.mxu1  ;;  %v3258_v22 = vmul.f32 %v3226_v54, %v2970_v28 }
 0x47f   : > { %v3417_v45 = vmul.f32 %v4367_v23, %v3257_v53  ;;  %v3712_v46 = vadd.f32 %v7482_v41, %v3711_v27  ;;  %4091 = vmatprep.mubr.msk.bf16.mxu1 %vm1639_vm9, %v3593_v1 }
 0x480   : > { %v3418_v11 = vmul.f32 %v4369_v19, %v3258_v22 }
 0x481   : > { %v3449_v29 = vsub.f32 1.0, %v3417_v45  ;;  %3824 = vxpose.xlu0.b32.cont [6/16] (narrow) %v3712_v46, 8 }
 0x482   : > { %v3450_v49 = vsub.f32 1.0, %v3418_v11 }
 0x483   : > { %v3481_v39 = vmul.f32 %v3449_v29, %v2745_v40 }
 0x484   : > { %v3482_v14 = vmul.f32 %v3450_v49, %v2746_v9 }
 0x485   : > { %v3513_v28 = vadd.f32 1.0, %v3481_v39  ;;  %3825 = vxpose.xlu0.b32.cont [7/16] (narrow) %v3717_v4, 8 }
 0x486   : > { %v3514_v21 = vadd.f32 1.0, %v3482_v14 }
 0x487   : > { %v3545_v48 = vmul.f32 %v3513_v28, %v2649_v42 }
 0x488   : > { %v3546_v33 = vmul.f32 %v3514_v21, %v2650_v5 }
 0x489   : > { %3826 = vxpose.xlu0.b32.cont [8/16] (narrow) %v3720_v55, 8  ;;  %v3577_v61 = vadd.f32 %v3545_v48, %v7802_v56 }
 0x48a   : > { %v3578_v59 = vadd.f32 %v3546_v33, %v7803_v51 }
 0x48c   : > { %v3594_v13 = vpack.c.bf16 %v3578_v59, %v3577_v61 }
 0x48e   : > { %4092 = vmatmul.mubr.msk.bf16.gmra.mxu1 %vm1639_vm9, %v3594_v13 }
 0x49f   : > { %v4073_v18 = vpop.f32.mrf.mxu1 }
 0x4a0   : > { %v3733_v31 = vadd.f32 %v4073_v18, %v7482_v41 }
 0x4a1   : > { %v3724_v35 = vpop.f32.mrf.mxu1 }
 0x4a2   : > { %v3725_v15 = vadd.f32 %v7482_v41, %v3724_v35 }
 0x4a3   : > { %v4074_v52 = vpop.f32.mrf.mxu1 }
 0x4a4   : > { %3827 = vxpose.xlu0.b32.cont [9/16] (narrow) %v3725_v15, 8  ;;  %v3736_v37 = vadd.f32 %v4074_v52, %v7482_v41 }
 0x4a5   : > { %v3727_v0 = vpop.f32.mrf.mxu1 }
 0x4a6   : > { %v3728_v32 = vadd.f32 %v7482_v41, %v3727_v0 }
 0x4a8   : > { %3828 = vxpose.xlu0.b32.cont [10/16] (narrow) %v3728_v32, 8 }
 0x4ac   : > { %3829 = vxpose.xlu0.b32.cont [11/16] (narrow) %v3733_v31, 8 }
 0x4b0   : > { %3830 = vxpose.xlu0.b32.cont [12/16] (narrow) %v3736_v37, 8 }
 0x4c0   : > { %v4077_v30 = vpop.f32.mrf.mxu1 }
 0x4c1   : > { %v3749_v17 = vadd.f32 %v4077_v30, %v7482_v41 }
 0x4c2   : > { %v3740_v25 = vpop.f32.mrf.mxu1 }
 0x4c3   : > { %v3741_v62 = vadd.f32 %v7482_v41, %v3740_v25 }
 0x4c4   : > { %v4078_v8 = vpop.f32.mrf.mxu1 }
 0x4c5   : > { %3831 = vxpose.xlu0.b32.cont [13/16] (narrow) %v3741_v62, 8  ;;  %v3752_v26 = vadd.f32 %v4078_v8, %v7482_v41 }
 0x4c6   : > { %v3743_v2 = vpop.f32.mrf.mxu1 }
 0x4c7   : > { %v3744_v60 = vadd.f32 %v7482_v41, %v3743_v2 }
 0x4c9   : > { %3832 = vxpose.xlu0.b32.cont [14/16] (narrow) %v3744_v60, 8 }
 0x4cd   : > { %3833 = vxpose.xlu0.b32.cont [15/16] (narrow) %v3749_v17, 8 }
 0x4d1   : > { %3834 = vxpose.xlu0.b32.end [16/16] (narrow) %v3752_v26, 8 }
 0x4e6   : > { %v4081_v50 = vpop.f32.mrf.mxu1 }
 0x4e7   : > { %v3765_v3 = vadd.f32 %v4081_v50, %v7482_v41 }
 0x4e8   : > { %v3756_v63 = vpop.f32.mrf.mxu1 }
 0x4e9   : > { %v3757_v44 = vadd.f32 %v7482_v41, %v3756_v63 }
 0x4ea   : > { %v4082_v34 = vpop.f32.mrf.mxu1 }
 0x4eb   : > { %3851 = vxpose.xlu1.b32.start [1/16] (narrow) %v3757_v44, 8  ;;  %v3768_v36 = vadd.f32 %v4082_v34, %v7482_v41 }
 0x4ec   : > { %v3759_v47 = vpop.f32.mrf.mxu1 }
 0x4ed   : > { %v3760_v57 = vadd.f32 %v7482_v41, %v3759_v47 }
 0x4ef   : > { %3852 = vxpose.xlu1.b32.cont [2/16] (narrow) %v3760_v57, 8 }
 0x4f3   : > { %3853 = vxpose.xlu1.b32.cont [3/16] (narrow) %v3765_v3, 8 }
 0x4f7   : > { %3854 = vxpose.xlu1.b32.cont [4/16] (narrow) %v3768_v36, 8 }
 0x507   : > { %v4085_v20 = vpop.f32.mrf.mxu1 }
 0x508   : > { %v3781_v6 = vadd.f32 %v4085_v20, %v7482_v41 }
 0x509   : > { %v3772_v7 = vpop.f32.mrf.mxu1 }
 0x50a   : > { %v3773_v43 = vadd.f32 %v7482_v41, %v3772_v7 }
 0x50b   : > { %v4086_v16 = vpop.f32.mrf.mxu1 }
 0x50c   : > { %3855 = vxpose.xlu1.b32.cont [5/16] (narrow) %v3773_v43, 8  ;;  %v3784_v12 = vadd.f32 %v4086_v16, %v7482_v41 }
 0x50d   : > { %v3775_v24 = vpop.f32.mrf.mxu1 }
 0x50e   : > { %v3776_v10 = vadd.f32 %v7482_v41, %v3775_v24 }
 0x510   : > { %3856 = vxpose.xlu1.b32.cont [6/16] (narrow) %v3776_v10, 8 }
 0x511   : > { %v3835_v4 = vpop.trf.xlu0 }
 0x514   : > { %3857 = vxpose.xlu1.b32.cont [7/16] (narrow) %v3781_v6, 8 }
 0x518   : > { %3858 = vxpose.xlu1.b32.cont [8/16] (narrow) %v3784_v12, 8 }
 0x52a   : > { %v4089_v38 = vpop.f32.mrf.mxu1 }
 0x52b   : > { %v3797_v27 = vadd.f32 %v4089_v38, %v7482_v41 }
 0x52c   : > { %v3788_v58 = vpop.f32.mrf.mxu1 }
 0x52d   : > { %v3789_v54 = vadd.f32 %v7482_v41, %v3788_v58 }
 0x52e   : > { %v4090_v53 = vpop.f32.mrf.mxu1 }
 0x52f   : > { %3859 = vxpose.xlu1.b32.cont [9/16] (narrow) %v3789_v54, 8  ;;  %v3800_v22 = vadd.f32 %v4090_v53, %v7482_v41 }
 0x530   : > { %v3791_v23 = vpop.f32.mrf.mxu1 }
 0x531   : > { %v3792_v1 = vadd.f32 %v7482_v41, %v3791_v23 }
 0x533   : > { %3860 = vxpose.xlu1.b32.cont [10/16] (narrow) %v3792_v1, 8 }
 0x537   : > { %3861 = vxpose.xlu1.b32.cont [11/16] (narrow) %v3797_v27, 8 }
 0x53b   : > { %3862 = vxpose.xlu1.b32.cont [12/16] (narrow) %v3800_v22, 8 }
 0x54e   : > { %v4093_v45 = vpop.f32.mrf.mxu1 }
 0x54f   : > { %v3813_v49 = vadd.f32 %v4093_v45, %v7482_v41 }
 0x550   : > { %v3804_v46 = vpop.f32.mrf.mxu1 }
 0x551   : > { %v3805_v19 = vadd.f32 %v7482_v41, %v3804_v46 }
 0x552   : > { %v4094_v11 = vpop.f32.mrf.mxu1 }
 0x553   : > { %3863 = vxpose.xlu1.b32.cont [13/16] (narrow) %v3805_v19, 8  ;;  %v3816_v39 = vadd.f32 %v4094_v11, %v7482_v41 }
 0x554   : > { %v3807_v29 = vpop.f32.mrf.mxu1 }
 0x555   : > { %v3808_v40 = vadd.f32 %v7482_v41, %v3807_v29 }
 0x557   : > { %3864 = vxpose.xlu1.b32.cont [14/16] (narrow) %v3808_v40, 8 }
 0x55b   : > { %3865 = vxpose.xlu1.b32.cont [15/16] (narrow) %v3813_v49, 8 }
 0x55f   : > { %3866 = vxpose.xlu1.b32.end [16/16] (narrow) %v3816_v39, 8 }
 0x59f   : > { %v3867_v9 = vpop.trf.xlu1 }
 0x5a0   : > { %v3885_v42 = vcombine.low %v3835_v4, %v3867_v9 }
 0x5a2   : > { %3887 = vst [vmem:[%s332_s19] sm:$0xff] %v3885_v42 }
 0x5a3 PF: > { %s19_s30 = sadd.s32 1, %s4410_s30  }
 0x5a4   : > { %p16_p4 = scmp.ge.s32.totalorder %s19_s30, 4  }
 0x5a6   :  { %18 = sbr.rel (!%p16_p4) target bundleno = 1 (0x1), region = 88 }

// kernel: mlp_forward.1
= control target key start
LH: loop header
LB: loop body
LE: loop exit
PB: predicated region body
PF: predicated region fallthrough
CT: control target
= control target key end

     0   :  { %s4465_s30 = smov 0   ;;  %s7575_s0 = inlined_call_operand.vmem [shape: f32[2,4,256], index: 0, kind: input, shape index: {}]   ;;  %s7576_s1 = inlined_call_operand.vmem [shape: f32[4,1], index: 1, kind: input, shape index: {}]   ;;  %s7577_s2 = inlined_call_operand.vmem [shape: f32[4,1], index: 2, kind: input, shape index: {}]   ;;  %s7578_s3 = inlined_call_operand.vmem [shape: bf16[4,16], index: 3, kind: input, shape index: {}]   ;;  %s7579_s4 = inlined_call_operand.vmem [shape: f32[1,16], index: 4, kind: input, shape index: {}]   ;;  %s7580_s5 = inlined_call_operand.vmem [shape: f32[9,16], index: 5, kind: input, shape index: {}]   ;;  %s7581_s6 = inlined_call_operand.vmem [shape: f32[1,16], index: 6, kind: input, shape index: {}]   ;;  %s7582_s7 = inlined_call_operand.vmem [shape: bf16[16,4], index: 7, kind: input, shape index: {}]   ;;  %s7583_s8 = inlined_call_operand.vmem [shape: f32[1,4], index: 8, kind: input, shape index: {}]   ;;  %s7584_s9 = inlined_call_operand.vmem [shape: f32[2,4,256], index: 9, kind: output, shape index: {}]  }
   0x1 LB: > { %s3943_s10 = sadd.s32 4294967295, %s4410_s30   ;;  %p3947_p0 = scmp.ge.s32.totalorder %s4410_s30, 1  ;;  %s4410_s30 = sphi %s4465_s30, %s19_s30  }
   0x2   : > { %p287_p1 = scmp.lt.s32.totalorder %s4410_s30, 3 }
   0x4   : > { %p288_p2 = pnand %p3947_p0, %p287_p1 }
   0x6   : > { %291 = sbr.rel (%p288_p2) target bundleno = 1443 (0x5a3), region = 56 }
   0xb   : > { %v390_v0 = vld [vmem:[%s7576_s1] sm:$0xf]  ;;  %v4412_v1 = vmov 0   ;;  %p323_p3 = scmp.lt.s32.totalorder %s3943_s10, 1  ;;  %vm338_vm0 = vcmask 1043456   ;;  %vm546_vm1 = vcmask 1041408  }
   0xc   : > { %4107 = vset.pattern.permute.xlu0 %v4412_v1  ;;  %v401_v2 = vld [vmem:[%s7577_s2] sm:$0xf]  ;;  %vm497_vm2 = vcmask 31744   ;;  %vm1680_vm8 = vcmask 1040384   ;;  %vm1639_vm9 = vcmask 130048   ;;  %vm1642_vm10 = vcmask 123904  }
   0xd   : > { %393 = vperm.xlu0 %4107, %v390_v0   ;;  %s7805_s10 = smov (!%p323_p3, %s3943_s10), 1  ;;  %v489_v51 = vld [vmem:[%s7578_s3] sm:$0x3] }
   0xe   : > { %s3991_s15 = sshll.u32 %s7805_s10, 3  ;;  %4095 = vmatprep.subr.msk.bf16.mxu0 %vm546_vm1, %v489_v51  ;;  %v548_v52 = vsel %vm546_vm1, %v489_v51, 0 }
   0xf   : > { %s327_s18 = scalar_lea.vmem %s7575_s0, %s3991_s15  ;;  %4028 = vmatpush3.bf16.msra.mxu0 %v548_v52  ;;  %s332_s19 = scalar_lea.vmem %s7584_s9, %s3991_s15 }
  0x10   : > { %v334_v3 = vld [vmem:[%s327_s18] sm:$0xff] }
  0x11   : > { %404 = vperm.xlu0 %4107, %v401_v2   ;;  %v336_v4 = vcombine.high %v334_v3, %v334_v3  ;;  %v339_v5 = vsel %vm338_vm0, %v334_v3, 0.0 }
  0x12   : > { %v340_v7 = vrot.slane %v339_v5, 4 }
  0x13   : > { %v346_v6 = vsel %vm338_vm0, %v336_v4, 0.0 }
  0x14   : > { %v347_v8 = vrot.slane %v346_v6, 4  ;;  %v341_v9 = vadd.f32 %v340_v7, %v339_v5 }
  0x16   : > { %v348_v10 = vadd.f32 %v347_v8, %v346_v6  ;;  %v342_v11 = vrot.slane %v341_v9, 2 }
  0x18   : > { %v349_v12 = vrot.slane %v348_v10, 2  ;;  %v343_v13 = vadd.f32 %v342_v11, %v341_v9 }
  0x1a   : > { %v350_v14 = vadd.f32 %v349_v12, %v348_v10  ;;  %v344_v15 = vrot.slane %v343_v13, 1 }
  0x1c   : > { %v351_v16 = vrot.slane %v350_v14, 1  ;;  %v345_v17 = vadd.f32 %v344_v15, %v343_v13 }
  0x1e   : > { %v352_v18 = vadd.f32 %v351_v16, %v350_v14  ;;  %v354_v19 = vmul.f32 0.25, %v345_v17 }
  0x20   : > { %v355_v20 = vmul.f32 0.25, %v352_v18 }
  0x22   : > { %v358_v21 = vcombine.low %v354_v19, %v355_v20 }
  0x24   : > { %v360_v22 = vsub.f32 %v334_v3, %v358_v21 }
  0x26   : > { %v361_v23 = vmul.f32 %v360_v22, %v360_v22 }
  0x28   : > { %v363_v24 = vcombine.high %v361_v23, %v361_v23  ;;  %v365_v25 = vsel %vm338_vm0, %v361_v23, 0.0 }
  0x29   : > { %v366_v27 = vrot.slane %v365_v25, 4 }
  0x2a   : > { %v372_v26 = vsel %vm338_vm0, %v363_v24, 0.0 }
  0x2b   : > { %v373_v28 = vrot.slane %v372_v26, 4  ;;  %v367_v29 = vadd.f32 %v366_v27, %v365_v25 }
  0x2d   : > { %v374_v30 = vadd.f32 %v373_v28, %v372_v26  ;;  %v368_v31 = vrot.slane %v367_v29, 2 }
  0x2f   : > { %v375_v32 = vrot.slane %v374_v30, 2  ;;  %v369_v33 = vadd.f32 %v368_v31, %v367_v29 }
  0x31   : > { %v376_v34 = vadd.f32 %v375_v32, %v374_v30  ;;  %v370_v35 = vrot.slane %v369_v33, 1 }
  0x33   : > { %v377_v36 = vrot.slane %v376_v34, 1  ;;  %v371_v37 = vadd.f32 %v370_v35, %v369_v33 }
  0x35   : > { %v378_v38 = vadd.f32 %v377_v36, %v376_v34  ;;  %v379_v39 = vmul.f32 0.25, %v371_v37 }
  0x37   : > { %v380_v40 = vmul.f32 0.25, %v378_v38  ;;  %v381_v41 = vadd.f32 1e-06, %v379_v39 }
  0x39   : > { %v382_v42 = vadd.f32 1e-06, %v380_v40  ;;  %4110 = vrsqrt.f32 %v381_v41  ;;  %v4513_v40 = vld [vmem:[%s7579_s4] ss:$0 sm:$0xff] }
  0x3b   : > { %4112 = vrsqrt.f32 %v382_v42 }
  0x46   : > { %v4111_v43 = vpop.eup %4110 }
  0x48   : > { %v4113_v44 = vpop.eup %4112 }
  0x49   : > { %v387_v45 = vcombine.low %v4111_v43, %v4113_v44 }
  0x4b   : > { %v389_v47 = vmul.f32 %v387_v45, %v360_v22 }
  0x4d   : > { %v397_v53 = vcombine.high %v389_v47, %v389_v47 }
  0x88   : > { %v394_v46 = vpop.permute.xlu0 %393 }
  0x89   : > { %v399_v48 = vmul.f32 %v394_v46, %v389_v47  ;;  %v400_v54 = vmul.f32 %v397_v53, %v394_v46 }
  0x8c   : > { %v405_v49 = vpop.permute.xlu0 %404 }
  0x8d   : > { %v407_v50 = vadd.f32 %v405_v49, %v399_v48  ;;  %v408_v55 = vadd.f32 %v405_v49, %v400_v54 }
  0x8f   : > { %409 = vxpose.xlu1.b32.start.end [1/1] (short) %v407_v50, 128 }
  0xcc   : > { %441 = vxpose.xlu1.b32.start.end [1/1] (short) %v408_v55, 128 }
 0x10b   : > { %v425_v56 = vpop.trf.xlu1 }
 0x10f   : > { %v426_v57 = vpop.trf.xlu1 }
 0x110   : > { %v473_v58 = vpack.c.bf16 %v426_v57, %v425_v56 }
 0x112   : > { %4029 = vmatprep.mubr.msk.bf16.mxu0 %vm497_vm2, %v473_v58 }
 0x113   : > { %v427_v59 = vpop.trf.xlu1 }
 0x117   : > { %v428_v60 = vpop.trf.xlu1 }
 0x118   : > { %v474_v61 = vpack.c.bf16 %v428_v60, %v427_v59 }
 0x11a   : > { %4030 = vmatmul.mubr.msk.bf16.vlgmr.msra.gmra.mxu0 %vm497_vm2, %v474_v61 }
 0x11b   : > { %v429_v62 = vpop.trf.xlu1 }
 0x11f   : > { %v430_v63 = vpop.trf.xlu1 }
 0x120   : > { %v475_v0 = vpack.c.bf16 %v430_v63, %v429_v62 }
 0x122   : > { %4033 = vmatprep.mubr.msk.bf16.mxu0 %vm497_vm2, %v475_v0 }
 0x123   : > { %v431_v1 = vpop.trf.xlu1 }
 0x127   : > { %v432_v2 = vpop.trf.xlu1 }
 0x128   : > { %v476_v3 = vpack.c.bf16 %v432_v2, %v431_v1 }
 0x12a   : > { %4034 = vmatmul.mubr.msk.bf16.gmra.mxu0 %vm497_vm2, %v476_v3 }
 0x12b   : > { %v433_v4 = vpop.trf.xlu1 }
 0x12f   : > { %v434_v5 = vpop.trf.xlu1 }
 0x130   : > { %v477_v6 = vpack.c.bf16 %v434_v5, %v433_v4 }
 0x132   : > { %4037 = vmatprep.mubr.msk.bf16.mxu0 %vm497_vm2, %v477_v6 }
 0x133   : > { %v435_v7 = vpop.trf.xlu1 }
 0x137   : > { %v436_v8 = vpop.trf.xlu1 }
 0x138   : > { %v478_v9 = vpack.c.bf16 %v436_v8, %v435_v7 }
 0x13a   : > { %4038 = vmatmul.mubr.msk.bf16.gmra.mxu0 %vm497_vm2, %v478_v9 }
 0x13b   : > { %v437_v10 = vpop.trf.xlu1 }
 0x13f   : > { %v438_v11 = vpop.trf.xlu1 }
 0x140   : > { %v479_v12 = vpack.c.bf16 %v438_v11, %v437_v10  ;;  %v7586_v11 = vmov -1.0  }
 0x142   : > { %4041 = vmatprep.mubr.msk.bf16.mxu0 %vm497_vm2, %v479_v12 }
 0x143   : > { %v439_v13 = vpop.trf.xlu1 }
 0x147   : > { %v440_v14 = vpop.trf.xlu1 }
 0x148   : > { %v480_v15 = vpack.c.bf16 %v440_v14, %v439_v13 }
 0x14a   : > { %4042 = vmatmul.mubr.msk.bf16.gmra.mxu0 %vm497_vm2, %v480_v15 }
 0x14b   : > { %v457_v16 = vpop.trf.xlu1 }
 0x14f   : > { %v458_v17 = vpop.trf.xlu1 }
 0x150   : > { %v481_v18 = vpack.c.bf16 %v458_v17, %v457_v16 }
 0x152   : > { %4045 = vmatprep.mubr.msk.bf16.mxu0 %vm497_vm2, %v481_v18 }
 0x153   : > { %v459_v19 = vpop.trf.xlu1 }
 0x157   : > { %v460_v20 = vpop.trf.xlu1 }
 0x158   : > { %v482_v21 = vpack.c.bf16 %v460_v20, %v459_v19 }
 0x15a   : > { %4046 = vmatmul.mubr.msk.bf16.gmra.mxu0 %vm497_vm2, %v482_v21 }
 0x15b   : > { %v461_v22 = vpop.trf.xlu1 }
 0x15f   : > { %v462_v23 = vpop.trf.xlu1 }
 0x160   : > { %v483_v24 = vpack.c.bf16 %v462_v23, %v461_v22 }
 0x162   : > { %4049 = vmatprep.mubr.msk.bf16.mxu0 %vm497_vm2, %v483_v24 }
 0x163   : > { %v463_v25 = vpop.trf.xlu1 }
 0x167   : > { %v464_v26 = vpop.trf.xlu1 }
 0x168   : > { %v484_v27 = vpack.c.bf16 %v464_v26, %v463_v25 }
 0x16a   : > { %4050 = vmatmul.mubr.msk.bf16.gmra.mxu0 %vm497_vm2, %v484_v27 }
 0x16b   : > { %v465_v28 = vpop.trf.xlu1 }
 0x16f   : > { %v466_v29 = vpop.trf.xlu1 }
 0x170   : > { %v485_v30 = vpack.c.bf16 %v466_v29, %v465_v28 }
 0x172   : > { %4053 = vmatprep.mubr.msk.bf16.mxu0 %vm497_vm2, %v485_v30 }
 0x173   : > { %v467_v31 = vpop.trf.xlu1 }
 0x177   : > { %v468_v32 = vpop.trf.xlu1 }
 0x178   : > { %v486_v33 = vpack.c.bf16 %v468_v32, %v467_v31 }
 0x17a   : > { %4054 = vmatmul.mubr.msk.bf16.gmra.mxu0 %vm497_vm2, %v486_v33 }
 0x17b   : > { %v469_v34 = vpop.trf.xlu1 }
 0x17f   : > { %v470_v35 = vpop.trf.xlu1 }
 0x180   : > { %v487_v36 = vpack.c.bf16 %v470_v35, %v469_v34 }
 0x182   : > { %4057 = vmatprep.mubr.msk.bf16.mxu0 %vm497_vm2, %v487_v36 }
 0x183   : > { %v471_v37 = vpop.trf.xlu1 }
 0x187   : > { %v472_v38 = vpop.trf.xlu1 }
 0x188   : > { %v488_v39 = vpack.c.bf16 %v472_v38, %v471_v37 }
 0x18a   : > { %4058 = vmatmul.mubr.msk.bf16.gmra.mxu0 %vm497_vm2, %v488_v39 }
 0x1da   : > { %v4031_v41 = vpop.f32.mrf.mxu0 }
 0x1db   : > { %v593_v42 = vadd.f32 %v4031_v41, %v4513_v40 }
 0x1dc   : > { %v584_v43 = vpop.f32.mrf.mxu0 }
 0x1dd   : > { %v745_v44 = vmul.f32 0.70710677, %v593_v42  ;;  %v585_v45 = vadd.f32 %v4513_v40, %v584_v43  ;;  %v4528_v10 = vmul.f32 0.5, %v593_v42 }
 0x1de   : > { %v4032_v46 = vpop.f32.mrf.mxu0 }
 0x1df   : > { %v841_v47 = vand.u32 2147483647, %v745_v44  ;;  %v743_v48 = vmul.f32 0.70710677, %v585_v45  ;;  %v596_v49 = vadd.f32 %v4032_v46, %v4513_v40  ;;  %vm777_vm3 = vcmp.ge.f32.partialorder %v745_v44, 0.0 }
 0x1e0   : > { %v587_v50 = vpop.f32.mrf.mxu0  ;;  %v4531_v12 = vsel %vm777_vm3, 1.0, %v7586_v11  ;;  %v4533_v13 = vmul.f32 0.5, %v585_v45 }
 0x1e1   : > { %v873_v51 = vmul.f32 0.3275911, %v841_v47  ;;  %v839_v52 = vand.u32 2147483647, %v743_v48  ;;  %v746_v53 = vmul.f32 0.70710677, %v596_v49  ;;  %v588_v54 = vadd.f32 %v4513_v40, %v587_v50 }
 0x1e2   : > { %v1353_v61 = vsub.f32 0.0, %v841_v47  ;;  %vm775_vm4 = vcmp.ge.f32.partialorder %v743_v48, 0.0  ;;  %v4548_v24 = vmul.f32 0.5, %v596_v49 }
 0x1e3   : > { %v905_v55 = vadd.f32 1.0, %v873_v51  ;;  %v871_v56 = vmul.f32 0.3275911, %v839_v52  ;;  %v842_v57 = vand.u32 2147483647, %v746_v53  ;;  %v1351_v63 = vsub.f32 0.0, %v839_v52 }
 0x1e4   : > { %v4519_v58 = vmul.f32 0.70710677, %v588_v54  ;;  %v1385_v3 = vmul.f32 %v1353_v61, %v841_v47  ;;  %v4543_v20 = vsel %vm775_vm4, 1.0, %v7586_v11  ;;  %vm778_vm5 = vcmp.ge.f32.partialorder %v746_v53, 0.0 }
 0x1e5   : > { %4114 = vrcp.f32 %v905_v55  ;;  %v903_v59 = vadd.f32 1.0, %v871_v56  ;;  %v874_v60 = vmul.f32 0.3275911, %v842_v57  ;;  %v1354_v4 = vsub.f32 0.0, %v842_v57 }
 0x1e6   : > { %v840_v62 = vand.u32 2147483647, %v4519_v58  ;;  %v1383_v7 = vmul.f32 %v1351_v63, %v839_v52  ;;  %v1419_v16 = vmul.f32 1.442695, %v1385_v3  ;;  %v4553_v28 = vmul.f32 0.5, %v588_v54 }
 0x1e7   : > { %4116 = vrcp.f32 %v903_v59  ;;  %v906_v0 = vadd.f32 1.0, %v874_v60  ;;  %v1386_v17 = vmul.f32 %v1354_v4, %v842_v57  ;;  %vm776_vm6 = vcmp.ge.f32.partialorder %v4519_v58, 0.0 }
 0x1e8   : > { %v872_v1 = vmul.f32 0.3275911, %v840_v62  ;;  %v1415_v21 = vmul.f32 1.442695, %v1383_v7  ;;  %v1352_v22 = vsub.f32 0.0, %v840_v62  ;;  %v4562_v41 = vsel %vm778_vm5, 1.0, %v7586_v11 }
 0x1e9   : > { %4118 = vrcp.f32 %v906_v0  ;;  %v1421_v33 = vmul.f32 1.442695, %v1386_v17  ;;  %v4575_v49 = vsel %vm776_vm6, 1.0, %v7586_v11 }
 0x1ea   : > { %v4035_v2 = vpop.f32.mrf.mxu0  ;;  %v4522_v5 = vadd.f32 1.0, %v872_v1  ;;  %v1384_v35 = vmul.f32 %v1352_v22, %v840_v62 }
 0x1eb   : > { %v609_v6 = vadd.f32 %v4035_v2, %v4513_v40 }
 0x1ec   : > { %v600_v8 = vpop.f32.mrf.mxu0  ;;  %4120 = vrcp.f32 %v4522_v5  ;;  %v1417_v53 = vmul.f32 1.442695, %v1384_v35 }
 0x1ed   : > { %v4526_v9 = vmul.f32 0.70710677, %v609_v6  ;;  %v4536_v14 = vadd.f32 %v4513_v40, %v600_v8  ;;  %4122 = vpow2.f32 %v1419_v16  ;;  %v4586_v61 = vmul.f32 0.5, %v609_v6 }
 0x1ee   : > { %v4036_v15 = vpop.f32.mrf.mxu0  ;;  %4124 = vpow2.f32 %v1415_v21 }
 0x1ef   : > { %v845_v18 = vand.u32 2147483647, %v4526_v9  ;;  %v4540_v19 = vadd.f32 %v4036_v15, %v4513_v40  ;;  %v4546_v23 = vmul.f32 0.70710677, %v4536_v14  ;;  %vm781_vm7 = vcmp.ge.f32.partialorder %v4526_v9, 0.0 }
 0x1f0   : > { %v603_v31 = vpop.f32.mrf.mxu0 }
 0x1f1   : > { %v877_v25 = vmul.f32 0.3275911, %v845_v18  ;;  %v4551_v26 = vmul.f32 0.70710677, %v4540_v19  ;;  %v1357_v29 = vsub.f32 0.0, %v845_v18  ;;  %v4566_v42 = vadd.f32 %v4513_v40, %v603_v31 }
 0x1f2   : > { %v4115_v27 = vpop.eup %4114  ;;  %v843_v30 = vand.u32 2147483647, %v4546_v23  ;;  %vm779_vm11 = vcmp.ge.f32.partialorder %v4546_v23, 0.0 }
 0x1f3   : > { %v969_v32 = vmul.f32 %v4115_v27, %v905_v55  ;;  %v4557_v34 = vadd.f32 1.0, %v877_v25  ;;  %v846_v37 = vand.u32 2147483647, %v4551_v26  ;;  %v1389_v44 = vmul.f32 %v1357_v29, %v845_v18 }
 0x1f4   : > { %v875_v36 = vmul.f32 0.3275911, %v843_v30  ;;  %v4117_v38 = vpop.eup %4116  ;;  %v1355_v50 = vsub.f32 0.0, %v843_v30  ;;  %v4582_v57 = vmul.f32 0.70710677, %v4566_v42  ;;  %vm782_vm12 = vcmp.ge.f32.partialorder %v4551_v26, 0.0 }
 0x1f5   : > { %v1001_v39 = vsub.f32 2.0, %v969_v32  ;;  %4126 = vrcp.f32 %v4557_v34  ;;  %v967_v43 = vmul.f32 %v4117_v38, %v903_v59  ;;  %v878_v46 = vmul.f32 0.3275911, %v846_v37 }
 0x1f6   : > { %v4568_v45 = vadd.f32 1.0, %v875_v36  ;;  %v4119_v47 = vpop.eup %4118  ;;  %4128 = vpow2.f32 %v1421_v33  ;;  %v1358_v56 = vsub.f32 0.0, %v846_v37  ;;  %v1427_v62 = vmul.f32 1.442695, %v1389_v44 }
 0x1f7   : > { %v4570_v48 = vmul.f32 %v4115_v27, %v1001_v39  ;;  %v999_v51 = vsub.f32 2.0, %v967_v43  ;;  %v970_v52 = vmul.f32 %v4119_v47, %v906_v0  ;;  %v4579_v55 = vadd.f32 1.0, %v878_v46 }
 0x1f8   : > { %4130 = vrcp.f32 %v4568_v45  ;;  %v1387_v1 = vmul.f32 %v1355_v50, %v843_v30  ;;  %v844_v7 = vand.u32 2147483647, %v4582_v57  ;;  %v1390_v6 = vmul.f32 %v1358_v56, %v846_v37 }
 0x1f9   : > { %v1065_v54 = vmul.f32 1.0614054, %v4570_v48  ;;  %v4121_v59 = vpop.eup %4120  ;;  %v4584_v60 = vmul.f32 %v4117_v38, %v999_v51  ;;  %v1002_v58 = vsub.f32 2.0, %v970_v52  ;;  %4132 = vrcp.f32 %v4579_v55 }
 0x1fa   : > { %v968_v0 = vmul.f32 %v4121_v59, %v4522_v5  ;;  %v4039_v2 = vpop.f32.mrf.mxu0  ;;  %4134 = vpow2.f32 %v1417_v53  ;;  %v876_v17 = vmul.f32 0.3275911, %v844_v7  ;;  %v1423_v25 = vmul.f32 1.442695, %v1387_v1  ;;  %v4123_v27 = vpop.eup %4122 }
 0x1fb   : > { %v1097_v63 = vadd.f32 -1.4531521, %v1065_v54  ;;  %v1063_v3 = vmul.f32 1.0614054, %v4584_v60  ;;  %v4591_v4 = vmul.f32 %v4119_v47, %v1002_v58  ;;  %v4598_v18 = vadd.f32 %v4039_v2, %v4513_v40  ;;  %v4125_v33 = vpop.eup %4124 }
 0x1fc   : > { %v1000_v15 = vsub.f32 2.0, %v968_v0  ;;  %4136 = vpow2.f32 %v1427_v62  ;;  %v4603_v31 = vadd.f32 1.0, %v876_v17  ;;  %v1356_v32 = vsub.f32 0.0, %v844_v7  ;;  %v616_v52 = vpop.f32.mrf.mxu0 }
 0x1fd   : > { %v1129_v8 = vmul.f32 %v1097_v63, %v4570_v48  ;;  %v1095_v16 = vadd.f32 -1.4531521, %v1063_v3  ;;  %v1066_v5 = vmul.f32 1.0614054, %v4591_v4  ;;  %v1429_v37 = vmul.f32 1.442695, %v1390_v6 }
 0x1fe   : > { %v4600_v22 = vmul.f32 %v4121_v59, %v1000_v15  ;;  %v4608_v38 = vmul.f32 0.70710677, %v4598_v18  ;;  %v4614_v46 = vsel %vm781_vm7, 1.0, %v7586_v11  ;;  %4138 = vrcp.f32 %v4603_v31 }
 0x1ff   : > { %v1161_v21 = vadd.f32 1.4214138, %v1129_v8  ;;  %v1127_v29 = vmul.f32 %v1095_v16, %v4584_v60  ;;  %v1098_v30 = vadd.f32 -1.4531521, %v1066_v5  ;;  %4140 = vpow2.f32 %v1423_v25 }
 0x200   : > { %v1064_v36 = vmul.f32 1.0614054, %v4600_v22  ;;  %v1388_v59 = vmul.f32 %v1356_v32, %v844_v7  ;;  %v4620_v58 = vand.u32 2147483647, %v4608_v38  ;;  %4142 = vpow2.f32 %v1429_v37 }
 0x201   : > { %v1193_v35 = vmul.f32 %v1161_v21, %v4570_v48  ;;  %v1159_v43 = vadd.f32 1.4214138, %v1127_v29  ;;  %v1130_v44 = vmul.f32 %v1098_v30, %v4591_v4  ;;  %v4627_v3 = vadd.f32 %v4513_v40, %v616_v52 }
 0x202   : > { %v4127_v39 = vpop.eup %4126  ;;  %v1096_v50 = vadd.f32 -1.4531521, %v1064_v36  ;;  %v881_v6 = vmul.f32 0.3275911, %v4620_v58  ;;  %v1425_v25 = vmul.f32 1.442695, %v1388_v59 }
 0x203   : > { %v1225_v47 = vadd.f32 -0.28449672, %v1193_v35  ;;  %v973_v51 = vmul.f32 %v4127_v39, %v4557_v34  ;;  %v4129_v53 = vpop.eup %4128  ;;  %v1191_v54 = vmul.f32 %v1159_v43, %v4584_v60  ;;  %v1162_v56 = vadd.f32 1.4214138, %v1130_v44 }
 0x204   : > { %v1128_v63 = vmul.f32 %v1096_v50, %v4600_v22  ;;  %v4640_v43 = vadd.f32 1.0, %v881_v6  ;;  %v715_v26 = vmul.f32 0.5, %v4536_v14  ;;  %vm780_vm13 = vcmp.ge.f32.partialorder %v4582_v57, 0.0 }
 0x205   : > { %v4131_v62 = vpop.eup %4130  ;;  %v1257_v9 = vmul.f32 %v1225_v47, %v4570_v48  ;;  %v1005_v0 = vsub.f32 2.0, %v973_v51  ;;  %v1223_v1 = vadd.f32 -0.28449672, %v1191_v54  ;;  %v1194_v34 = vmul.f32 %v1162_v56, %v4591_v4 }
 0x206   : > { %v971_v2 = vmul.f32 %v4131_v62, %v4568_v45  ;;  %v1160_v7 = vadd.f32 1.4214138, %v1128_v63  ;;  %v4133_v16 = vpop.eup %4132  ;;  %4144 = vrcp.f32 %v4640_v43  ;;  %v716_v57 = vmul.f32 0.5, %v4566_v42 }
 0x207   : > { %v1289_v8 = vadd.f32 0.2548296, %v1257_v9  ;;  %v4629_v15 = vmul.f32 %v4127_v39, %v1005_v0  ;;  %v1255_v5 = vmul.f32 %v1223_v1, %v4584_v60  ;;  %v1226_v17 = vadd.f32 -0.28449672, %v1194_v34  ;;  %v4135_v29 = vpop.eup %4134 }
 0x208   : > { %v1003_v21 = vsub.f32 2.0, %v971_v2  ;;  %v1192_v45 = vmul.f32 %v1160_v7, %v4600_v22  ;;  %v974_v35 = vmul.f32 %v4133_v16, %v4579_v55  ;;  %4146 = vpow2.f32 %v1425_v25 }
 0x209   : > { %v1321_v30 = vmul.f32 %v1289_v8, %v4570_v48  ;;  %v1069_v32 = vmul.f32 1.0614054, %v4629_v15  ;;  %v1287_v36 = vadd.f32 0.2548296, %v1255_v5  ;;  %v1258_v37 = vmul.f32 %v1226_v17, %v4591_v4  ;;  %v4642_v52 = vpop.eup %4136 }
 0x20a   : > { %v4638_v39 = vmul.f32 %v4131_v62, %v1003_v21  ;;  %v1224_v47 = vadd.f32 -0.28449672, %v1192_v45  ;;  %v1006_v51 = vsub.f32 2.0, %v974_v35  ;;  %vm785_vm14 = vcmp.ge.f32.partialorder %v4608_v38, 0.0 }
 0x20b   : > { %v1481_v44 = vmul.f32 %v4123_v27, %v1321_v30  ;;  %v1101_v50 = vadd.f32 -1.4531521, %v1069_v32  ;;  %v1319_v48 = vmul.f32 %v1287_v36, %v4584_v60  ;;  %v1290_v54 = vadd.f32 0.2548296, %v1258_v37  ;;  %v4139_v1 = vpop.eup %4138 }
 0x20c   : > { %v1067_v56 = vmul.f32 1.0614054, %v4638_v39  ;;  %v1256_v59 = vmul.f32 %v1224_v47, %v4600_v22  ;;  %v4649_v27 = vmul.f32 %v4133_v16, %v1006_v51  ;;  %v4654_v7 = vpop.eup %4140  ;;  %v972_v16 = vmul.f32 %v4139_v1, %v4603_v31 }
 0x20d   : > { %v1513_v55 = vsub.f32 1.0, %v1481_v44  ;;  %v1133_v62 = vmul.f32 %v1101_v50, %v4629_v15  ;;  %v1479_v9 = vmul.f32 %v4125_v33, %v1319_v48  ;;  %v1322_v63 = vmul.f32 %v1290_v54, %v4591_v4  ;;  %v4660_v30 = vpop.eup %4142 }
 0x20e   : > { %v1099_v0 = vadd.f32 -1.4531521, %v1067_v56  ;;  %v1288_v34 = vadd.f32 0.2548296, %v1256_v59  ;;  %v1070_v8 = vmul.f32 1.0614054, %v4649_v27 }
 0x20f   : > { %v1545_v60 = vmul.f32 %v1513_v55, %v4531_v12  ;;  %v1165_v2 = vadd.f32 1.4214138, %v1133_v62  ;;  %v1511_v6 = vsub.f32 1.0, %v1479_v9  ;;  %v1482_v5 = vmul.f32 %v4129_v53, %v1322_v63 }
 0x210   : > { %v1131_v17 = vmul.f32 %v1099_v0, %v4638_v39  ;;  %v1320_v4 = vmul.f32 %v1288_v34, %v4600_v22  ;;  %v1102_v25 = vadd.f32 -1.4531521, %v1070_v8  ;;  %v1004_v35 = vsub.f32 2.0, %v972_v16 }
 0x211   : > { %v1577_v33 = vadd.f32 1.0, %v1545_v60  ;;  %v1197_v21 = vmul.f32 %v1165_v2, %v4629_v15  ;;  %v1543_v12 = vmul.f32 %v1511_v6, %v4543_v20  ;;  %v1514_v45 = vsub.f32 1.0, %v1482_v5 }
 0x212   : > { %v1163_v32 = vadd.f32 1.4214138, %v1131_v17  ;;  %v1480_v36 = vmul.f32 %v4135_v29, %v1320_v4  ;;  %v1134_v31 = vmul.f32 %v1102_v25, %v4649_v27  ;;  %v4669_v50 = vmul.f32 %v4139_v1, %v1004_v35 }
 0x213   : > { %v4664_v53 = vmul.f32 %v1577_v33, %v4528_v10  ;;  %v1229_v37 = vadd.f32 -0.28449672, %v1197_v21  ;;  %v1575_v44 = vadd.f32 1.0, %v1543_v12  ;;  %v1546_v22 = vmul.f32 %v1514_v45, %v4562_v41  ;;  %v4145_v60 = vpop.eup %4144 }
 0x214   : > { %v1195_v47 = vmul.f32 %v1163_v32, %v4638_v39  ;;  %v1512_v51 = vsub.f32 1.0, %v1480_v36  ;;  %v1166_v10 = vadd.f32 1.4214138, %v1134_v31  ;;  %v1068_v55 = vmul.f32 1.0614054, %v4669_v50 }
 0x215   : > { %7635 = vst [vmem:[#allocation3_spill] sm:$0xff] %v4664_v53  ;;  %v1684_v20 = vrot.slane %v4664_v53, 7  ;;  %v1261_v48 = vmul.f32 %v1229_v37, %v4629_v15  ;;  %v4675_v29 = vmul.f32 %v1575_v44, %v4533_v13  ;;  %v1578_v54 = vadd.f32 1.0, %v1546_v22  ;;  %v4147_v33 = vpop.eup %4146 }
 0x216   : > { %v1227_v56 = vadd.f32 -0.28449672, %v1195_v47  ;;  %v1544_v59 = vmul.f32 %v1512_v51, %v4575_v49  ;;  %v1198_v9 = vmul.f32 %v1166_v10, %v4649_v27  ;;  %v1100_v1 = vadd.f32 -1.4531521, %v1068_v55 }
 0x217   : > { %7636 = vst [vmem:[#allocation4_spill] sm:$0xff] %v4675_v29  ;;  %v1778_v41 = vsel %vm1680_vm8, 0.0, %v1684_v20  ;;  %v1293_v62 = vadd.f32 0.2548296, %v1261_v48  ;;  %v1681_v63 = vrot.slane %v4675_v29, 7  ;;  %v4684_v0 = vmul.f32 %v1578_v54, %v4548_v24 }
 0x218   : > { %1813 = vst.msk [vmem:[#allocation2 + $0x30] sm:$0xff] %vm1639_vm9, %v1778_v41  ;;  %v1259_v13 = vmul.f32 %v1227_v56, %v4638_v39  ;;  %v1576_v34 = vadd.f32 1.0, %v1544_v59  ;;  %v1230_v8 = vadd.f32 -0.28449672, %v1198_v9  ;;  %v1361_v49 = vsub.f32 0.0, %v4620_v58 }
 0x219   : > { %7637 = vst [vmem:[#allocation5_spill] sm:$0xff] %v4684_v0  ;;  %v1325_v2 = vmul.f32 %v1293_v62, %v4629_v15  ;;  %v1777_v6 = vsel %vm1680_vm8, 0.0, %v1681_v63  ;;  %v1685_v5 = vrot.slane %v4684_v0, 7  ;;  %v1132_v16 = vmul.f32 %v1100_v1, %v4669_v50 }
 0x21a   : > { %v1291_v17 = vadd.f32 0.2548296, %v1259_v13  ;;  %1810 = vst.msk [vmem:[#allocation2 + $0x18] sm:$0xff] %vm1639_vm9, %v1777_v6  ;;  %v4694_v24 = vmul.f32 %v1576_v34, %v4553_v28  ;;  %v1262_v15 = vmul.f32 %v1230_v8, %v4649_v27  ;;  %v977_v21 = vmul.f32 %v4145_v60, %v4640_v43 }
 0x21b   : > { %v1485_v4 = vmul.f32 %v4642_v52, %v1325_v2  ;;  %v1686_v25 = vsel %vm1680_vm8, %v1684_v20, %v1685_v5  ;;  %v1794_v12 = vsel %vm1680_vm8, %v1685_v5, 0.0  ;;  %v1164_v32 = vadd.f32 1.4214138, %v1132_v16 }
 0x21c   : > { %7638 = vst [vmem:[#allocation6_spill] sm:$0xff] %v4694_v24  ;;  %v1323_v45 = vmul.f32 %v1291_v17, %v4638_v39  ;;  %1814 = vst.msk [vmem:[#allocation2 + $0x38] sm:$0xff] %vm1639_vm9, %v1686_v25  ;;  %v1682_v28 = vrot.slane %v4694_v24, 7  ;;  %v1294_v36 = vadd.f32 0.2548296, %v1262_v15  ;;  %v1009_v52 = vsub.f32 2.0, %v977_v21 }
 0x21d   : > { %1815 = vst.msk [vmem:[#allocation2 + $0x40] sm:$0x3] %vm1642_vm10, %v1794_v12  ;;  %v1517_v35 = vsub.f32 1.0, %v1485_v4  ;;  %v1196_v43 = vmul.f32 %v1164_v32, %v4669_v50  ;;  %v1393_v31 = vmul.f32 %v1361_v49, %v4620_v58  ;;  %v4709_v44 = vmul.f32 0.70710677, %v4627_v3 }
 0x21e   : > { %v1483_v37 = vmul.f32 %v4654_v7, %v1323_v45  ;;  %v1683_v39 = vsel %vm1680_vm8, %v1681_v63, %v1682_v28  ;;  %v1793_v22 = vsel %vm1680_vm8, %v1682_v28, 0.0  ;;  %v1326_v20 = vmul.f32 %v1294_v36, %v4649_v27  ;;  %v4040_v27 = vpop.f32.mrf.mxu0 }
 0x21f   : > { %v1549_v47 = vmul.f32 %v1517_v35, %v4614_v46  ;;  %1811 = vst.msk [vmem:[#allocation2 + $0x20] sm:$0xff] %vm1639_vm9, %v1683_v39  ;;  %v811_v7 = vsel %vm779_vm11, 1.0, %v7586_v11  ;;  %v1228_v51 = vadd.f32 -0.28449672, %v1196_v43  ;;  %v4720_v48 = vmul.f32 %v4145_v60, %v1009_v52 }
 0x220   : > { %1812 = vst.msk [vmem:[#allocation2 + $0x28] sm:$0x3] %vm1642_vm10, %v1793_v22  ;;  %v1515_v58 = vsub.f32 1.0, %v1483_v37  ;;  %v1486_v54 = vmul.f32 %v4660_v30, %v1326_v20  ;;  %v4725_v46 = vand.u32 2147483647, %v4709_v44  ;;  %v1896_v41 = vlaneseq }
 0x221   : > { %v1581_v10 = vadd.f32 1.0, %v1549_v47  ;;  %v1260_v55 = vmul.f32 %v1228_v51, %v4669_v50  ;;  %v1073_v23 = vmul.f32 1.0614054, %v4720_v48  ;;  %v1435_v9 = vmul.f32 1.442695, %v1393_v31 }
 0x222   : > { %v1547_v56 = vmul.f32 %v1515_v58, %v811_v7  ;;  %v1518_v62 = vsub.f32 1.0, %v1486_v54  ;;  %v879_v63 = vmul.f32 0.3275911, %v4725_v46  ;;  %v814_v13 = vsel %vm782_vm12, 1.0, %v7586_v11 }
 0x223   : > { %v4730_v59 = vmul.f32 %v1581_v10, %v4586_v61  ;;  %v1292_v1 = vadd.f32 0.2548296, %v1260_v55  ;;  %v718_v34 = vmul.f32 0.5, %v4540_v19  ;;  %v4738_v8 = vadd.f32 %v4040_v27, %v4513_v40  ;;  %v619_v61 = vpop.f32.mrf.mxu0 }
 0x224   : > { %v1579_v30 = vadd.f32 1.0, %v1547_v56  ;;  %v1550_v2 = vmul.f32 %v1518_v62, %v814_v13  ;;  %v1105_v14 = vadd.f32 -1.4531521, %v1073_v23  ;;  %4148 = vpow2.f32 %v1435_v9 }
 0x225   : > { %7639 = vst [vmem:[#allocation7_spill] sm:$0xff] %v4730_v59  ;;  %v1690_v60 = vrot.slane %v4730_v59, 7  ;;  %v1324_v6 = vmul.f32 %v1292_v1, %v4669_v50  ;;  %v4745_v16 = vadd.f32 1.0, %v879_v63  ;;  %v4751_v21 = vadd.f32 %v4513_v40, %v619_v61  ;;  %v4043_v28 = vpop.f32.mrf.mxu0  ;;  %v1858_v63 = vld [vmem:[%s7580_s5] sm:$0xff] }
 0x226   : > { %v4740_v49 = vmul.f32 %v1579_v30, %v715_v26  ;;  %v1582_v17 = vadd.f32 1.0, %v1550_v2  ;;  %v1137_v15 = vmul.f32 %v1105_v14, %v4720_v48  ;;  %v4757_v50 = vmul.f32 0.70710677, %v4738_v8 }
 0x227   : > { %v1780_v5 = vsel %vm1680_vm8, 0.0, %v1690_v60  ;;  %v1484_v4 = vmul.f32 %v4147_v33, %v1324_v6  ;;  %4150 = vrcp.f32 %v4745_v16  ;;  %v812_v35 = vsel %vm780_vm13, 1.0, %v7586_v11  ;;  %v632_v61 = vpop.f32.mrf.mxu0 }
 0x228   : > { %7640 = vst [vmem:[#allocation8_spill] sm:$0xff] %v4740_v49  ;;  %1819 = vst.msk [vmem:[#allocation2 + $0x60] sm:$0xff] %vm1639_vm9, %v1780_v5  ;;  %v1687_v19 = vrot.slane %v4740_v49, 7  ;;  %v4753_v25 = vmul.f32 %v1582_v17, %v718_v34  ;;  %v1169_v32 = vadd.f32 1.4214138, %v1137_v15  ;;  %v1897_v36 = vshrl.u32 %v1896_v41, 7 }
 0x229   : > { %v1516_v45 = vsub.f32 1.0, %v1484_v4  ;;  %v4766_v52 = vand.u32 2147483647, %v4757_v50  ;;  %v4770_v31 = vmul.f32 0.70710677, %v4751_v21  ;;  %v4776_v20 = vadd.f32 %v4043_v28, %v4513_v40 }
 0x22a   : > { %7641 = vst [vmem:[#allocation9_spill] sm:$0xff] %v4753_v25  ;;  %v1779_v12 = vsel %vm1680_vm8, 0.0, %v1687_v19  ;;  %v1691_v33 = vrot.slane %v4753_v25, 7  ;;  %v1201_v43 = vmul.f32 %v1169_v32, %v4720_v48  ;;  %v1898_v10 = vsub.s32 0, %v1897_v36 }
 0x22b   : > { %1816 = vst.msk [vmem:[#allocation2 + $0x48] sm:$0xff] %vm1639_vm9, %v1779_v12  ;;  %v1548_v37 = vmul.f32 %v1516_v45, %v812_v35  ;;  %v882_v47 = vmul.f32 0.3275911, %v4766_v52  ;;  %v4782_v51 = vand.u32 2147483647, %v4770_v31  ;;  %v1966_v56 = vsub.s32 3, %v1897_v36 }
 0x22c   : > { %v1692_v39 = vsel %vm1680_vm8, %v1690_v60, %v1691_v33  ;;  %v1796_v22 = vsel %vm1680_vm8, %v1691_v33, 0.0  ;;  %v1233_v58 = vadd.f32 -0.28449672, %v1201_v43  ;;  %v2034_v23 = vsub.s32 6, %v1897_v36 }
 0x22d   : > { %1820 = vst.msk [vmem:[#allocation2 + $0x68] sm:$0xff] %vm1639_vm9, %v1692_v39  ;;  %v1580_v7 = vadd.f32 1.0, %v1548_v37  ;;  %v4784_v54 = vadd.f32 1.0, %v882_v47  ;;  %v880_v41 = vmul.f32 0.3275911, %v4782_v51  ;;  %v1359_v62 = vsub.f32 0.0, %v4725_v46 }
 0x22e   : > { %1821 = vst.msk [vmem:[#allocation2 + $0x70] sm:$0x3] %vm1642_vm10, %v1796_v22  ;;  %v1265_v55 = vmul.f32 %v1233_v58, %v4720_v48  ;;  %v4793_v42 = vmul.f32 0.70710677, %v4776_v20  ;;  %v2138_v26 = vsub.s32 1, %v1897_v36  ;;  %v2206_v1 = vsub.s32 4, %v1897_v36 }
 0x22f   : > { %v4786_v27 = vmul.f32 %v1580_v7, %v716_v57  ;;  %4152 = vrcp.f32 %v4784_v54  ;;  %v4799_v13 = vadd.f32 1.0, %v880_v41  ;;  %v2274_v60 = vsub.s32 7, %v1897_v36  ;;  %v2105_v58 = vld [vmem:[#allocation2 + $0x39] sm:$0xff] }
 0x230   : > { %v1297_v30 = vadd.f32 0.2548296, %v1265_v55  ;;  %v2378_v34 = vsub.s32 2, %v1897_v36  ;;  %v2446_v2 = vsub.s32 5, %v1897_v36  ;;  %v4807_v4 = vrot.slane %v1858_v63, %v1898_v10  ;;  %v1865_v36 = vld [vmem:[#allocation2 + $0x38] sm:$0xff]  ;;  %v4044_v55 = vpop.f32.mrf.mxu0 }
 0x231   : > { %7642 = vst [vmem:[#allocation10_spill] sm:$0xff] %v4786_v27  ;;  %v1688_v9 = vrot.slane %v4786_v27, 7  ;;  %v4149_v6 = vpop.eup %4148  ;;  %4154 = vrcp.f32 %v4799_v13  ;;  %v1391_v15 = vmul.f32 %v1359_v62, %v4725_v46  ;;  %v4811_v12 = vand.u32 2147483647, %v4793_v42  ;;  %v2345_v41 = vld [vmem:[#allocation2 + $0x3a] sm:$0xff] }
 0x232   : > { %v1329_v17 = vmul.f32 %v1297_v30, %v4720_v48  ;;  %7643 = vst [vmem:[#allocation11_spill] sm:$0xff] %v4807_v4  ;;  %v4813_v32 = vrot.slane %v1858_v63, %v1966_v56  ;;  %v4817_v28 = vrot.slane %v1858_v63, %v2138_v26  ;;  %v4820_v48 = vadd.f32 %v4513_v40, %v632_v61 }
 0x233   : > { %v1689_v14 = vsel %vm1680_vm8, %v1687_v19, %v1688_v9  ;;  %v1795_v5 = vsel %vm1680_vm8, %v1688_v9, 0.0  ;;  %v4815_v19 = vrot.slane %v1858_v63, %v2034_v23  ;;  %v4822_v33 = vrot.slane %v1858_v63, %v2206_v1 }
 0x234   : > { %1817 = vst.msk [vmem:[#allocation2 + $0x50] sm:$0xff] %vm1639_vm9, %v1689_v14  ;;  %v4151_v45 = vpop.eup %4150  ;;  %v1489_v35 = vmul.f32 %v4149_v6, %v1329_v17  ;;  %v4826_v37 = vrot.slane %v1858_v63, %v2274_v60  ;;  %v4828_v43 = vrot.slane %v1858_v63, %v2378_v34  ;;  %v4830_v39 = vrot.slane %v1858_v63, %v2446_v2  ;;  %v4847_v30 = vld [vmem:[#allocation2 + $0x68] sm:$0xff]  ;;  %v635_v17 = vpop.f32.mrf.mxu0 }
 0x235   : > { %1818 = vst.msk [vmem:[#allocation2 + $0x58] sm:$0x3] %vm1642_vm10, %v1795_v5  ;;  %v975_v46 = vmul.f32 %v4151_v45, %v4745_v16  ;;  %vm783_vm15 = vcmp.ge.f32.partialorder %v4709_v44, 0.0  ;;  %v1431_v57 = vmul.f32 1.442695, %v1391_v15  ;;  %v721_v38 = vmul.f32 0.5, %v4598_v18 }
 0x236   : > { %v1521_v22 = vsub.f32 1.0, %v1489_v35  ;;  %v885_v7 = vmul.f32 0.3275911, %v4811_v12  ;;  %v817_v10 = vsel %vm785_vm14, 1.0, %v7586_v11  ;;  %v4837_v16 = vmul.f32 0.5, %v4627_v3 }
 0x237   : > { %v1007_v47 = vsub.f32 2.0, %v975_v46  ;;  %v4840_v56 = vmul.f32 0.70710677, %v4820_v48  ;;  %v1362_v9 = vsub.f32 0.0, %v4766_v52  ;;  %v1905_v18 = vmul.f32 %v4807_v4, %v1865_v36 }
 0x238   : > { %v1553_v23 = vmul.f32 %v1521_v22, %v817_v10  ;;  %v4845_v63 = vadd.f32 1.0, %v885_v7  ;;  %v4853_v3 = vsel %vm783_vm15, 1.0, %v7586_v11  ;;  %v1360_v1 = vsub.f32 0.0, %v4782_v51 }
 0x239   : > { %v4842_v62 = vmul.f32 %v4151_v45, %v1007_v47  ;;  %v4857_v60 = vand.u32 2147483647, %v4840_v56  ;;  %v2145_v2 = vmul.f32 %v4817_v28, %v2105_v58  ;;  %4156 = vpow2.f32 %v1431_v57 }
 0x23a   : > { %v4862_v61 = vadd.f32 %v4044_v55, %v4513_v40  ;;  %v2385_v14 = vmul.f32 %v4828_v43, %v2345_v41  ;;  %v1585_v5 = vadd.f32 1.0, %v1553_v23  ;;  %4158 = vrcp.f32 %v4845_v63 }
 0x23b   : > { %v1867_v26 = vld [vmem:[#allocation2 + $0x50] sm:$0xff]  ;;  %v1071_v44 = vmul.f32 1.0614054, %v4842_v62  ;;  %v2041_v45 = vmul.f32 %v4815_v19, %v4847_v30  ;;  %v1394_v46 = vmul.f32 %v1362_v9, %v4766_v52  ;;  %v1392_v57 = vmul.f32 %v1360_v1, %v4782_v51 }
 0x23c   : > { %v1973_v34 = vmul.f32 %v4813_v32, %v1867_v26  ;;  %v4153_v6 = vpop.eup %4152  ;;  %v4871_v36 = vld [vmem:[#allocation2 + $0x51] sm:$0xff]  ;;  %v4873_v22 = vmul.f32 %v1585_v5, %v721_v38  ;;  %v883_v7 = vmul.f32 0.3275911, %v4857_v60  ;;  %v4878_v41 = vmul.f32 0.70710677, %v4862_v61 }
 0x23d   : > { %v978_v35 = vmul.f32 %v4153_v6, %v4784_v54  ;;  %v1103_v47 = vadd.f32 -1.4531521, %v1071_v44  ;;  %v4881_v23 = vadd.f32 %v4513_v40, %v635_v17  ;;  %v4883_v54 = vld [vmem:[#allocation2 + $0x69] sm:$0xff]  ;;  %v1363_v59 = vsub.f32 0.0, %v4857_v60 }
 0x23e   : > { %v2005_v15 = vadd.f32 %v1973_v34, %v1905_v18  ;;  %7644 = vst [vmem:[#allocation12_spill] sm:$0xff] %v4873_v22  ;;  %v4155_v58 = vpop.eup %4154  ;;  %v7585_v52 = vrot.slane %v4873_v22, 7  ;;  %v4888_v51 = vadd.f32 1.0, %v883_v7  ;;  %v2213_v18 = vmul.f32 %v4822_v33, %v4871_v36 }
 0x23f   : > { %v1010_v55 = vsub.f32 2.0, %v978_v35  ;;  %v1135_v38 = vmul.f32 %v1103_v47, %v4842_v62  ;;  %v976_v9 = vmul.f32 %v4155_v58, %v4799_v13  ;;  %v1437_v34 = vmul.f32 1.442695, %v1394_v46 }
 0x240   : > { %v2073_v10 = vadd.f32 %v2041_v45, %v2005_v15  ;;  %v1782_v5 = vsel %vm1680_vm8, 0.0, %v7585_v52  ;;  %4160 = vrcp.f32 %v4888_v51  ;;  %v2281_v13 = vmul.f32 %v4826_v37, %v4883_v54  ;;  %v4905_v45 = vld [vmem:[#allocation2 + $0x52] sm:$0xff] }
 0x241   : > { %v4892_v1 = vmul.f32 %v4153_v6, %v1010_v55  ;;  %v1167_v44 = vadd.f32 1.4214138, %v1135_v38  ;;  %v1008_v17 = vsub.f32 2.0, %v976_v9  ;;  %1825 = vst.msk [vmem:[#allocation2 + $0x90] sm:$0xff] %vm1639_vm9, %v1782_v5  ;;  %v4903_v6 = vand.u32 2147483647, %v4878_v41 }
 0x242   : > { %v2177_v26 = vadd.f32 %v2145_v2, %v2073_v10  ;;  %v1433_v47 = vmul.f32 1.442695, %v1392_v57  ;;  %v4911_v7 = vmul.f32 0.70710677, %v4881_v23  ;;  %v4914_v55 = vmul.f32 0.5, %v4738_v8 }
 0x243   : > { %v1074_v2 = vmul.f32 1.0614054, %v4892_v1  ;;  %v1199_v35 = vmul.f32 %v1167_v44, %v4842_v62  ;;  %v4908_v46 = vmul.f32 %v4155_v58, %v1008_v17  ;;  %v886_v9 = vmul.f32 0.3275911, %v4903_v6 }
 0x244   : > { %v2245_v15 = vadd.f32 %v2213_v18, %v2177_v26  ;;  %v4917_v26 = vld [vmem:[#allocation2 + $0x6a] sm:$0xff]  ;;  %4162 = vpow2.f32 %v1437_v34  ;;  %v1365_v58 = vsub.f32 0.0, %v4811_v12  ;;  %v2453_v57 = vmul.f32 %v4830_v39, %v4905_v45 }
 0x245   : > { %v1106_v38 = vadd.f32 -1.4531521, %v1074_v2  ;;  %v1231_v18 = vadd.f32 -0.28449672, %v1199_v35  ;;  %v1072_v5 = vmul.f32 1.0614054, %v4908_v46  ;;  %4164 = vpow2.f32 %v1433_v47 }
 0x246   : > { %v2313_v10 = vadd.f32 %v2281_v13, %v2245_v15  ;;  %v4924_v15 = vadd.f32 1.0, %v886_v9  ;;  %v4157_v8 = vpop.eup %4156  ;;  %v4929_v13 = vld [vmem:[%s7580_s5 + $0x8] ss:$0 sm:$0xff]  ;;  %v4933_v35 = vand.u32 2147483647, %v4911_v7  ;;  %vm786_vm0 = vcmp.ge.f32.partialorder %v4757_v50, 0.0 }
 0x247   : > { %v1138_v17 = vmul.f32 %v1106_v38, %v4892_v1  ;;  %v1263_v34 = vmul.f32 %v1231_v18, %v4842_v62  ;;  %v1104_v2 = vadd.f32 -1.4531521, %v1072_v5  ;;  %v2521_v38 = vmul.f32 %v4929_v13, %v4917_v26 }
 0x248   : > { %v2417_v44 = vadd.f32 %v2385_v14, %v2313_v10  ;;  %v4159_v14 = vpop.eup %4158  ;;  %4166 = vrcp.f32 %v4924_v15  ;;  %v1397_v18 = vmul.f32 %v1365_v58, %v4811_v12  ;;  %vm784_vm1 = vcmp.ge.f32.partialorder %v4770_v31, 0.0 }
 0x249   : > { %v1170_v9 = vadd.f32 1.4214138, %v1138_v17  ;;  %v1295_v52 = vadd.f32 0.2548296, %v1263_v34  ;;  %v1136_v11 = vmul.f32 %v1104_v2, %v4908_v46  ;;  %v981_v25 = vmul.f32 %v4159_v14, %v4845_v63 }
 0x24a   : > { %v2485_v10 = vadd.f32 %v2453_v57, %v2417_v44  ;;  %v884_v44 = vmul.f32 0.3275911, %v4933_v35  ;;  %v4947_v57 = vld [vmem:[%s7581_s6] ss:$0 sm:$0xff]  ;;  %v4951_v34 = vmul.f32 0.5, %v4751_v21  ;;  %vm789_vm2 = vcmp.ge.f32.partialorder %v4793_v42, 0.0 }
 0x24b   : > { %v1202_v47 = vmul.f32 %v1170_v9, %v4892_v1  ;;  %v1327_v17 = vmul.f32 %v1295_v52, %v4842_v62  ;;  %v1168_v63 = vadd.f32 1.4214138, %v1136_v11  ;;  %v1013_v2 = vsub.f32 2.0, %v981_v25  ;;  %v4047_v62 = vpop.f32.mrf.mxu0 }
 0x24c   : > { %v2553_v5 = vadd.f32 %v2521_v38, %v2485_v10  ;;  %v4957_v10 = vadd.f32 1.0, %v884_v44  ;;  %v1443_v0 = vmul.f32 1.442695, %v1397_v18  ;;  %v1395_v25 = vmul.f32 %v1363_v59, %v4857_v60 }
 0x24d   : > { %v1234_v58 = vadd.f32 -0.28449672, %v1202_v47  ;;  %v1487_v38 = vmul.f32 %v4157_v8, %v1327_v17  ;;  %v1200_v9 = vmul.f32 %v1168_v63, %v4908_v46  ;;  %v4960_v49 = vmul.f32 %v4159_v14, %v1013_v2  ;;  %v4161_v52 = vpop.eup %4160 }
 0x24e   : > { %v4954_v12 = vadd.f32 %v4947_v57, %v2553_v5  ;;  %4168 = vrcp.f32 %v4957_v10  ;;  %v979_v44 = vmul.f32 %v4161_v52, %v4888_v51  ;;  %v7645_v18 = vmov -1.0  }
 0x24f   : > { %v1266_v11 = vmul.f32 %v1234_v58, %v4892_v1  ;;  %v1519_v5 = vsub.f32 1.0, %v1487_v38  ;;  %v1232_v47 = vadd.f32 -0.28449672, %v1200_v9  ;;  %v1077_v8 = vmul.f32 1.0614054, %v4960_v49 }
 0x250   : > { %v4963_v21 = vmul.f32 0.70710677, %v4954_v12  ;;  %v818_v17 = vsel %vm786_vm0, 1.0, %v7645_v18  ;;  %v4977_v2 = vadd.f32 %v4047_v62, %v4513_v40  ;;  %4170 = vpow2.f32 %v1443_v0 }
 0x251   : > { %v1298_v63 = vadd.f32 0.2548296, %v1266_v11  ;;  %v1551_v59 = vmul.f32 %v1519_v5, %v4853_v3  ;;  %v1264_v60 = vmul.f32 %v1232_v47, %v4908_v46  ;;  %v1109_v58 = vadd.f32 -1.4531521, %v1077_v8  ;;  %v4163_v38 = vpop.eup %4162 }
 0x252   : > { %v4971_v14 = vand.u32 2147483647, %v4963_v21  ;;  %v1011_v53 = vsub.f32 2.0, %v979_v44  ;;  %v1439_v40 = vmul.f32 1.442695, %v1395_v25  ;;  %v4165_v62 = vpop.eup %4164  ;;  %v816_v0 = vsel %vm784_vm1, 1.0, %v7645_v18 }
 0x253   : > { %v1330_v9 = vmul.f32 %v1298_v63, %v4892_v1  ;;  %v1583_v50 = vadd.f32 1.0, %v1551_v59  ;;  %v1296_v24 = vadd.f32 0.2548296, %v1264_v60  ;;  %v1141_v11 = vmul.f32 %v1109_v58, %v4960_v49 }
 0x254   : > { %v2784_v51 = vmul.f32 0.3275911, %v4971_v14  ;;  %v4987_v5 = vmul.f32 %v4161_v52, %v1011_v53  ;;  %v4990_v47 = vmul.f32 0.70710677, %v4977_v2  ;;  %v1366_v52 = vsub.f32 0.0, %v4903_v6 }
 0x255   : > { %v1490_v3 = vmul.f32 %v4163_v38, %v1330_v9  ;;  %v4167_v8 = vpop.eup %4166  ;;  %v4993_v27 = vmul.f32 %v1583_v50, %v4837_v16  ;;  %v1328_v1 = vmul.f32 %v1296_v24, %v4908_v46  ;;  %v1173_v25 = vadd.f32 1.4214138, %v1141_v11  ;;  %v648_v50 = vpop.f32.mrf.mxu0 }
 0x256   : > { %v4985_v29 = vadd.f32 1.0, %v2784_v51  ;;  %v1075_v53 = vmul.f32 1.0614054, %v4987_v5  ;;  %v982_v31 = vmul.f32 %v4167_v8, %v4924_v15  ;;  %v5007_v24 = vand.u32 2147483647, %v4990_v47 }
 0x257   : > { %7646 = vst [vmem:[#allocation13_spill] sm:$0xff] %v4993_v27  ;;  %v1522_v44 = vsub.f32 1.0, %v1490_v3  ;;  %v1693_v63 = vrot.slane %v4993_v27, 7  ;;  %v1488_v59 = vmul.f32 %v4165_v62, %v1328_v1  ;;  %v1205_v16 = vmul.f32 %v1173_v25, %v4960_v49 }
 0x258   : > { %4172 = vrcp.f32 %v4985_v29  ;;  %v1107_v58 = vadd.f32 -1.4531521, %v1075_v53  ;;  %v1014_v9 = vsub.f32 2.0, %v982_v31  ;;  %v1398_v3 = vmul.f32 %v1366_v52, %v4903_v6  ;;  %v5025_v6 = vld [vmem:[%s7579_s4] ss:$0 sm:$0xff] }
 0x259   : > { %v1554_v60 = vmul.f32 %v1522_v44, %v818_v17  ;;  %4174 = vpow2.f32 %v1439_v40  ;;  %v1781_v46 = vsel %vm1680_vm8, 0.0, %v1693_v63  ;;  %v1520_v38 = vsub.f32 1.0, %v1488_v59 }
 0x25a   : > { %v1237_v51 = vadd.f32 -0.28449672, %v1205_v16  ;;  %1822 = vst.msk [vmem:[#allocation2 + $0x78] sm:$0xff] %vm1639_vm9, %v1781_v46  ;;  %v1139_v62 = vmul.f32 %v1107_v58, %v4987_v5  ;;  %v889_v15 = vmul.f32 0.3275911, %v5007_v24  ;;  %v5015_v25 = vmul.f32 %v4167_v8, %v1014_v9 }
 0x25b   : > { %v1586_v11 = vadd.f32 1.0, %v1554_v60  ;;  %v4169_v17 = vpop.eup %4168  ;;  %v1552_v40 = vmul.f32 %v1520_v38, %v816_v0  ;;  %v1364_v44 = vsub.f32 0.0, %v4933_v35  ;;  %v5028_v52 = vadd.f32 %v5025_v6, %v648_v50 }
 0x25c   : > { %v1269_v1 = vmul.f32 %v1237_v51, %v4960_v49  ;;  %v1171_v59 = vadd.f32 1.4214138, %v1139_v62  ;;  %v980_v16 = vmul.f32 %v4169_v17, %v4957_v10  ;;  %v1078_v8 = vmul.f32 1.0614054, %v5015_v25 }
 0x25d   : > { %v5019_v53 = vmul.f32 %v1586_v11, %v4914_v55  ;;  %v1584_v0 = vadd.f32 1.0, %v1552_v40  ;;  %v5031_v60 = vadd.f32 1.0, %v889_v15  ;;  %v1445_v46 = vmul.f32 1.442695, %v1398_v3  ;;  %v4171_v38 = vpop.eup %4170 }
 0x25e   : > { %v1301_v31 = vadd.f32 0.2548296, %v1269_v1  ;;  %v1203_v58 = vmul.f32 %v1171_v59, %v4987_v5  ;;  %v1012_v10 = vsub.f32 2.0, %v980_v16  ;;  %v1110_v50 = vadd.f32 -1.4531521, %v1078_v8 }
 0x25f   : > { %7647 = vst [vmem:[#allocation14_spill] sm:$0xff] %v5019_v53  ;;  %v1697_v55 = vrot.slane %v5019_v53, 7  ;;  %v5036_v51 = vmul.f32 %v1584_v0, %v4951_v34  ;;  %v1396_v11 = vmul.f32 %v1364_v44, %v4933_v35  ;;  %v7648_v62 = vrot.slane %v4873_v22, 7 }
 0x260   : > { %v1333_v9 = vmul.f32 %v1301_v31, %v4960_v49  ;;  %v1235_v1 = vadd.f32 -0.28449672, %v1203_v58  ;;  %v5044_v53 = vmul.f32 %v4169_v17, %v1012_v10  ;;  %v1142_v49 = vmul.f32 %v1110_v50, %v5015_v25 }
 0x261   : > { %v1698_v15 = vsel %vm1680_vm8, %v7648_v62, %v1697_v55  ;;  %v1798_v40 = vsel %vm1680_vm8, %v1697_v55, 0.0  ;;  %v1694_v34 = vrot.slane %v5036_v51, 7  ;;  %4176 = vrcp.f32 %v5031_v60 }
 0x262   : > { %1826 = vst.msk [vmem:[#allocation2 + $0x98] sm:$0xff] %vm1639_vm9, %v1698_v15  ;;  %v1493_v3 = vmul.f32 %v4171_v38, %v1333_v9  ;;  %v821_v35 = vsel %vm789_vm2, 1.0, %v7645_v18  ;;  %v1267_v44 = vmul.f32 %v1235_v1, %v4987_v5  ;;  %4178 = vpow2.f32 %v1445_v46 }
 0x263   : > { %1827 = vst.msk [vmem:[#allocation2 + $0xa0] sm:$0x3] %vm1642_vm10, %v1798_v40  ;;  %v1076_v17 = vmul.f32 1.0614054, %v5044_v53  ;;  %v1695_v16 = vsel %vm1680_vm8, %v1693_v63, %v1694_v34  ;;  %v1797_v0 = vsel %vm1680_vm8, %v1694_v34, 0.0  ;;  %v725_v62 = vmul.f32 0.5, %v4776_v20 }
 0x264   : > { %v1525_v31 = vsub.f32 1.0, %v1493_v3  ;;  %v1174_v8 = vadd.f32 1.4214138, %v1142_v49  ;;  %1823 = vst.msk [vmem:[#allocation2 + $0x80] sm:$0xff] %vm1639_vm9, %v1695_v16  ;;  %v1299_v42 = vadd.f32 0.2548296, %v1267_v44  ;;  %v5070_v40 = vmul.f32 %v4813_v32, %v4847_v30 }
 0x265   : > { %v4173_v59 = vpop.eup %4172  ;;  %1824 = vst.msk [vmem:[#allocation2 + $0x88] sm:$0x3] %vm1642_vm10, %v1797_v0  ;;  %v1108_v58 = vadd.f32 -1.4531521, %v1076_v17  ;;  %v1441_v10 = vmul.f32 1.442695, %v1396_v11  ;;  %v5075_v3 = vmul.f32 %v4822_v33, %v4883_v54  ;;  %v1909_v44 = vmul.f32 %v4807_v4, %v4847_v30 }
 0x266   : > { %v2880_v55 = vmul.f32 %v4173_v59, %v4985_v29  ;;  %v4175_v38 = vpop.eup %4174  ;;  %v1557_v46 = vmul.f32 %v1525_v31, %v821_v35  ;;  %v1206_v9 = vmul.f32 %v1174_v8, %v5015_v25  ;;  %v5063_v50 = vmul.f32 0.70710677, %v5028_v52  ;;  %7649 = vst [vmem:[#allocation15_spill] sm:$0xff] %v5070_v40 }
 0x267   : > { %v1331_v15 = vmul.f32 %v1299_v42, %v4987_v5  ;;  %v1140_v29 = vmul.f32 %v1108_v58, %v5044_v53  ;;  %v723_v11 = vmul.f32 0.5, %v4820_v48  ;;  %7650 = vst [vmem:[#allocation16_spill] sm:$0xff] %v5075_v3  ;;  %4180 = vpow2.f32 %v1441_v10 }
 0x268   : > { %v2912_v63 = vsub.f32 2.0, %v2880_v55  ;;  %v1589_v1 = vadd.f32 1.0, %v1557_v46  ;;  %v1238_v34 = vadd.f32 -0.28449672, %v1206_v9  ;;  %vm787_vm3 = vcmp.ge.f32.partialorder %v4840_v56, 0.0  ;;  %v4048_v46 = vpop.f32.mrf.mxu0 }
 0x269   : > { %v1491_v49 = vmul.f32 %v4175_v38, %v1331_v15  ;;  %v1172_v35 = vadd.f32 1.4214138, %v1140_v29  ;;  %vm790_vm4 = vcmp.ge.f32.partialorder %v4878_v41, 0.0  ;;  %v5082_v5 = vand.u32 2147483647, %v5063_v50  ;;  %v5094_v0 = vld [vmem:[#allocation2 + $0x98] sm:$0xff] }
 0x26a   : > { %v5077_v20 = vmul.f32 %v4173_v59, %v2912_v63  ;;  %v5086_v48 = vmul.f32 %v4830_v39, %v4917_v26  ;;  %v2149_v17 = vmul.f32 %v4817_v28, %v4883_v54  ;;  %v5092_v16 = vmul.f32 %v1589_v1, %v725_v62 }
 0x26b   : > { %v1871_v59 = vld [vmem:[#allocation2 + $0x80] sm:$0xff]  ;;  %v5098_v56 = vmul.f32 %v4828_v43, %v4917_v26  ;;  %v1523_v41 = vsub.f32 1.0, %v1491_v49  ;;  %v1270_v31 = vmul.f32 %v1238_v34, %v5015_v25  ;;  %v1204_v8 = vmul.f32 %v1172_v35, %v5044_v53 }
 0x26c   : > { %7651 = vst [vmem:[#allocation17_spill] sm:$0xff] %v5086_v48  ;;  %7652 = vst [vmem:[#allocation18_spill] sm:$0xff] %v5092_v16  ;;  %v1977_v55 = vmul.f32 %v4813_v32, %v1871_v59  ;;  %v819_v30 = vsel %vm787_vm3, 1.0, %v7645_v18  ;;  %v5105_v54 = vmul.f32 0.5, %v4862_v61  ;;  %v822_v42 = vsel %vm790_vm4, 1.0, %v7645_v18  ;;  %v5113_v61 = vld [vmem:[#allocation2 + $0x81] sm:$0xff] }
 0x26d   : > { %v2976_v58 = vmul.f32 1.0614054, %v5077_v20  ;;  %v7597_v10 = vrot.slane %v5092_v16, 7  ;;  %v1555_v26 = vmul.f32 %v1523_v41, %v819_v30  ;;  %v887_v38 = vmul.f32 0.3275911, %v5082_v5 }
 0x26e   : > { %v4177_v9 = vpop.eup %4176  ;;  %v2009_v63 = vadd.f32 %v1977_v55, %v1909_v44  ;;  %v2045_v62 = vmul.f32 %v4815_v19, %v5094_v0  ;;  %v1302_v15 = vadd.f32 0.2548296, %v1270_v31  ;;  %v1236_v29 = vadd.f32 -0.28449672, %v1204_v8  ;;  %v5126_v55 = vld [vmem:[#allocation2 + $0x99] sm:$0xff] }
 0x26f   : > { %v4179_v1 = vpop.eup %4178  ;;  %v1784_v34 = vsel %vm1680_vm8, 0.0, %v7597_v10  ;;  %v1587_v49 = vadd.f32 1.0, %v1555_v26  ;;  %vm788_vm5 = vcmp.ge.f32.partialorder %v4911_v7, 0.0  ;;  %v1369_v35 = vsub.f32 0.0, %v5007_v24 }
 0x270   : > { %v2077_v59 = vadd.f32 %v2045_v62, %v2009_v63  ;;  %1831 = vst.msk [vmem:[#allocation2 + $0xc0] sm:$0xff] %vm1639_vm9, %v1784_v34  ;;  %v1334_v44 = vmul.f32 %v1302_v15, %v5015_v25  ;;  %v1268_v41 = vmul.f32 %v1236_v29, %v5044_v53  ;;  %v5124_v31 = vadd.f32 %v5025_v6, %v4048_v46 }
 0x271   : > { %v3008_v8 = vadd.f32 -1.4531521, %v2976_v58  ;;  %v5128_v30 = vmul.f32 %v1587_v49, %v723_v11  ;;  %v985_v26 = vmul.f32 %v4177_v9, %v5031_v60  ;;  %v5131_v10 = vadd.f32 1.0, %v887_v38 }
 0x272   : > { %v2181_v22 = vadd.f32 %v2149_v17, %v2077_v59  ;;  %v2217_v63 = vmul.f32 %v4822_v33, %v5113_v61  ;;  %v1494_v62 = vmul.f32 %v4179_v1, %v1334_v44  ;;  %v1300_v25 = vadd.f32 0.2548296, %v1268_v41  ;;  %v651_v17 = vpop.f32.mrf.mxu0  ;;  %v5142_v1 = vld [vmem:[#allocation2 + $0x82] sm:$0xff]  ;;  %v5153_v41 = vld [vmem:[#allocation2 + $0x9a] sm:$0xff] }
 0x273   : > { %7653 = vst [vmem:[#allocation19_spill] sm:$0xff] %v5128_v30  ;;  %v7599_v15 = vrot.slane %v5128_v30, 7  ;;  %v1017_v29 = vsub.f32 2.0, %v985_v26  ;;  %v1401_v46 = vmul.f32 %v1369_v35, %v5007_v24  ;;  %4182 = vrcp.f32 %v5131_v10 }
 0x274   : > { %v2249_v58 = vadd.f32 %v2217_v63, %v2181_v22  ;;  %v2285_v11 = vmul.f32 %v4826_v37, %v5126_v55  ;;  %v1526_v60 = vsub.f32 1.0, %v1494_v62  ;;  %v1332_v38 = vmul.f32 %v1300_v25, %v5044_v53  ;;  %v4181_v34 = vpop.eup %4180 }
 0x275   : > { %v3264_v49 = vsub.f32 0.0, %v4971_v14  ;;  %v1783_v59 = vsel %vm1680_vm8, 0.0, %v7599_v15  ;;  %v5147_v24 = vmul.f32 %v4177_v9, %v1017_v29  ;;  %v5150_v22 = vmul.f32 0.70710677, %v5124_v31 }
 0x276   : > { %v3040_v35 = vmul.f32 %v3008_v8, %v5077_v20  ;;  %v2317_v44 = vadd.f32 %v2285_v11, %v2249_v58  ;;  %1828 = vst.msk [vmem:[#allocation2 + $0xa8] sm:$0xff] %vm1639_vm9, %v1783_v59  ;;  %v1558_v53 = vmul.f32 %v1526_v60, %v822_v42  ;;  %v1492_v26 = vmul.f32 %v4181_v34, %v1332_v38 }
 0x277   : > { %v1081_v63 = vmul.f32 1.0614054, %v5147_v24  ;;  %v1451_v62 = vmul.f32 1.442695, %v1401_v46  ;;  %v5158_v25 = vand.u32 2147483647, %v5150_v22  ;;  %v5161_v9 = vadd.f32 %v5025_v6, %v651_v17 }
 0x278   : > { %v2421_v29 = vadd.f32 %v5098_v56, %v2317_v44  ;;  %v2457_v8 = vmul.f32 %v4830_v39, %v5142_v1  ;;  %v1590_v58 = vadd.f32 1.0, %v1558_v53  ;;  %v1524_v11 = vsub.f32 1.0, %v1492_v26 }
 0x279   : > { %v2525_v42 = vmul.f32 %v4929_v13, %v5153_v41  ;;  %v820_v46 = vsel %vm788_vm5, 1.0, %v7645_v18  ;;  %v1113_v60 = vadd.f32 -1.4531521, %v1081_v63  ;;  %v890_v38 = vmul.f32 0.3275911, %v5158_v25 }
 0x27a   : > { %v3072_v34 = vadd.f32 1.4214138, %v3040_v35  ;;  %v2489_v17 = vadd.f32 %v2457_v8, %v2421_v29  ;;  %v5173_v59 = vmul.f32 %v1590_v58, %v5105_v54  ;;  %v1556_v56 = vmul.f32 %v1524_v11, %v820_v46 }
 0x27b   : > { %v3296_v44 = vmul.f32 %v3264_v49, %v4971_v14  ;;  %v1145_v53 = vmul.f32 %v1113_v60, %v5147_v24  ;;  %4184 = vpow2.f32 %v1451_v62  ;;  %v5177_v26 = vadd.f32 1.0, %v890_v38 }
 0x27c   : > { %7654 = vst [vmem:[#allocation20_spill] sm:$0xff] %v5173_v59  ;;  %v2557_v15 = vadd.f32 %v2525_v42, %v2489_v17  ;;  %v1703_v7 = vrot.slane %v5173_v59, 7  ;;  %v1588_v27 = vadd.f32 1.0, %v1556_v56  ;;  %v5181_v63 = vmul.f32 0.70710677, %v5161_v9 }
 0x27d   : > { %v724_v35 = vmul.f32 0.5, %v4881_v23  ;;  %v5185_v54 = vmul.f32 0.5, %v4977_v2  ;;  %v1177_v29 = vadd.f32 1.4214138, %v1145_v53  ;;  %4186 = vrcp.f32 %v5177_v26 }
 0x27e   : > { %v3104_v14 = vmul.f32 %v3072_v34, %v5077_v20  ;;  %v5190_v49 = vadd.f32 %v4947_v57, %v2557_v15  ;;  %v7655_v62 = vrot.slane %v5092_v16, 7  ;;  %v1800_v58 = vsel %vm1680_vm8, %v1703_v7, 0.0 }
 0x27f   : > { %v5197_v11 = vmul.f32 0.5, %v4954_v12  ;;  %1833 = vst.msk [vmem:[#allocation2 + $0xd0] sm:$0x3] %vm1642_vm10, %v1800_v58  ;;  %v5201_v23 = vmul.f32 %v1588_v27, %v724_v35  ;;  %vm793_vm6 = vcmp.ge.f32.partialorder %v4990_v47, 0.0  ;;  %v1209_v2 = vmul.f32 %v1177_v29, %v5147_v24 }
 0x280   : > { %v1704_v8 = vsel %vm1680_vm8, %v7655_v62, %v1703_v7  ;;  %v4183_v15 = vpop.eup %4182  ;;  %v5207_v42 = vmul.f32 %v4817_v28, %v4871_v36  ;;  %v3333_v46 = vmul.f32 1.442695, %v3296_v44  ;;  %v5210_v60 = vmul.f32 0.70710677, %v5190_v49 }
 0x281   : > { %1832 = vst.msk [vmem:[#allocation2 + $0xc8] sm:$0xff] %vm1639_vm9, %v1704_v8  ;;  %7656 = vst [vmem:[#allocation21_spill] sm:$0xff] %v5201_v23  ;;  %v5213_v12 = vand.u32 2147483647, %v5181_v63  ;;  %v1700_v38 = vrot.slane %v5201_v23, 7  ;;  %v983_v34 = vmul.f32 %v4183_v15, %v5131_v10  ;;  %v1367_v17 = vsub.f32 0.0, %v5082_v5 }
 0x282   : > { %7657 = vst [vmem:[#allocation22_spill] sm:$0xff] %v5207_v42  ;;  %v1241_v27 = vadd.f32 -0.28449672, %v1209_v2  ;;  %v5220_v56 = vmul.f32 %v4828_v43, %v4905_v45  ;;  %v3136_v36 = vadd.f32 -0.28449672, %v3104_v14  ;;  %vm2688_vm7 = vcmp.ge.f32.partialorder %v4963_v21, 0.0  ;;  %v4051_v2 = vpop.f32.mrf.mxu0 }
 0x283   : > { %v5223_v44 = vand.u32 2147483647, %v5210_v60  ;;  %v888_v53 = vmul.f32 0.3275911, %v5213_v12  ;;  %v7659_v7 = vrot.slane %v5128_v30, 7  ;;  %v1799_v10 = vsel %vm1680_vm8, %v1700_v38, 0.0 }
 0x284   : > { %7658 = vst [vmem:[#allocation23_spill] sm:$0xff] %v5220_v56  ;;  %v1273_v29 = vmul.f32 %v1241_v27, %v5147_v24  ;;  %4188 = vpow2.f32 %v3333_v46  ;;  %1830 = vst.msk [vmem:[#allocation2 + $0xb8] sm:$0x3] %vm1642_vm10, %v1799_v10  ;;  %vm791_vm11 = vcmp.ge.f32.partialorder %v5063_v50, 0.0  ;;  %v1015_v14 = vsub.f32 2.0, %v983_v34  ;;  %v664_v10 = vpop.f32.mrf.mxu0 }
 0x285   : > { %v1701_v35 = vsel %vm1680_vm8, %v7659_v7, %v1700_v38  ;;  %v2788_v45 = vmul.f32 0.3275911, %v5223_v44  ;;  %v825_v21 = vsel %vm793_vm6, 1.0, %v7645_v18  ;;  %v1399_v8 = vmul.f32 %v1367_v17, %v5082_v5 }
 0x286   : > { %1829 = vst.msk [vmem:[#allocation2 + $0xb0] sm:$0xff] %vm1639_vm9, %v1701_v35  ;;  %v1305_v62 = vadd.f32 0.2548296, %v1273_v29  ;;  %v5240_v58 = vadd.f32 1.0, %v888_v53  ;;  %v5243_v46 = vsel %vm2688_vm7, 1.0, %v7645_v18  ;;  %v3168_v38 = vmul.f32 %v3136_v36, %v5077_v20 }
 0x287   : > { %v5246_v27 = vadd.f32 1.0, %v2788_v45  ;;  %v5248_v7 = vmul.f32 %v4183_v15, %v1015_v14  ;;  %v5251_v50 = vmul.f32 0.5, %v5028_v52  ;;  %v5254_v47 = vsel %vm791_vm11, 1.0, %v7645_v18 }
 0x288   : > { %v5257_v5 = vmul.f32 0.5, %v5124_v31  ;;  %v1370_v34 = vsub.f32 0.0, %v5158_v25  ;;  %v4185_v17 = vpop.eup %4184  ;;  %v5262_v53 = vmul.f32 %v4813_v32, %v5094_v0  ;;  %v5266_v15 = vmul.f32 %v4822_v33, %v5126_v55 }
 0x289   : > { %v5270_v52 = vmul.f32 %v4830_v39, %v5153_v41  ;;  %4190 = vrcp.f32 %v5246_v27  ;;  %v1337_v31 = vmul.f32 %v1305_v62, %v5147_v24  ;;  %v1079_v36 = vmul.f32 1.0614054, %v5248_v7  ;;  %v5285_v24 = vld [vmem:[#allocation2 + $0xc8] sm:$0xff] }
 0x28a   : > { %7660 = vst [vmem:[#allocation24_spill] sm:$0xff] %v5262_v53  ;;  %7661 = vst [vmem:[#allocation25_spill] sm:$0xff] %v5266_v15  ;;  %v1447_v35 = vmul.f32 1.442695, %v1399_v8  ;;  %4192 = vrcp.f32 %v5240_v58  ;;  %v4187_v29 = vpop.eup %4186  ;;  %v3200_v45 = vadd.f32 0.2548296, %v3168_v38  ;;  %v5278_v14 = vmul.f32 %v4817_v28, %v5113_v61 }
 0x28b   : > { %7662 = vst [vmem:[#allocation26_spill] sm:$0xff] %v5270_v52  ;;  %v1913_v59 = vmul.f32 %v4807_v4, %v5094_v0  ;;  %v5283_v16 = vadd.f32 %v5025_v6, %v4051_v2  ;;  %v1497_v62 = vmul.f32 %v4185_v17, %v1337_v31  ;;  %v1111_v8 = vadd.f32 -1.4531521, %v1079_v36 }
 0x28c   : > { %7663 = vst [vmem:[#allocation27_spill] sm:$0xff] %v5278_v14  ;;  %v986_v52 = vmul.f32 %v4187_v29, %v5177_v26  ;;  %v1402_v15 = vmul.f32 %v1370_v34, %v5158_v25  ;;  %v5291_v38 = vmul.f32 %v4828_v43, %v5142_v1  ;;  %v2153_v0 = vmul.f32 %v4817_v28, %v5126_v55 }
 0x28d   : > { %v1875_v30 = vld [vmem:[#allocation2 + $0xb0] sm:$0xff]  ;;  %v5297_v2 = vadd.f32 %v5025_v6, %v664_v10  ;;  %v1529_v14 = vsub.f32 1.0, %v1497_v62  ;;  %v1143_v17 = vmul.f32 %v1111_v8, %v5248_v7  ;;  %4194 = vpow2.f32 %v1447_v35 }
 0x28e   : > { %7664 = vst [vmem:[#allocation28_spill] sm:$0xff] %v5291_v38  ;;  %v1981_v61 = vmul.f32 %v4813_v32, %v1875_v30  ;;  %v1018_v31 = vsub.f32 2.0, %v986_v52  ;;  %v3232_v26 = vmul.f32 %v3200_v45, %v5077_v20  ;;  %v2049_v1 = vmul.f32 %v4815_v19, %v5285_v24  ;;  %v5306_v30 = vld [vmem:[#allocation2 + $0xb1] sm:$0xff]  ;;  %v5318_v45 = vld [vmem:[#allocation2 + $0xc9] sm:$0xff] }
 0x28f   : > { %v5304_v34 = vmul.f32 0.70710677, %v5283_v16  ;;  %v1561_v55 = vmul.f32 %v1529_v14, %v825_v21  ;;  %v1175_v36 = vadd.f32 1.4214138, %v1143_v17  ;;  %v1453_v62 = vmul.f32 1.442695, %v1402_v15 }
 0x290   : > { %v2013_v25 = vadd.f32 %v1981_v61, %v1913_v59  ;;  %v5308_v10 = vmul.f32 %v4187_v29, %v1018_v31  ;;  %v2393_v52 = vmul.f32 %v4828_v43, %v5153_v41  ;;  %v5316_v59 = vmul.f32 0.70710677, %v5297_v2  ;;  %v5326_v31 = vld [vmem:[#allocation2 + $0xb2] sm:$0xff] }
 0x291   : > { %v5313_v20 = vand.u32 2147483647, %v5304_v34  ;;  %v4189_v35 = vpop.eup %4188  ;;  %v1593_v8 = vadd.f32 1.0, %v1561_v55  ;;  %v1207_v21 = vmul.f32 %v1175_v36, %v5248_v7  ;;  %v1368_v15 = vsub.f32 0.0, %v5213_v12 }
 0x292   : > { %v2081_v38 = vadd.f32 %v2049_v1, %v2013_v25  ;;  %v1082_v29 = vmul.f32 1.0614054, %v5308_v10  ;;  %v3392_v14 = vmul.f32 %v4189_v35, %v3232_v26  ;;  %v2221_v41 = vmul.f32 %v4822_v33, %v5306_v30 }
 0x293   : > { %v893_v17 = vmul.f32 0.3275911, %v5313_v20  ;;  %v5329_v25 = vmul.f32 %v1593_v8, %v5185_v54  ;;  %v1239_v1 = vadd.f32 -0.28449672, %v1207_v21  ;;  %4196 = vpow2.f32 %v1453_v62  ;;  %v4052_v21 = vpop.f32.mrf.mxu0 }
 0x294   : > { %v2185_v61 = vadd.f32 %v2153_v0, %v2081_v38  ;;  %v1114_v55 = vadd.f32 -1.4531521, %v1082_v29  ;;  %v2289_v53 = vmul.f32 %v4826_v37, %v5318_v45  ;;  %v5336_v38 = vand.u32 2147483647, %v5316_v59 }
 0x295   : > { %7665 = vst [vmem:[#allocation29_spill] sm:$0xff] %v5329_v25  ;;  %v5333_v48 = vadd.f32 1.0, %v893_v17  ;;  %v7605_v26 = vrot.slane %v5329_v25, 7  ;;  %v1271_v35 = vmul.f32 %v1239_v1, %v5248_v7  ;;  %v1400_v8 = vmul.f32 %v1368_v15, %v5213_v12  ;;  %v5346_v17 = vld [vmem:[#allocation2 + $0xca] sm:$0xff] }
 0x296   : > { %v2253_v36 = vadd.f32 %v2221_v41, %v2185_v61  ;;  %v4191_v0 = vpop.eup %4190  ;;  %v1146_v54 = vmul.f32 %v1114_v55, %v5308_v10  ;;  %v2461_v41 = vmul.f32 %v4830_v39, %v5326_v31  ;;  %vm794_vm12 = vcmp.ge.f32.partialorder %v5150_v22, 0.0 }
 0x297   : > { %v4193_v62 = vpop.eup %4192  ;;  %v2884_v29 = vmul.f32 %v4191_v0, %v5246_v27  ;;  %4198 = vrcp.f32 %v5333_v48  ;;  %v1786_v1 = vsel %vm1680_vm8, 0.0, %v7605_v26  ;;  %v1303_v56 = vadd.f32 0.2548296, %v1271_v35 }
 0x298   : > { %v2321_v61 = vadd.f32 %v2289_v53, %v2253_v36  ;;  %v1178_v55 = vadd.f32 1.4214138, %v1146_v54  ;;  %v984_v12 = vmul.f32 %v4193_v62, %v5240_v58  ;;  %1837 = vst.msk [vmem:[#allocation2 + $0xf0] sm:$0xff] %vm1639_vm9, %v1786_v1  ;;  %v891_v27 = vmul.f32 0.3275911, %v5336_v38 }
 0x299   : > { %v2916_v15 = vsub.f32 2.0, %v2884_v29  ;;  %v5355_v53 = vadd.f32 %v5025_v6, %v4052_v21  ;;  %v3424_v36 = vsub.f32 1.0, %v3392_v14  ;;  %v1335_v42 = vmul.f32 %v1303_v56, %v5248_v7 }
 0x29a   : > { %v2425_v3 = vadd.f32 %v2393_v52, %v2321_v61  ;;  %v1210_v40 = vmul.f32 %v1178_v55, %v5308_v10  ;;  %v1016_v23 = vsub.f32 2.0, %v984_v12  ;;  %v4195_v26 = vpop.eup %4194  ;;  %v2529_v58 = vmul.f32 %v4929_v13, %v5346_v17 }
 0x29b   : > { %v5359_v35 = vmul.f32 %v4191_v0, %v2916_v15  ;;  %v5363_v52 = vadd.f32 1.0, %v891_v27  ;;  %v1495_v29 = vmul.f32 %v4195_v26, %v1335_v42  ;;  %v1449_v21 = vmul.f32 1.442695, %v1400_v8 }
 0x29c   : > { %v2493_v54 = vadd.f32 %v2461_v41, %v2425_v3  ;;  %v1242_v61 = vadd.f32 -0.28449672, %v1210_v40  ;;  %v5365_v1 = vmul.f32 %v4193_v62, %v1016_v23  ;;  %v5370_v7 = vmul.f32 0.70710677, %v5355_v53 }
 0x29d   : > { %v2980_v14 = vmul.f32 1.0614054, %v5359_v35  ;;  %4200 = vrcp.f32 %v5363_v52  ;;  %v1527_v0 = vsub.f32 1.0, %v1495_v29  ;;  %v3456_v40 = vmul.f32 %v3424_v36, %v5243_v46 }
 0x29e   : > { %v2561_v56 = vadd.f32 %v2529_v58, %v2493_v54  ;;  %v1274_v13 = vmul.f32 %v1242_v61, %v5308_v10  ;;  %v1080_v3 = vmul.f32 1.0614054, %v5365_v1  ;;  %v5380_v42 = vmul.f32 0.5, %v5161_v9 }
 0x29f   : > { %v5383_v26 = vand.u32 2147483647, %v5370_v7  ;;  %v1559_v8 = vmul.f32 %v1527_v0, %v5254_v47  ;;  %vm792_vm13 = vcmp.ge.f32.partialorder %v5181_v63, 0.0  ;;  %v3012_v55 = vadd.f32 -1.4531521, %v2980_v14 }
 0x2a0   : > { %v5377_v23 = vadd.f32 %v4947_v57, %v2561_v56  ;;  %v1306_v62 = vadd.f32 0.2548296, %v1274_v13  ;;  %v1112_v22 = vadd.f32 -1.4531521, %v1080_v3  ;;  %v4197_v41 = vpop.eup %4196  ;;  %v826_v57 = vsel %vm794_vm12, 1.0, %v7645_v18 }
 0x2a1   : > { %4202 = vpow2.f32 %v1449_v21  ;;  %v1591_v46 = vadd.f32 1.0, %v1559_v8  ;;  %v894_v27 = vmul.f32 0.3275911, %v5383_v26  ;;  %v3488_v47 = vadd.f32 1.0, %v3456_v40 }
 0x2a2   : > { %v5388_v12 = vmul.f32 0.70710677, %v5377_v23  ;;  %v1338_v9 = vmul.f32 %v1306_v62, %v5308_v10  ;;  %v1144_v15 = vmul.f32 %v1112_v22, %v5365_v1  ;;  %v5395_v36 = vmul.f32 0.5, %v5190_v49 }
 0x2a3   : > { %v5401_v54 = vsel %vm792_vm13, 1.0, %v7645_v18  ;;  %v3268_v29 = vsub.f32 0.0, %v5223_v44  ;;  %v5405_v61 = vmul.f32 %v1591_v46, %v5251_v50  ;;  %v3044_v14 = vmul.f32 %v3012_v55, %v5359_v35 }
 0x2a4   : > { %v5398_v63 = vand.u32 2147483647, %v5388_v12  ;;  %v4199_v58 = vpop.eup %4198  ;;  %v1498_v10 = vmul.f32 %v4197_v41, %v1338_v9  ;;  %v1176_v21 = vadd.f32 1.4214138, %v1144_v15  ;;  %v1373_v0 = vsub.f32 0.0, %v5313_v20  ;;  %v667_v41 = vpop.f32.mrf.mxu0 }
 0x2a5   : > { %7666 = vst [vmem:[#allocation30_spill] sm:$0xff] %v5405_v61  ;;  %v989_v49 = vmul.f32 %v4199_v58, %v5333_v48  ;;  %v1705_v13 = vrot.slane %v5405_v61, 7  ;;  %v5413_v8 = vadd.f32 1.0, %v894_v27  ;;  %v3520_v50 = vmul.f32 %v3488_v47, %v5197_v11 }
 0x2a6   : > { %v2792_v56 = vmul.f32 0.3275911, %v5398_v63  ;;  %v1530_v3 = vsub.f32 1.0, %v1498_v10  ;;  %v1208_v40 = vmul.f32 %v1176_v21, %v5365_v1  ;;  %vm2692_vm14 = vcmp.ge.f32.partialorder %v5210_v60, 0.0 }
 0x2a7   : > { %v1021_v22 = vsub.f32 2.0, %v989_v49  ;;  %v1785_v48 = vsel %vm1680_vm8, 0.0, %v1705_v13  ;;  %4204 = vrcp.f32 %v5413_v8  ;;  %v3076_v9 = vadd.f32 1.4214138, %v3044_v14 }
 0x2a8   : > { %v5417_v62 = vadd.f32 1.0, %v2792_v56  ;;  %v1562_v55 = vmul.f32 %v1530_v3, %v826_v57  ;;  %v1240_v46 = vadd.f32 -0.28449672, %v1208_v40  ;;  %v3300_v15 = vmul.f32 %v3268_v29, %v5223_v44  ;;  %1834 = vst.msk [vmem:[#allocation2 + $0xd8] sm:$0xff] %vm1639_vm9, %v1785_v48  ;;  %v7667_v29 = vld [vmem:[#allocation10_spill] sm:$0xff] }
 0x2a9   : > { %v5425_v11 = vmul.f32 %v4199_v58, %v1021_v22  ;;  %v1405_v27 = vmul.f32 %v1373_v0, %v5313_v20  ;;  %v5431_v57 = vadd.f32 %v5025_v6, %v667_v41  ;;  %v5436_v14 = vsel %vm2692_vm14, 1.0, %v7645_v18 }
 0x2aa   : > { %v4201_v47 = vpop.eup %4200  ;;  %4206 = vrcp.f32 %v5417_v62  ;;  %v1594_v10 = vadd.f32 1.0, %v1562_v55  ;;  %v1272_v21 = vmul.f32 %v1240_v46, %v5365_v1  ;;  %v1371_v20 = vsub.f32 0.0, %v5336_v38 }
 0x2ab   : > { %v1085_v44 = vmul.f32 1.0614054, %v5425_v11  ;;  %v987_v58 = vmul.f32 %v4201_v47, %v5363_v52  ;;  %v5442_v56 = vadd.f32 %v3520_v50, %v7667_v29  ;;  %v5448_v3 = vmul.f32 0.5, %v5283_v16 }
 0x2ac   : > { %v5445_v49 = vmul.f32 %v1594_v10, %v5257_v5  ;;  %v1304_v0 = vadd.f32 0.2548296, %v1272_v21  ;;  %v3108_v60 = vmul.f32 %v3076_v9, %v5359_v35  ;;  %v1459_v22 = vmul.f32 1.442695, %v1405_v27 }
 0x2ad   : > { %7668 = vst [vmem:[#allocation10_spill] sm:$0xff] %v5442_v56  ;;  %v1117_v40 = vadd.f32 -1.4531521, %v1085_v44  ;;  %v1019_v41 = vsub.f32 2.0, %v987_v58  ;;  %v3341_v55 = vmul.f32 1.442695, %v3300_v15  ;;  %v5458_v5 = vmul.f32 %v4813_v32, %v5285_v24 }
 0x2ae   : > { %7669 = vst [vmem:[#allocation31_spill] sm:$0xff] %v5445_v49  ;;  %v4203_v48 = vpop.eup %4202  ;;  %v1709_v52 = vrot.slane %v5445_v49, 7  ;;  %v1336_v46 = vmul.f32 %v1304_v0, %v5365_v1  ;;  %v5454_v50 = vmul.f32 0.70710677, %v5431_v57  ;;  %v1403_v9 = vmul.f32 %v1371_v20, %v5336_v38 }
 0x2af   : > { %7670 = vst [vmem:[#allocation32_spill] sm:$0xff] %v5458_v5  ;;  %v1149_v16 = vmul.f32 %v1117_v40, %v5425_v11  ;;  %v5461_v10 = vmul.f32 %v4201_v47, %v1019_v41  ;;  %v5466_v15 = vmul.f32 %v4822_v33, %v5318_v45  ;;  %v7672_v27 = vrot.slane %v5329_v25, 7 }
 0x2b0   : > { %v1802_v21 = vsel %vm1680_vm8, %v1709_v52, 0.0  ;;  %v1496_v44 = vmul.f32 %v4203_v48, %v1336_v46  ;;  %v3140_v58 = vadd.f32 -0.28449672, %v3108_v60  ;;  %4208 = vpow2.f32 %v1459_v22  ;;  %v4055_v22 = vpop.f32.mrf.mxu0 }
 0x2b1   : > { %7671 = vst [vmem:[#allocation33_spill] sm:$0xff] %v5466_v15  ;;  %v1710_v1 = vsel %vm1680_vm8, %v7672_v27, %v1709_v52  ;;  %1839 = vst.msk [vmem:[#allocation2 + $0x100] sm:$0x3] %vm1642_vm10, %v1802_v21  ;;  %v1181_v47 = vadd.f32 1.4214138, %v1149_v16  ;;  %4210 = vpow2.f32 %v3341_v55  ;;  %v5477_v20 = vmul.f32 %v4830_v39, %v5346_v17 }
 0x2b2   : > { %1838 = vst.msk [vmem:[#allocation2 + $0xf8] sm:$0xff] %vm1639_vm9, %v1710_v1  ;;  %v1083_v38 = vmul.f32 1.0614054, %v5461_v10  ;;  %v1528_v29 = vsub.f32 1.0, %v1496_v44  ;;  %v5480_v0 = vand.u32 2147483647, %v5454_v50  ;;  %v5484_v60 = vmul.f32 %v4807_v4, %v5285_v24 }
 0x2b3   : > { %7673 = vst [vmem:[#allocation34_spill] sm:$0xff] %v5477_v20  ;;  %v1213_v40 = vmul.f32 %v1181_v47, %v5425_v11  ;;  %v1455_v48 = vmul.f32 1.442695, %v1403_v9  ;;  %v5490_v55 = vmul.f32 %v4817_v28, %v5318_v45  ;;  %v5494_v46 = vmul.f32 %v4828_v43, %v5346_v17 }
 0x2b4   : > { %v1115_v41 = vadd.f32 -1.4531521, %v1083_v38  ;;  %v1560_v52 = vmul.f32 %v1528_v29, %v5401_v54  ;;  %v892_v16 = vmul.f32 0.3275911, %v5480_v0  ;;  %v4205_v27 = vpop.eup %4204  ;;  %v3172_v24 = vmul.f32 %v3140_v58, %v5359_v35 }
 0x2b5   : > { %vm797_vm15 = vcmp.ge.f32.partialorder %v5304_v34, 0.0  ;;  %v1245_v1 = vadd.f32 -0.28449672, %v1213_v40  ;;  %v990_v54 = vmul.f32 %v4205_v27, %v5413_v8  ;;  %v5504_v45 = vadd.f32 %v5025_v6, %v4055_v22 }
 0x2b6   : > { %v1147_v9 = vmul.f32 %v1115_v41, %v5461_v10  ;;  %v1592_v21 = vadd.f32 1.0, %v1560_v52  ;;  %v5501_v44 = vadd.f32 1.0, %v892_v16  ;;  %4212 = vpow2.f32 %v1455_v48 }
 0x2b7   : > { %v4207_v17 = vpop.eup %4206  ;;  %v1277_v47 = vmul.f32 %v1245_v1, %v5425_v11  ;;  %v1374_v58 = vsub.f32 0.0, %v5383_v26  ;;  %vm795_vm0 = vcmp.ge.f32.partialorder %v5316_v59, 0.0  ;;  %v1022_v40 = vsub.f32 2.0, %v990_v54 }
 0x2b8   : > { %v1179_v38 = vadd.f32 1.4214138, %v1147_v9  ;;  %v5509_v29 = vmul.f32 %v1592_v21, %v5380_v42  ;;  %4214 = vrcp.f32 %v5501_v44  ;;  %v5515_v8 = vmul.f32 %v4817_v28, %v5306_v30 }
 0x2b9   : > { %v3272_v41 = vsub.f32 0.0, %v5398_v63  ;;  %v829_v48 = vsel %vm797_vm15, 1.0, %v7645_v18  ;;  %v5522_v22 = vmul.f32 0.5, %v5297_v2  ;;  %v3204_v42 = vadd.f32 0.2548296, %v3172_v24 }
 0x2ba   : > { %7674 = vst [vmem:[#allocation35_spill] sm:$0xff] %v5509_v29  ;;  %7675 = vst [vmem:[#allocation36_spill] sm:$0xff] %v5515_v8  ;;  %v2888_v52 = vmul.f32 %v4207_v17, %v5417_v62  ;;  %v1706_v59 = vrot.slane %v5509_v29, 7  ;;  %v5527_v16 = vmul.f32 0.70710677, %v5504_v45  ;;  %v5530_v30 = vsel %vm795_vm0, 1.0, %v7645_v18 }
 0x2bb   : > { %v1309_v1 = vadd.f32 0.2548296, %v1277_v47  ;;  %v1211_v9 = vmul.f32 %v1179_v38, %v5461_v10  ;;  %v1406_v34 = vmul.f32 %v1374_v58, %v5383_v26  ;;  %v5539_v62 = vmul.f32 0.5, %v5355_v53  ;;  %v680_v38 = vpop.f32.mrf.mxu0 }
 0x2bc   : > { %v1707_v2 = vsel %vm1680_vm8, %v1705_v13, %v1706_v59  ;;  %v1801_v24 = vsel %vm1680_vm8, %v1706_v59, 0.0  ;;  %v5541_v21 = vmul.f32 %v4205_v27, %v1022_v40  ;;  %v3304_v54 = vmul.f32 %v3272_v41, %v5398_v63 }
 0x2bd   : > { %1835 = vst.msk [vmem:[#allocation2 + $0xe0] sm:$0xff] %vm1639_vm9, %v1707_v2  ;;  %v1341_v47 = vmul.f32 %v1309_v1, %v5425_v11  ;;  %v1243_v26 = vadd.f32 -0.28449672, %v1211_v9  ;;  %vm798_vm1 = vcmp.ge.f32.partialorder %v5370_v7, 0.0  ;;  %v4209_v13 = vpop.eup %4208  ;;  %v3236_v58 = vmul.f32 %v3204_v42, %v5359_v35 }
 0x2be   : > { %1836 = vst.msk [vmem:[#allocation2 + $0xe8] sm:$0x3] %vm1642_vm10, %v1801_v24  ;;  %v2920_v59 = vsub.f32 2.0, %v2888_v52  ;;  %v1086_v53 = vmul.f32 1.0614054, %v5541_v21  ;;  %v4211_v63 = vpop.eup %4210  ;;  %v5554_v40 = vmul.f32 0.5, %v5377_v23  ;;  %v5560_v35 = vadd.f32 %v5025_v6, %v680_v38 }
 0x2bf   : > { %v5551_v27 = vand.u32 2147483647, %v5527_v16  ;;  %v1501_v41 = vmul.f32 %v4209_v13, %v1341_v47  ;;  %v1275_v11 = vmul.f32 %v1243_v26, %v5461_v10  ;;  %v1461_v1 = vmul.f32 1.442695, %v1406_v34 }
 0x2c0   : > { %vm2696_vm2 = vcmp.ge.f32.partialorder %v5388_v12, 0.0  ;;  %v1118_v9 = vadd.f32 -1.4531521, %v1086_v53  ;;  %v3349_v42 = vmul.f32 1.442695, %v3304_v54  ;;  %v1372_v49 = vsub.f32 0.0, %v5480_v0 }
 0x2c1   : > { %v897_v2 = vmul.f32 0.3275911, %v5551_v27  ;;  %v1533_v52 = vsub.f32 1.0, %v1501_v41  ;;  %v1307_v24 = vadd.f32 0.2548296, %v1275_v11  ;;  %v3396_v25 = vmul.f32 %v4211_v63, %v3236_v58  ;;  %v5578_v58 = vld [vmem:[#allocation2 + $0xf8] sm:$0xff]  ;;  %v4056_v41 = vpop.f32.mrf.mxu0 }
 0x2c2   : > { %v5563_v23 = vmul.f32 %v4207_v17, %v2920_v59  ;;  %v1150_v47 = vmul.f32 %v1118_v9, %v5541_v21  ;;  %v5572_v38 = vsel %vm798_vm1, 1.0, %v7645_v18  ;;  %4216 = vpow2.f32 %v1461_v1 }
 0x2c3   : > { %v5566_v26 = vadd.f32 1.0, %v897_v2  ;;  %v1565_v34 = vmul.f32 %v1533_v52, %v829_v48  ;;  %v1339_v13 = vmul.f32 %v1307_v24, %v5461_v10  ;;  %v4213_v54 = vpop.eup %4212  ;;  %v5576_v53 = vmul.f32 %v4828_v43, %v5326_v31 }
 0x2c4   : > { %v1879_v17 = vld [vmem:[#allocation2 + $0xe0] sm:$0xff]  ;;  %v1182_v59 = vadd.f32 1.4214138, %v1150_v47  ;;  %v5582_v48 = vmul.f32 0.70710677, %v5560_v35  ;;  %v5587_v7 = vsel %vm2696_vm2, 1.0, %v7645_v18  ;;  %v1404_v31 = vmul.f32 %v1372_v49, %v5480_v0 }
 0x2c5   : > { %7676 = vst [vmem:[#allocation37_spill] sm:$0xff] %v5576_v53  ;;  %4218 = vrcp.f32 %v5566_v26  ;;  %v4215_v10 = vpop.eup %4214  ;;  %v1985_v63 = vmul.f32 %v4813_v32, %v1879_v17  ;;  %v3428_v11 = vsub.f32 1.0, %v3396_v25  ;;  %v2984_v1 = vmul.f32 1.0614054, %v5563_v23 }
 0x2c6   : > { %4220 = vpow2.f32 %v3349_v42  ;;  %v1597_v9 = vadd.f32 1.0, %v1565_v34  ;;  %v1499_v2 = vmul.f32 %v4213_v54, %v1339_v13  ;;  %v2053_v24 = vmul.f32 %v4815_v19, %v5578_v58  ;;  %v5597_v42 = vld [vmem:[#allocation2 + $0xe1] sm:$0xff] }
 0x2c7   : > { %v2017_v52 = vadd.f32 %v1985_v63, %v5484_v60  ;;  %v1214_v12 = vmul.f32 %v1182_v59, %v5541_v21  ;;  %v988_v47 = vmul.f32 %v4215_v10, %v5501_v44  ;;  %v5603_v25 = vand.u32 2147483647, %v5582_v48  ;;  %v5608_v59 = vld [vmem:[#allocation2 + $0xf9] sm:$0xff] }
 0x2c8   : > { %v5600_v17 = vmul.f32 %v1597_v9, %v5448_v3  ;;  %v1531_v49 = vsub.f32 1.0, %v1499_v2  ;;  %v5606_v0 = vadd.f32 %v5025_v6, %v4056_v41  ;;  %v1457_v54 = vmul.f32 1.442695, %v1404_v31 }
 0x2c9   : > { %v2085_v60 = vadd.f32 %v2053_v24, %v2017_v52  ;;  %v1246_v34 = vadd.f32 -0.28449672, %v1214_v12  ;;  %v1020_v13 = vsub.f32 2.0, %v988_v47  ;;  %v3016_v63 = vadd.f32 -1.4531521, %v2984_v1  ;;  %v5619_v52 = vld [vmem:[#allocation2 + $0xfa] sm:$0xff] }
 0x2ca   : > { %7677 = vst [vmem:[#allocation38_spill] sm:$0xff] %v5600_v17  ;;  %v7609_v44 = vrot.slane %v5600_v17, 7  ;;  %v1563_v61 = vmul.f32 %v1531_v49, %v5530_v30  ;;  %v895_v3 = vmul.f32 0.3275911, %v5603_v25  ;;  %v2225_v2 = vmul.f32 %v4822_v33, %v5597_v42 }
 0x2cb   : > { %v2189_v9 = vadd.f32 %v5490_v55, %v2085_v60  ;;  %v1278_v6 = vmul.f32 %v1246_v34, %v5541_v21  ;;  %v5617_v41 = vmul.f32 %v4215_v10, %v1020_v13  ;;  %v5627_v30 = vmul.f32 0.70710677, %v5606_v0  ;;  %v5635_v34 = vld [vmem:[#allocation2 + $0xe2] sm:$0xff] }
 0x2cc   : > { %v1788_v31 = vsel %vm1680_vm8, 0.0, %v7609_v44  ;;  %v1595_v1 = vadd.f32 1.0, %v1563_v61  ;;  %v5624_v24 = vadd.f32 1.0, %v895_v3  ;;  %v2293_v12 = vmul.f32 %v4826_v37, %v5608_v59  ;;  %v5644_v3 = vld [vmem:[%s7580_s5 + $0x8] ss:$0 sm:$0xff] }
 0x2cd   : > { %v2257_v55 = vadd.f32 %v2225_v2, %v2189_v9  ;;  %1843 = vst.msk [vmem:[#allocation2 + $0x120] sm:$0xff] %vm1639_vm9, %v1788_v31  ;;  %v1310_v10 = vadd.f32 0.2548296, %v1278_v6  ;;  %v1084_v47 = vmul.f32 1.0614054, %v5617_v41  ;;  %v3460_v49 = vmul.f32 %v3428_v11, %v5436_v14  ;;  %v683_v31 = vpop.f32.mrf.mxu0 }
 0x2ce   : > { %v3048_v60 = vmul.f32 %v3016_v63, %v5563_v23  ;;  %v5638_v61 = vmul.f32 %v1595_v1, %v5522_v22  ;;  %4222 = vrcp.f32 %v5624_v24  ;;  %v2533_v9 = vmul.f32 %v5644_v3, %v5619_v52 }
 0x2cf   : > { %v2325_v13 = vadd.f32 %v2293_v12, %v2257_v55  ;;  %v1342_v14 = vmul.f32 %v1310_v10, %v5541_v21  ;;  %v1116_v11 = vadd.f32 -1.4531521, %v1084_v47  ;;  %v4217_v63 = vpop.eup %4216  ;;  %4224 = vpow2.f32 %v1457_v54 }
 0x2d0   : > { %7678 = vst [vmem:[#allocation39_spill] sm:$0xff] %v5638_v61  ;;  %v7610_v2 = vrot.slane %v5638_v61, 7  ;;  %v1377_v22 = vsub.f32 0.0, %v5551_v27  ;;  %v5652_v6 = vand.u32 2147483647, %v5627_v30  ;;  %v2465_v12 = vmul.f32 %v4830_v39, %v5635_v34 }
 0x2d1   : > { %v2429_v55 = vadd.f32 %v5494_v46, %v2325_v13  ;;  %v1502_v44 = vmul.f32 %v4217_v63, %v1342_v14  ;;  %v1148_v21 = vmul.f32 %v1116_v11, %v5617_v41  ;;  %v3080_v47 = vadd.f32 1.4214138, %v3048_v60  ;;  %v5669_v14 = vld [vmem:[%s7579_s4] ss:$0 sm:$0xff] }
 0x2d2   : > { %v4219_v1 = vpop.eup %4218  ;;  %v1787_v54 = vsel %vm1680_vm8, 0.0, %v7610_v2  ;;  %v898_v53 = vmul.f32 0.3275911, %v5652_v6  ;;  %v5672_v60 = vadd.f32 %v5669_v14, %v683_v31  ;;  %vm796_vm3 = vcmp.ge.f32.partialorder %v5454_v50, 0.0 }
 0x2d3   : > { %v5658_v10 = vpop.eup %4220  ;;  %v993_v20 = vmul.f32 %v4219_v1, %v5566_v26  ;;  %v2497_v15 = vadd.f32 %v2465_v12, %v2429_v55  ;;  %1840 = vst.msk [vmem:[#allocation2 + $0x108] sm:$0xff] %vm1639_vm9, %v1787_v54  ;;  %v1534_v46 = vsub.f32 1.0, %v1502_v44  ;;  %v1180_v13 = vadd.f32 1.4214138, %v1148_v21 }
 0x2d4   : > { %v1409_v26 = vmul.f32 %v1377_v22, %v5551_v27  ;;  %v5676_v63 = vadd.f32 1.0, %v898_v53  ;;  %vm801_vm4 = vcmp.ge.f32.partialorder %v5527_v16, 0.0  ;;  %v3492_v21 = vadd.f32 1.0, %v3460_v49 }
 0x2d5   : > { %v1025_v11 = vsub.f32 2.0, %v993_v20  ;;  %v2565_v55 = vadd.f32 %v2533_v9, %v2497_v15  ;;  %v1566_v12 = vmul.f32 %v1534_v46, %v5572_v38  ;;  %v1212_v44 = vmul.f32 %v1180_v13, %v5617_v41  ;;  %v5688_v20 = vld [vmem:[%s7581_s6] ss:$0 sm:$0xff] }
 0x2d6   : > { %v3112_v54 = vmul.f32 %v3080_v47, %v5563_v23  ;;  %4226 = vrcp.f32 %v5676_v63  ;;  %v5694_v53 = vmul.f32 0.70710677, %v5672_v60  ;;  %v5697_v49 = vmul.f32 0.5, %v5431_v57 }
 0x2d7   : > { %v5682_v2 = vmul.f32 %v4219_v1, %v1025_v11  ;;  %v5691_v15 = vadd.f32 %v5688_v20, %v2565_v55  ;;  %v1598_v27 = vadd.f32 1.0, %v1566_v12  ;;  %v1244_v38 = vadd.f32 -0.28449672, %v1212_v44  ;;  %v4059_v55 = vpop.f32.mrf.mxu0 }
 0x2d8   : > { %v828_v9 = vsel %vm796_vm3, 1.0, %v7645_v18  ;;  %v1467_v31 = vmul.f32 1.442695, %v1409_v26  ;;  %v5710_v46 = vmul.f32 0.5, %v5504_v45  ;;  %v5715_v57 = vsel %vm801_vm4, 1.0, %v7645_v18 }
 0x2d9   : > { %v1089_v22 = vmul.f32 1.0614054, %v5682_v2  ;;  %v5704_v1 = vmul.f32 0.70710677, %v5691_v15  ;;  %v5707_v47 = vmul.f32 %v1598_v27, %v5539_v62  ;;  %v3524_v50 = vmul.f32 %v3492_v21, %v5395_v36 }
 0x2da   : > { %v3144_v13 = vadd.f32 -0.28449672, %v3112_v54  ;;  %v1276_v11 = vmul.f32 %v1244_v38, %v5617_v41  ;;  %v1375_v45 = vsub.f32 0.0, %v5603_v25  ;;  %v5725_v27 = vand.u32 2147483647, %v5694_v53 }
 0x2db   : > { %7679 = vst [vmem:[#allocation40_spill] sm:$0xff] %v5707_v47  ;;  %v1121_v26 = vadd.f32 -1.4531521, %v1089_v22  ;;  %v4223_v12 = vpop.eup %4222  ;;  %v5720_v44 = vand.u32 2147483647, %v5704_v1  ;;  %v1715_v62 = vrot.slane %v5707_v47, 7  ;;  %4228 = vpow2.f32 %v1467_v31 }
 0x2dc   : > { %v1308_v16 = vadd.f32 0.2548296, %v1276_v11  ;;  %v991_v36 = vmul.f32 %v4223_v12, %v5624_v24  ;;  %v4225_v21 = vpop.eup %4224  ;;  %v7680_v38 = vrot.slane %v5600_v17, 7  ;;  %v5735_v5 = vadd.f32 %v5669_v14, %v4059_v55 }
 0x2dd   : > { %v1153_v8 = vmul.f32 %v1121_v26, %v5682_v2  ;;  %v2796_v54 = vmul.f32 0.3275911, %v5720_v44  ;;  %v1804_v47 = vsel %vm1680_vm8, %v1715_v62, 0.0  ;;  %v896_v26 = vmul.f32 0.3275911, %v5725_v27 }
 0x2de   : > { %v1716_v22 = vsel %vm1680_vm8, %v7680_v38, %v1715_v62  ;;  %1845 = vst.msk [vmem:[#allocation2 + $0x130] sm:$0x3] %vm1642_vm10, %v1804_v47  ;;  %v1340_v31 = vmul.f32 %v1308_v16, %v5617_v41  ;;  %v1023_v24 = vsub.f32 2.0, %v991_v36  ;;  %v5742_v56 = vadd.f32 %v3524_v50, %v5036_v51 }
 0x2df   : > { %1844 = vst.msk [vmem:[#allocation2 + $0x128] sm:$0xff] %vm1639_vm9, %v1716_v22  ;;  %v1185_v11 = vadd.f32 1.4214138, %v1153_v8  ;;  %v5746_v38 = vmul.f32 %v4813_v32, %v5578_v58  ;;  %v5748_v62 = vadd.f32 1.0, %v2796_v54  ;;  %v1407_v55 = vmul.f32 %v1375_v45, %v5603_v25 }
 0x2e0   : > { %7681 = vst [vmem:[#allocation41_spill] sm:$0xff] %v5742_v56  ;;  %v1500_v22 = vmul.f32 %v4225_v21, %v1340_v31  ;;  %v5752_v17 = vmul.f32 %v4223_v12, %v1023_v24  ;;  %v5754_v8 = vadd.f32 1.0, %v896_v26  ;;  %v3176_v41 = vmul.f32 %v3144_v13, %v5563_v23 }
 0x2e1   : > { %7682 = vst [vmem:[#allocation42_spill] sm:$0xff] %v5746_v38  ;;  %v1217_v47 = vmul.f32 %v1185_v11, %v5682_v2  ;;  %4230 = vrcp.f32 %v5748_v62  ;;  %v1378_v51 = vsub.f32 0.0, %v5652_v6  ;;  %v5760_v50 = vmul.f32 0.70710677, %v5735_v5 }
 0x2e2   : > { %v1532_v16 = vsub.f32 1.0, %v1500_v22  ;;  %v1087_v25 = vmul.f32 1.0614054, %v5752_v17  ;;  %4232 = vrcp.f32 %v5754_v8  ;;  %v5766_v12 = vmul.f32 %v4822_v33, %v5608_v59  ;;  %v696_v22 = vpop.f32.mrf.mxu0 }
 0x2e3   : > { %v1249_v36 = vadd.f32 -0.28449672, %v1217_v47  ;;  %v4227_v45 = vpop.eup %4226  ;;  %v5770_v13 = vmul.f32 %v4830_v39, %v5619_v52  ;;  %v1463_v21 = vmul.f32 1.442695, %v1407_v55  ;;  %v5773_v54 = vand.u32 2147483647, %v5760_v50 }
 0x2e4   : > { %7683 = vst [vmem:[#allocation43_spill] sm:$0xff] %v5766_v12  ;;  %v1564_v31 = vmul.f32 %v1532_v16, %v828_v9  ;;  %v1119_v24 = vadd.f32 -1.4531521, %v1087_v25  ;;  %v994_v26 = vmul.f32 %v4227_v45, %v5676_v63  ;;  %v3208_v47 = vadd.f32 0.2548296, %v3176_v41 }
 0x2e5   : > { %7684 = vst [vmem:[#allocation44_spill] sm:$0xff] %v5770_v13  ;;  %v1281_v11 = vmul.f32 %v1249_v36, %v5682_v2  ;;  %v5779_v38 = vmul.f32 %v4807_v4, %v5578_v58  ;;  %v5783_v12 = vmul.f32 %v4817_v28, %v5608_v59  ;;  %v901_v55 = vmul.f32 0.3275911, %v5773_v54 }
 0x2e6   : > { %v1596_v13 = vadd.f32 1.0, %v1564_v31  ;;  %v5788_v9 = vmul.f32 %v4828_v43, %v5619_v52  ;;  %vm799_vm5 = vcmp.ge.f32.partialorder %v5582_v48, 0.0  ;;  %v1410_v63 = vmul.f32 %v1378_v51, %v5652_v6 }
 0x2e7   : > { %v1313_v41 = vadd.f32 0.2548296, %v1281_v11  ;;  %v5793_v16 = vmul.f32 0.5, %v5560_v35  ;;  %v5796_v58 = vmul.f32 0.5, %v5606_v0  ;;  %v5799_v59 = vadd.f32 %v5669_v14, %v696_v22 }
 0x2e8   : > { %v5802_v36 = vmul.f32 %v1596_v13, %v5697_v49  ;;  %v1151_v52 = vmul.f32 %v1119_v24, %v5752_v17  ;;  %4234 = vpow2.f32 %v1463_v21  ;;  %v1026_v25 = vsub.f32 2.0, %v994_v26  ;;  %v4229_v48 = vpop.eup %4228 }
 0x2e9   : > { %v3240_v6 = vmul.f32 %v3208_v47, %v5563_v23  ;;  %v1345_v51 = vmul.f32 %v1313_v41, %v5682_v2  ;;  %v5808_v35 = vsel %vm799_vm5, 1.0, %v7645_v18  ;;  %v5810_v0 = vadd.f32 1.0, %v901_v55 }
 0x2ea   : > { %7685 = vst [vmem:[#allocation45_spill] sm:$0xff] %v5802_v36  ;;  %v1712_v31 = vrot.slane %v5802_v36, 7  ;;  %v1183_v11 = vadd.f32 1.4214138, %v1151_v52  ;;  %v5813_v22 = vmul.f32 %v4227_v45, %v1026_v25  ;;  %v1469_v49 = vmul.f32 1.442695, %v1410_v63 }
 0x2eb   : > { %v1505_v13 = vmul.f32 %v4229_v48, %v1345_v51  ;;  %v1376_v21 = vsub.f32 0.0, %v5725_v27  ;;  %4236 = vrcp.f32 %v5810_v0  ;;  %v5818_v23 = vmul.f32 0.70710677, %v5799_v59 }
 0x2ec   : > { %v7686_v2 = vrot.slane %v5638_v61, 7  ;;  %v1803_v26 = vsel %vm1680_vm8, %v1712_v31, 0.0  ;;  %v1215_v47 = vmul.f32 %v1183_v11, %v5752_v17  ;;  %v1090_v45 = vmul.f32 1.0614054, %v5813_v22 }
 0x2ed   : > { %v5828_v55 = vmul.f32 %v4817_v28, %v5597_v42  ;;  %v3276_v63 = vsub.f32 0.0, %v5720_v44  ;;  %1842 = vst.msk [vmem:[#allocation2 + $0x118] sm:$0x3] %vm1642_vm10, %v1803_v26  ;;  %v1537_v41 = vsub.f32 1.0, %v1505_v13  ;;  %v5834_v52 = vand.u32 2147483647, %v5818_v23 }
 0x2ee   : > { %v1713_v24 = vsel %vm1680_vm8, %v7686_v2, %v1712_v31  ;;  %v4231_v25 = vpop.eup %4230  ;;  %v5837_v48 = vmul.f32 %v5658_v10, %v3240_v6  ;;  %v1247_v51 = vadd.f32 -0.28449672, %v1215_v47  ;;  %vm802_vm6 = vcmp.ge.f32.partialorder %v5627_v30, 0.0 }
 0x2ef   : > { %7687 = vst [vmem:[#allocation46_spill] sm:$0xff] %v5828_v55  ;;  %1841 = vst.msk [vmem:[#allocation2 + $0x110] sm:$0xff] %vm1639_vm9, %v1713_v24  ;;  %v1122_v31 = vadd.f32 -1.4531521, %v1090_v45  ;;  %v4233_v42 = vpop.eup %4232  ;;  %v2892_v11 = vmul.f32 %v4231_v25, %v5748_v62  ;;  %v1569_v2 = vmul.f32 %v1537_v41, %v5715_v57  ;;  %v1408_v24 = vmul.f32 %v1376_v21, %v5725_v27  ;;  %v4060_v62 = vpop.f32.mrf.mxu0 }
 0x2f0   : > { %v899_v13 = vmul.f32 0.3275911, %v5834_v52  ;;  %v1279_v26 = vmul.f32 %v1247_v51, %v5752_v17  ;;  %4238 = vpow2.f32 %v1469_v49  ;;  %v992_v10 = vmul.f32 %v4233_v42, %v5754_v8  ;;  %v5857_v49 = vld [vmem:[#allocation2 + $0x128] sm:$0xff] }
 0x2f1   : > { %v1154_v61 = vmul.f32 %v1122_v31, %v5813_v22  ;;  %v2924_v6 = vsub.f32 2.0, %v2892_v11  ;;  %v3308_v47 = vmul.f32 %v3276_v63, %v5720_v44  ;;  %v1601_v45 = vadd.f32 1.0, %v1569_v2 }
 0x2f2   : > { %v5848_v55 = vadd.f32 1.0, %v899_v13  ;;  %v1311_v56 = vadd.f32 0.2548296, %v1279_v26  ;;  %v5853_v57 = vsel %vm802_vm6, 1.0, %v7645_v18  ;;  %v1024_v21 = vsub.f32 2.0, %v992_v10 }
 0x2f3   : > { %v1186_v27 = vadd.f32 1.4214138, %v1154_v61  ;;  %v5855_v41 = vmul.f32 %v4231_v25, %v2924_v6  ;;  %v5860_v8 = vmul.f32 %v1601_v45, %v5710_v46  ;;  %v1465_v44 = vmul.f32 1.442695, %v1408_v24 }
 0x2f4   : > { %4240 = vrcp.f32 %v5848_v55  ;;  %v1343_v51 = vmul.f32 %v1311_v56, %v5752_v17  ;;  %v5865_v30 = vmul.f32 %v4233_v42, %v1024_v21  ;;  %v5868_v61 = vadd.f32 %v5669_v14, %v4060_v62 }
 0x2f5   : > { %7688 = vst [vmem:[#allocation47_spill] sm:$0xff] %v5860_v8  ;;  %v1218_v31 = vmul.f32 %v1186_v27, %v5813_v22  ;;  %v4235_v25 = vpop.eup %4234  ;;  %v2988_v2 = vmul.f32 1.0614054, %v5855_v41  ;;  %v5872_v46 = vmul.f32 1.442695, %v3308_v47  ;;  %v2057_v13 = vmul.f32 %v4815_v19, %v5857_v49 }
 0x2f6   : > { %v1883_v63 = vld [vmem:[#allocation2 + $0x110] sm:$0xff]  ;;  %v7614_v56 = vrot.slane %v5860_v8, 7  ;;  %v1503_v17 = vmul.f32 %v4235_v25, %v1343_v51  ;;  %v1381_v42 = vsub.f32 0.0, %v5773_v54  ;;  %v1088_v45 = vmul.f32 1.0614054, %v5865_v30 }
 0x2f7   : > { %v1989_v24 = vmul.f32 %v4813_v32, %v1883_v63  ;;  %v3020_v26 = vadd.f32 -1.4531521, %v2988_v2  ;;  %v1250_v6 = vadd.f32 -0.28449672, %v1218_v31  ;;  %v5881_v27 = vld [vmem:[#allocation2 + $0x111] sm:$0xff]  ;;  %4242 = vpow2.f32 %v1465_v44  ;;  %v5890_v2 = vld [vmem:[#allocation2 + $0x129] sm:$0xff] }
 0x2f8   : > { %v4237_v62 = vpop.eup %4236  ;;  %7689 = vst [vmem:[#allocation48_spill] sm:$0xff] %v5881_v27  ;;  %v1790_v47 = vsel %vm1680_vm8, 0.0, %v7614_v56  ;;  %v1535_v21 = vsub.f32 1.0, %v1503_v17  ;;  %v5887_v63 = vmul.f32 0.70710677, %v5868_v61  ;;  %v1413_v17 = vmul.f32 %v1381_v42, %v5773_v54 }
 0x2f9   : > { %v2021_v10 = vadd.f32 %v1989_v24, %v5779_v38  ;;  %v3052_v51 = vmul.f32 %v3020_v26, %v5855_v41  ;;  %1849 = vst.msk [vmem:[#allocation2 + $0x150] sm:$0xff] %vm1639_vm9, %v1790_v47  ;;  %v1282_v38 = vmul.f32 %v1250_v6, %v5813_v22  ;;  %v1120_v31 = vadd.f32 -1.4531521, %v1088_v45 }
 0x2fa   : > { %v1567_v24 = vmul.f32 %v1535_v21, %v5808_v35  ;;  %v997_v11 = vmul.f32 %v4237_v62, %v5810_v0  ;;  %v5898_v44 = vand.u32 2147483647, %v5887_v63  ;;  %v2297_v6 = vmul.f32 %v4826_v37, %v5890_v2  ;;  %v5907_v21 = vld [vmem:[#allocation2 + $0x112] sm:$0xff] }
 0x2fb   : > { %v2089_v25 = vadd.f32 %v2057_v13, %v2021_v10  ;;  %v2229_v13 = vmul.f32 %v4822_v33, %v5881_v27  ;;  %v1314_v26 = vadd.f32 0.2548296, %v1282_v38  ;;  %v1152_v10 = vmul.f32 %v1120_v31, %v5865_v30  ;;  %7690 = vst [vmem:[#allocation49_spill] sm:$0xff] %v5907_v21 }
 0x2fc   : > { %v1599_v45 = vadd.f32 1.0, %v1567_v24  ;;  %v1029_v35 = vsub.f32 2.0, %v997_v11  ;;  %v902_v0 = vmul.f32 0.3275911, %v5898_v44  ;;  %v3084_v54 = vadd.f32 1.4214138, %v3052_v51 }
 0x2fd   : > { %v2193_v56 = vadd.f32 %v5783_v12, %v2089_v25  ;;  %v4239_v47 = vpop.eup %4238  ;;  %v1346_v12 = vmul.f32 %v1314_v26, %v5813_v22  ;;  %v1184_v25 = vadd.f32 1.4214138, %v1152_v10  ;;  %v1475_v31 = vmul.f32 1.442695, %v1413_v17  ;;  %v5917_v11 = vld [vmem:[#allocation2 + $0x12a] sm:$0xff] }
 0x2fe   : > { %v5911_v36 = vmul.f32 %v1599_v45, %v5793_v16  ;;  %v5913_v38 = vmul.f32 %v4237_v62, %v1029_v35  ;;  %v5915_v29 = vadd.f32 1.0, %v902_v0  ;;  %v2469_v22 = vmul.f32 %v4830_v39, %v5907_v21  ;;  %v699_v45 = vpop.f32.mrf.mxu0 }
 0x2ff   : > { %v2261_v42 = vadd.f32 %v2229_v13, %v2193_v56  ;;  %v1506_v27 = vmul.f32 %v4239_v47, %v1346_v12  ;;  %v1216_v51 = vmul.f32 %v1184_v25, %v5865_v30  ;;  %v1379_v56 = vsub.f32 0.0, %v5834_v52 }
 0x300   : > { %7691 = vst [vmem:[#allocation50_spill] sm:$0xff] %v5911_v36  ;;  %v7618_v16 = vrot.slane %v5911_v36, 7  ;;  %v1093_v62 = vmul.f32 1.0614054, %v5913_v38  ;;  %4244 = vrcp.f32 %v5915_v29  ;;  %v3116_v17 = vmul.f32 %v3084_v54, %v5855_v41 }
 0x301   : > { %v2329_v24 = vadd.f32 %v2297_v6, %v2261_v42  ;;  %v4241_v13 = vpop.eup %4240  ;;  %v1538_v10 = vsub.f32 1.0, %v1506_v27  ;;  %v1248_v6 = vadd.f32 -0.28449672, %v1216_v51  ;;  %v2537_v35 = vmul.f32 %v5644_v3, %v5917_v11 }
 0x302   : > { %v1789_v0 = vsel %vm1680_vm8, 0.0, %v7618_v16  ;;  %v1125_v47 = vadd.f32 -1.4531521, %v1093_v62  ;;  %v995_v42 = vmul.f32 %v4241_v13, %v5848_v55  ;;  %4246 = vpow2.f32 %v1475_v31 }
 0x303   : > { %v2433_v26 = vadd.f32 %v5788_v9, %v2329_v24  ;;  %1846 = vst.msk [vmem:[#allocation2 + $0x138] sm:$0xff] %vm1639_vm9, %v1789_v0  ;;  %v1570_v54 = vmul.f32 %v1538_v10, %v5853_v57  ;;  %v1280_v9 = vmul.f32 %v1248_v6, %v5865_v30  ;;  %v1411_v24 = vmul.f32 %v1379_v56, %v5834_v52 }
 0x304   : > { %v1157_v27 = vmul.f32 %v1125_v47, %v5913_v38  ;;  %v1027_v25 = vsub.f32 2.0, %v995_v42  ;;  %v5940_v51 = vadd.f32 %v5669_v14, %v699_v45  ;;  %v4243_v16 = vpop.eup %4242  ;;  %v3148_v62 = vadd.f32 -0.28449672, %v3116_v17 }
 0x305   : > { %v2501_v12 = vadd.f32 %v2469_v22, %v2433_v26  ;;  %v1602_v55 = vadd.f32 1.0, %v1570_v54  ;;  %v1312_v22 = vadd.f32 0.2548296, %v1280_v9  ;;  %v7692_v26 = vsub.f32 1.0, %v5837_v48 }
 0x306   : > { %v1189_v10 = vadd.f32 1.4214138, %v1157_v27  ;;  %v5945_v6 = vmul.f32 %v4241_v13, %v1027_v25  ;;  %v5948_v31 = vmul.f32 0.70710677, %v5940_v51  ;;  %4248 = vpow2.f32 %v5872_v46 }
 0x307   : > { %v2569_v21 = vadd.f32 %v2537_v35, %v2501_v12  ;;  %v3464_v57 = vmul.f32 %v7692_v26, %v5587_v7  ;;  %v5955_v52 = vmul.f32 %v1602_v55, %v5796_v58  ;;  %v1344_v56 = vmul.f32 %v1312_v22, %v5865_v30 }
 0x308   : > { %v5960_v48 = vmul.f32 %v4828_v43, %v5635_v34  ;;  %vm800_vm7 = vcmp.ge.f32.partialorder %v5694_v53, 0.0  ;;  %v1221_v7 = vmul.f32 %v1189_v10, %v5913_v38  ;;  %v1091_v13 = vmul.f32 1.0614054, %v5945_v6 }
 0x309   : > { %v5952_v14 = vadd.f32 %v5688_v20, %v2569_v21  ;;  %7693 = vst [vmem:[#allocation51_spill] sm:$0xff] %v5955_v52  ;;  %v3180_v46 = vmul.f32 %v3148_v62, %v5855_v41  ;;  %v1721_v58 = vrot.slane %v5955_v52, 7  ;;  %v1471_v17 = vmul.f32 1.442695, %v1411_v24 }
 0x30a   : > { %7694 = vst [vmem:[#allocation52_spill] sm:$0xff] %v5960_v48  ;;  %v1504_v45 = vmul.f32 %v4243_v16, %v1344_v56  ;;  %v1253_v30 = vadd.f32 -0.28449672, %v1221_v7  ;;  %v1123_v35 = vadd.f32 -1.4531521, %v1091_v13  ;;  %v3496_v0 = vadd.f32 1.0, %v3464_v57 }
 0x30b   : > { %v5967_v21 = vmul.f32 0.70710677, %v5952_v14  ;;  %v5971_v34 = vand.u32 2147483647, %v5948_v31  ;;  %v7695_v42 = vrot.slane %v5860_v8, 7  ;;  %v736_v54 = vmul.f32 0.5, %v5672_v60 }
 0x30c   : > { %v1806_v9 = vsel %vm1680_vm8, %v1721_v58, 0.0  ;;  %v832_v16 = vsel %vm800_vm7, 1.0, %v7645_v18  ;;  %v1536_v27 = vsub.f32 1.0, %v1504_v45  ;;  %v1285_v25 = vmul.f32 %v1253_v30, %v5913_v38 }
 0x30d   : > { %v5974_v47 = vand.u32 2147483647, %v5967_v21  ;;  %v1722_v12 = vsel %vm1680_vm8, %v7695_v42, %v1721_v58  ;;  %v4245_v24 = vpop.eup %4244  ;;  %v3212_v62 = vadd.f32 0.2548296, %v3180_v46  ;;  %1851 = vst.msk [vmem:[#allocation2 + $0x160] sm:$0x3] %vm1642_vm10, %v1806_v9  ;;  %v1155_v22 = vmul.f32 %v1123_v35, %v5945_v6 }
 0x30e   : > { %1850 = vst.msk [vmem:[#allocation2 + $0x158] sm:$0xff] %vm1639_vm9, %v1722_v12  ;;  %4250 = vpow2.f32 %v1471_v17  ;;  %v1568_v60 = vmul.f32 %v1536_v27, %v832_v16  ;;  %v1317_v26 = vadd.f32 0.2548296, %v1285_v25  ;;  %v998_v57 = vmul.f32 %v4245_v24, %v5915_v29  ;;  %v7697_v42 = vld [vmem:[#allocation21_spill] sm:$0xff] }
 0x30f   : > { %v2800_v55 = vmul.f32 0.3275911, %v5974_v47  ;;  %v900_v10 = vmul.f32 0.3275911, %v5971_v34  ;;  %v3528_v53 = vmul.f32 %v3496_v0, %v5554_v40  ;;  %v1187_v7 = vadd.f32 1.4214138, %v1155_v22  ;;  %v4247_v46 = vpop.eup %4246 }
 0x310   : > { %v1382_v13 = vsub.f32 0.0, %v5898_v44  ;;  %v1600_v58 = vadd.f32 1.0, %v1568_v60  ;;  %v1349_v45 = vmul.f32 %v1317_v26, %v5913_v38  ;;  %v1030_v30 = vsub.f32 2.0, %v998_v57 }
 0x311   : > { %v5992_v56 = vadd.f32 1.0, %v2800_v55  ;;  %v5996_v35 = vadd.f32 1.0, %v900_v10  ;;  %vm2700_vm11 = vcmp.ge.f32.partialorder %v5704_v1, 0.0  ;;  %v3244_v29 = vmul.f32 %v3212_v62, %v5855_v41 }
 0x312   : > { %v1219_v40 = vmul.f32 %v1187_v7, %v5945_v6  ;;  %v6002_v17 = vmul.f32 %v1600_v58, %v736_v54  ;;  %vm805_vm12 = vcmp.ge.f32.partialorder %v5760_v50, 0.0  ;;  %v1509_v0 = vmul.f32 %v4247_v46, %v1349_v45 }
 0x313   : > { %4252 = vrcp.f32 %v5992_v56  ;;  %v6007_v38 = vadd.f32 %v3528_v53, %v7697_v42  ;;  %v6009_v9 = vmul.f32 %v4245_v24, %v1030_v30  ;;  %v4249_v16 = vpop.eup %4248  ;;  %v6012_v41 = vmul.f32 0.5, %v5691_v15 }
 0x314   : > { %7696 = vst [vmem:[#allocation53_spill] sm:$0xff] %v6002_v17  ;;  %4254 = vrcp.f32 %v5996_v35  ;;  %v1251_v12 = vadd.f32 -0.28449672, %v1219_v40  ;;  %v1718_v27 = vrot.slane %v6002_v17, 7  ;;  %v1541_v25 = vsub.f32 1.0, %v1509_v0 }
 0x315   : > { %7698 = vst [vmem:[#allocation21_spill] sm:$0xff] %v6007_v38  ;;  %v1414_v54 = vmul.f32 %v1382_v13, %v5898_v44  ;;  %v4414_v62 = vmov 0.0   ;;  %v2732_v15 = vsel %vm2700_vm11, 1.0, %v7645_v18  ;;  %v3404_v24 = vmul.f32 %v4249_v16, %v3244_v29 }
 0x316   : > { %1640 = vst.msk [vmem:[#allocation2] sm:$0xff] %vm1639_vm9, %v4414_v62  ;;  %1641 = vst.msk [vmem:[#allocation2 + $0x8] sm:$0xff] %vm1639_vm9, %v4414_v62  ;;  %v3280_v44 = vsub.f32 0.0, %v5974_v47  ;;  %v837_v55 = vsel %vm805_vm12, 1.0, %v7645_v18  ;;  %v7699_v22 = vrot.slane %v5911_v36, 7  ;;  %v1805_v26 = vsel %vm1680_vm8, %v1718_v27, 0.0 }
 0x317   : > { %1643 = vst.msk [vmem:[#allocation2 + $0x10] sm:$0x3] %vm1642_vm10, %v4414_v62  ;;  %1647 = vst.msk [vmem:[#allocation2 + $0x1a8] sm:$0x3] %vm1642_vm10, %v4414_v62  ;;  %v1573_v57 = vmul.f32 %v1541_v25, %v837_v55  ;;  %v1283_v10 = vmul.f32 %v1251_v12, %v5945_v6  ;;  %v1925_v1 = vmul.f32 %v4807_v4, %v5857_v49  ;;  %v741_v53 = vmul.f32 0.5, %v5735_v5  ;;  %v4109_v12 = vld [vmem:[%s7582_s7] sm:$0xff]  }
 0x318   : > { %1645 = vst.msk [vmem:[#allocation2 + $0x198] sm:$0xff] %vm1639_vm9, %v4414_v62  ;;  %1646 = vst.msk [vmem:[#allocation2 + $0x1a0] sm:$0xff] %vm1639_vm9, %v4414_v62  ;;  %v1719_v60 = vsel %vm1680_vm8, %v7699_v22, %v1718_v27  ;;  %vm803_vm13 = vcmp.ge.f32.partialorder %v5818_v23, 0.0  ;;  %v1094_v50 = vmul.f32 1.0614054, %v6009_v9  ;;  %v1380_v58 = vsub.f32 0.0, %v5971_v34  ;;  %4061 = vmatprep.subr.bf16.mxu1 %v4109_v12 }
 0x319   : > { %1847 = vst.msk [vmem:[#allocation2 + $0x140] sm:$0xff] %vm1639_vm9, %v1719_v60  ;;  %v1605_v7 = vadd.f32 1.0, %v1573_v57  ;;  %v1315_v13 = vadd.f32 0.2548296, %v1283_v10  ;;  %v1477_v46 = vmul.f32 1.442695, %v1414_v54  ;;  %v6044_v45 = vmul.f32 %v4817_v28, %v5890_v2  ;;  %4062 = vmatpush3.bf16.msra.mxu1 %v4109_v12 }
 0x31a   : > { %1848 = vst.msk [vmem:[#allocation2 + $0x148] sm:$0x3] %vm1642_vm10, %v1805_v26  ;;  %vm806_vm14 = vcmp.ge.f32.partialorder %v5887_v63, 0.0  ;;  %v1126_v30 = vadd.f32 -1.4531521, %v1094_v50  ;;  %vm804_vm15 = vcmp.ge.f32.partialorder %v5948_v31, 0.0  ;;  %v3312_v40 = vmul.f32 %v3280_v44, %v5974_v47 }
 0x31b   : > { %v4251_v29 = vpop.eup %4250  ;;  %v3436_v5 = vsub.f32 1.0, %v3404_v24  ;;  %v6049_v0 = vmul.f32 %v1605_v7, %v741_v53  ;;  %v1347_v42 = vmul.f32 %v1315_v13, %v5945_v6  ;;  %v6057_v16 = vmul.f32 %v4828_v43, %v5917_v11  ;;  %v6064_v54 = vld [vmem:[#allocation2 + $0x158] sm:$0xff] }
 0x31c   : > { %v739_v27 = vmul.f32 0.5, %v5799_v59  ;;  %v835_v25 = vsel %vm803_vm13, 1.0, %v7645_v18  ;;  %v1158_v47 = vmul.f32 %v1126_v30, %v6009_v9  ;;  %v6066_v62 = vld [vmem:[#allocation2 + $0x159] sm:$0xff]  ;;  %4256 = vpow2.f32 %v1477_v46 }
 0x31d   : > { %7700 = vst [vmem:[#allocation54_spill] sm:$0xff] %v6049_v0  ;;  %v7620_v6 = vrot.slane %v6049_v0, 7  ;;  %v1507_v24 = vmul.f32 %v4251_v29, %v1347_v42  ;;  %v1412_v44 = vmul.f32 %v1380_v58, %v5971_v34  ;;  %v6070_v55 = vld [vmem:[#allocation2 + $0x15a] sm:$0xff]  ;;  %v6073_v59 = vmul.f32 0.5, %v5868_v61  ;;  %v1864_v58 = vld [vmem:[#allocation2 + $0x30] sm:$0xff] }
 0x31e   : > { %v6078_v23 = vsel %vm806_vm14, 1.0, %v7645_v18  ;;  %v1190_v22 = vadd.f32 1.4214138, %v1158_v47  ;;  %v6083_v60 = vsel %vm804_vm15, 1.0, %v7645_v18  ;;  %v6085_v34 = vmul.f32 %v3436_v5, %v2732_v15  ;;  %v1862_v53 = vld [vmem:[#allocation2 + $0x18] sm:$0xff]  ;;  %v1863_v46 = vld [vmem:[#allocation2 + $0x20] sm:$0xff] }
 0x31f   : > { %v6087_v57 = vmul.f32 1.442695, %v3312_v40  ;;  %v1792_v61 = vsel %vm1680_vm8, 0.0, %v7620_v6  ;;  %v1539_v63 = vsub.f32 1.0, %v1507_v24  ;;  %v2061_v13 = vmul.f32 %v4815_v19, %v6064_v54 }
 0x320   : > { %v4253_v26 = vpop.eup %4252  ;;  %v1887_v10 = vld [vmem:[#allocation2 + $0x140] sm:$0xff]  ;;  %v2301_v15 = vmul.f32 %v4826_v37, %v6066_v62  ;;  %1855 = vst.msk [vmem:[#allocation2 + $0x180] sm:$0xff] %vm1639_vm9, %v1792_v61  ;;  %v6101_v30 = vmul.f32 %v5644_v3, %v6070_v55  ;;  %v1222_v5 = vmul.f32 %v1190_v22, %v6009_v9  ;;  %v1902_v47 = vmul.f32 %v4807_v4, %v1862_v53 }
 0x321   : > { %v4255_v50 = vpop.eup %4254  ;;  %v2896_v7 = vmul.f32 %v4253_v26, %v5992_v56  ;;  %v1993_v31 = vmul.f32 %v4813_v32, %v1887_v10  ;;  %v1571_v29 = vmul.f32 %v1539_v63, %v835_v25  ;;  %v1473_v56 = vmul.f32 1.442695, %v1412_v44  ;;  %v6106_v24 = vld [vmem:[#allocation2 + $0x141] sm:$0xff] }
 0x322   : > { %v996_v12 = vmul.f32 %v4255_v50, %v5996_v35  ;;  %7701 = vst [vmem:[#allocation55_spill] sm:$0xff] %v6106_v24  ;;  %v1254_v61 = vadd.f32 -0.28449672, %v1222_v5  ;;  %v1903_v6 = vmul.f32 %v4807_v4, %v1863_v46  ;;  %v1904_v52 = vmul.f32 %v4807_v4, %v1864_v58  ;;  %v1860_v22 = vld [vmem:[#allocation2] sm:$0xff]  ;;  %v1861_v44 = vld [vmem:[#allocation2 + $0x8] sm:$0xff] }
 0x323   : > { %v2928_v40 = vsub.f32 2.0, %v2896_v7  ;;  %v2025_v42 = vadd.f32 %v1993_v31, %v1925_v1  ;;  %v1603_v10 = vadd.f32 1.0, %v1571_v29  ;;  %v1968_v1 = vmul.f32 %v4813_v32, %v1862_v53 }
 0x324   : > { %v1028_v63 = vsub.f32 2.0, %v996_v12  ;;  %v1286_v35 = vmul.f32 %v1254_v61, %v6009_v9  ;;  %4258 = vpow2.f32 %v1473_v56  ;;  %v1969_v31 = vmul.f32 %v4813_v32, %v1863_v46 }
 0x325   : > { %v6110_v3 = vmul.f32 %v4253_v26, %v2928_v40  ;;  %v2093_v25 = vadd.f32 %v2061_v13, %v2025_v42  ;;  %v6113_v7 = vmul.f32 %v1603_v10, %v739_v27  ;;  %v2233_v26 = vmul.f32 %v4822_v33, %v6106_v24  ;;  %v6123_v40 = vld [vmem:[#allocation2 + $0x48] sm:$0xff] }
 0x326   : > { %v6121_v13 = vmul.f32 %v4255_v50, %v1028_v63  ;;  %v1318_v27 = vadd.f32 0.2548296, %v1286_v35  ;;  %v1900_v42 = vmul.f32 %v4807_v4, %v1860_v22  ;;  %v1901_v56 = vmul.f32 %v4807_v4, %v1861_v44  ;;  %v6128_v10 = vld [vmem:[#allocation2 + $0x142] sm:$0xff]  ;;  %v4374_v63 = vld [vmem:[#allocation2 + $0x38] sm:$0xff] }
 0x327   : > { %7702 = vst [vmem:[#allocation56_spill] sm:$0xff] %v6113_v7  ;;  %v2992_v29 = vmul.f32 1.0614054, %v6110_v3  ;;  %v2197_v5 = vadd.f32 %v6044_v45, %v2093_v25  ;;  %v7624_v53 = vrot.slane %v6113_v7, 7  ;;  %v1970_v61 = vmul.f32 %v4813_v32, %v1864_v58 }
 0x328   : > { %v1092_v45 = vmul.f32 1.0614054, %v6121_v13  ;;  %v1350_v25 = vmul.f32 %v1318_v27, %v6009_v9  ;;  %v1971_v35 = vmul.f32 %v4374_v63, %v4813_v32  ;;  %v1972_v22 = vmul.f32 %v4813_v32, %v6123_v40 }
 0x329   : > { %v3024_v12 = vadd.f32 -1.4531521, %v2992_v29  ;;  %v2265_v46 = vadd.f32 %v2233_v26, %v2197_v5  ;;  %v1791_v50 = vsel %vm1680_vm8, 0.0, %v7624_v53  ;;  %v4257_v44 = vpop.eup %4256  ;;  %v2002_v8 = vadd.f32 %v1970_v61, %v1902_v47  ;;  %v6149_v47 = vld [vmem:[#allocation2 + $0x50] sm:$0xff] }
 0x32a   : > { %1852 = vst.msk [vmem:[#allocation2 + $0x168] sm:$0xff] %vm1639_vm9, %v1791_v50  ;;  %v1124_v26 = vadd.f32 -1.4531521, %v1092_v45  ;;  %v2473_v36 = vmul.f32 %v4830_v39, %v6128_v10  ;;  %v1510_v53 = vmul.f32 %v4257_v44, %v1350_v25  ;;  %v2000_v17 = vadd.f32 %v1968_v1, %v1900_v42  ;;  %v2100_v1 = vld [vmem:[#allocation2 + $0x1] sm:$0xff] }
 0x32b   : > { %v3056_v29 = vmul.f32 %v3024_v12, %v6110_v3  ;;  %v2333_v5 = vadd.f32 %v2301_v15, %v2265_v46  ;;  %v2001_v9 = vadd.f32 %v1969_v31, %v1901_v56  ;;  %v2036_v24 = vmul.f32 %v4815_v19, %v1864_v58  ;;  %v2101_v31 = vld [vmem:[#allocation2 + $0x9] sm:$0xff]  ;;  %v6154_v45 = vld [vmem:[#allocation2 + $0x60] sm:$0xff] }
 0x32c   : > { %v1156_v48 = vmul.f32 %v1124_v26, %v6121_v13  ;;  %v1542_v4 = vsub.f32 1.0, %v1510_v53  ;;  %v2037_v15 = vmul.f32 %v4374_v63, %v4815_v19  ;;  %v2038_v12 = vmul.f32 %v4815_v19, %v6123_v40 }
 0x32d   : > { %v3088_v27 = vadd.f32 1.4214138, %v3056_v29  ;;  %v2437_v38 = vadd.f32 %v6057_v16, %v2333_v5  ;;  %v2039_v46 = vmul.f32 %v6149_v47, %v4815_v19  ;;  %v2003_v58 = vadd.f32 %v1971_v35, %v1903_v6  ;;  %v2102_v29 = vld [vmem:[#allocation2 + $0x19] sm:$0xff]  ;;  %v2103_v5 = vld [vmem:[#allocation2 + $0x21] sm:$0xff] }
 0x32e   : > { %v1188_v56 = vadd.f32 1.4214138, %v1156_v48  ;;  %v1574_v53 = vmul.f32 %v1542_v4, %v6078_v23  ;;  %v2004_v61 = vadd.f32 %v1972_v22, %v1904_v52  ;;  %v2068_v50 = vadd.f32 %v2036_v24, %v2000_v17 }
 0x32f   : > { %v3120_v42 = vmul.f32 %v3088_v27, %v6110_v3  ;;  %v2505_v16 = vadd.f32 %v2473_v36, %v2437_v38  ;;  %v2069_v25 = vadd.f32 %v2037_v15, %v2001_v9  ;;  %v2140_v26 = vmul.f32 %v4817_v28, %v2100_v1  ;;  %v2104_v15 = vld [vmem:[#allocation2 + $0x31] sm:$0xff] }
 0x330   : > { %v1220_v44 = vmul.f32 %v1188_v56, %v6121_v13  ;;  %v2141_v27 = vmul.f32 %v4817_v28, %v2101_v31  ;;  %v1606_v36 = vadd.f32 1.0, %v1574_v53  ;;  %v2040_v48 = vmul.f32 %v4815_v19, %v6154_v45 }
 0x331   : > { %v2573_v63 = vadd.f32 %v6101_v30, %v2505_v16  ;;  %v2070_v38 = vadd.f32 %v2038_v12, %v2002_v8  ;;  %v2071_v6 = vadd.f32 %v2039_v46, %v2003_v58  ;;  %v4259_v4 = vpop.eup %4258  ;;  %v3152_v52 = vadd.f32 -0.28449672, %v3120_v42 }
 0x332   : > { %4260 = vpow2.f32 %v6087_v57  ;;  %v1252_v23 = vadd.f32 -0.28449672, %v1220_v44  ;;  %v6168_v30 = vmul.f32 %v1606_v36, %v6073_v59  ;;  %v2072_v24 = vadd.f32 %v2040_v48, %v2004_v61 }
 0x333   : > { %v6165_v17 = vadd.f32 %v5688_v20, %v2573_v63  ;;  %v2142_v35 = vmul.f32 %v4817_v28, %v2102_v29  ;;  %v2143_v22 = vmul.f32 %v4817_v28, %v2103_v5  ;;  %v2172_v12 = vadd.f32 %v2140_v26, %v2068_v50 }
 0x334   : > { %7703 = vst [vmem:[#allocation57_spill] sm:$0xff] %v6168_v30  ;;  %v1284_v8 = vmul.f32 %v1252_v23, %v6121_v13  ;;  %v2173_v57 = vadd.f32 %v2141_v27, %v2069_v25  ;;  %v1727_v20 = vrot.slane %v6168_v30, 7  ;;  %v2208_v59 = vmul.f32 %v4822_v33, %v2102_v29  ;;  %v4376_v25 = vld [vmem:[#allocation2 + $0x39] sm:$0xff] }
 0x335   : > { %v6173_v9 = vmul.f32 0.70710677, %v6165_v17  ;;  %v2174_v46 = vadd.f32 %v2142_v35, %v2070_v38  ;;  %v2175_v1 = vadd.f32 %v2143_v22, %v2071_v6  ;;  %v3184_v31 = vmul.f32 %v3152_v52, %v6110_v3  ;;  %v2340_v52 = vld [vmem:[#allocation2 + $0x2] sm:$0xff] }
 0x336   : > { %v1316_v16 = vadd.f32 0.2548296, %v1284_v8  ;;  %v2209_v56 = vmul.f32 %v4822_v33, %v2103_v5  ;;  %v7704_v58 = vrot.slane %v6049_v0, 7  ;;  %v1808_v61 = vsel %vm1680_vm8, %v1727_v20, 0.0  ;;  %v6193_v5 = vld [vmem:[#allocation2 + $0x49] sm:$0xff] }
 0x337   : > { %v6180_v42 = vand.u32 2147483647, %v6173_v9  ;;  %v2210_v50 = vmul.f32 %v4822_v33, %v2104_v15  ;;  %v2211_v63 = vmul.f32 %v4376_v25, %v4822_v33  ;;  %v3500_v44 = vadd.f32 1.0, %v6085_v34  ;;  %1857 = vst.msk [vmem:[#allocation2 + $0x190] sm:$0x3] %vm1642_vm10, %v1808_v61  ;;  %v2341_v8 = vld [vmem:[#allocation2 + $0xa] sm:$0xff] }
 0x338   : > { %v1728_v53 = vsel %vm1680_vm8, %v7704_v58, %v1727_v20  ;;  %v1348_v29 = vmul.f32 %v1316_v16, %v6121_v13  ;;  %v2240_v26 = vadd.f32 %v2208_v59, %v2172_v12  ;;  %v2241_v27 = vadd.f32 %v2209_v56, %v2173_v57  ;;  %v4377_v57 = vld [vmem:[#allocation2 + $0x51] sm:$0xff] }
 0x339   : > { %1856 = vst.msk [vmem:[#allocation2 + $0x188] sm:$0xff] %vm1639_vm9, %v1728_v53  ;;  %v2804_v36 = vmul.f32 0.3275911, %v6180_v42  ;;  %v2144_v48 = vmul.f32 %v4817_v28, %v2104_v15  ;;  %v2242_v38 = vadd.f32 %v2210_v50, %v2174_v46  ;;  %v2243_v6 = vadd.f32 %v2211_v63, %v2175_v1 }
 0x33a   : > { %v3216_v23 = vadd.f32 0.2548296, %v3184_v31  ;;  %v1508_v35 = vmul.f32 %v4259_v4, %v1348_v29  ;;  %v2276_v34 = vmul.f32 %v4826_v37, %v2104_v15  ;;  %v2277_v22 = vmul.f32 %v4376_v25, %v4826_v37  ;;  %v2342_v31 = vld [vmem:[#allocation2 + $0x1a] sm:$0xff]  ;;  %v2343_v4 = vld [vmem:[#allocation2 + $0x22] sm:$0xff] }
 0x33b   : > { %v2176_v20 = vadd.f32 %v2144_v48, %v2072_v24  ;;  %v2212_v13 = vmul.f32 %v4822_v33, %v6193_v5  ;;  %v2278_v12 = vmul.f32 %v4826_v37, %v6193_v5  ;;  %v2279_v59 = vmul.f32 %v4377_v57, %v4826_v37  ;;  %v6218_v29 = vld [vmem:[#allocation2 + $0x61] sm:$0xff] }
 0x33c   : > { %v1540_v46 = vsub.f32 1.0, %v1508_v35  ;;  %v2308_v1 = vadd.f32 %v2276_v34, %v2240_v26  ;;  %v2309_v16 = vadd.f32 %v2277_v22, %v2241_v27  ;;  %v2380_v15 = vmul.f32 %v4828_v43, %v2340_v52  ;;  %v2344_v52 = vld [vmem:[#allocation2 + $0x32] sm:$0xff]  ;;  %v4379_v57 = vld [vmem:[#allocation2 + $0x3a] sm:$0xff] }
 0x33d   : > { %v6205_v56 = vadd.f32 1.0, %v2804_v36  ;;  %v2310_v58 = vadd.f32 %v2278_v12, %v2242_v38  ;;  %v2311_v24 = vadd.f32 %v2279_v59, %v2243_v6  ;;  %v2381_v53 = vmul.f32 %v4828_v43, %v2341_v8 }
 0x33e   : > { %v6210_v61 = vmul.f32 %v4813_v32, %v5857_v49  ;;  %v6214_v50 = vmul.f32 %v4822_v33, %v5890_v2  ;;  %v3248_v25 = vmul.f32 %v3216_v23, %v6110_v3  ;;  %v1572_v63 = vmul.f32 %v1540_v46, %v6083_v60 }
 0x33f   : > { %v4261_v26 = vpop.eup %4260  ;;  %v740_v27 = vmul.f32 0.5, %v5940_v51  ;;  %v2244_v36 = vadd.f32 %v2212_v13, %v2176_v20  ;;  %v2382_v48 = vmul.f32 %v4828_v43, %v2342_v31  ;;  %v2383_v38 = vmul.f32 %v4828_v43, %v2343_v4  ;;  %v6231_v20 = vld [vmem:[#allocation2 + $0x4a] sm:$0xff]  ;;  %v6237_v13 = vld [vmem:[%s7580_s5 + $0x8] ss:$0 sm:$0xff] }
 0x340   : > { %7705 = vst [vmem:[#allocation58_spill] sm:$0xff] %v6210_v61  ;;  %7706 = vst [vmem:[#allocation59_spill] sm:$0xff] %v6214_v50  ;;  %v3532_v49 = vmul.f32 %v3500_v44, %v6012_v41  ;;  %v1604_v6 = vadd.f32 1.0, %v1572_v63  ;;  %v2412_v2 = vadd.f32 %v2380_v15, %v2308_v1  ;;  %v2413_v35 = vadd.f32 %v2381_v53, %v2309_v16 }
 0x341   : > { %4262 = vrcp.f32 %v6205_v56  ;;  %v2280_v60 = vmul.f32 %v4826_v37, %v6218_v29  ;;  %v2414_v3 = vadd.f32 %v2382_v48, %v2310_v58  ;;  %v2415_v23 = vadd.f32 %v2383_v38, %v2311_v24  ;;  %v4380_v24 = vld [vmem:[#allocation2 + $0x52] sm:$0xff] }
 0x342   : > { %v3408_v34 = vmul.f32 %v4261_v26, %v3248_v25  ;;  %v6227_v51 = vmul.f32 %v1604_v6, %v740_v27  ;;  %v2448_v22 = vmul.f32 %v4830_v39, %v2342_v31  ;;  %v2449_v8 = vmul.f32 %v4830_v39, %v2343_v4 }
 0x343   : > { %v2312_v41 = vadd.f32 %v2280_v60, %v2244_v36  ;;  %v2450_v44 = vmul.f32 %v4830_v39, %v2344_v52  ;;  %v2516_v12 = vmul.f32 %v6237_v13, %v2344_v52  ;;  %v2451_v59 = vmul.f32 %v4379_v57, %v4830_v39 }
 0x344   : > { %7707 = vst [vmem:[#allocation60_spill] sm:$0xff] %v6227_v51  ;;  %v1724_v46 = vrot.slane %v6227_v51, 7  ;;  %v2480_v1 = vadd.f32 %v2448_v22, %v2412_v2  ;;  %v2481_v16 = vadd.f32 %v2449_v8, %v2413_v35  ;;  %v2517_v31 = vmul.f32 %v4379_v57, %v6237_v13  ;;  %v6262_v35 = vld [vmem:[%s7581_s6] ss:$0 sm:$0xff]  ;;  %v7710_v22 = vld [vmem:[#allocation48_spill] sm:$0xff]  ;;  %v7714_v57 = vld [vmem:[#allocation35_spill] sm:$0xff] }
 0x345   : > { %v2482_v4 = vadd.f32 %v2450_v44, %v2414_v3  ;;  %v2483_v15 = vadd.f32 %v2451_v59, %v2415_v23  ;;  %v2518_v58 = vmul.f32 %v6237_v13, %v6231_v20  ;;  %v2519_v53 = vmul.f32 %v4380_v24, %v6237_v13  ;;  %v7712_v8 = vld [vmem:[#allocation49_spill] sm:$0xff]  ;;  %v7719_v24 = vld [vmem:[#allocation11_spill] sm:$0xff] }
 0x346   : > { %v7708_v25 = vrot.slane %v6113_v7, 7  ;;  %v1807_v26 = vsel %vm1680_vm8, %v1724_v46, 0.0  ;;  %v2548_v27 = vadd.f32 %v2516_v12, %v2480_v1  ;;  %v2549_v36 = vadd.f32 %v2517_v31, %v2481_v16 }
 0x347   : > { %vm2704_vm0 = vcmp.ge.f32.partialorder %v5967_v21, 0.0  ;;  %v3284_v48 = vsub.f32 0.0, %v6180_v42  ;;  %1854 = vst.msk [vmem:[#allocation2 + $0x178] sm:$0x3] %vm1642_vm10, %v1807_v26  ;;  %v2384_v38 = vmul.f32 %v4828_v43, %v2344_v52  ;;  %v2550_v6 = vadd.f32 %v2518_v58, %v2482_v4 }
 0x348   : > { %v1725_v63 = vsel %vm1680_vm8, %v7708_v25, %v1724_v46  ;;  %v6257_v2 = vmul.f32 %v4830_v39, %v5917_v11  ;;  %v6265_v60 = vadd.f32 %v6262_v35, %v2548_v27  ;;  %v6268_v3 = vadd.f32 %v6262_v35, %v2549_v36 }
 0x349   : > { %1853 = vst.msk [vmem:[#allocation2 + $0x170] sm:$0xff] %vm1639_vm9, %v1725_v63  ;;  %v2551_v23 = vadd.f32 %v2519_v53, %v2483_v15  ;;  %v6272_v52 = vmul.f32 %v4817_v28, %v7710_v22  ;;  %v6276_v11 = vmul.f32 %v4828_v43, %v7712_v8  ;;  %v2640_v44 = vmul.f32 0.5, %v5952_v14 }
 0x34a   : > { %7709 = vst [vmem:[#allocation61_spill] sm:$0xff] %v6257_v2  ;;  %v2416_v12 = vadd.f32 %v2384_v38, %v2312_v41  ;;  %v6280_v59 = vadd.f32 %v3532_v49, %v7714_v57  ;;  %v2736_v46 = vsel %vm2704_vm0, 1.0, %v7645_v18  ;;  %v3440_v1 = vsub.f32 1.0, %v3408_v34  ;;  %v6311_v41 = vld [vmem:[#allocation2 + $0x62] sm:$0xff]  ;;  %v7720_v57 = vld [vmem:[#allocation55_spill] sm:$0xff] }
 0x34b   : > { %7711 = vst [vmem:[#allocation48_spill] sm:$0xff] %v6272_v52  ;;  %7713 = vst [vmem:[#allocation49_spill] sm:$0xff] %v6276_v11  ;;  %v6286_v16 = vmul.f32 0.70710677, %v6265_v60  ;;  %v3316_v31 = vmul.f32 %v3284_v48, %v6180_v42  ;;  %v6290_v4 = vmul.f32 0.70710677, %v6268_v3  ;;  %v6293_v15 = vadd.f32 %v6262_v35, %v2550_v6 }
 0x34c   : > { %7715 = vst [vmem:[#allocation35_spill] sm:$0xff] %v6280_v59  ;;  %v2452_v14 = vmul.f32 %v4830_v39, %v6231_v20  ;;  %v6299_v49 = vmul.f32 %v4813_v32, %v6064_v54  ;;  %v6303_v21 = vmul.f32 %v4822_v33, %v6066_v62  ;;  %v6309_v42 = vadd.f32 %v6262_v35, %v2551_v23  ;;  %v1893_v48 = vld [vmem:[#allocation2 + $0x188] sm:$0xff] }
 0x34d   : > { %v6306_v34 = vand.u32 2147483647, %v6286_v16  ;;  %v6315_v58 = vmul.f32 %v4830_v39, %v6070_v55  ;;  %v1929_v53 = vmul.f32 %v7719_v24, %v6064_v54  ;;  %v6320_v25 = vand.u32 2147483647, %v6290_v4 }
 0x34e   : > { %7716 = vst [vmem:[#allocation62_spill] sm:$0xff] %v6299_v49  ;;  %7717 = vst [vmem:[#allocation63_spill] sm:$0xff] %v6303_v21  ;;  %v2484_v63 = vadd.f32 %v2452_v14, %v2416_v12  ;;  %v4263_v26 = vpop.eup %4262  ;;  %v3472_v27 = vmul.f32 %v3440_v1, %v2736_v46  ;;  %v2169_v38 = vmul.f32 %v4817_v28, %v6066_v62  ;;  %v3373_v22 = vmul.f32 1.442695, %v3316_v31 }
 0x34f   : > { %7718 = vst [vmem:[#allocation64_spill] sm:$0xff] %v6315_v58  ;;  %v6326_v6 = vmul.f32 %v4828_v43, %v6070_v55  ;;  %v2779_v23 = vmul.f32 0.3275911, %v6306_v34  ;;  %v6331_v8 = vmul.f32 0.70710677, %v6293_v15  ;;  %v2520_v12 = vmul.f32 %v6237_v13, %v6311_v41 }
 0x350   : > { %v1891_v36 = vld [vmem:[#allocation2 + $0x170] sm:$0xff]  ;;  %v6337_v46 = vmul.f32 %v4817_v28, %v7720_v57  ;;  %v2780_v62 = vmul.f32 0.3275911, %v6320_v25  ;;  %v6343_v55 = vmul.f32 0.70710677, %v6309_v42  ;;  %v2900_v31 = vmul.f32 %v4263_v26, %v6205_v56 }
 0x351   : > { %v1997_v54 = vmul.f32 %v4813_v32, %v1891_v36  ;;  %v6340_v1 = vadd.f32 1.0, %v2779_v23  ;;  %v2065_v36 = vmul.f32 %v4815_v19, %v1893_v48  ;;  %v2552_v30 = vadd.f32 %v2520_v12, %v2484_v63  ;;  %v2373_v12 = vld [vmem:[#allocation2 + $0x18a] sm:$0xff] }
 0x352   : > { %7721 = vst [vmem:[#allocation11_spill] sm:$0xff] %v6337_v46  ;;  %v3504_v0 = vadd.f32 1.0, %v3472_v27  ;;  %vm2708_vm8 = vcmp.ge.f32.partialorder %v6173_v9, 0.0  ;;  %v6348_v7 = vadd.f32 1.0, %v2780_v62  ;;  %v6353_v23 = vmul.f32 %v4828_v43, %v6128_v10  ;;  %v2133_v9 = vld [vmem:[#allocation2 + $0x189] sm:$0xff] }
 0x353   : > { %v2029_v14 = vadd.f32 %v1997_v54, %v1929_v53  ;;  %4264 = vrcp.f32 %v6340_v1  ;;  %v2146_v51 = vmul.f32 %v4817_v28, %v6193_v5  ;;  %v6359_v56 = vmul.f32 %v4817_v28, %v6218_v29  ;;  %v6374_v54 = vld [vmem:[#allocation2 + $0x171] sm:$0xff] }
 0x354   : > { %7722 = vst [vmem:[#allocation55_spill] sm:$0xff] %v6353_v23  ;;  %v6362_v53 = vmul.f32 0.5, %v6165_v17  ;;  %4266 = vrcp.f32 %v6348_v7  ;;  %v6366_v63 = vand.u32 2147483647, %v6331_v8  ;;  %v6369_v10 = vand.u32 2147483647, %v6343_v55 }
 0x355   : > { %v2097_v57 = vadd.f32 %v2065_v36, %v2029_v14  ;;  %v6372_v27 = vsel %vm2708_vm8, 1.0, %v7645_v18  ;;  %v2932_v5 = vsub.f32 2.0, %v2900_v31  ;;  %4268 = vpow2.f32 %v3373_v22  ;;  %v6388_v31 = vld [vmem:[#allocation2 + $0x78] sm:$0xff] }
 0x356   : > { %7723 = vst [vmem:[#allocation65_spill] sm:$0xff] %v6362_v53  ;;  %7724 = vst [vmem:[#allocation66_spill] sm:$0xff] %v6372_v27  ;;  %v6377_v17 = vadd.f32 %v6262_v35, %v2552_v30  ;;  %v3536_v62 = vmul.f32 %v3504_v0, %v2640_v44  ;;  %v2781_v36 = vmul.f32 0.3275911, %v6366_v63  ;;  %v2782_v53 = vmul.f32 0.3275911, %v6369_v10 }
 0x357   : > { %v2201_v14 = vadd.f32 %v2169_v38, %v2097_v57  ;;  %v6382_v58 = vmul.f32 %v4813_v32, %v1893_v48  ;;  %v6385_v23 = vmul.f32 %v4822_v33, %v2133_v9  ;;  %v2305_v22 = vmul.f32 %v4826_v37, %v2133_v9 }
 0x358   : > { %v1906_v30 = vmul.f32 %v7719_v24, %v6123_v40  ;;  %v2237_v0 = vmul.f32 %v4822_v33, %v6374_v54  ;;  %v6395_v44 = vmul.f32 %v4830_v39, %v2373_v12  ;;  %v6397_v38 = vadd.f32 1.0, %v2781_v36 }
 0x359   : > { %7725 = vst [vmem:[#allocation67_spill] sm:$0xff] %v6382_v58  ;;  %7726 = vst [vmem:[#allocation68_spill] sm:$0xff] %v6385_v23  ;;  %v6399_v48 = vadd.f32 1.0, %v2782_v53  ;;  %v6401_v57 = vmul.f32 %v4263_v26, %v2932_v5  ;;  %v6404_v23 = vmul.f32 0.70710677, %v6377_v17  ;;  %v1907_v9 = vmul.f32 %v6149_v47, %v7719_v24  ;;  %v7728_v26 = vld [vmem:[#allocation45_spill] sm:$0xff] }
 0x35a   : > { %7727 = vst [vmem:[#allocation69_spill] sm:$0xff] %v6395_v44  ;;  %v1974_v40 = vmul.f32 %v4813_v32, %v6154_v45  ;;  %v2269_v58 = vadd.f32 %v2237_v0, %v2201_v14  ;;  %v6411_v21 = vmul.f32 %v6237_v13, %v2373_v12  ;;  %4270 = vrcp.f32 %v6397_v38  ;;  %v6428_v14 = vld [vmem:[#allocation2 + $0x80] sm:$0xff] }
 0x35b   : > { %v2042_v53 = vmul.f32 %v4815_v19, %v6388_v31  ;;  %v6417_v5 = vadd.f32 %v3536_v62, %v7728_v26  ;;  %v3259_v36 = vsub.f32 0.0, %v6306_v34  ;;  %4272 = vrcp.f32 %v6399_v48 }
 0x35c   : > { %v2006_v47 = vadd.f32 %v1974_v40, %v1906_v30  ;;  %v6422_v44 = vmul.f32 0.5, %v6265_v60  ;;  %vm2683_vm10 = vcmp.ge.f32.partialorder %v6286_v16, 0.0  ;;  %v6426_v12 = vand.u32 2147483647, %v6404_v23 }
 0x35d   : > { %7729 = vst [vmem:[#allocation45_spill] sm:$0xff] %v6417_v5  ;;  %v2043_v0 = vmul.f32 %v6428_v14, %v4815_v19  ;;  %v2996_v62 = vmul.f32 1.0614054, %v6401_v57  ;;  %v3260_v26 = vsub.f32 0.0, %v6320_v25  ;;  %v7730_v5 = vld [vmem:[#allocation15_spill] sm:$0xff]  ;;  %v2337_v40 = vadd.f32 %v2305_v22, %v2269_v58 }
 0x35e   : > { %v2007_v46 = vadd.f32 %v7730_v5, %v1907_v9  ;;  %v2074_v30 = vadd.f32 %v2042_v53, %v2006_v47  ;;  %v6436_v60 = vmul.f32 0.5, %v6268_v3  ;;  %vm2684_vm1 = vcmp.ge.f32.partialorder %v6290_v4, 0.0  ;;  %v6451_v47 = vld [vmem:[#allocation2 + $0x172] sm:$0xff] }
 0x35f   : > { %v2783_v49 = vmul.f32 0.3275911, %v6426_v12  ;;  %v3291_v2 = vmul.f32 %v3259_v36, %v6306_v34  ;;  %v3261_v11 = vsub.f32 0.0, %v6366_v63  ;;  %v6445_v9 = vsel %vm2683_vm10, 1.0, %v7645_v18  ;;  %v7731_v36 = vld [vmem:[#allocation22_spill] sm:$0xff] }
 0x360   : > { %v4265_v59 = vpop.eup %4264  ;;  %v2075_v50 = vadd.f32 %v2043_v0, %v2007_v46  ;;  %v2178_v52 = vadd.f32 %v2146_v51, %v2074_v30  ;;  %v3262_v3 = vsub.f32 0.0, %v6369_v10  ;;  %v3028_v5 = vadd.f32 -1.4531521, %v2996_v62 }
 0x361   : > { %v2875_v58 = vmul.f32 %v4265_v59, %v6340_v1  ;;  %v6449_v22 = vadd.f32 1.0, %v2783_v49  ;;  %v4267_v53 = vpop.eup %4266  ;;  %v3292_v34 = vmul.f32 %v3260_v26, %v6320_v25  ;;  %v2214_v51 = vmul.f32 %v4822_v33, %v6218_v29  ;;  %v6462_v49 = vld [vmem:[#allocation2 + $0x79] sm:$0xff] }
 0x362   : > { %v2179_v46 = vadd.f32 %v7731_v36, %v2075_v50  ;;  %v6457_v16 = vpop.eup %4268  ;;  %v2441_v0 = vadd.f32 %v6326_v6, %v2337_v40  ;;  %v2876_v1 = vmul.f32 %v4267_v53, %v6348_v7  ;;  %v3323_v62 = vmul.f32 1.442695, %v3291_v2  ;;  %v7732_v26 = vld [vmem:[#allocation16_spill] sm:$0xff]  ;;  %v4383_v2 = vld [vmem:[#allocation2 + $0x81] sm:$0xff] }
 0x363   : > { %v2907_v30 = vsub.f32 2.0, %v2875_v58  ;;  %4274 = vrcp.f32 %v6449_v22  ;;  %v3293_v61 = vmul.f32 %v3261_v11, %v6366_v63  ;;  %v2246_v25 = vadd.f32 %v2214_v51, %v2178_v52 }
 0x364   : > { %v2247_v50 = vadd.f32 %v7732_v26, %v2179_v46  ;;  %v2477_v29 = vmul.f32 %v4830_v39, %v6451_v47  ;;  %v2908_v36 = vsub.f32 2.0, %v2876_v1  ;;  %v3294_v6 = vmul.f32 %v3262_v3, %v6369_v10 }
 0x365   : > { %v6468_v27 = vmul.f32 %v4265_v59, %v2907_v30  ;;  %v3060_v7 = vmul.f32 %v3028_v5, %v6401_v57  ;;  %v3325_v40 = vmul.f32 1.442695, %v3292_v34  ;;  %v2282_v58 = vmul.f32 %v4826_v37, %v6462_v49 }
 0x366   : > { %v2283_v11 = vmul.f32 %v4383_v2, %v4826_v37  ;;  %v2509_v52 = vadd.f32 %v2477_v29, %v2441_v0  ;;  %v6478_v63 = vsel %vm2684_vm1, 1.0, %v7645_v18  ;;  %v6480_v46 = vmul.f32 %v4267_v53, %v2908_v36  ;;  %v7733_v2 = vld [vmem:[#allocation23_spill] sm:$0xff] }
 0x367   : > { %v2971_v59 = vmul.f32 1.0614054, %v6468_v27  ;;  %v4271_v10 = vpop.eup %4270  ;;  %4276 = vpow2.f32 %v3323_v62  ;;  %v3327_v3 = vmul.f32 1.442695, %v3293_v61  ;;  %v2314_v5 = vadd.f32 %v2282_v58, %v2246_v25 }
 0x368   : > { %v2315_v34 = vadd.f32 %v2283_v11, %v2247_v50  ;;  %v4273_v51 = vpop.eup %4272  ;;  %v2972_v1 = vmul.f32 1.0614054, %v6480_v46  ;;  %v2877_v0 = vmul.f32 %v4271_v10, %v6397_v38  ;;  %v3329_v26 = vmul.f32 1.442695, %v3294_v6 }
 0x369   : > { %v3003_v30 = vadd.f32 -1.4531521, %v2971_v59  ;;  %v3092_v29 = vadd.f32 1.4214138, %v3060_v7  ;;  %4278 = vpow2.f32 %v3325_v40  ;;  %v2878_v4 = vmul.f32 %v4273_v51, %v6399_v48  ;;  %v6494_v48 = vld [vmem:[#allocation2 + $0x7a] sm:$0xff] }
 0x36a   : > { %v2386_v53 = vmul.f32 %v4828_v43, %v6231_v20  ;;  %v2577_v36 = vadd.f32 %v6411_v21, %v2509_v52  ;;  %v3004_v62 = vadd.f32 -1.4531521, %v2972_v1  ;;  %v2909_v25 = vsub.f32 2.0, %v2877_v0  ;;  %v7734_v52 = vld [vmem:[#allocation17_spill] sm:$0xff] }
 0x36b   : > { %v3035_v61 = vmul.f32 %v3003_v30, %v6468_v27  ;;  %v2910_v50 = vsub.f32 2.0, %v2878_v4  ;;  %4280 = vpow2.f32 %v3327_v3  ;;  %v2419_v11 = vadd.f32 %v7733_v2, %v2315_v34 }
 0x36c   : > { %v2418_v58 = vadd.f32 %v2386_v53, %v2314_v5  ;;  %v3036_v38 = vmul.f32 %v3004_v62, %v6480_v46  ;;  %v6492_v7 = vmul.f32 %v4271_v10, %v2909_v25  ;;  %4282 = vpow2.f32 %v3329_v26  ;;  %v4384_v26 = vld [vmem:[#allocation2 + $0x82] sm:$0xff] }
 0x36d   : > { %v3067_v6 = vadd.f32 1.4214138, %v3035_v61  ;;  %v6496_v20 = vmul.f32 %v4273_v51, %v2910_v50  ;;  %v3263_v21 = vsub.f32 0.0, %v6426_v12  ;;  %v2454_v40 = vmul.f32 %v4830_v39, %v6311_v41 }
 0x36e   : > { %v2487_v59 = vadd.f32 %v7734_v52, %v2419_v11  ;;  %v6503_v3 = vadd.f32 %v6262_v35, %v2577_v36  ;;  %v3068_v5 = vadd.f32 1.4214138, %v3036_v38  ;;  %v2973_v10 = vmul.f32 1.0614054, %v6492_v7 }
 0x36f   : > { %v3099_v34 = vmul.f32 %v3067_v6, %v6468_v27  ;;  %v2974_v30 = vmul.f32 1.0614054, %v6496_v20  ;;  %v2486_v51 = vadd.f32 %v2454_v40, %v2418_v58  ;;  %v2522_v0 = vmul.f32 %v6237_v13, %v6494_v48 }
 0x370   : > { %7735 = vst [vmem:[#allocation15_spill] sm:$0xff] %v6503_v3  ;;  %v4275_v1 = vpop.eup %4274  ;;  %v2523_v4 = vmul.f32 %v4384_v26, %v6237_v13  ;;  %v3100_v53 = vmul.f32 %v3068_v5, %v6480_v46  ;;  %vm2685_vm2 = vcmp.ge.f32.partialorder %v6331_v8, 0.0  ;;  %v3005_v36 = vadd.f32 -1.4531521, %v2973_v10 }
 0x371   : > { %v3131_v62 = vadd.f32 -0.28449672, %v3099_v34  ;;  %v2879_v61 = vmul.f32 %v4275_v1, %v6449_v22  ;;  %v3006_v25 = vadd.f32 -1.4531521, %v2974_v30  ;;  %v3295_v50 = vmul.f32 %v3263_v21, %v6426_v12 }
 0x372   : > { %v2554_v2 = vadd.f32 %v2522_v0, %v2486_v51  ;;  %v2555_v11 = vadd.f32 %v2523_v4, %v2487_v59  ;;  %v3132_v58 = vadd.f32 -0.28449672, %v3100_v53  ;;  %v3037_v6 = vmul.f32 %v3005_v36, %v6492_v7 }
 0x373   : > { %v3163_v38 = vmul.f32 %v3131_v62, %v6468_v27  ;;  %v2911_v40 = vsub.f32 2.0, %v2879_v61  ;;  %v6518_v52 = vmul.f32 0.70710677, %v6503_v3  ;;  %v3038_v5 = vmul.f32 %v3006_v25, %v6496_v20 }
 0x374   : > { %v6522_v34 = vadd.f32 %v6262_v35, %v2554_v2  ;;  %v6525_v22 = vadd.f32 %v6262_v35, %v2555_v11  ;;  %v4277_v12 = vpop.eup %4276  ;;  %v3164_v21 = vmul.f32 %v3132_v58, %v6480_v46  ;;  %v3069_v10 = vadd.f32 1.4214138, %v3037_v6 }
 0x375   : > { %7736 = vst [vmem:[#allocation22_spill] sm:$0xff] %v6518_v52  ;;  %v3195_v59 = vadd.f32 0.2548296, %v3163_v38  ;;  %v6528_v30 = vmul.f32 %v4275_v1, %v2911_v40  ;;  %v3124_v51 = vmul.f32 %v3092_v29, %v6401_v57  ;;  %v3070_v0 = vadd.f32 1.4214138, %v3038_v5 }
 0x376   : > { %v3331_v26 = vmul.f32 1.442695, %v3295_v50  ;;  %v6532_v4 = vmul.f32 0.70710677, %v6522_v34  ;;  %v4279_v53 = vpop.eup %4278  ;;  %v3196_v62 = vadd.f32 0.2548296, %v3164_v21  ;;  %v3101_v61 = vmul.f32 %v3069_v10, %v6492_v7 }
 0x377   : > { %v3227_v36 = vmul.f32 %v3195_v59, %v6468_v27  ;;  %v2975_v25 = vmul.f32 1.0614054, %v6528_v30  ;;  %v6538_v2 = vand.u32 2147483647, %v6518_v52  ;;  %vm2686_vm3 = vcmp.ge.f32.partialorder %v6343_v55, 0.0 }
 0x378   : > { %v3102_v29 = vmul.f32 %v3070_v0, %v6496_v20  ;;  %v6543_v1 = vmul.f32 0.70710677, %v6525_v22  ;;  %v4281_v50 = vpop.eup %4280  ;;  %v3228_v11 = vmul.f32 %v3196_v62, %v6480_v46  ;;  %v3133_v38 = vadd.f32 -0.28449672, %v3101_v61 }
 0x379   : > { %v3387_v58 = vmul.f32 %v4277_v12, %v3227_v36  ;;  %v3007_v27 = vadd.f32 -1.4531521, %v2975_v25  ;;  %v4283_v6 = vpop.eup %4282  ;;  %v3156_v40 = vadd.f32 -0.28449672, %v3124_v51  ;;  %4284 = vpow2.f32 %v3331_v26 }
 0x37a   : > { %v3134_v5 = vadd.f32 -0.28449672, %v3102_v29  ;;  %v6547_v21 = vand.u32 2147483647, %v6532_v4  ;;  %v3388_v59 = vmul.f32 %v4279_v53, %v3228_v11  ;;  %v3165_v0 = vmul.f32 %v3133_v38, %v6492_v7 }
 0x37b   : > { %v3419_v10 = vsub.f32 1.0, %v3387_v58  ;;  %v3039_v3 = vmul.f32 %v3007_v27, %v6528_v30  ;;  %v2808_v52 = vmul.f32 0.3275911, %v6538_v2  ;;  %v2717_v46 = vsel %vm2685_vm2, 1.0, %v7645_v18 }
 0x37c   : > { %v3166_v12 = vmul.f32 %v3134_v5, %v6496_v20  ;;  %v6557_v51 = vand.u32 2147483647, %v6543_v1  ;;  %v3420_v26 = vsub.f32 1.0, %v3388_v59  ;;  %v3197_v53 = vadd.f32 0.2548296, %v3165_v0 }
 0x37d   : > { %v3451_v62 = vmul.f32 %v3419_v10, %v6445_v9  ;;  %v3071_v36 = vadd.f32 1.4214138, %v3039_v3  ;;  %v3188_v61 = vmul.f32 %v3156_v40, %v6401_v57  ;;  %v2785_v29 = vmul.f32 0.3275911, %v6547_v21 }
 0x37e   : > { %v3198_v25 = vadd.f32 0.2548296, %v3166_v12  ;;  %v2786_v11 = vmul.f32 0.3275911, %v6557_v51  ;;  %v3452_v8 = vmul.f32 %v3420_v26, %v6478_v63  ;;  %v3229_v38 = vmul.f32 %v3197_v53, %v6492_v7 }
 0x37f   : > { %v3483_v58 = vadd.f32 1.0, %v3451_v62  ;;  %v3103_v27 = vmul.f32 %v3071_v36, %v6528_v30  ;;  %v6567_v59 = vadd.f32 1.0, %v2785_v29  ;;  %v1976_v3 = vmul.f32 %v4813_v32, %v6388_v31 }
 0x380   : > { %v3230_v5 = vmul.f32 %v3198_v25, %v6496_v20  ;;  %v6569_v9 = vadd.f32 1.0, %v2786_v11  ;;  %v3484_v40 = vadd.f32 1.0, %v3452_v8  ;;  %v3389_v0 = vmul.f32 %v4281_v50, %v3229_v38  ;;  %v6582_v25 = vld [vmem:[#allocation2 + $0x90] sm:$0xff]  ;;  %v7738_v11 = vld [vmem:[#allocation6_spill] sm:$0xff] }
 0x381   : > { %v3515_v10 = vmul.f32 %v3483_v58, %v6422_v44  ;;  %v3135_v12 = vadd.f32 -0.28449672, %v3103_v27  ;;  %v2718_v63 = vsel %vm2686_vm3, 1.0, %v7645_v18  ;;  %4286 = vrcp.f32 %v6567_v59 }
 0x382   : > { %v3390_v7 = vmul.f32 %v4283_v6, %v3230_v5  ;;  %v1908_v20 = vmul.f32 %v7719_v24, %v6154_v45  ;;  %v3220_v26 = vadd.f32 0.2548296, %v3188_v61  ;;  %v3516_v62 = vmul.f32 %v3484_v40, %v6436_v60  ;;  %v7737_v6 = vld [vmem:[#allocation4_spill] sm:$0xff] }
 0x383   : > { %v3421_v53 = vsub.f32 1.0, %v3389_v0  ;;  %v3167_v36 = vmul.f32 %v3135_v12, %v6528_v30  ;;  %v6584_v44 = vadd.f32 1.0, %v2808_v52  ;;  %4288 = vrcp.f32 %v6569_v9 }
 0x384   : > { %v3422_v50 = vsub.f32 1.0, %v3390_v7  ;;  %v2008_v55 = vadd.f32 %v1976_v3, %v1908_v20  ;;  %v3547_v29 = vadd.f32 %v3515_v10, %v7737_v6  ;;  %v3548_v8 = vadd.f32 %v3516_v62, %v7738_v11 }
 0x385   : > { %v3453_v58 = vmul.f32 %v3421_v53, %v2717_v46  ;;  %v3199_v45 = vadd.f32 0.2548296, %v3167_v36  ;;  %v2621_v61 = vmul.f32 0.5, %v6293_v15  ;;  %v2622_v60 = vmul.f32 0.5, %v6309_v42  ;;  %v7739_v53 = vld [vmem:[#allocation3_spill] sm:$0xff] }
 0x386   : > { %v3454_v38 = vmul.f32 %v3422_v50, %v2718_v63  ;;  %v2044_v27 = vmul.f32 %v4815_v19, %v6582_v25  ;;  %v4285_v52 = vpop.eup %4284  ;;  %v3252_v5 = vmul.f32 %v3220_v26, %v6401_v57  ;;  %v3579_v40 = vpack.c.bf16 %v3548_v8, %v3547_v29  ;;  %v6606_v63 = vld [vmem:[#allocation2 + $0x91] sm:$0xff]  ;;  %v7740_v50 = vld [vmem:[#allocation5_spill] sm:$0xff] }
 0x387   : > { %v3485_v0 = vadd.f32 1.0, %v3453_v58  ;;  %v3231_v3 = vmul.f32 %v3199_v45, %v6528_v30  ;;  %4290 = vrcp.f32 %v6584_v44  ;;  %vm2687_vm4 = vcmp.ge.f32.partialorder %v6404_v23, 0.0 }
 0x388   : > { %v3486_v10 = vadd.f32 1.0, %v3454_v38  ;;  %v2076_v46 = vadd.f32 %v2044_v27, %v2008_v55  ;;  %v6599_v15 = vmul.f32 %v4817_v28, %v6374_v54  ;;  %v6603_v42 = vmul.f32 %v4828_v43, %v6451_v47  ;;  %4063 = vmatprep.mubr.msk.bf16.mxu1 %vm1639_vm9, %v3579_v40 }
 0x389   : > { %v3517_v57 = vmul.f32 %v3485_v0, %v2621_v61  ;;  %v3391_v12 = vmul.f32 %v4285_v52, %v3231_v3  ;;  %v2623_v7 = vmul.f32 0.5, %v6377_v17  ;;  %v2216_v20 = vmul.f32 %v4822_v33, %v6462_v49  ;;  %v6632_v52 = vld [vmem:[#allocation2 + $0x92] sm:$0xff] }
 0x38a   : > { %v3518_v30 = vmul.f32 %v3486_v10, %v2622_v60  ;;  %v2180_v23 = vadd.f32 %v6359_v56, %v2076_v46  ;;  %v6613_v54 = vmul.f32 %v6457_v16, %v3252_v5  ;;  %v2719_v47 = vsel %vm2687_vm4, 1.0, %v7645_v18  ;;  %v6621_v56 = vld [vmem:[#allocation2 + $0xa8] sm:$0xff]  ;;  %v7741_v5 = vld [vmem:[#allocation24_spill] sm:$0xff]  ;;  %v6637_v0 = vld [vmem:[#allocation2 + $0xb0] sm:$0xff] }
 0x38b   : > { %v3423_v26 = vsub.f32 1.0, %v3391_v12  ;;  %v3265_v62 = vsub.f32 0.0, %v6547_v21  ;;  %v3549_v36 = vadd.f32 %v3517_v57, %v7739_v53  ;;  %v2284_v17 = vmul.f32 %v4826_v37, %v6606_v63 }
 0x38c   : > { %v3550_v55 = vadd.f32 %v3518_v30, %v7740_v50  ;;  %v2248_v6 = vadd.f32 %v2216_v20, %v2180_v23  ;;  %v3266_v11 = vsub.f32 0.0, %v6557_v51  ;;  %v1910_v16 = vmul.f32 %v7719_v24, %v6388_v31 }
 0x38d   : > { %v3455_v29 = vmul.f32 %v3423_v26, %v2719_v47  ;;  %v1911_v8 = vmul.f32 %v6428_v14, %v7719_v24  ;;  %v2388_v61 = vmul.f32 %v4828_v43, %v6311_v41  ;;  %v1978_v60 = vmul.f32 %v4813_v32, %v6582_v25 }
 0x38e   : > { %v3580_v58 = vpack.c.bf16 %v3550_v55, %v3549_v36  ;;  %v2316_v45 = vadd.f32 %v2284_v17, %v2248_v6  ;;  %v4287_v38 = vpop.eup %4286  ;;  %v2046_v31 = vmul.f32 %v4815_v19, %v6621_v56  ;;  %v2047_v14 = vmul.f32 %v6637_v0, %v4815_v19  ;;  %v7743_v55 = vld [vmem:[#allocation27_spill] sm:$0xff] }
 0x38f   : > { %v3487_v27 = vadd.f32 1.0, %v3455_v29  ;;  %v2011_v40 = vadd.f32 %v7741_v5, %v1911_v8  ;;  %v2881_v41 = vmul.f32 %v4287_v38, %v6567_v59  ;;  %v3297_v3 = vmul.f32 %v3265_v62, %v6547_v21  ;;  %v7742_v59 = vld [vmem:[#allocation8_spill] sm:$0xff]  ;;  %v6656_v29 = vld [vmem:[#allocation2 + $0xa9] sm:$0xff] }
 0x390   : > { %4064 = vmatmul.mubr.msk.bf16.vlgmr.msra.gmra.mxu1 %vm1639_vm9, %v3580_v58  ;;  %v2420_v10 = vadd.f32 %v2388_v61, %v2316_v45  ;;  %v2456_v46 = vmul.f32 %v4830_v39, %v6494_v48  ;;  %v4289_v57 = vpop.eup %4288  ;;  %v3298_v30 = vmul.f32 %v3266_v11, %v6557_v51  ;;  %v2010_v23 = vadd.f32 %v1978_v60, %v1910_v16  ;;  %v7744_v16 = vld [vmem:[#allocation10_spill] sm:$0xff]  ;;  %v7745_v45 = vld [vmem:[#allocation25_spill] sm:$0xff]  ;;  %v4386_v60 = vld [vmem:[#allocation2 + $0xb1] sm:$0xff] }
 0x391   : > { %v3519_v12 = vmul.f32 %v3487_v27, %v2623_v7  ;;  %v2079_v20 = vadd.f32 %v2047_v14, %v2011_v40  ;;  %v2882_v47 = vmul.f32 %v4289_v57, %v6569_v9  ;;  %v2913_v26 = vsub.f32 2.0, %v2881_v41 }
 0x392   : > { %v2488_v53 = vadd.f32 %v2456_v46, %v2420_v10  ;;  %v2524_v36 = vmul.f32 %v6237_v13, %v6632_v52  ;;  %v2078_v21 = vadd.f32 %v2046_v31, %v2010_v23  ;;  %v2150_v62 = vmul.f32 %v4817_v28, %v6462_v49 }
 0x393   : > { %v3551_v50 = vadd.f32 %v3519_v12, %v7742_v59  ;;  %v2183_v6 = vadd.f32 %v7743_v55, %v2079_v20  ;;  %v2914_v7 = vsub.f32 2.0, %v2882_v47  ;;  %v6654_v17 = vmul.f32 %v4287_v38, %v2913_v26  ;;  %v7746_v47 = vld [vmem:[#allocation28_spill] sm:$0xff]  ;;  %v6682_v59 = vld [vmem:[#allocation2 + $0xaa] sm:$0xff] }
 0x394   : > { %v2556_v51 = vadd.f32 %v2524_v36, %v2488_v53  ;;  %v2218_v9 = vmul.f32 %v4822_v33, %v6606_v63  ;;  %v4291_v11 = vpop.eup %4290  ;;  %v2182_v58 = vadd.f32 %v2150_v62, %v2078_v21  ;;  %v2287_v49 = vmul.f32 %v4386_v60, %v4826_v37  ;;  %v7747_v21 = vld [vmem:[#allocation26_spill] sm:$0xff]  ;;  %v4387_v55 = vld [vmem:[#allocation2 + $0xb2] sm:$0xff] }
 0x395   : > { %v3581_v8 = vpack.c.bf16 %v7744_v16, %v3551_v50  ;;  %v2251_v61 = vadd.f32 %v7745_v45, %v2183_v6  ;;  %v6663_v27 = vmul.f32 %v4289_v57, %v2914_v7  ;;  %v2977_v38 = vmul.f32 1.0614054, %v6654_v17  ;;  %v6692_v45 = vld [vmem:[#allocation2 + $0xc0] sm:$0xff] }
 0x396   : > { %v3335_v5 = vmul.f32 1.442695, %v3297_v3  ;;  %v6667_v40 = vadd.f32 %v6262_v35, %v2556_v51  ;;  %v3444_v31 = vsub.f32 1.0, %v6613_v54  ;;  %v2250_v14 = vadd.f32 %v2218_v9, %v2182_v58 }
 0x397   : > { %4067 = vmatprep.mubr.msk.bf16.mxu1 %vm1639_vm9, %v3581_v8  ;;  %v2286_v41 = vmul.f32 %v4826_v37, %v6656_v29  ;;  %v2319_v10 = vadd.f32 %v2287_v49, %v2251_v61  ;;  %v2904_v46 = vmul.f32 %v4291_v11, %v6584_v44  ;;  %v2978_v57 = vmul.f32 1.0614054, %v6663_v27 }
 0x398   : > { %v3009_v12 = vadd.f32 -1.4531521, %v2977_v38  ;;  %v3337_v23 = vmul.f32 1.442695, %v3298_v30  ;;  %v6676_v3 = vmul.f32 0.70710677, %v6667_v40  ;;  %v2390_v54 = vmul.f32 %v4828_v43, %v6494_v48 }
 0x399   : > { %v2318_v20 = vadd.f32 %v2286_v41, %v2250_v14  ;;  %v2423_v26 = vadd.f32 %v7746_v47, %v2319_v10  ;;  %v3010_v53 = vadd.f32 -1.4531521, %v2978_v57  ;;  %4292 = vpow2.f32 %v3335_v5  ;;  %v7748_v5 = vld [vmem:[#allocation66_spill] sm:$0xff] }
 0x39a   : > { %v3041_v36 = vmul.f32 %v3009_v12, %v6654_v17  ;;  %v2458_v44 = vmul.f32 %v4830_v39, %v6632_v52  ;;  %v2755_v30 = vand.u32 2147483647, %v6676_v3  ;;  %v2527_v6 = vmul.f32 %v4387_v55, %v6237_v13 }
 0x39b   : > { %v2422_v50 = vadd.f32 %v2390_v54, %v2318_v20  ;;  %v2491_v62 = vadd.f32 %v7747_v21, %v2423_v26  ;;  %v2936_v48 = vsub.f32 2.0, %v2904_v46  ;;  %v3042_v7 = vmul.f32 %v3010_v53, %v6663_v27 }
 0x39c   : > { %v3073_v51 = vadd.f32 1.4214138, %v3041_v36  ;;  %4294 = vpow2.f32 %v3337_v23  ;;  %v2787_v9 = vmul.f32 0.3275911, %v2755_v30  ;;  %v2526_v8 = vmul.f32 %v6237_v13, %v6682_v59 }
 0x39d   : > { %v2490_v16 = vadd.f32 %v2458_v44, %v2422_v50  ;;  %v2559_v58 = vadd.f32 %v2527_v6, %v2491_v62  ;;  %v3074_v61 = vadd.f32 1.4214138, %v3042_v7  ;;  %v1912_v49 = vmul.f32 %v7719_v24, %v6582_v25 }
 0x39e   : > { %v3105_v60 = vmul.f32 %v3073_v51, %v6654_v17  ;;  %v1980_v38 = vmul.f32 %v4813_v32, %v6621_v56  ;;  %v3476_v14 = vmul.f32 %v3444_v31, %v7748_v5  ;;  %v6700_v41 = vadd.f32 1.0, %v2787_v9  ;;  %v6734_v51 = vld [vmem:[#allocation2 + $0xc1] sm:$0xff] }
 0x39f   : > { %v2558_v10 = vadd.f32 %v2526_v8, %v2490_v16  ;;  %v6703_v46 = vadd.f32 %v6262_v35, %v2559_v58  ;;  %v3106_v57 = vmul.f32 %v3074_v61, %v6663_v27  ;;  %v2048_v20 = vmul.f32 %v4815_v19, %v6692_v45 }
 0x3a0   : > { %v3137_v12 = vadd.f32 -0.28449672, %v3105_v60  ;;  %v2012_v23 = vadd.f32 %v1980_v38, %v1912_v49  ;;  %v6708_v54 = vmul.f32 %v4291_v11, %v2936_v48  ;;  %4296 = vrcp.f32 %v6700_v41 }
 0x3a1   : > { %v6713_v31 = vadd.f32 %v6262_v35, %v2558_v10  ;;  %v3138_v47 = vadd.f32 -0.28449672, %v3106_v57  ;;  %v6717_v53 = vmul.f32 0.70710677, %v6703_v46  ;;  %v6719_v44 = vadd.f32 1.0, %v3476_v14 }
 0x3a2   : > { %v3169_v26 = vmul.f32 %v3137_v12, %v6654_v17  ;;  %v2080_v36 = vadd.f32 %v2048_v20, %v2012_v23  ;;  %v3267_v50 = vsub.f32 0.0, %v2755_v30  ;;  %v2152_v21 = vmul.f32 %v4817_v28, %v6606_v63 }
 0x3a3   : > { %7749 = vst [vmem:[#allocation16_spill] sm:$0xff] %v6719_v44  ;;  %v6722_v11 = vmul.f32 0.70710677, %v6713_v31  ;;  %v2625_v62 = vmul.f32 0.5, %v6522_v34  ;;  %v3170_v55 = vmul.f32 %v3138_v47, %v6663_v27  ;;  %v6729_v48 = vand.u32 2147483647, %v6717_v53 }
 0x3a4   : > { %v3201_v6 = vadd.f32 0.2548296, %v3169_v26  ;;  %vm2689_vm5 = vcmp.ge.f32.partialorder %v6532_v4, 0.0  ;;  %vm2690_vm6 = vcmp.ge.f32.partialorder %v6543_v1, 0.0  ;;  %v2184_v9 = vadd.f32 %v2152_v21, %v2080_v36  ;;  %v6757_v36 = vld [vmem:[#allocation2 + $0xc2] sm:$0xff] }
 0x3a5   : > { %v2757_v7 = vand.u32 2147483647, %v6722_v11  ;;  %v3000_v16 = vmul.f32 1.0614054, %v6708_v54  ;;  %v3202_v63 = vadd.f32 0.2548296, %v3170_v55  ;;  %v3299_v60 = vmul.f32 %v3267_v50, %v2755_v30 }
 0x3a6   : > { %v3233_v34 = vmul.f32 %v3201_v6, %v6654_v17  ;;  %v2790_v8 = vmul.f32 0.3275911, %v6729_v48  ;;  %v4293_v58 = vpop.eup %4292  ;;  %v2626_v61 = vmul.f32 0.5, %v6525_v22  ;;  %v2220_v4 = vmul.f32 %v4822_v33, %v6656_v29 }
 0x3a7   : > { %v2789_v49 = vmul.f32 0.3275911, %v2757_v7  ;;  %v2721_v38 = vsel %vm2689_vm5, 1.0, %v7645_v18  ;;  %v3234_v5 = vmul.f32 %v3202_v63, %v6663_v27  ;;  %v2722_v17 = vsel %vm2690_vm6, 1.0, %v7645_v18 }
 0x3a8   : > { %v3393_v14 = vmul.f32 %v4293_v58, %v3233_v34  ;;  %v6744_v10 = vadd.f32 1.0, %v2790_v8  ;;  %v2252_v22 = vadd.f32 %v2220_v4, %v2184_v9  ;;  %v2288_v30 = vmul.f32 %v4826_v37, %v6734_v51  ;;  %v6762_v9 = vld [vmem:[#allocation2 + $0xd8] sm:$0xff] }
 0x3a9   : > { %v4295_v57 = vpop.eup %4294  ;;  %v6749_v12 = vadd.f32 1.0, %v2789_v49  ;;  %v6753_v23 = vadd.f32 -1.4531521, %v3000_v16  ;;  %v3339_v27 = vmul.f32 1.442695, %v3299_v60  ;;  %v2392_v1 = vmul.f32 %v4828_v43, %v6632_v52 }
 0x3aa   : > { %v3394_v20 = vmul.f32 %v4295_v57, %v3234_v5  ;;  %v3425_v47 = vsub.f32 1.0, %v3393_v14  ;;  %4298 = vrcp.f32 %v6744_v10  ;;  %v2320_v26 = vadd.f32 %v2288_v30, %v2252_v22  ;;  %v7750_v14 = vld [vmem:[#allocation32_spill] sm:$0xff] }
 0x3ab   : > { %4300 = vrcp.f32 %v6749_v12  ;;  %v3269_v55 = vsub.f32 0.0, %v2757_v7  ;;  %v3270_v6 = vsub.f32 0.0, %v6729_v48  ;;  %v2460_v63 = vmul.f32 %v4830_v39, %v6682_v59 }
 0x3ac   : > { %v3426_v50 = vsub.f32 1.0, %v3394_v20  ;;  %v3457_v21 = vmul.f32 %v3425_v47, %v2721_v38  ;;  %v2424_v16 = vadd.f32 %v2392_v1, %v2320_v26  ;;  %v1914_v34 = vmul.f32 %v7719_v24, %v6621_v56  ;;  %v6778_v20 = vld [vmem:[#allocation2 + $0xe0] sm:$0xff] }
 0x3ad   : > { %v1915_v8 = vmul.f32 %v6637_v0, %v7719_v24  ;;  %v4297_v58 = vpop.eup %4296  ;;  %v2528_v49 = vmul.f32 %v6237_v13, %v6757_v36  ;;  %v1982_v4 = vmul.f32 %v4813_v32, %v6692_v45  ;;  %v2050_v56 = vmul.f32 %v4815_v19, %v6762_v9 }
 0x3ae   : > { %v3458_v60 = vmul.f32 %v3426_v50, %v2722_v17  ;;  %v3489_v52 = vadd.f32 1.0, %v3457_v21  ;;  %v2883_v38 = vmul.f32 %v4297_v58, %v6700_v41  ;;  %v2492_v5 = vadd.f32 %v2460_v63, %v2424_v16  ;;  %v6782_v21 = vld [vmem:[#allocation2 + $0xd9] sm:$0xff] }
 0x3af   : > { %v2015_v57 = vadd.f32 %v7750_v14, %v1915_v8  ;;  %v2014_v0 = vadd.f32 %v1982_v4, %v1914_v34  ;;  %v2051_v17 = vmul.f32 %v6778_v20, %v4815_v19  ;;  %4302 = vpow2.f32 %v3339_v27  ;;  %v4389_v14 = vld [vmem:[#allocation2 + $0xe1] sm:$0xff] }
 0x3b0   : > { %v3490_v22 = vadd.f32 1.0, %v3458_v60  ;;  %v3521_v30 = vmul.f32 %v3489_v52, %v2625_v62  ;;  %v2915_v13 = vsub.f32 2.0, %v2883_v38  ;;  %v3301_v47 = vmul.f32 %v3269_v55, %v2757_v7  ;;  %v7751_v7 = vld [vmem:[#allocation7_spill] sm:$0xff]  ;;  %v7753_v52 = vld [vmem:[#allocation36_spill] sm:$0xff]  ;;  %v7754_v38 = vld [vmem:[#allocation33_spill] sm:$0xff] }
 0x3b1   : > { %v2560_v26 = vadd.f32 %v2528_v49, %v2492_v5  ;;  %v2082_v41 = vadd.f32 %v2050_v56, %v2014_v0  ;;  %v2083_v50 = vadd.f32 %v2051_v17, %v2015_v57  ;;  %v2154_v16 = vmul.f32 %v4817_v28, %v6656_v29  ;;  %v6805_v56 = vld [vmem:[#allocation2 + $0xda] sm:$0xff] }
 0x3b2   : > { %v3522_v1 = vmul.f32 %v3490_v22, %v2626_v61  ;;  %v6786_v63 = vmul.f32 %v4297_v58, %v2915_v13  ;;  %v3302_v62 = vmul.f32 %v3270_v6, %v6729_v48  ;;  %v2222_v27 = vmul.f32 %v4822_v33, %v6734_v51  ;;  %v7752_v61 = vld [vmem:[#allocation9_spill] sm:$0xff] }
 0x3b3   : > { %v6790_v34 = vadd.f32 %v6262_v35, %v2560_v26  ;;  %v3553_v55 = vadd.f32 %v3521_v30, %v7751_v7  ;;  %v2186_v60 = vadd.f32 %v2154_v16, %v2082_v41  ;;  %v2187_v49 = vadd.f32 %v7753_v52, %v2083_v50  ;;  %v6819_v7 = vld [vmem:[%s7580_s5 + $0x8] ss:$0 sm:$0xff] }
 0x3b4   : > { %v3554_v8 = vadd.f32 %v3522_v1, %v7752_v61  ;;  %v2979_v4 = vmul.f32 1.0614054, %v6786_v63  ;;  %v3343_v29 = vmul.f32 1.442695, %v3301_v47  ;;  %v2290_v35 = vmul.f32 %v4826_v37, %v6782_v21  ;;  %v7755_v61 = vld [vmem:[#allocation37_spill] sm:$0xff] }
 0x3b5   : > { %v6799_v58 = vmul.f32 0.70710677, %v6790_v34  ;;  %v2254_v6 = vadd.f32 %v2222_v27, %v2186_v60  ;;  %v2255_v5 = vadd.f32 %v7754_v38, %v2187_v49  ;;  %v2291_v57 = vmul.f32 %v4389_v14, %v4826_v37  ;;  %v4391_v60 = vld [vmem:[#allocation2 + $0xe2] sm:$0xff]  ;;  %v6832_v14 = vld [vmem:[#allocation2 + $0xf0] sm:$0xff] }
 0x3b6   : > { %v3582_v48 = vpack.c.bf16 %v3554_v8, %v3553_v55  ;;  %v3011_v30 = vadd.f32 -1.4531521, %v2979_v4  ;;  %v3345_v0 = vmul.f32 1.442695, %v3302_v62  ;;  %v2394_v13 = vmul.f32 %v4828_v43, %v6682_v59  ;;  %v7756_v38 = vld [vmem:[#allocation34_spill] sm:$0xff] }
 0x3b7   : > { %v4299_v22 = vpop.eup %4298  ;;  %v2759_v17 = vand.u32 2147483647, %v6799_v58  ;;  %v2322_v1 = vadd.f32 %v2290_v35, %v2254_v6  ;;  %v2323_v41 = vadd.f32 %v2291_v57, %v2255_v5  ;;  %v2462_v50 = vmul.f32 %v4830_v39, %v6757_v36 }
 0x3b8   : > { %v4301_v47 = vpop.eup %4300  ;;  %4068 = vmatmul.mubr.msk.bf16.gmra.mxu1 %vm1639_vm9, %v3582_v48  ;;  %v2886_v26 = vmul.f32 %v4299_v22, %v6744_v10  ;;  %v3043_v16 = vmul.f32 %v3011_v30, %v6786_v63  ;;  %v2530_v59 = vmul.f32 %v6819_v7, %v6805_v56  ;;  %v2531_v52 = vmul.f32 %v4391_v60, %v6819_v7 }
 0x3b9   : > { %v2885_v27 = vmul.f32 %v4301_v47, %v6749_v12  ;;  %v2791_v62 = vmul.f32 0.3275911, %v2759_v17  ;;  %v2426_v10 = vadd.f32 %v2394_v13, %v2322_v1  ;;  %v2427_v8 = vadd.f32 %v7755_v61, %v2323_v41 }
 0x3ba   : > { %v2918_v55 = vsub.f32 2.0, %v2886_v26  ;;  %v3075_v49 = vadd.f32 1.4214138, %v3043_v16  ;;  %v1916_v12 = vmul.f32 %v7719_v24, %v6692_v45  ;;  %v1984_v57 = vmul.f32 %v4813_v32, %v6762_v9 }
 0x3bb   : > { %v2917_v4 = vsub.f32 2.0, %v2885_v27  ;;  %v6825_v35 = vadd.f32 1.0, %v2791_v62  ;;  %v2494_v6 = vadd.f32 %v2462_v50, %v2426_v10  ;;  %v2495_v5 = vadd.f32 %v7756_v38, %v2427_v8 }
 0x3bc   : > { %v6829_v48 = vmul.f32 %v4299_v22, %v2918_v55  ;;  %v3107_v30 = vmul.f32 %v3075_v49, %v6786_v63  ;;  %v3271_v26 = vsub.f32 0.0, %v2759_v17  ;;  %v4303_v1 = vpop.eup %4302  ;;  %v2016_v50 = vadd.f32 %v1984_v57, %v1916_v12 }
 0x3bd   : > { %v6837_v13 = vmul.f32 %v4301_v47, %v2917_v4  ;;  %4304 = vrcp.f32 %v6825_v35  ;;  %v2562_v22 = vadd.f32 %v2530_v59, %v2494_v6  ;;  %v2563_v41 = vadd.f32 %v2531_v52, %v2495_v5  ;;  %v6848_v47 = vld [vmem:[%s7581_s6] ss:$0 sm:$0xff] }
 0x3be   : > { %v2982_v45 = vmul.f32 1.0614054, %v6829_v48  ;;  %vm2691_vm7 = vcmp.ge.f32.partialorder %v6676_v3, 0.0  ;;  %v3139_v16 = vadd.f32 -0.28449672, %v3107_v30  ;;  %v2052_v62 = vmul.f32 %v4815_v19, %v6832_v14 }
 0x3bf   : > { %v2981_v27 = vmul.f32 1.0614054, %v6837_v13  ;;  %4306 = vpow2.f32 %v3343_v29  ;;  %v6851_v10 = vadd.f32 %v6848_v47, %v2562_v22  ;;  %v6854_v59 = vadd.f32 %v6848_v47, %v2563_v41  ;;  %v6876_v22 = vld [vmem:[#allocation2 + $0xf1] sm:$0xff] }
 0x3c0   : > { %v3014_v55 = vadd.f32 -1.4531521, %v2982_v45  ;;  %v3171_v61 = vmul.f32 %v3139_v16, %v6786_v63  ;;  %v2084_v60 = vadd.f32 %v2052_v62, %v2016_v50  ;;  %v2156_v52 = vmul.f32 %v4817_v28, %v6734_v51 }
 0x3c1   : > { %v3013_v8 = vadd.f32 -1.4531521, %v2981_v27  ;;  %4308 = vpow2.f32 %v3345_v0  ;;  %v3303_v49 = vmul.f32 %v3271_v26, %v2759_v17  ;;  %v6861_v4 = vmul.f32 0.70710677, %v6851_v10 }
 0x3c2   : > { %v3046_v29 = vmul.f32 %v3014_v55, %v6829_v48  ;;  %v3203_v12 = vadd.f32 0.2548296, %v3171_v61  ;;  %v6865_v38 = vmul.f32 0.70710677, %v6854_v59  ;;  %v2188_v5 = vadd.f32 %v2156_v52, %v2084_v60 }
 0x3c3   : > { %v3045_v6 = vmul.f32 %v3013_v8, %v6837_v13  ;;  %v2627_v57 = vmul.f32 0.5, %v6667_v40  ;;  %v2723_v51 = vsel %vm2691_vm7, 1.0, %v7645_v18  ;;  %v2761_v0 = vand.u32 2147483647, %v6861_v4 }
 0x3c4   : > { %v3078_v30 = vadd.f32 1.4214138, %v3046_v29  ;;  %v3235_v17 = vmul.f32 %v3203_v12, %v6786_v63  ;;  %v6874_v26 = vmul.f32 0.5, %v6703_v46  ;;  %v2224_v41 = vmul.f32 %v4822_v33, %v6782_v21 }
 0x3c5   : > { %v3077_v45 = vadd.f32 1.4214138, %v3045_v6  ;;  %vm2694_vm11 = vcmp.ge.f32.partialorder %v6717_v53, 0.0  ;;  %v6883_v3 = vand.u32 2147483647, %v6865_v38  ;;  %v2292_v8 = vmul.f32 %v4826_v37, %v6876_v22 }
 0x3c6   : > { %v3110_v40 = vmul.f32 %v3078_v30, %v6829_v48  ;;  %v2793_v50 = vmul.f32 0.3275911, %v2761_v0  ;;  %v3395_v16 = vmul.f32 %v4303_v1, %v3235_v17  ;;  %v3347_v27 = vmul.f32 1.442695, %v3303_v49 }
 0x3c7   : > { %v3109_v63 = vmul.f32 %v3077_v45, %v6837_v13  ;;  %v2256_v46 = vadd.f32 %v2224_v41, %v2188_v5  ;;  %v2794_v55 = vmul.f32 0.3275911, %v6883_v3  ;;  %vm2693_vm12 = vcmp.ge.f32.partialorder %v6722_v11, 0.0  ;;  %v6901_v45 = vld [vmem:[#allocation2 + $0xf2] sm:$0xff] }
 0x3c8   : > { %v3142_v62 = vadd.f32 -0.28449672, %v3110_v40  ;;  %v6887_v61 = vadd.f32 1.0, %v2793_v50  ;;  %v3427_v53 = vsub.f32 1.0, %v3395_v16  ;;  %v2726_v60 = vsel %vm2694_vm11, 1.0, %v7645_v18 }
 0x3c9   : > { %v3141_v52 = vadd.f32 -0.28449672, %v3109_v63  ;;  %v6894_v12 = vadd.f32 1.0, %v2794_v55  ;;  %v2324_v49 = vadd.f32 %v2292_v8, %v2256_v46  ;;  %v2725_v17 = vsel %vm2693_vm12, 1.0, %v7645_v18 }
 0x3ca   : > { %v4305_v29 = vpop.eup %4304  ;;  %v3174_v1 = vmul.f32 %v3142_v62, %v6829_v48  ;;  %4310 = vrcp.f32 %v6887_v61  ;;  %v3459_v6 = vmul.f32 %v3427_v53, %v2723_v51  ;;  %v2396_v41 = vmul.f32 %v4828_v43, %v6757_v36 }
 0x3cb   : > { %v3173_v5 = vmul.f32 %v3141_v52, %v6837_v13  ;;  %v2887_v30 = vmul.f32 %v4305_v29, %v6825_v35  ;;  %4312 = vpow2.f32 %v3347_v27  ;;  %v3273_v51 = vsub.f32 0.0, %v2761_v0 }
 0x3cc   : > { %v3206_v11 = vadd.f32 0.2548296, %v3174_v1  ;;  %4314 = vrcp.f32 %v6894_v12  ;;  %v4307_v40 = vpop.eup %4306  ;;  %v3491_v50 = vadd.f32 1.0, %v3459_v6  ;;  %v3274_v35 = vsub.f32 0.0, %v6883_v3  ;;  %v6914_v1 = vld [vmem:[#allocation2 + $0x108] sm:$0xff] }
 0x3cd   : > { %v3205_v16 = vadd.f32 0.2548296, %v3173_v5  ;;  %v2919_v63 = vsub.f32 2.0, %v2887_v30  ;;  %v2428_v27 = vadd.f32 %v2396_v41, %v2324_v49  ;;  %v2464_v62 = vmul.f32 %v4830_v39, %v6805_v56  ;;  %v7757_v30 = vld [vmem:[#allocation13_spill] sm:$0xff] }
 0x3ce   : > { %v3238_v46 = vmul.f32 %v3206_v11, %v6829_v48  ;;  %v4309_v55 = vpop.eup %4308  ;;  %v3523_v8 = vmul.f32 %v3491_v50, %v2627_v57  ;;  %v2532_v36 = vmul.f32 %v6819_v7, %v6901_v45  ;;  %v1918_v48 = vmul.f32 %v7719_v24, %v6762_v9 }
 0x3cf   : > { %v3237_v53 = vmul.f32 %v3205_v16, %v6837_v13  ;;  %v6910_v52 = vmul.f32 %v4305_v29, %v2919_v63  ;;  %v2496_v5 = vadd.f32 %v2464_v62, %v2428_v27  ;;  %v1919_v49 = vmul.f32 %v6778_v20, %v7719_v24 }
 0x3d0   : > { %v3398_v6 = vmul.f32 %v4309_v55, %v3238_v46  ;;  %v3555_v11 = vadd.f32 %v3523_v8, %v7757_v30  ;;  %v1986_v29 = vmul.f32 %v4813_v32, %v6832_v14  ;;  %v3305_v50 = vmul.f32 %v3273_v51, %v2761_v0  ;;  %v7758_v46 = vld [vmem:[#allocation41_spill] sm:$0xff]  ;;  %v6931_v30 = vld [vmem:[#allocation2 + $0x110] sm:$0xff] }
 0x3d1   : > { %v3397_v57 = vmul.f32 %v4307_v40, %v3237_v53  ;;  %v2983_v13 = vmul.f32 1.0614054, %v6910_v52  ;;  %v2564_v16 = vadd.f32 %v2532_v36, %v2496_v5  ;;  %v2054_v63 = vmul.f32 %v4815_v19, %v6914_v1  ;;  %v7759_v40 = vld [vmem:[#allocation42_spill] sm:$0xff] }
 0x3d2   : > { %v3430_v41 = vsub.f32 1.0, %v3398_v6  ;;  %v3583_v27 = vpack.c.bf16 %v7758_v46, %v3555_v11  ;;  %v2018_v55 = vadd.f32 %v1986_v29, %v1918_v48  ;;  %v2019_v53 = vadd.f32 %v7759_v40, %v1919_v49 }
 0x3d3   : > { %v3429_v9 = vsub.f32 1.0, %v3397_v57  ;;  %v3015_v62 = vadd.f32 -1.4531521, %v2983_v13  ;;  %v6928_v8 = vadd.f32 %v6848_v47, %v2564_v16  ;;  %v2055_v0 = vmul.f32 %v6931_v30, %v4815_v19 }
 0x3d4   : > { %v3462_v20 = vmul.f32 %v3430_v41, %v2726_v60  ;;  %4071 = vmatprep.mubr.msk.bf16.mxu1 %vm1639_vm9, %v3583_v27  ;;  %v2086_v6 = vadd.f32 %v2054_v63, %v2018_v55  ;;  %v2158_v5 = vmul.f32 %v4817_v28, %v6782_v21  ;;  %v2629_v60 = vmul.f32 0.5, %v6713_v31  ;;  %v6949_v31 = vld [vmem:[#allocation2 + $0x109] sm:$0xff] }
 0x3d5   : > { %v3461_v51 = vmul.f32 %v3429_v9, %v2725_v17  ;;  %v3047_v36 = vmul.f32 %v3015_v62, %v6910_v52  ;;  %v6941_v11 = vmul.f32 0.70710677, %v6928_v8  ;;  %v2087_v49 = vadd.f32 %v2055_v0, %v2019_v53  ;;  %v7762_v0 = vld [vmem:[#allocation12_spill] sm:$0xff] }
 0x3d6   : > { %v3494_v48 = vadd.f32 1.0, %v3462_v20  ;;  %v3306_v41 = vmul.f32 %v3274_v35, %v6883_v3  ;;  %v2190_v16 = vadd.f32 %v2158_v5, %v2086_v6  ;;  %v3351_v27 = vmul.f32 1.442695, %v3305_v50  ;;  %v7760_v20 = vld [vmem:[#allocation46_spill] sm:$0xff] }
 0x3d7   : > { %v4311_v57 = vpop.eup %4310  ;;  %v3493_v13 = vadd.f32 1.0, %v3461_v51  ;;  %v3079_v29 = vadd.f32 1.4214138, %v3047_v36  ;;  %v6947_v21 = vand.u32 2147483647, %v6941_v11  ;;  %v2191_v40 = vadd.f32 %v7760_v20, %v2087_v49  ;;  %v7761_v35 = vld [vmem:[#allocation14_spill] sm:$0xff] }
 0x3d8   : > { %v4313_v17 = vpop.eup %4312  ;;  %v3526_v46 = vmul.f32 %v3494_v48, %v6874_v26  ;;  %v2889_v63 = vmul.f32 %v4311_v57, %v6887_v61  ;;  %v2226_v3 = vmul.f32 %v4822_v33, %v6876_v22  ;;  %v2294_v5 = vmul.f32 %v4826_v37, %v6949_v31  ;;  %v6973_v20 = vld [vmem:[#allocation2 + $0x10a] sm:$0xff] }
 0x3d9   : > { %v4315_v9 = vpop.eup %4314  ;;  %v3525_v62 = vmul.f32 %v3493_v13, %v2629_v60  ;;  %v3111_v55 = vmul.f32 %v3079_v29, %v6910_v52  ;;  %v2795_v50 = vmul.f32 0.3275911, %v6947_v21  ;;  %v7763_v13 = vld [vmem:[#allocation43_spill] sm:$0xff]  ;;  %vm2695_vm13 = vcmp.ge.f32.partialorder %v6799_v58, 0.0 }
 0x3da   : > { %v3558_v53 = vadd.f32 %v3526_v46, %v7761_v35  ;;  %v2890_v26 = vmul.f32 %v4315_v9, %v6894_v12  ;;  %v2921_v61 = vsub.f32 2.0, %v2889_v63  ;;  %v2258_v6 = vadd.f32 %v2226_v3, %v2190_v16  ;;  %v4394_v63 = vld [vmem:[#allocation2 + $0x111] sm:$0xff] }
 0x3db   : > { %v3557_v51 = vadd.f32 %v3525_v62, %v7762_v0  ;;  %v3143_v36 = vadd.f32 -0.28449672, %v3111_v55  ;;  %v6963_v49 = vadd.f32 1.0, %v2795_v50  ;;  %v2259_v29 = vadd.f32 %v7763_v13, %v2191_v40 }
 0x3dc   : > { %v2922_v60 = vsub.f32 2.0, %v2890_v26  ;;  %v6961_v48 = vmul.f32 %v4311_v57, %v2921_v61  ;;  %v2295_v62 = vmul.f32 %v4394_v63, %v4826_v37  ;;  %v2326_v57 = vadd.f32 %v2294_v5, %v2258_v6 }
 0x3dd   : > { %v3584_v46 = vpack.c.bf16 %v3558_v53, %v3557_v51  ;;  %v3175_v12 = vmul.f32 %v3143_v36, %v6910_v52  ;;  %4316 = vrcp.f32 %v6963_v49  ;;  %v3353_v3 = vmul.f32 1.442695, %v3306_v41  ;;  %v7764_v51 = vld [vmem:[#allocation52_spill] sm:$0xff] }
 0x3de   : > { %v6969_v55 = vmul.f32 %v4315_v9, %v2922_v60  ;;  %v2985_v16 = vmul.f32 1.0614054, %v6961_v48  ;;  %v2327_v35 = vadd.f32 %v2295_v62, %v2259_v29  ;;  %v2398_v53 = vmul.f32 %v4828_v43, %v6805_v56  ;;  %v4395_v60 = vld [vmem:[#allocation2 + $0x112] sm:$0xff] }
 0x3df   : > { %4072 = vmatmul.mubr.msk.bf16.gmra.mxu1 %vm1639_vm9, %v3584_v46  ;;  %v3207_v40 = vadd.f32 0.2548296, %v3175_v12  ;;  %4318 = vpow2.f32 %v3351_v27  ;;  %v2466_v9 = vmul.f32 %v4830_v39, %v6901_v45  ;;  %v2534_v6 = vmul.f32 %v6819_v7, %v6973_v20  ;;  %v7765_v46 = vld [vmem:[#allocation44_spill] sm:$0xff] }
 0x3e0   : > { %v2986_v26 = vmul.f32 1.0614054, %v6969_v55  ;;  %v3017_v61 = vadd.f32 -1.4531521, %v2985_v16  ;;  %v2430_v0 = vadd.f32 %v2398_v53, %v2326_v57  ;;  %v2431_v36 = vadd.f32 %v7764_v51, %v2327_v35  ;;  %v6994_v57 = vld [vmem:[#allocation2 + $0x120] sm:$0xff] }
 0x3e1   : > { %v3239_v50 = vmul.f32 %v3207_v40, %v6910_v52  ;;  %v2535_v56 = vmul.f32 %v4395_v60, %v6819_v7  ;;  %v1920_v27 = vmul.f32 %v7719_v24, %v6832_v14  ;;  %v1988_v52 = vmul.f32 %v4813_v32, %v6914_v1 }
 0x3e2   : > { %v3018_v41 = vadd.f32 -1.4531521, %v2986_v26  ;;  %v3049_v5 = vmul.f32 %v3017_v61, %v6961_v48  ;;  %v2498_v29 = vadd.f32 %v2466_v9, %v2430_v0  ;;  %v2499_v12 = vadd.f32 %v7765_v46, %v2431_v36 }
 0x3e3   : > { %v3399_v13 = vmul.f32 %v4313_v17, %v3239_v50  ;;  %4320 = vpow2.f32 %v3353_v3  ;;  %v3275_v16 = vsub.f32 0.0, %v6947_v21  ;;  %v2020_v26 = vadd.f32 %v1988_v52, %v1920_v27 }
 0x3e4   : > { %v3050_v63 = vmul.f32 %v3018_v41, %v6969_v55  ;;  %v3081_v62 = vadd.f32 1.4214138, %v3049_v5  ;;  %v2566_v35 = vadd.f32 %v2534_v6, %v2498_v29  ;;  %v2567_v53 = vadd.f32 %v2535_v56, %v2499_v12 }
 0x3e5   : > { %v3431_v40 = vsub.f32 1.0, %v3399_v13  ;;  %v2631_v14 = vmul.f32 0.5, %v6790_v34  ;;  %v2727_v17 = vsel %vm2695_vm13, 1.0, %v7645_v18  ;;  %v2056_v51 = vmul.f32 %v4815_v19, %v6994_v57 }
 0x3e6   : > { %v3082_v61 = vadd.f32 1.4214138, %v3050_v63  ;;  %v3113_v9 = vmul.f32 %v3081_v62, %v6961_v48  ;;  %v7002_v3 = vadd.f32 %v6848_v47, %v2566_v35  ;;  %v7005_v0 = vadd.f32 %v6848_v47, %v2567_v53 }
 0x3e7   : > { %v3463_v50 = vmul.f32 %v3431_v40, %v2727_v17  ;;  %v7010_v36 = vmul.f32 0.5, %v6851_v10  ;;  %vm2697_vm14 = vcmp.ge.f32.partialorder %v6861_v4, 0.0  ;;  %v3307_v41 = vmul.f32 %v3275_v16, %v6947_v21  ;;  %v7766_v40 = vld [vmem:[#allocation19_spill] sm:$0xff] }
 0x3e8   : > { %v3114_v34 = vmul.f32 %v3082_v61, %v6969_v55  ;;  %v3145_v58 = vadd.f32 -0.28449672, %v3113_v9  ;;  %v7016_v5 = vmul.f32 0.70710677, %v7002_v3  ;;  %v2088_v60 = vadd.f32 %v2056_v51, %v2020_v26  ;;  %v7042_v9 = vld [vmem:[#allocation2 + $0x121] sm:$0xff] }
 0x3e9   : > { %v3495_v6 = vadd.f32 1.0, %v3463_v50  ;;  %v7019_v56 = vmul.f32 0.5, %v6854_v59  ;;  %v7023_v10 = vmul.f32 0.70710677, %v7005_v0  ;;  %vm2698_vm15 = vcmp.ge.f32.partialorder %v6865_v38, 0.0  ;;  %v7767_v50 = vld [vmem:[#allocation21_spill] sm:$0xff] }
 0x3ea   : > { %v3146_v27 = vadd.f32 -0.28449672, %v3114_v34  ;;  %v3177_v13 = vmul.f32 %v3145_v58, %v6961_v48  ;;  %v4317_v29 = vpop.eup %4316  ;;  %v7027_v12 = vand.u32 2147483647, %v7016_v5  ;;  %v2160_v21 = vmul.f32 %v4817_v28, %v6876_v22 }
 0x3eb   : > { %v3527_v46 = vmul.f32 %v3495_v6, %v2631_v14  ;;  %v2729_v59 = vsel %vm2697_vm14, 1.0, %v7645_v18  ;;  %v2891_v62 = vmul.f32 %v4317_v29, %v6963_v49  ;;  %v3355_v53 = vmul.f32 1.442695, %v3307_v41 }
 0x3ec   : > { %v3178_v52 = vmul.f32 %v3146_v27, %v6969_v55  ;;  %v3209_v63 = vadd.f32 0.2548296, %v3177_v13  ;;  %v4319_v16 = vpop.eup %4318  ;;  %v7038_v26 = vand.u32 2147483647, %v7023_v10  ;;  %v2192_v14 = vadd.f32 %v2160_v21, %v2088_v60 }
 0x3ed   : > { %v3559_v35 = vadd.f32 %v3527_v46, %v7766_v40  ;;  %v2923_v61 = vsub.f32 2.0, %v2891_v62  ;;  %v2797_v4 = vmul.f32 0.3275911, %v7027_v12  ;;  %v2730_v49 = vsel %vm2698_vm15, 1.0, %v7645_v18 }
 0x3ee   : > { %v3210_v17 = vadd.f32 0.2548296, %v3178_v52  ;;  %v3241_v22 = vmul.f32 %v3209_v63, %v6961_v48  ;;  %v2798_v34 = vmul.f32 0.3275911, %v7038_v26  ;;  %v2228_v58 = vmul.f32 %v4822_v33, %v6949_v31 }
 0x3ef   : > { %v3585_v51 = vpack.c.bf16 %v7767_v50, %v3559_v35  ;;  %v7052_v48 = vmul.f32 %v4317_v29, %v2923_v61  ;;  %v7054_v60 = vadd.f32 1.0, %v2797_v4  ;;  %4322 = vpow2.f32 %v3355_v53  ;;  %v7065_v29 = vld [vmem:[#allocation2 + $0x122] sm:$0xff]  ;;  %v7069_v53 = vld [vmem:[#allocation2 + $0x138] sm:$0xff] }
 0x3f0   : > { %v3242_v6 = vmul.f32 %v3210_v17, %v6969_v55  ;;  %v3401_v41 = vmul.f32 %v4319_v16, %v3241_v22  ;;  %v4321_v27 = vpop.eup %4320  ;;  %v7057_v13 = vadd.f32 1.0, %v2798_v34  ;;  %v2260_v38 = vadd.f32 %v2228_v58, %v2192_v14 }
 0x3f1   : > { %4075 = vmatprep.mubr.msk.bf16.mxu1 %vm1639_vm9, %v3585_v51  ;;  %v2296_v46 = vmul.f32 %v4826_v37, %v7042_v9  ;;  %v2987_v63 = vmul.f32 1.0614054, %v7052_v48  ;;  %4324 = vrcp.f32 %v7054_v60  ;;  %vm2699_vm0 = vcmp.ge.f32.partialorder %v6941_v11, 0.0 }
 0x3f2   : > { %v3402_v21 = vmul.f32 %v4321_v27, %v3242_v6  ;;  %v3433_v52 = vsub.f32 1.0, %v3401_v41  ;;  %4326 = vrcp.f32 %v7057_v13  ;;  %v2400_v62 = vmul.f32 %v4828_v43, %v6901_v45 }
 0x3f3   : > { %v2328_v55 = vadd.f32 %v2296_v46, %v2260_v38  ;;  %v3019_v35 = vadd.f32 -1.4531521, %v2987_v63  ;;  %v1922_v14 = vmul.f32 %v7719_v24, %v6914_v1  ;;  %v2468_v22 = vmul.f32 %v4830_v39, %v6973_v20  ;;  %v7768_v1 = vld [vmem:[#allocation58_spill] sm:$0xff]  ;;  %v7086_v46 = vld [vmem:[#allocation2 + $0x140] sm:$0xff] }
 0x3f4   : > { %v3434_v16 = vsub.f32 1.0, %v3402_v21  ;;  %v3465_v40 = vmul.f32 %v3433_v52, %v2729_v59  ;;  %v1923_v61 = vmul.f32 %v6931_v30, %v7719_v24  ;;  %v1990_v4 = vmul.f32 %v4813_v32, %v6994_v57 }
 0x3f5   : > { %v2432_v17 = vadd.f32 %v2400_v62, %v2328_v55  ;;  %v3051_v59 = vmul.f32 %v3019_v35, %v7052_v48  ;;  %v2536_v51 = vmul.f32 %v6819_v7, %v7065_v29  ;;  %v2058_v41 = vmul.f32 %v4815_v19, %v7069_v53  ;;  %v7100_v35 = vld [vmem:[#allocation2 + $0x139] sm:$0xff] }
 0x3f6   : > { %v3466_v50 = vmul.f32 %v3434_v16, %v2730_v49  ;;  %v3497_v45 = vadd.f32 1.0, %v3465_v40  ;;  %v2022_v58 = vadd.f32 %v1990_v4, %v1922_v14  ;;  %v2023_v6 = vadd.f32 %v7768_v1, %v1923_v61  ;;  %v7770_v4 = vld [vmem:[#allocation20_spill] sm:$0xff] }
 0x3f7   : > { %v2500_v34 = vadd.f32 %v2468_v22, %v2432_v17  ;;  %v3083_v38 = vadd.f32 1.4214138, %v3051_v59  ;;  %v2059_v49 = vmul.f32 %v7086_v46, %v4815_v19  ;;  %v3277_v21 = vsub.f32 0.0, %v7027_v12 }
 0x3f8   : > { %v3498_v27 = vadd.f32 1.0, %v3466_v50  ;;  %v3529_v30 = vmul.f32 %v3497_v45, %v7010_v36  ;;  %v2090_v63 = vadd.f32 %v2058_v41, %v2022_v58  ;;  %v2162_v55 = vmul.f32 %v4817_v28, %v6949_v31  ;;  %v7771_v45 = vld [vmem:[#allocation48_spill] sm:$0xff] }
 0x3f9   : > { %v2568_v52 = vadd.f32 %v2536_v51, %v2500_v34  ;;  %v7097_v16 = vsel %vm2699_vm0, 1.0, %v7645_v18  ;;  %v3115_v36 = vmul.f32 %v3083_v38, %v7052_v48  ;;  %v2091_v40 = vadd.f32 %v2059_v49, %v2023_v6  ;;  %v7772_v38 = vld [vmem:[#allocation59_spill] sm:$0xff]  ;;  %v4397_v49 = vld [vmem:[#allocation2 + $0x141] sm:$0xff] }
 0x3fa   : > { %v3530_v62 = vmul.f32 %v3498_v27, %v7019_v56  ;;  %v3278_v14 = vsub.f32 0.0, %v7038_v26  ;;  %v2194_v22 = vadd.f32 %v2162_v55, %v2090_v63  ;;  %v2230_v31 = vmul.f32 %v4822_v33, %v7042_v9  ;;  %v7769_v56 = vld [vmem:[#allocation18_spill] sm:$0xff]  ;;  %v7120_v63 = vld [vmem:[#allocation2 + $0x13a] sm:$0xff] }
 0x3fb   : > { %v7104_v17 = vadd.f32 %v6848_v47, %v2568_v52  ;;  %v3561_v61 = vadd.f32 %v3529_v30, %v7769_v56  ;;  %v3147_v50 = vadd.f32 -0.28449672, %v3115_v36  ;;  %v2195_v59 = vadd.f32 %v7771_v45, %v2091_v40  ;;  %v7773_v45 = vld [vmem:[#allocation49_spill] sm:$0xff] }
 0x3fc   : > { %v3562_v11 = vadd.f32 %v3530_v62, %v7770_v4  ;;  %v3309_v51 = vmul.f32 %v3277_v21, %v7027_v12  ;;  %v2262_v58 = vadd.f32 %v2230_v31, %v2194_v22  ;;  %v2298_v1 = vmul.f32 %v4826_v37, %v7100_v35  ;;  %v4323_v6 = vpop.eup %4322 }
 0x3fd   : > { %v7113_v34 = vmul.f32 0.70710677, %v7104_v17  ;;  %v3179_v27 = vmul.f32 %v3147_v50, %v7052_v48  ;;  %v2263_v30 = vadd.f32 %v7772_v38, %v2195_v59  ;;  %v2299_v52 = vmul.f32 %v4397_v49, %v4826_v37  ;;  %v7774_v49 = vld [vmem:[#allocation61_spill] sm:$0xff] }
 0x3fe   : > { %v3586_v41 = vpack.c.bf16 %v3562_v11, %v3561_v61  ;;  %v4325_v55 = vpop.eup %4324  ;;  %v3310_v12 = vmul.f32 %v3278_v14, %v7038_v26  ;;  %v2330_v62 = vadd.f32 %v2298_v1, %v2262_v58  ;;  %v2402_v36 = vmul.f32 %v4828_v43, %v6973_v20  ;;  %v4398_v58 = vld [vmem:[#allocation2 + $0x142] sm:$0xff] }
 0x3ff   : > { %v7124_v21 = vand.u32 2147483647, %v7113_v34  ;;  %v4327_v40 = vpop.eup %4326  ;;  %v3211_v22 = vadd.f32 0.2548296, %v3179_v27  ;;  %v2893_v31 = vmul.f32 %v4325_v55, %v7054_v60  ;;  %v2331_v56 = vadd.f32 %v2299_v52, %v2263_v30 }
 0x400   : > { %4076 = vmatmul.mubr.msk.bf16.gmra.mxu1 %vm1639_vm9, %v3586_v41  ;;  %v2470_v61 = vmul.f32 %v4830_v39, %v7065_v29  ;;  %v2894_v4 = vmul.f32 %v4327_v40, %v7057_v13  ;;  %v2434_v14 = vadd.f32 %v2402_v36, %v2330_v62  ;;  %v2538_v11 = vmul.f32 %v6819_v7, %v7120_v63  ;;  %v7146_v62 = vld [vmem:[#allocation2 + $0x150] sm:$0xff] }
 0x401   : > { %v2799_v26 = vmul.f32 0.3275911, %v7124_v21  ;;  %v3243_v20 = vmul.f32 %v3211_v22, %v7052_v48  ;;  %v2925_v50 = vsub.f32 2.0, %v2893_v31  ;;  %v2435_v59 = vadd.f32 %v7773_v45, %v2331_v56 }
 0x402   : > { %v2539_v60 = vmul.f32 %v4398_v58, %v6819_v7  ;;  %v2926_v1 = vsub.f32 2.0, %v2894_v4  ;;  %v2502_v27 = vadd.f32 %v2470_v61, %v2434_v14  ;;  %v1924_v13 = vmul.f32 %v7719_v24, %v6994_v57 }
 0x403   : > { %v7139_v41 = vadd.f32 1.0, %v2799_v26  ;;  %v3403_v38 = vmul.f32 %v4323_v6, %v3243_v20  ;;  %v7143_v30 = vmul.f32 %v4325_v55, %v2925_v50  ;;  %v2503_v52 = vadd.f32 %v7774_v49, %v2435_v59 }
 0x404   : > { %v1992_v48 = vmul.f32 %v4813_v32, %v7069_v53  ;;  %v7150_v36 = vmul.f32 %v4327_v40, %v2926_v1  ;;  %v3359_v22 = vmul.f32 1.442695, %v3309_v51  ;;  %v2570_v31 = vadd.f32 %v2538_v11, %v2502_v27 }
 0x405   : > { %4328 = vrcp.f32 %v7139_v41  ;;  %v3435_v56 = vsub.f32 1.0, %v3403_v38  ;;  %v2989_v61 = vmul.f32 1.0614054, %v7143_v30  ;;  %v2571_v57 = vadd.f32 %v2539_v60, %v2503_v52 }
 0x406   : > { %v2024_v6 = vadd.f32 %v1992_v48, %v1924_v13  ;;  %v2990_v55 = vmul.f32 1.0614054, %v7150_v36  ;;  %v3361_v4 = vmul.f32 1.442695, %v3310_v12  ;;  %v7156_v26 = vadd.f32 %v6848_v47, %v2570_v31 }
 0x407   : > { %v2060_v14 = vmul.f32 %v4815_v19, %v7146_v62  ;;  %v2635_v40 = vmul.f32 0.5, %v6928_v8  ;;  %v3467_v51 = vmul.f32 %v3435_v56, %v7097_v16  ;;  %v3021_v20 = vadd.f32 -1.4531521, %v2989_v61 }
 0x408   : > { %v7163_v11 = vadd.f32 %v6848_v47, %v2571_v57  ;;  %v3022_v50 = vadd.f32 -1.4531521, %v2990_v55  ;;  %4330 = vpow2.f32 %v3359_v22  ;;  %v7166_v45 = vmul.f32 0.70710677, %v7156_v26  ;;  %v7775_v22 = vld [vmem:[#allocation30_spill] sm:$0xff] }
 0x409   : > { %v2092_v12 = vadd.f32 %v2060_v14, %v2024_v6  ;;  %v3499_v59 = vadd.f32 1.0, %v3467_v51  ;;  %v3053_v58 = vmul.f32 %v3021_v20, %v7143_v30  ;;  %v2164_v8 = vmul.f32 %v4817_v28, %v7042_v9  ;;  %v7198_v14 = vld [vmem:[#allocation2 + $0x151] sm:$0xff] }
 0x40a   : > { %v7170_v60 = vmul.f32 0.70710677, %v7163_v11  ;;  %v3054_v16 = vmul.f32 %v3022_v50, %v7150_v36  ;;  %4332 = vpow2.f32 %v3361_v4  ;;  %v3279_v1 = vsub.f32 0.0, %v7124_v21 }
 0x40b   : > { %v7177_v27 = vand.u32 2147483647, %v7166_v45  ;;  %v3531_v13 = vmul.f32 %v3499_v59, %v2635_v40  ;;  %v7180_v38 = vmul.f32 0.5, %v7002_v3  ;;  %v3085_v49 = vadd.f32 1.4214138, %v3053_v58  ;;  %v7776_v40 = vld [vmem:[#allocation35_spill] sm:$0xff] }
 0x40c   : > { %v2196_v52 = vadd.f32 %v2164_v8, %v2092_v12  ;;  %vm2701_vm8 = vcmp.ge.f32.partialorder %v7016_v5, 0.0  ;;  %vm2702_vm10 = vcmp.ge.f32.partialorder %v7023_v10, 0.0  ;;  %v3086_v48 = vadd.f32 1.4214138, %v3054_v16 }
 0x40d   : > { %v7185_v9 = vand.u32 2147483647, %v7170_v60  ;;  %v3563_v31 = vadd.f32 %v3531_v13, %v7775_v22  ;;  %v3117_v56 = vmul.f32 %v3085_v49, %v7143_v30  ;;  %v2801_v61 = vmul.f32 0.3275911, %v7177_v27  ;;  %v7219_v13 = vld [vmem:[#allocation2 + $0x152] sm:$0xff] }
 0x40e   : > { %v2232_v3 = vmul.f32 %v4822_v33, %v7100_v35  ;;  %v7193_v57 = vmul.f32 0.5, %v7005_v0  ;;  %v3118_v6 = vmul.f32 %v3086_v48, %v7150_v36  ;;  %v3311_v55 = vmul.f32 %v3279_v1, %v7124_v21 }
 0x40f   : > { %v2802_v4 = vmul.f32 0.3275911, %v7185_v9  ;;  %v3587_v51 = vpack.c.bf16 %v7776_v40, %v3563_v31  ;;  %v3149_v20 = vadd.f32 -0.28449672, %v3117_v56  ;;  %v7201_v50 = vadd.f32 1.0, %v2801_v61  ;;  %v7227_v56 = vld [vmem:[#allocation2 + $0x168] sm:$0xff] }
 0x410   : > { %v2264_v12 = vadd.f32 %v2232_v3, %v2196_v52  ;;  %v2733_v59 = vsel %vm2701_vm8, 1.0, %v7645_v18  ;;  %v2734_v0 = vsel %vm2702_vm10, 1.0, %v7645_v18  ;;  %v3150_v58 = vadd.f32 -0.28449672, %v3118_v6 }
 0x411   : > { %v7209_v21 = vadd.f32 1.0, %v2802_v4  ;;  %4079 = vmatprep.mubr.msk.bf16.mxu1 %vm1639_vm9, %v3587_v51  ;;  %v3181_v16 = vmul.f32 %v3149_v20, %v7143_v30  ;;  %v7214_v1 = vmul.f32 0.5, %v7104_v17  ;;  %4334 = vrcp.f32 %v7201_v50 }
 0x412   : > { %v4329_v8 = vpop.eup %4328  ;;  %v2300_v5 = vmul.f32 %v4826_v37, %v7198_v14  ;;  %v3182_v10 = vmul.f32 %v3150_v58, %v7150_v36  ;;  %v3363_v52 = vmul.f32 1.442695, %v3311_v55  ;;  %v3281_v22 = vsub.f32 0.0, %v7177_v27 }
 0x413   : > { %v2895_v49 = vmul.f32 %v4329_v8, %v7139_v41  ;;  %4336 = vrcp.f32 %v7209_v21  ;;  %v3213_v48 = vadd.f32 0.2548296, %v3181_v16  ;;  %v2404_v17 = vmul.f32 %v4828_v43, %v7065_v29 }
 0x414   : > { %v2332_v31 = vadd.f32 %v2300_v5, %v2264_v12  ;;  %v3214_v61 = vadd.f32 0.2548296, %v3182_v10  ;;  %v2472_v6 = vmul.f32 %v4830_v39, %v7120_v63  ;;  %v2540_v41 = vmul.f32 %v6819_v7, %v7219_v13 }
 0x415   : > { %v2927_v3 = vsub.f32 2.0, %v2895_v49  ;;  %v4331_v55 = vpop.eup %4330  ;;  %v3245_v4 = vmul.f32 %v3213_v48, %v7143_v30  ;;  %v1926_v51 = vmul.f32 %v7719_v24, %v7069_v53  ;;  %v1927_v29 = vmul.f32 %v7086_v46, %v7719_v24  ;;  %v7777_v49 = vld [vmem:[#allocation62_spill] sm:$0xff] }
 0x416   : > { %v2436_v40 = vadd.f32 %v2404_v17, %v2332_v31  ;;  %v3246_v20 = vmul.f32 %v3214_v61, %v7150_v36  ;;  %v1994_v58 = vmul.f32 %v4813_v32, %v7146_v62  ;;  %v2062_v16 = vmul.f32 %v4815_v19, %v7227_v56  ;;  %v7246_v31 = vld [vmem:[#allocation2 + $0x170] sm:$0xff] }
 0x417   : > { %v7239_v12 = vmul.f32 %v4329_v8, %v2927_v3  ;;  %v4333_v5 = vpop.eup %4332  ;;  %v3405_v10 = vmul.f32 %v4331_v55, %v3245_v4  ;;  %v2027_v48 = vadd.f32 %v7777_v49, %v1927_v29  ;;  %v2063_v53 = vmul.f32 %v7246_v31, %v4815_v19  ;;  %v7778_v49 = vld [vmem:[#allocation11_spill] sm:$0xff] }
 0x418   : > { %v2504_v30 = vadd.f32 %v2472_v6, %v2436_v40  ;;  %v3406_v46 = vmul.f32 %v4333_v5, %v3246_v20  ;;  %v3282_v8 = vsub.f32 0.0, %v7185_v9  ;;  %v2026_v17 = vadd.f32 %v1994_v58, %v1926_v51  ;;  %v7258_v5 = vld [vmem:[#allocation2 + $0x169] sm:$0xff] }
 0x419   : > { %v2991_v36 = vmul.f32 1.0614054, %v7239_v12  ;;  %v3437_v61 = vsub.f32 1.0, %v3405_v10  ;;  %v3313_v3 = vmul.f32 %v3281_v22, %v7177_v27  ;;  %v2095_v44 = vadd.f32 %v2063_v53, %v2027_v48 }
 0x41a   : > { %v2572_v25 = vadd.f32 %v2540_v41, %v2504_v30  ;;  %v3438_v55 = vsub.f32 1.0, %v3406_v46  ;;  %v2094_v4 = vadd.f32 %v2062_v16, %v2026_v17  ;;  %v2166_v40 = vmul.f32 %v4817_v28, %v7100_v35 }
 0x41b   : > { %v3023_v6 = vadd.f32 -1.4531521, %v2991_v36  ;;  %v3469_v29 = vmul.f32 %v3437_v61, %v2733_v59  ;;  %4338 = vpow2.f32 %v3363_v52  ;;  %v2199_v51 = vadd.f32 %v7778_v49, %v2095_v44  ;;  %v7781_v49 = vld [vmem:[#allocation31_spill] sm:$0xff] }
 0x41c   : > { %v7256_v20 = vadd.f32 %v6848_v47, %v2572_v25  ;;  %v3470_v58 = vmul.f32 %v3438_v55, %v2734_v0  ;;  %v2198_v22 = vadd.f32 %v2166_v40, %v2094_v4  ;;  %v2234_v41 = vmul.f32 %v4822_v33, %v7198_v14  ;;  %v4400_v55 = vld [vmem:[#allocation2 + $0x171] sm:$0xff]  ;;  %v7780_v4 = vld [vmem:[#allocation29_spill] sm:$0xff] }
 0x41d   : > { %v3055_v27 = vmul.f32 %v3023_v6, %v7239_v12  ;;  %v3501_v16 = vadd.f32 1.0, %v3469_v29  ;;  %v3314_v10 = vmul.f32 %v3282_v8, %v7185_v9  ;;  %v3367_v35 = vmul.f32 1.442695, %v3313_v3  ;;  %v7779_v9 = vld [vmem:[#allocation63_spill] sm:$0xff] }
 0x41e   : > { %v7266_v59 = vmul.f32 0.70710677, %v7256_v20  ;;  %v4335_v25 = vpop.eup %4334  ;;  %v3502_v52 = vadd.f32 1.0, %v3470_v58  ;;  %v2266_v48 = vadd.f32 %v2234_v41, %v2198_v22  ;;  %v2302_v44 = vmul.f32 %v4826_v37, %v7258_v5 }
 0x41f   : > { %v3087_v30 = vadd.f32 1.4214138, %v3055_v27  ;;  %v3533_v53 = vmul.f32 %v3501_v16, %v7180_v38  ;;  %v2897_v46 = vmul.f32 %v4335_v25, %v7201_v50  ;;  %v2267_v8 = vadd.f32 %v7779_v9, %v2199_v51  ;;  %v7290_v16 = vld [vmem:[#allocation2 + $0x16a] sm:$0xff] }
 0x420   : > { %v4337_v0 = vpop.eup %4336  ;;  %v7273_v36 = vand.u32 2147483647, %v7266_v59  ;;  %v3534_v17 = vmul.f32 %v3502_v52, %v7193_v57  ;;  %vm2703_vm1 = vcmp.ge.f32.partialorder %v7113_v34, 0.0  ;;  %v2303_v6 = vmul.f32 %v4400_v55, %v4826_v37 }
 0x421   : > { %v3119_v61 = vmul.f32 %v3087_v30, %v7239_v12  ;;  %v2898_v3 = vmul.f32 %v4337_v0, %v7209_v21  ;;  %v3565_v38 = vadd.f32 %v3533_v53, %v7780_v4  ;;  %v2929_v40 = vsub.f32 2.0, %v2897_v46  ;;  %v4401_v4 = vld [vmem:[#allocation2 + $0x172] sm:$0xff] }
 0x422   : > { %v2803_v50 = vmul.f32 0.3275911, %v7273_v36  ;;  %v2406_v29 = vmul.f32 %v4828_v43, %v7120_v63  ;;  %v3566_v51 = vadd.f32 %v3534_v17, %v7781_v49  ;;  %v2334_v27 = vadd.f32 %v2302_v44, %v2266_v48 }
 0x423   : > { %v3151_v57 = vadd.f32 -0.28449672, %v3119_v61  ;;  %v2930_v58 = vsub.f32 2.0, %v2898_v3  ;;  %v7286_v22 = vmul.f32 %v4335_v25, %v2929_v40  ;;  %v2335_v21 = vadd.f32 %v2303_v6, %v2267_v8  ;;  %v7782_v25 = vld [vmem:[#allocation55_spill] sm:$0xff] }
 0x424   : > { %v7288_v41 = vadd.f32 1.0, %v2803_v50  ;;  %v2474_v52 = vmul.f32 %v4830_v39, %v7219_v13  ;;  %v3588_v30 = vpack.c.bf16 %v3566_v51, %v3565_v38  ;;  %v2438_v63 = vadd.f32 %v2406_v29, %v2334_v27 }
 0x425   : > { %v3183_v53 = vmul.f32 %v3151_v57, %v7239_v12  ;;  %v7295_v46 = vmul.f32 %v4337_v0, %v2930_v58  ;;  %v2993_v9 = vmul.f32 1.0614054, %v7286_v22  ;;  %v3369_v17 = vmul.f32 1.442695, %v3314_v10  ;;  %v7783_v0 = vld [vmem:[#allocation64_spill] sm:$0xff]  ;;  %v7309_v58 = vld [vmem:[#allocation2 + $0x180] sm:$0xff] }
 0x426   : > { %4340 = vrcp.f32 %v7288_v41  ;;  %v2439_v48 = vadd.f32 %v7782_v25, %v2335_v21  ;;  %4080 = vmatmul.mubr.msk.bf16.gmra.mxu1 %vm1639_vm9, %v3588_v30  ;;  %v2506_v61 = vadd.f32 %v2474_v52, %v2438_v63  ;;  %v2542_v3 = vmul.f32 %v6819_v7, %v7290_v16 }
 0x427   : > { %v3215_v44 = vadd.f32 0.2548296, %v3183_v53  ;;  %v2994_v8 = vmul.f32 1.0614054, %v7295_v46  ;;  %v3025_v55 = vadd.f32 -1.4531521, %v2993_v9  ;;  %4342 = vpow2.f32 %v3367_v35 }
 0x428   : > { %v2507_v6 = vadd.f32 %v7783_v0, %v2439_v48  ;;  %v2543_v10 = vmul.f32 %v4401_v4, %v6819_v7  ;;  %v4339_v38 = vpop.eup %4338  ;;  %v3283_v29 = vsub.f32 0.0, %v7273_v36  ;;  %v2574_v49 = vadd.f32 %v2542_v3, %v2506_v61 }
 0x429   : > { %v3247_v40 = vmul.f32 %v3215_v44, %v7239_v12  ;;  %v3026_v50 = vadd.f32 -1.4531521, %v2994_v8  ;;  %v3057_v51 = vmul.f32 %v3025_v55, %v7286_v22  ;;  %v1928_v35 = vmul.f32 %v7719_v24, %v7146_v62 }
 0x42a   : > { %v2575_v57 = vadd.f32 %v2543_v10, %v2507_v6  ;;  %v1996_v27 = vmul.f32 %v4813_v32, %v7227_v56  ;;  %4344 = vpow2.f32 %v3369_v17  ;;  %v7317_v12 = vadd.f32 %v6848_v47, %v2574_v49 }
 0x42b   : > { %v3407_v21 = vmul.f32 %v4339_v38, %v3247_v40  ;;  %v3058_v7 = vmul.f32 %v3026_v50, %v7295_v46  ;;  %v2735_v52 = vsel %vm2703_vm1, 1.0, %v7645_v18  ;;  %v3089_v30 = vadd.f32 1.4214138, %v3057_v51 }
 0x42c   : > { %v7323_v53 = vadd.f32 %v6848_v47, %v2575_v57  ;;  %v2028_v63 = vadd.f32 %v1996_v27, %v1928_v35  ;;  %v7326_v25 = vmul.f32 0.70710677, %v7317_v12  ;;  %v2064_v17 = vmul.f32 %v4815_v19, %v7309_v58 }
 0x42d   : > { %v3439_v62 = vsub.f32 1.0, %v3407_v21  ;;  %v3090_v9 = vadd.f32 1.4214138, %v3058_v7  ;;  %v7331_v48 = vmul.f32 0.5, %v7156_v26  ;;  %v3121_v44 = vmul.f32 %v3089_v30, %v7286_v22  ;;  %v7784_v30 = vld [vmem:[#allocation39_spill] sm:$0xff] }
 0x42e   : > { %v3315_v34 = vmul.f32 %v3283_v29, %v7273_v36  ;;  %v7336_v8 = vmul.f32 0.70710677, %v7323_v53  ;;  %v7340_v3 = vand.u32 2147483647, %v7326_v25  ;;  %v2096_v55 = vadd.f32 %v2064_v17, %v2028_v63 }
 0x42f   : > { %v3471_v47 = vmul.f32 %v3439_v62, %v2735_v52  ;;  %v3122_v61 = vmul.f32 %v3090_v9, %v7295_v46  ;;  %v7343_v0 = vmul.f32 0.5, %v7163_v11  ;;  %vm2705_vm2 = vcmp.ge.f32.partialorder %v7166_v45, 0.0 }
 0x430   : > { %v3153_v26 = vadd.f32 -0.28449672, %v3121_v44  ;;  %v7347_v6 = vand.u32 2147483647, %v7336_v8  ;;  %v2805_v10 = vmul.f32 0.3275911, %v7340_v3  ;;  %v2168_v38 = vmul.f32 %v4817_v28, %v7198_v14 }
 0x431   : > { %v3503_v36 = vadd.f32 1.0, %v3471_v47  ;;  %v3154_v4 = vadd.f32 -0.28449672, %v3122_v61  ;;  %vm2706_vm3 = vcmp.ge.f32.partialorder %v7170_v60, 0.0  ;;  %v3371_v50 = vmul.f32 1.442695, %v3315_v34 }
 0x432   : > { %v3185_v40 = vmul.f32 %v3153_v26, %v7286_v22  ;;  %v2806_v11 = vmul.f32 0.3275911, %v7347_v6  ;;  %v7357_v57 = vadd.f32 1.0, %v2805_v10  ;;  %v2200_v35 = vadd.f32 %v2168_v38, %v2096_v55  ;;  %v7376_v55 = vld [vmem:[#allocation2 + $0x182] sm:$0xff] }
 0x433   : > { %v4341_v29 = vpop.eup %4340  ;;  %v3535_v49 = vmul.f32 %v3503_v36, %v7214_v1  ;;  %v3186_v51 = vmul.f32 %v3154_v4, %v7295_v46  ;;  %v2737_v27 = vsel %vm2705_vm2, 1.0, %v7645_v18  ;;  %v2132_v1 = vld [vmem:[#allocation2 + $0x181] sm:$0xff]  ;;  %v2236_v9 = vmul.f32 %v4822_v33, %v7258_v5 }
 0x434   : > { %v3217_v14 = vadd.f32 0.2548296, %v3185_v40  ;;  %v2899_v21 = vmul.f32 %v4341_v29, %v7288_v41  ;;  %v7363_v7 = vadd.f32 1.0, %v2806_v11  ;;  %v4343_v52 = vpop.eup %4342  ;;  %4346 = vrcp.f32 %v7357_v57  ;;  %v7785_v41 = vld [vmem:[#allocation45_spill] sm:$0xff] }
 0x435   : > { %v3567_v63 = vadd.f32 %v3535_v49, %v7784_v30  ;;  %v3218_v62 = vadd.f32 0.2548296, %v3186_v51  ;;  %v2738_v45 = vsel %vm2706_vm3, 1.0, %v7645_v18  ;;  %v2268_v61 = vadd.f32 %v2236_v9, %v2200_v35  ;;  %v7392_v51 = vld [vmem:[%s7580_s5 + $0x8] ss:$0 sm:$0xff] }
 0x436   : > { %v3249_v17 = vmul.f32 %v3217_v14, %v7286_v22  ;;  %v2931_v44 = vsub.f32 2.0, %v2899_v21  ;;  %4348 = vrcp.f32 %v7363_v7  ;;  %v3285_v60 = vsub.f32 0.0, %v7340_v3  ;;  %v1895_v14 = vld [vmem:[#allocation2 + $0x1a0] sm:$0xff] }
 0x437   : > { %v3589_v34 = vpack.c.bf16 %v7785_v41, %v3567_v63  ;;  %v3250_v47 = vmul.f32 %v3218_v62, %v7295_v46  ;;  %4350 = vpow2.f32 %v3371_v50  ;;  %v4345_v26 = vpop.eup %4344  ;;  %v2304_v10 = vmul.f32 %v4826_v37, %v2132_v1  ;;  %v1894_v50 = vld [vmem:[#allocation2 + $0x198] sm:$0xff] }
 0x438   : > { %v3409_v36 = vmul.f32 %v4343_v52, %v3249_v17  ;;  %v7378_v4 = vmul.f32 %v4341_v29, %v2931_v44  ;;  %v3286_v38 = vsub.f32 0.0, %v7347_v6  ;;  %v2408_v46 = vmul.f32 %v4828_v43, %v7219_v13 }
 0x439   : > { %4083 = vmatprep.mubr.msk.bf16.mxu1 %vm1639_vm9, %v3589_v34  ;;  %v3410_v22 = vmul.f32 %v4345_v26, %v3250_v47  ;;  %v2476_v40 = vmul.f32 %v4830_v39, %v7290_v16  ;;  %v2336_v49 = vadd.f32 %v2304_v10, %v2268_v61  ;;  %v2544_v35 = vmul.f32 %v7392_v51, %v7376_v55  ;;  %v7786_v34 = vld [vmem:[#allocation67_spill] sm:$0xff]  ;;  %v2134_v26 = vld [vmem:[#allocation2 + $0x199] sm:$0xff] }
 0x43a   : > { %v3441_v11 = vsub.f32 1.0, %v3409_v36  ;;  %v2995_v29 = vmul.f32 1.0614054, %v7378_v4  ;;  %v1930_v13 = vmul.f32 %v7719_v24, %v7227_v56  ;;  %v1931_v52 = vmul.f32 %v7246_v31, %v7719_v24  ;;  %v2135_v24 = vld [vmem:[#allocation2 + $0x1a1] sm:$0xff] }
 0x43b   : > { %v3442_v21 = vsub.f32 1.0, %v3410_v22  ;;  %v1998_v30 = vmul.f32 %v4813_v32, %v7309_v58  ;;  %v2440_v9 = vadd.f32 %v2408_v46, %v2336_v49  ;;  %v2066_v17 = vmul.f32 %v4815_v19, %v1894_v50 }
 0x43c   : > { %v3473_v63 = vmul.f32 %v3441_v11, %v2737_v27  ;;  %v3027_v62 = vadd.f32 -1.4531521, %v2995_v29  ;;  %v2031_v47 = vadd.f32 %v7786_v34, %v1931_v52  ;;  %v2067_v61 = vmul.f32 %v4815_v19, %v1895_v14 }
 0x43d   : > { %v3474_v44 = vmul.f32 %v3442_v21, %v2738_v45  ;;  %v2030_v41 = vadd.f32 %v1998_v30, %v1930_v13  ;;  %v2508_v10 = vadd.f32 %v2476_v40, %v2440_v9  ;;  %v2170_v32 = vmul.f32 %v4817_v28, %v7258_v5  ;;  %v7787_v28 = vld [vmem:[#allocation38_spill] sm:$0xff] }
 0x43e   : > { %v3505_v36 = vadd.f32 1.0, %v3473_v63  ;;  %v3059_v56 = vmul.f32 %v3027_v62, %v7378_v4  ;;  %v2099_v27 = vadd.f32 %v2067_v61, %v2031_v47  ;;  %v2238_v22 = vmul.f32 %v4822_v33, %v2132_v1 }
 0x43f   : > { %v3506_v31 = vadd.f32 1.0, %v3474_v44  ;;  %v2098_v58 = vadd.f32 %v2066_v17, %v2030_v41  ;;  %v2576_v50 = vadd.f32 %v2544_v35, %v2508_v10  ;;  %v2306_v19 = vmul.f32 %v4826_v37, %v2134_v26 }
 0x440   : > { %v3537_v45 = vmul.f32 %v3505_v36, %v7331_v48  ;;  %v3091_v46 = vadd.f32 1.4214138, %v3059_v56  ;;  %v2203_v40 = vadd.f32 %v6599_v15, %v2099_v27  ;;  %v2307_v49 = vmul.f32 %v4826_v37, %v2135_v24  ;;  %v4403_v48 = vld [vmem:[%s7581_s6] ss:$0 sm:$0xff]  ;;  %v7789_v37 = vld [vmem:[#allocation68_spill] sm:$0xff] }
 0x441   : > { %v3538_v11 = vmul.f32 %v3506_v31, %v7343_v0  ;;  %v2202_v29 = vadd.f32 %v2170_v32, %v2098_v58  ;;  %v4347_v14 = vpop.eup %4346  ;;  %v3317_v33 = vmul.f32 %v3285_v60, %v7340_v3  ;;  %v7420_v1 = vadd.f32 %v4403_v48, %v2576_v50  ;;  %v7788_v0 = vld [vmem:[#allocation40_spill] sm:$0xff] }
 0x442   : > { %v3569_v5 = vadd.f32 %v3537_v45, %v7787_v28  ;;  %v3123_v21 = vmul.f32 %v3091_v46, %v7378_v4  ;;  %v2901_v15 = vmul.f32 %v4347_v14, %v7357_v57  ;;  %v2271_v30 = vadd.f32 %v7789_v37, %v2203_v40  ;;  %v2374_v36 = vld [vmem:[#allocation2 + $0x19a] sm:$0xff] }
 0x443   : > { %v4349_v35 = vpop.eup %4348  ;;  %v3570_v13 = vadd.f32 %v3538_v11, %v7788_v0  ;;  %v2270_v52 = vadd.f32 %v2238_v22, %v2202_v29  ;;  %v7427_v3 = vmul.f32 0.70710677, %v7420_v1  ;;  %v2410_v60 = vmul.f32 %v4828_v43, %v7290_v16  ;;  %v2375_v43 = vld [vmem:[#allocation2 + $0x1a2] sm:$0xff] }
 0x444   : > { %v4351_v63 = vpop.eup %4350  ;;  %v3155_v62 = vadd.f32 -0.28449672, %v3123_v21  ;;  %v2902_v9 = vmul.f32 %v4349_v35, %v7363_v7  ;;  %v2933_v44 = vsub.f32 2.0, %v2901_v15  ;;  %v2339_v34 = vadd.f32 %v2307_v49, %v2271_v30  ;;  %v7793_v15 = vld [vmem:[#allocation16_spill] sm:$0xff] }
 0x445   : > { %v3590_v17 = vpack.c.bf16 %v3570_v13, %v3569_v5  ;;  %v2338_v41 = vadd.f32 %v2306_v19, %v2270_v52  ;;  %v3318_v61 = vmul.f32 %v3286_v38, %v7347_v6  ;;  %v7434_v26 = vand.u32 2147483647, %v7427_v3  ;;  %v7792_v13 = vld [vmem:[#allocation65_spill] sm:$0xff] }
 0x446   : > { %v3187_v47 = vmul.f32 %v3155_v62, %v7378_v4  ;;  %v2934_v57 = vsub.f32 2.0, %v2902_v9  ;;  %v3064_v7 = vmul.f32 %v6753_v23, %v6708_v54  ;;  %v7439_v56 = vmul.f32 %v4347_v14, %v2933_v44  ;;  %v7790_v23 = vld [vmem:[#allocation69_spill] sm:$0xff] }
 0x447   : > { %4084 = vmatmul.mubr.msk.bf16.gmra.mxu1 %vm1639_vm9, %v3590_v17  ;;  %v2442_v16 = vadd.f32 %v2410_v60, %v2338_v41  ;;  %v2443_v10 = vadd.f32 %v6603_v42, %v2339_v34  ;;  %v3375_v31 = vmul.f32 1.442695, %v3317_v33  ;;  %v2807_v6 = vmul.f32 0.3275911, %v7434_v26  ;;  %v7482_v41 = vld [vmem:[%s7583_s8] ss:$0 sm:$0xff] }
 0x448   : > { %v3219_v24 = vadd.f32 0.2548296, %v3187_v47  ;;  %v7442_v32 = vmul.f32 %v4349_v35, %v2934_v57  ;;  %v2997_v38 = vmul.f32 1.0614054, %v7439_v56  ;;  %v2478_v58 = vmul.f32 %v4830_v39, %v7376_v55 }
 0x449   : > { %v2511_v27 = vadd.f32 %v7790_v23, %v2443_v10  ;;  %v2546_v22 = vmul.f32 %v7392_v51, %v2374_v36  ;;  %v3377_v42 = vmul.f32 1.442695, %v3318_v61  ;;  %v7452_v50 = vadd.f32 1.0, %v2807_v6 }
 0x44a   : > { %v3251_v45 = vmul.f32 %v3219_v24, %v7378_v4  ;;  %v2998_v46 = vmul.f32 1.0614054, %v7442_v32  ;;  %v3096_v19 = vadd.f32 1.4214138, %v3064_v7  ;;  %v3029_v11 = vadd.f32 -1.4531521, %v2997_v38 }
 0x44b   : > { %v2510_v29 = vadd.f32 %v2478_v58, %v2442_v16  ;;  %v2547_v40 = vmul.f32 %v7392_v51, %v2375_v43  ;;  %vm2707_vm4 = vcmp.ge.f32.partialorder %v7266_v59, 0.0  ;;  %4352 = vrcp.f32 %v7452_v50  ;;  %v7795_v58 = vld [vmem:[#allocation50_spill] sm:$0xff] }
 0x44c   : > { %v3411_v49 = vmul.f32 %v4351_v63, %v3251_v45  ;;  %v3030_v39 = vadd.f32 -1.4531521, %v2998_v46  ;;  %v3061_v55 = vmul.f32 %v3029_v11, %v7439_v56  ;;  %4354 = vpow2.f32 %v3375_v31 }
 0x44d   : > { %v2578_v4 = vadd.f32 %v2546_v22, %v2510_v29  ;;  %v2579_v14 = vadd.f32 %v2547_v40, %v2511_v27  ;;  %v7791_v28 = vsub.f32 0.0, %v6538_v2  ;;  %4356 = vpow2.f32 %v3377_v42 }
 0x44e   : > { %v3443_v21 = vsub.f32 1.0, %v3411_v49  ;;  %v3062_v33 = vmul.f32 %v3030_v39, %v7442_v32  ;;  %v2739_v51 = vsel %vm2707_vm4, 1.0, %v7645_v18  ;;  %v3093_v59 = vadd.f32 1.4214138, %v3061_v55 }
 0x44f   : > { %v3320_v5 = vmul.f32 %v7791_v28, %v6538_v2  ;;  %v7463_v35 = vadd.f32 %v4403_v48, %v2578_v4  ;;  %v7465_v0 = vadd.f32 %v4403_v48, %v2579_v14  ;;  %v3540_v52 = vmul.f32 %v7793_v15, %v7792_v13 }
 0x450   : > { %v3475_v37 = vmul.f32 %v3443_v21, %v2739_v51  ;;  %v3094_v30 = vadd.f32 1.4214138, %v3062_v33  ;;  %v4065_v63 = vpop.f32.mrf.mxu1  ;;  %v3128_v62 = vmul.f32 %v3096_v19, %v6708_v54  ;;  %v3125_v2 = vmul.f32 %v3093_v59, %v7439_v56 }
 0x451   : > { %v7472_v9 = vmul.f32 0.70710677, %v7463_v35  ;;  %v2643_v60 = vmul.f32 0.5, %v7256_v20  ;;  %v7477_v48 = vmul.f32 0.70710677, %v7465_v0  ;;  %v7794_v20 = vld [vmem:[#allocation53_spill] sm:$0xff]  ;;  %v3701_v13 = vadd.f32 %v4065_v63, %v7482_v41 }
 0x452   : > { %v3507_v17 = vadd.f32 1.0, %v3475_v37  ;;  %v3126_v44 = vmul.f32 %v3094_v30, %v7442_v32  ;;  %v3692_v34 = vpop.f32.mrf.mxu1  ;;  %v3381_v47 = vmul.f32 1.442695, %v3320_v5  ;;  %v3157_v57 = vadd.f32 -0.28449672, %v3125_v2 }
 0x453   : > { %v7485_v61 = vand.u32 2147483647, %v7472_v9  ;;  %v3693_v36 = vadd.f32 %v7482_v41, %v3692_v34  ;;  %v3572_v7 = vadd.f32 %v3540_v52, %v7794_v20  ;;  %v7491_v31 = vand.u32 2147483647, %v7477_v48 }
 0x454   : > { %v3539_v43 = vmul.f32 %v3507_v17, %v2643_v60  ;;  %v3158_v16 = vadd.f32 -0.28449672, %v3126_v44  ;;  %v4066_v10 = vpop.f32.mrf.mxu1  ;;  %v3189_v24 = vmul.f32 %v3157_v57, %v7439_v56  ;;  %v3160_v38 = vadd.f32 -0.28449672, %v3128_v62 }
 0x455   : > { %v2809_v6 = vmul.f32 0.3275911, %v7485_v61  ;;  %3819 = vxpose.xlu0.b32.start [1/16] (narrow) %v3693_v36, 8  ;;  %4358 = vpow2.f32 %v3381_v47  ;;  %v2810_v46 = vmul.f32 0.3275911, %v7491_v31  ;;  %v3287_v29 = vsub.f32 0.0, %v7434_v26 }
 0x456   : > { %v3571_v23 = vadd.f32 %v3539_v43, %v7795_v58  ;;  %v3190_v27 = vmul.f32 %v3158_v16, %v7442_v32  ;;  %v3695_v22 = vpop.f32.mrf.mxu1  ;;  %v3221_v45 = vadd.f32 0.2548296, %v3189_v24  ;;  %v3192_v14 = vmul.f32 %v3160_v38, %v6708_v54 }
 0x457   : > { %v2841_v42 = vadd.f32 1.0, %v2809_v6  ;;  %v3696_v40 = vadd.f32 %v7482_v41, %v3695_v22  ;;  %v2842_v55 = vadd.f32 1.0, %v2810_v46  ;;  %vm2709_vm5 = vcmp.ge.f32.partialorder %v7326_v25, 0.0 }
 0x458   : > { %v3591_v19 = vpack.c.bf16 %v3572_v7, %v3571_v23  ;;  %v3222_v11 = vadd.f32 0.2548296, %v3190_v27  ;;  %v4353_v49 = vpop.eup %4352  ;;  %v3253_v39 = vmul.f32 %v3221_v45, %v7439_v56  ;;  %vm2710_vm6 = vcmp.ge.f32.partialorder %v7336_v8, 0.0 }
 0x459   : > { %4360 = vrcp.f32 %v2841_v42  ;;  %v4355_v4 = vpop.eup %4354  ;;  %v2903_v5 = vmul.f32 %v4353_v49, %v7452_v50  ;;  %3820 = vxpose.xlu0.b32.cont [2/16] (narrow) %v3696_v40, 8  ;;  %v3319_v59 = vmul.f32 %v3287_v29, %v7434_v26  ;;  %v3224_v52 = vadd.f32 0.2548296, %v3192_v14 }
 0x45a   : > { %4087 = vmatprep.mubr.msk.bf16.mxu1 %vm1639_vm9, %v3591_v19  ;;  %v3254_v28 = vmul.f32 %v3222_v11, %v7442_v32  ;;  %v4357_v21 = vpop.eup %4356  ;;  %v3413_v33 = vmul.f32 %v4355_v4, %v3253_v39  ;;  %4362 = vrcp.f32 %v2842_v55  ;;  %v2741_v32 = vsel %vm2709_vm5, 1.0, %v7645_v18  ;;  %v7798_v11 = vld [vmem:[#allocation22_spill] sm:$0xff] }
 0x45b   : > { %v2935_v51 = vsub.f32 2.0, %v2903_v5  ;;  %v2742_v30 = vsel %vm2710_vm6, 1.0, %v7645_v18  ;;  %v3379_v2 = vmul.f32 1.442695, %v3319_v59  ;;  %v3704_v60 = vadd.f32 %v4066_v10, %v7482_v41  ;;  %v7796_v10 = vld [vmem:[#allocation47_spill] sm:$0xff] }
 0x45c   : > { %v3414_v56 = vmul.f32 %v4357_v21, %v3254_v28  ;;  %v3445_v15 = vsub.f32 1.0, %v3413_v33  ;;  %v2645_v17 = vmul.f32 0.5, %v7317_v12  ;;  %v3256_v63 = vmul.f32 %v3224_v52, %v6708_v54  ;;  %v7797_v12 = vld [vmem:[#allocation51_spill] sm:$0xff] }
 0x45d   : > { %v2967_v50 = vmul.f32 %v4353_v49, %v2935_v51  ;;  %3821 = vxpose.xlu0.b32.cont [3/16] (narrow) %v3701_v13, 8  ;;  %v2646_v44 = vmul.f32 0.5, %v7323_v53  ;;  %4364 = vpow2.f32 %v3379_v2  ;;  %v3289_v43 = vsub.f32 0.0, %v7485_v61 }
 0x45e   : > { %v3446_v37 = vsub.f32 1.0, %v3414_v56  ;;  %v3477_v25 = vmul.f32 %v3445_v15, %v2741_v32  ;;  %v3290_v53 = vsub.f32 0.0, %v7491_v31  ;;  %vm2712_vm7 = vcmp.ge.f32.partialorder %v7798_v11, 0.0 }
 0x45f   : > { %v2999_v8 = vmul.f32 1.0614054, %v2967_v50  ;;  %v3321_v19 = vmul.f32 %v3289_v43, %v7485_v61  ;;  %v2744_v14 = vsel %vm2712_vm7, 1.0, %v7645_v18  ;;  %vm2711_vm11 = vcmp.ge.f32.partialorder %v7427_v3, 0.0 }
 0x460   : > { %v3478_v62 = vmul.f32 %v3446_v37, %v2742_v30  ;;  %v3509_v26 = vadd.f32 1.0, %v3477_v25  ;;  %v3322_v4 = vmul.f32 %v3290_v53, %v7491_v31  ;;  %v7799_v25 = vld [vmem:[#allocation15_spill] sm:$0xff]  ;;  %v2743_v2 = vsel %vm2711_vm11, 1.0, %v7645_v18 }
 0x461   : > { %v3031_v47 = vadd.f32 -1.4531521, %v2999_v8  ;;  %3822 = vxpose.xlu0.b32.cont [4/16] (narrow) %v3704_v60, 8  ;;  %v3383_v21 = vmul.f32 1.442695, %v3321_v19  ;;  %vm2713_vm12 = vcmp.ge.f32.partialorder %v7472_v9, 0.0 }
 0x462   : > { %v3510_v34 = vadd.f32 1.0, %v3478_v62  ;;  %v3541_v57 = vmul.f32 %v3509_v26, %v2645_v17  ;;  %v4359_v36 = vpop.eup %4358  ;;  %v3385_v51 = vmul.f32 1.442695, %v3322_v4  ;;  %v2648_v62 = vmul.f32 0.5, %v7799_v25 }
 0x463   : > { %v3063_v7 = vmul.f32 %v3031_v47, %v2967_v50  ;;  %v3416_v24 = vmul.f32 %v4359_v36, %v3256_v63  ;;  %4366 = vpow2.f32 %v3383_v21  ;;  %vm2714_vm13 = vcmp.ge.f32.partialorder %v7477_v48, 0.0 }
 0x464   : > { %v3542_v20 = vmul.f32 %v3510_v34, %v2646_v44  ;;  %v3573_v6 = vadd.f32 %v3541_v57, %v7796_v10  ;;  %4368 = vpow2.f32 %v3385_v51  ;;  %v2647_v34 = vmul.f32 0.5, %v7420_v1  ;;  %v7803_v51 = vld [vmem:[#allocation57_spill] sm:$0xff] }
 0x465   : > { %v3095_v58 = vadd.f32 1.4214138, %v3063_v7  ;;  %v3448_v29 = vsub.f32 1.0, %v3416_v24  ;;  %v2746_v9 = vsel %vm2714_vm13, 1.0, %v7645_v18 }
 0x466   : > { %v4361_v16 = vpop.eup %4360  ;;  %v3574_v38 = vadd.f32 %v3542_v20, %v7797_v12  ;;  %v7800_v20 = vld [vmem:[#allocation60_spill] sm:$0xff] }
 0x467   : > { %v2905_v54 = vmul.f32 %v4361_v16, %v2841_v42  ;;  %v4363_v23 = vpop.eup %4362  ;;  %v3127_v22 = vmul.f32 %v3095_v58, %v2967_v50  ;;  %v7801_v12 = vld [vmem:[#allocation56_spill] sm:$0xff] }
 0x468   : > { %v3592_v27 = vpack.c.bf16 %v3574_v38, %v3573_v6  ;;  %v2906_v45 = vmul.f32 %v4363_v23, %v2842_v55  ;;  %v3480_v55 = vmul.f32 %v3448_v29, %v2744_v14 }
 0x469   : > { %v2937_v46 = vsub.f32 2.0, %v2905_v54  ;;  %v3159_v40 = vadd.f32 -0.28449672, %v3127_v22 }
 0x46a   : > { %4088 = vmatmul.mubr.msk.bf16.gmra.mxu1 %vm1639_vm9, %v3592_v27  ;;  %v2938_v49 = vsub.f32 2.0, %v2906_v45  ;;  %v4365_v13 = vpop.eup %4364  ;;  %v3512_v32 = vadd.f32 1.0, %v3480_v55 }
 0x46b   : > { %v2969_v39 = vmul.f32 %v4361_v16, %v2937_v46  ;;  %v3191_v42 = vmul.f32 %v3159_v40, %v2967_v50  ;;  %v2745_v40 = vsel %vm2713_vm12, 1.0, %v7645_v18 }
 0x46c   : > { %v2970_v28 = vmul.f32 %v4363_v23, %v2938_v49  ;;  %v3544_v26 = vmul.f32 %v3512_v32, %v2648_v62 }
 0x46d   : > { %v3001_v5 = vmul.f32 1.0614054, %v2969_v39  ;;  %v3223_v33 = vadd.f32 0.2548296, %v3191_v42  ;;  %v2649_v42 = vmul.f32 0.5, %v7463_v35 }
 0x46e   : > { %v3002_v56 = vmul.f32 1.0614054, %v2970_v28  ;;  %v3576_v7 = vadd.f32 %v3544_v26, %v7800_v20 }
 0x46f   : > { %v3033_v61 = vadd.f32 -1.4531521, %v3001_v5  ;;  %v3255_v59 = vmul.f32 %v3223_v33, %v2967_v50  ;;  %v2650_v5 = vmul.f32 0.5, %v7465_v0 }
 0x470   : > { %v3034_v15 = vadd.f32 -1.4531521, %v3002_v56  ;;  %v4367_v23 = vpop.eup %4366  ;;  %v7802_v56 = vld [vmem:[#allocation54_spill] sm:$0xff] }
 0x471   : > { %v3065_v52 = vmul.f32 %v3033_v61, %v2969_v39  ;;  %v3415_v31 = vmul.f32 %v4365_v13, %v3255_v59  ;;  %v4369_v19 = vpop.eup %4368 }
 0x472   : > { %v3066_v37 = vmul.f32 %v3034_v15, %v2970_v28 }
 0x473   : > { %v3097_v30 = vadd.f32 1.4214138, %v3065_v52  ;;  %v3447_v8 = vsub.f32 1.0, %v3415_v31 }
 0x474   : > { %v3098_v60 = vadd.f32 1.4214138, %v3066_v37 }
 0x475   : > { %v3129_v17 = vmul.f32 %v3097_v30, %v2969_v39  ;;  %v3479_v50 = vmul.f32 %v3447_v8, %v2743_v2 }
 0x476   : > { %v3130_v63 = vmul.f32 %v3098_v60, %v2970_v28 }
 0x477   : > { %v3161_v44 = vadd.f32 -0.28449672, %v3129_v17  ;;  %v3511_v47 = vadd.f32 1.0, %v3479_v50 }
 0x478   : > { %v4069_v57 = vpop.f32.mrf.mxu1  ;;  %v3162_v3 = vadd.f32 -0.28449672, %v3130_v63 }
 0x479   : > { %v3193_v36 = vmul.f32 %v3161_v44, %v2969_v39  ;;  %v3543_v43 = vmul.f32 %v3511_v47, %v2647_v34  ;;  %v3717_v4 = vadd.f32 %v4069_v57, %v7482_v41 }
 0x47a   : > { %v3708_v16 = vpop.f32.mrf.mxu1  ;;  %v3194_v24 = vmul.f32 %v3162_v3, %v2970_v28 }
 0x47b   : > { %v3225_v10 = vadd.f32 0.2548296, %v3193_v36  ;;  %v3709_v6 = vadd.f32 %v7482_v41, %v3708_v16  ;;  %v3575_v38 = vadd.f32 %v3543_v43, %v7801_v12 }
 0x47c   : > { %v4070_v58 = vpop.f32.mrf.mxu1  ;;  %v3226_v54 = vadd.f32 0.2548296, %v3194_v24 }
 0x47d   : > { %v3257_v53 = vmul.f32 %v3225_v10, %v2969_v39  ;;  %3823 = vxpose.xlu0.b32.cont [5/16] (narrow) %v3709_v6, 8  ;;  %v3593_v1 = vpack.c.bf16 %v3576_v7, %v3575_v38  ;;  %v3720_v55 = vadd.f32 %v4070_v58, %v7482_v41 }
 0x47e   : > { %v3711_v27 = vpop.f32.mrf.mxu1  ;;  %v3258_v22 = vmul.f32 %v3226_v54, %v2970_v28 }
 0x47f   : > { %v3417_v45 = vmul.f32 %v4367_v23, %v3257_v53  ;;  %v3712_v46 = vadd.f32 %v7482_v41, %v3711_v27  ;;  %4091 = vmatprep.mubr.msk.bf16.mxu1 %vm1639_vm9, %v3593_v1 }
 0x480   : > { %v3418_v11 = vmul.f32 %v4369_v19, %v3258_v22 }
 0x481   : > { %v3449_v29 = vsub.f32 1.0, %v3417_v45  ;;  %3824 = vxpose.xlu0.b32.cont [6/16] (narrow) %v3712_v46, 8 }
 0x482   : > { %v3450_v49 = vsub.f32 1.0, %v3418_v11 }
 0x483   : > { %v3481_v39 = vmul.f32 %v3449_v29, %v2745_v40 }
 0x484   : > { %v3482_v14 = vmul.f32 %v3450_v49, %v2746_v9 }
 0x485   : > { %v3513_v28 = vadd.f32 1.0, %v3481_v39  ;;  %3825 = vxpose.xlu0.b32.cont [7/16] (narrow) %v3717_v4, 8 }
 0x486   : > { %v3514_v21 = vadd.f32 1.0, %v3482_v14 }
 0x487   : > { %v3545_v48 = vmul.f32 %v3513_v28, %v2649_v42 }
 0x488   : > { %v3546_v33 = vmul.f32 %v3514_v21, %v2650_v5 }
 0x489   : > { %3826 = vxpose.xlu0.b32.cont [8/16] (narrow) %v3720_v55, 8  ;;  %v3577_v61 = vadd.f32 %v3545_v48, %v7802_v56 }
 0x48a   : > { %v3578_v59 = vadd.f32 %v3546_v33, %v7803_v51 }
 0x48c   : > { %v3594_v13 = vpack.c.bf16 %v3578_v59, %v3577_v61 }
 0x48e   : > { %4092 = vmatmul.mubr.msk.bf16.gmra.mxu1 %vm1639_vm9, %v3594_v13 }
 0x49f   : > { %v4073_v18 = vpop.f32.mrf.mxu1 }
 0x4a0   : > { %v3733_v31 = vadd.f32 %v4073_v18, %v7482_v41 }
 0x4a1   : > { %v3724_v35 = vpop.f32.mrf.mxu1 }
 0x4a2   : > { %v3725_v15 = vadd.f32 %v7482_v41, %v3724_v35 }
 0x4a3   : > { %v4074_v52 = vpop.f32.mrf.mxu1 }
 0x4a4   : > { %3827 = vxpose.xlu0.b32.cont [9/16] (narrow) %v3725_v15, 8  ;;  %v3736_v37 = vadd.f32 %v4074_v52, %v7482_v41 }
 0x4a5   : > { %v3727_v0 = vpop.f32.mrf.mxu1 }
 0x4a6   : > { %v3728_v32 = vadd.f32 %v7482_v41, %v3727_v0 }
 0x4a8   : > { %3828 = vxpose.xlu0.b32.cont [10/16] (narrow) %v3728_v32, 8 }
 0x4ac   : > { %3829 = vxpose.xlu0.b32.cont [11/16] (narrow) %v3733_v31, 8 }
 0x4b0   : > { %3830 = vxpose.xlu0.b32.cont [12/16] (narrow) %v3736_v37, 8 }
 0x4c0   : > { %v4077_v30 = vpop.f32.mrf.mxu1 }
 0x4c1   : > { %v3749_v17 = vadd.f32 %v4077_v30, %v7482_v41 }
 0x4c2   : > { %v3740_v25 = vpop.f32.mrf.mxu1 }
 0x4c3   : > { %v3741_v62 = vadd.f32 %v7482_v41, %v3740_v25 }
 0x4c4   : > { %v4078_v8 = vpop.f32.mrf.mxu1 }
 0x4c5   : > { %3831 = vxpose.xlu0.b32.cont [13/16] (narrow) %v3741_v62, 8  ;;  %v3752_v26 = vadd.f32 %v4078_v8, %v7482_v41 }
 0x4c6   : > { %v3743_v2 = vpop.f32.mrf.mxu1 }
 0x4c7   : > { %v3744_v60 = vadd.f32 %v7482_v41, %v3743_v2 }
 0x4c9   : > { %3832 = vxpose.xlu0.b32.cont [14/16] (narrow) %v3744_v60, 8 }
 0x4cd   : > { %3833 = vxpose.xlu0.b32.cont [15/16] (narrow) %v3749_v17, 8 }
 0x4d1   : > { %3834 = vxpose.xlu0.b32.end [16/16] (narrow) %v3752_v26, 8 }
 0x4e6   : > { %v4081_v50 = vpop.f32.mrf.mxu1 }
 0x4e7   : > { %v3765_v3 = vadd.f32 %v4081_v50, %v7482_v41 }
 0x4e8   : > { %v3756_v63 = vpop.f32.mrf.mxu1 }
 0x4e9   : > { %v3757_v44 = vadd.f32 %v7482_v41, %v3756_v63 }
 0x4ea   : > { %v4082_v34 = vpop.f32.mrf.mxu1 }
 0x4eb   : > { %3851 = vxpose.xlu1.b32.start [1/16] (narrow) %v3757_v44, 8  ;;  %v3768_v36 = vadd.f32 %v4082_v34, %v7482_v41 }
 0x4ec   : > { %v3759_v47 = vpop.f32.mrf.mxu1 }
 0x4ed   : > { %v3760_v57 = vadd.f32 %v7482_v41, %v3759_v47 }
 0x4ef   : > { %3852 = vxpose.xlu1.b32.cont [2/16] (narrow) %v3760_v57, 8 }
 0x4f3   : > { %3853 = vxpose.xlu1.b32.cont [3/16] (narrow) %v3765_v3, 8 }
 0x4f7   : > { %3854 = vxpose.xlu1.b32.cont [4/16] (narrow) %v3768_v36, 8 }
 0x507   : > { %v4085_v20 = vpop.f32.mrf.mxu1 }
 0x508   : > { %v3781_v6 = vadd.f32 %v4085_v20, %v7482_v41 }
 0x509   : > { %v3772_v7 = vpop.f32.mrf.mxu1 }
 0x50a   : > { %v3773_v43 = vadd.f32 %v7482_v41, %v3772_v7 }
 0x50b   : > { %v4086_v16 = vpop.f32.mrf.mxu1 }
 0x50c   : > { %3855 = vxpose.xlu1.b32.cont [5/16] (narrow) %v3773_v43, 8  ;;  %v3784_v12 = vadd.f32 %v4086_v16, %v7482_v41 }
 0x50d   : > { %v3775_v24 = vpop.f32.mrf.mxu1 }
 0x50e   : > { %v3776_v10 = vadd.f32 %v7482_v41, %v3775_v24 }
 0x510   : > { %3856 = vxpose.xlu1.b32.cont [6/16] (narrow) %v3776_v10, 8 }
 0x511   : > { %v3835_v4 = vpop.trf.xlu0 }
 0x514   : > { %3857 = vxpose.xlu1.b32.cont [7/16] (narrow) %v3781_v6, 8 }
 0x518   : > { %3858 = vxpose.xlu1.b32.cont [8/16] (narrow) %v3784_v12, 8 }
 0x52a   : > { %v4089_v38 = vpop.f32.mrf.mxu1 }
 0x52b   : > { %v3797_v27 = vadd.f32 %v4089_v38, %v7482_v41 }
 0x52c   : > { %v3788_v58 = vpop.f32.mrf.mxu1 }
 0x52d   : > { %v3789_v54 = vadd.f32 %v7482_v41, %v3788_v58 }
 0x52e   : > { %v4090_v53 = vpop.f32.mrf.mxu1 }
 0x52f   : > { %3859 = vxpose.xlu1.b32.cont [9/16] (narrow) %v3789_v54, 8  ;;  %v3800_v22 = vadd.f32 %v4090_v53, %v7482_v41 }
 0x530   : > { %v3791_v23 = vpop.f32.mrf.mxu1 }
 0x531   : > { %v3792_v1 = vadd.f32 %v7482_v41, %v3791_v23 }
 0x533   : > { %3860 = vxpose.xlu1.b32.cont [10/16] (narrow) %v3792_v1, 8 }
 0x537   : > { %3861 = vxpose.xlu1.b32.cont [11/16] (narrow) %v3797_v27, 8 }
 0x53b   : > { %3862 = vxpose.xlu1.b32.cont [12/16] (narrow) %v3800_v22, 8 }
 0x54e   : > { %v4093_v45 = vpop.f32.mrf.mxu1 }
 0x54f   : > { %v3813_v49 = vadd.f32 %v4093_v45, %v7482_v41 }
 0x550   : > { %v3804_v46 = vpop.f32.mrf.mxu1 }
 0x551   : > { %v3805_v19 = vadd.f32 %v7482_v41, %v3804_v46 }
 0x552   : > { %v4094_v11 = vpop.f32.mrf.mxu1 }
 0x553   : > { %3863 = vxpose.xlu1.b32.cont [13/16] (narrow) %v3805_v19, 8  ;;  %v3816_v39 = vadd.f32 %v4094_v11, %v7482_v41 }
 0x554   : > { %v3807_v29 = vpop.f32.mrf.mxu1 }
 0x555   : > { %v3808_v40 = vadd.f32 %v7482_v41, %v3807_v29 }
 0x557   : > { %3864 = vxpose.xlu1.b32.cont [14/16] (narrow) %v3808_v40, 8 }
 0x55b   : > { %3865 = vxpose.xlu1.b32.cont [15/16] (narrow) %v3813_v49, 8 }
 0x55f   : > { %3866 = vxpose.xlu1.b32.end [16/16] (narrow) %v3816_v39, 8 }
 0x59f   : > { %v3867_v9 = vpop.trf.xlu1 }
 0x5a0   : > { %v3885_v42 = vcombine.low %v3835_v4, %v3867_v9 }
 0x5a2   : > { %3887 = vst [vmem:[%s332_s19] sm:$0xff] %v3885_v42 }
 0x5a3 PF: > { %s19_s30 = sadd.s32 1, %s4410_s30  }
 0x5a4   : > { %p16_p4 = scmp.ge.s32.totalorder %s19_s30, 4  }
 0x5a6   :  { %18 = sbr.rel (!%p16_p4) target bundleno = 1 (0x1), region = 88 }

</bundles_post_ra>
